<compile_context>
chip_gen: v5e
topology: v5e:2x2
jax: 0.10.0
libtpu: 0.0.40
codegen_flags: <defaults>
</compile_context>

<pallas_src>
import functools

import jax
import jax.numpy as jnp
import numpy as np
from jax.experimental import pallas as pl
from jax.experimental.pallas import tpu as pltpu

ROW_CHUNK = 32  # rows per unrolled chunk in the KAN elementwise/basis stage


# ----------------------------------------------------------------------------
# Fused GKAN forward kernel (grid = (1,), everything resident in VMEM)
# ----------------------------------------------------------------------------
def _gkan_kernel(x_ref, adj_ref, w_in_t_ref, w_kan_ref, w_out_t_ref, o_ref,
                 h_ref, y_ref, *, knots, k, n_kan, row_chunk):
    g = knots                       # python float tuple (compile-time consts)
    nb0 = len(g) - 1                # number of order-0 basis functions
    ncoef = nb0 - k                 # number of final basis fns / coefficients

    # ---- input stage (reassociated):  h = (A @ X) @ W_in^T -----------------
    # D=16 < H=32, so contracting D first is ~40% fewer MACs than A@(X@Win^T).
    ax = jnp.dot(adj_ref[...], x_ref[...], preferred_element_type=jnp.float32)
    h_ref[...] = jnp.dot(ax, w_in_t_ref[...],
                         preferred_element_type=jnp.float32)
    # dropout -> identity (eval semantics)

    n_rows = h_ref.shape[0]

    # ---- (num_layers - 1) x [ KAN layer ; A @ h ] ---------------------------
    for layer in range(n_kan):
        for c0 in range(0, n_rows, row_chunk):
            xc = h_ref[pl.ds(c0, row_chunk), :]              # (rc, H)

            # SiLU via tanh identity (EUP transcendental, no VALU divide):
            #   sigmoid(x) = 0.5 * (tanh(x/2) + 1)
            base = xc * (0.5 * (jnp.tanh(0.5 * xc) + 1.0))

            # order-0 B-spline basis from shared step comparisons:
            #   B0_j = [x >= g_j] - [x >= g_{j+1}]  (half-open indicator)
            ge_prev = (xc >= g[0]).astype(jnp.float32)
            B = []
            for j in range(nb0):
                ge_next = (xc >= g[j + 1]).astype(jnp.float32)
                B.append(ge_prev - ge_next)
                ge_prev = ge_next

            # Cox-de-Boor recursion; reciprocal constants folded at trace time
            for p in range(1, k + 1):
                B = [
                    (xc - g[j]) * (1.0 / (g[j + p] - g[j])) * B[j]
                    + (g[j + p + 1] - xc)
                    * (1.0 / (g[j + p + 1] - g[j + 1])) * B[j + 1]
                    for j in range(len(B) - 1)
                ]

            # Per-coefficient MXU accumulation (no lane-axis concatenate):
            #   y = silu(h) @ Wb + sum_c B_c(h) @ Wc
            acc = jnp.dot(base, w_kan_ref[layer, 0],
                          preferred_element_type=jnp.float32)
            for c in range(ncoef):
                acc = acc + jnp.dot(B[c], w_kan_ref[layer, c + 1],
                                    preferred_element_type=jnp.float32)
            y_ref[pl.ds(c0, row_chunk), :] = acc

        if layer + 1 < n_kan:
            # aggregation: h = A @ KAN(h)   (dropout -> identity, eval)
            h_ref[...] = jnp.dot(adj_ref[...], y_ref[...],
                                 preferred_element_type=jnp.float32)

    # ---- output stage --------------------------------------------------------
    if n_kan > 0:
        # Reassociated last layer: logits = A @ (y @ W_out^T); C=4 << H=32 so
        # contracting C first cuts the output-stage MACs ~5-6x.
        z = jnp.dot(y_ref[...], w_out_t_ref[...],
                    preferred_element_type=jnp.float32)
        logits = jnp.dot(adj_ref[...], z, preferred_element_type=jnp.float32)
    else:
        logits = jnp.dot(h_ref[...], w_out_t_ref[...],
                         preferred_element_type=jnp.float32)

    m = jnp.max(logits, axis=-1, keepdims=True)
    zc = logits - m
    lse = jnp.log(jnp.sum(jnp.exp(zc), axis=-1, keepdims=True))
    o_ref[...] = zc - lse


def gkan_forward(x, adj, w_in_t, w_kan_all, w_out_t, knots, k,
                 row_chunk=ROW_CHUNK):
    """Fused GKAN forward.  All operands f32 (bf16 MXU casting from the v5e
    suggestion intentionally skipped to keep accuracy headroom)."""
    N, D = x.shape
    H = w_in_t.shape[1]
    L, NC1, _, _ = w_kan_all.shape   # (layers, 1 + ncoef, H, H)
    C = w_out_t.shape[1]
    assert N % row_chunk == 0, "N must be a multiple of ROW_CHUNK"

    kern = functools.partial(_gkan_kernel, knots=knots, k=k,
                             n_kan=L, row_chunk=row_chunk)
    return pl.pallas_call(
        kern,
        out_shape=jax.ShapeDtypeStruct((N, C), jnp.float32),
        grid_spec=pltpu.PrefetchScalarGridSpec(
            num_scalar_prefetch=0,
            grid=(1,),
            in_specs=[
                pl.BlockSpec((N, D), lambda i: (0, 0)),              # x
                pl.BlockSpec((N, N), lambda i: (0, 0)),              # adj
                pl.BlockSpec((D, H), lambda i: (0, 0)),              # W_in^T
                pl.BlockSpec((L, NC1, H, H), lambda i: (0, 0, 0, 0)),  # KAN W
                pl.BlockSpec((H, C), lambda i: (0, 0)),              # W_out^T
            ],
            out_specs=pl.BlockSpec((N, C), lambda i: (0, 0)),
            scratch_shapes=[
                pltpu.VMEM((N, H), jnp.float32),   # h (resident activations)
                pltpu.VMEM((N, H), jnp.float32),   # y (KAN layer output)
            ]),
        # grid=(1,): nothing to pipeline.  For large N (esp. v7x's 64 MiB
        # VMEM) tile adj over column blocks and add a "parallel" row-block
        # axis over the KAN stage so both TensorCores are used.
        compiler_params=pltpu.CompilerParams(
            dimension_semantics=("arbitrary",)),
    )(x, adj, w_in_t, w_kan_all, w_out_t)


# ----------------------------------------------------------------------------
# Pure-JAX reference (same math, HIGHEST-precision matmuls) for correctness
# ----------------------------------------------------------------------------
def gkan_reference(x, adj, w_in, layer_params, w_out, knots, k):
    dot = functools.partial(jnp.dot, precision=jax.lax.Precision.HIGHEST)
    h = dot(x, w_in.T)
    h = dot(adj, h)
    for (wbase_t, coef_t) in layer_params:
        base = h * jax.nn.sigmoid(h)
        y = dot(base, wbase_t)
        B = [jnp.where((h >= knots[j]) & (h < knots[j + 1]), 1.0, 0.0)
             for j in range(len(knots) - 1)]
        for p in range(1, k + 1):
            B = [(h - knots[j]) / (knots[j + p] - knots[j]) * B[j]
                 + (knots[j + p + 1] - h)
                 / (knots[j + p + 1] - knots[j + 1]) * B[j + 1]
                 for j in range(len(B) - 1)]
        for c in range(len(B)):
            y = y + dot(B[c], coef_t[c])
        h = dot(adj, y)
    logits = dot(h, w_out.T)
    return jax.nn.log_softmax(logits, axis=-1)


if __name__ == "__main__":
    # --------------------------- problem sizes -----------------------------
    N = 64            # num nodes
    D = 16            # input feature dim (dataset.x.shape[1])
    H = 32            # hidden_dim
    C = 4             # output_dim = number of classes
    NUM_LAYERS = 3    # num_layers -> (NUM_LAYERS - 1) KAN layers in forward
    GRID = 5          # grid_size
    K = 3             # order (cubic splines)
    NCOEF = GRID + K  # number of B-spline basis functions / coefficients
    E = 256           # number of edges

    # Extended B-spline knot vector for grid_range=[-1, 1], num=GRID, k=K
    h_step = 2.0 / GRID
    base_knots = np.linspace(-1.0, 1.0, GRID + 1)
    ext = np.concatenate([base_knots[0] - h_step * np.arange(K, 0, -1),
                          base_knots,
                          base_knots[-1] + h_step * np.arange(1, K + 1)])
    KNOTS = tuple(float(v) for v in ext)            # length GRID+1+2K = 12

    # --------------------------- deterministic data -------------------------
    key = jax.random.PRNGKey(0)
    ks = jax.random.split(key, 4 + (NUM_LAYERS - 1))

    x = jax.random.normal(ks[0], (N, D), dtype=jnp.float32)
    edge_index = jax.random.randint(ks[1], (2, E), 0, N)
    # dense adjacency, duplicate edges summed (== sparse_coo_tensor of ones)
    adj = jnp.zeros((N, N), jnp.float32).at[edge_index[0],
                                            edge_index[1]].add(1.0)

    # Weight scales are chosen so activations stay O(1) through all layers:
    # the f32 comparison is then numerically meaningful, the spline grid
    # range [-1, 1] is actually exercised, and log_softmax does not saturate.
    w_in = 0.2 * jax.random.normal(ks[2], (H, D), dtype=jnp.float32)   # (H,D)
    w_out = 0.2 * jax.random.normal(ks[3], (C, H), dtype=jnp.float32)  # (C,H)

    layer_params = []     # for the pure-JAX reference
    w_kan_list = []       # per-layer (1+NCOEF, H, H) weights for the kernel
    for layer_idx in range(NUM_LAYERS - 1):
        kb, kc, ksp = jax.random.split(ks[4 + layer_idx], 3)
        coef = 0.3 * jax.random.normal(kc, (H, H, NCOEF), dtype=jnp.float32)
        scale_base = 0.1 * jax.random.normal(kb, (H, H), dtype=jnp.float32)
        scale_sp = 1.0 + 0.1 * jax.random.normal(ksp, (H, H), dtype=jnp.float32)
        mask = jnp.ones((H, H), jnp.float32)
        # fold scales/mask into the weights consumed by the kernel
        wbase_t = (scale_base * mask).T                         # (H_in, H_out)
        coef_scaled = coef * (scale_sp * mask)[:, :, None]
        coef_t = jnp.transpose(coef_scaled, (2, 1, 0))          # (ncoef, Hi, Ho)
        layer_params.append((wbase_t, coef_t))
        # kernel weights: slice 0 = silu path, slice c+1 = spline coefficient c
        w_kan_list.append(jnp.concatenate([wbase_t[None], coef_t], axis=0))
    w_kan_all = jnp.stack(w_kan_list, axis=0)           # (L, NCOEF+1, H, H)

    # --------------------------- run + verify -------------------------------
    out = gkan_forward(x, adj, w_in.T, w_kan_all, w_out.T, KNOTS, K)
    out = jax.block_until_ready(out)

    ref = gkan_reference(x, adj, w_in, layer_params, w_out, KNOTS, K)
    ref = jax.block_until_ready(ref)

    assert out.shape == (N, C)
    # 1e-3 covers MXU multi-pass f32 rounding differences between the
    # in-kernel dots and the HIGHEST-precision XLA reference; structural
    # errors would be orders of magnitude larger at these O(1) activations.
    np.testing.assert_allclose(np.asarray(out), np.asarray(ref),
                               rtol=1e-3, atol=1e-3)
    print("KERNEL_OK")
</pallas_src>

<mosaic_0001>
module attributes {stable_mosaic.version = 11 : i64} {
  func.func @_gkan_kernel(%arg0: i32, %arg1: memref<64x16xf32, #tpu.memory_space<vmem>>, %arg2: memref<64x64xf32, #tpu.memory_space<vmem>>, %arg3: memref<16x32xf32, #tpu.memory_space<vmem>>, %arg4: memref<2x9x32x32xf32, #tpu.memory_space<vmem>>, %arg5: memref<32x4xf32, #tpu.memory_space<vmem>>, %arg6: memref<64x4xf32, #tpu.memory_space<vmem>>, %arg7: memref<64x32xf32, #tpu.memory_space<vmem>>, %arg8: memref<64x32xf32, #tpu.memory_space<vmem>>) attributes {dimension_semantics = [#tpu.dimension_semantics<arbitrary>], iteration_bounds = array<i64: 1>, scalar_prefetch = 0 : i64, scratch_operands = 2 : i64, tpu.core_type = #tpu.core_type<tc>, window_params = [{pipeline_mode = #tpu.pipeline_mode<synchronous>, transform_indices = @transform_0, window_bounds = array<i64: 64, 16>}, {pipeline_mode = #tpu.pipeline_mode<synchronous>, transform_indices = @transform_1, window_bounds = array<i64: 64, 64>}, {pipeline_mode = #tpu.pipeline_mode<synchronous>, transform_indices = @transform_2, window_bounds = array<i64: 16, 32>}, {pipeline_mode = #tpu.pipeline_mode<synchronous>, transform_indices = @transform_3, window_bounds = array<i64: 2, 9, 32, 32>}, {pipeline_mode = #tpu.pipeline_mode<synchronous>, transform_indices = @transform_4, window_bounds = array<i64: 32, 4>}, {pipeline_mode = #tpu.pipeline_mode<synchronous>, transform_indices = @transform_5, window_bounds = array<i64: 64, 4>}]} {
    %c0 = arith.constant 0 : index
    %c0_0 = arith.constant 0 : index
    %0 = vector.load %arg2[%c0, %c0_0] : memref<64x64xf32, #tpu.memory_space<vmem>>, vector<64x64xf32>
    %c0_1 = arith.constant 0 : index
    %c0_2 = arith.constant 0 : index
    %1 = vector.load %arg1[%c0_1, %c0_2] : memref<64x16xf32, #tpu.memory_space<vmem>>, vector<64x16xf32>
    %cst = arith.constant dense<0.000000e+00> : vector<64x16xf32>
    %2 = tpu.matmul %0, %1, %cst {dimension_numbers = #tpu.dot_dimension_numbers<[1], [0], [0], [1], [0, 0, 1, 1], [], []>} : vector<64x64xf32>, vector<64x16xf32>, vector<64x16xf32> -> vector<64x16xf32>
    %c0_3 = arith.constant 0 : index
    %c0_4 = arith.constant 0 : index
    %3 = vector.load %arg3[%c0_3, %c0_4] : memref<16x32xf32, #tpu.memory_space<vmem>>, vector<16x32xf32>
    %cst_5 = arith.constant dense<0.000000e+00> : vector<64x32xf32>
    %4 = tpu.matmul %2, %3, %cst_5 {dimension_numbers = #tpu.dot_dimension_numbers<[1], [0], [0], [1], [0, 0, 1, 1], [], []>} : vector<64x16xf32>, vector<16x32xf32>, vector<64x32xf32> -> vector<64x32xf32>
    %c0_6 = arith.constant 0 : index
    %c0_7 = arith.constant 0 : index
    %5 = vector.load %arg7[%c0_6, %c0_7] : memref<64x32xf32, #tpu.memory_space<vmem>>, vector<64x32xf32>
    tpu.vector_store %arg7[%c0_6, %c0_7], %4 {strides = array<i32>} : memref<64x32xf32, #tpu.memory_space<vmem>>, vector<64x32xf32>,
    %c0_8 = arith.constant 0 : index
    %c0_9 = arith.constant 0 : index
    %6 = vector.load %arg7[%c0_8, %c0_9] : memref<64x32xf32, #tpu.memory_space<vmem>>, vector<32x32xf32>
    %cst_10 = arith.constant 5.000000e-01 : f32
    %7 = vector.broadcast %cst_10 : f32 to vector<32x32xf32>
    %8 = arith.mulf %7, %6 : vector<32x32xf32>
    %9 = math.tanh %8 : vector<32x32xf32>
    %cst_11 = arith.constant 1.000000e+00 : f32
    %10 = vector.broadcast %cst_11 : f32 to vector<32x32xf32>
    %11 = arith.addf %9, %10 : vector<32x32xf32>
    %cst_12 = arith.constant 5.000000e-01 : f32
    %12 = vector.broadcast %cst_12 : f32 to vector<32x32xf32>
    %13 = arith.mulf %12, %11 : vector<32x32xf32>
    %14 = arith.mulf %6, %13 : vector<32x32xf32>
    %cst_13 = arith.constant -2.200000e+00 : f32
    %15 = vector.broadcast %cst_13 : f32 to vector<32x32xf32>
    %16 = arith.cmpf oge, %6, %15 : vector<32x32xf32>
    %17 = arith.extui %16 : vector<32x32xi1> to vector<32x32xi32>
    %18 = arith.sitofp %17 : vector<32x32xi32> to vector<32x32xf32>
    %cst_14 = arith.constant -1.800000e+00 : f32
    %19 = vector.broadcast %cst_14 : f32 to vector<32x32xf32>
    %20 = arith.cmpf oge, %6, %19 : vector<32x32xf32>
    %21 = arith.extui %20 : vector<32x32xi1> to vector<32x32xi32>
    %22 = arith.sitofp %21 : vector<32x32xi32> to vector<32x32xf32>
    %23 = arith.subf %18, %22 : vector<32x32xf32>
    %cst_15 = arith.constant -1.400000e+00 : f32
    %24 = vector.broadcast %cst_15 : f32 to vector<32x32xf32>
    %25 = arith.cmpf oge, %6, %24 : vector<32x32xf32>
    %26 = arith.extui %25 : vector<32x32xi1> to vector<32x32xi32>
    %27 = arith.sitofp %26 : vector<32x32xi32> to vector<32x32xf32>
    %28 = arith.subf %22, %27 : vector<32x32xf32>
    %cst_16 = arith.constant -1.000000e+00 : f32
    %29 = vector.broadcast %cst_16 : f32 to vector<32x32xf32>
    %30 = arith.cmpf oge, %6, %29 : vector<32x32xf32>
    %31 = arith.extui %30 : vector<32x32xi1> to vector<32x32xi32>
    %32 = arith.sitofp %31 : vector<32x32xi32> to vector<32x32xf32>
    %33 = arith.subf %27, %32 : vector<32x32xf32>
    %cst_17 = arith.constant -6.000000e-01 : f32
    %34 = vector.broadcast %cst_17 : f32 to vector<32x32xf32>
    %35 = arith.cmpf oge, %6, %34 : vector<32x32xf32>
    %36 = arith.extui %35 : vector<32x32xi1> to vector<32x32xi32>
    %37 = arith.sitofp %36 : vector<32x32xi32> to vector<32x32xf32>
    %38 = arith.subf %32, %37 : vector<32x32xf32>
    %cst_18 = arith.constant -2.000000e-01 : f32
    %39 = vector.broadcast %cst_18 : f32 to vector<32x32xf32>
    %40 = arith.cmpf oge, %6, %39 : vector<32x32xf32>
    %41 = arith.extui %40 : vector<32x32xi1> to vector<32x32xi32>
    %42 = arith.sitofp %41 : vector<32x32xi32> to vector<32x32xf32>
    %43 = arith.subf %37, %42 : vector<32x32xf32>
    %cst_19 = arith.constant 2.000000e-01 : f32
    %44 = vector.broadcast %cst_19 : f32 to vector<32x32xf32>
    %45 = arith.cmpf oge, %6, %44 : vector<32x32xf32>
    %46 = arith.extui %45 : vector<32x32xi1> to vector<32x32xi32>
    %47 = arith.sitofp %46 : vector<32x32xi32> to vector<32x32xf32>
    %48 = arith.subf %42, %47 : vector<32x32xf32>
    %cst_20 = arith.constant 6.000000e-01 : f32
    %49 = vector.broadcast %cst_20 : f32 to vector<32x32xf32>
    %50 = arith.cmpf oge, %6, %49 : vector<32x32xf32>
    %51 = arith.extui %50 : vector<32x32xi1> to vector<32x32xi32>
    %52 = arith.sitofp %51 : vector<32x32xi32> to vector<32x32xf32>
    %53 = arith.subf %47, %52 : vector<32x32xf32>
    %cst_21 = arith.constant 1.000000e+00 : f32
    %54 = vector.broadcast %cst_21 : f32 to vector<32x32xf32>
    %55 = arith.cmpf oge, %6, %54 : vector<32x32xf32>
    %56 = arith.extui %55 : vector<32x32xi1> to vector<32x32xi32>
    %57 = arith.sitofp %56 : vector<32x32xi32> to vector<32x32xf32>
    %58 = arith.subf %52, %57 : vector<32x32xf32>
    %cst_22 = arith.constant 1.400000e+00 : f32
    %59 = vector.broadcast %cst_22 : f32 to vector<32x32xf32>
    %60 = arith.cmpf oge, %6, %59 : vector<32x32xf32>
    %61 = arith.extui %60 : vector<32x32xi1> to vector<32x32xi32>
    %62 = arith.sitofp %61 : vector<32x32xi32> to vector<32x32xf32>
    %63 = arith.subf %57, %62 : vector<32x32xf32>
    %cst_23 = arith.constant 1.800000e+00 : f32
    %64 = vector.broadcast %cst_23 : f32 to vector<32x32xf32>
    %65 = arith.cmpf oge, %6, %64 : vector<32x32xf32>
    %66 = arith.extui %65 : vector<32x32xi1> to vector<32x32xi32>
    %67 = arith.sitofp %66 : vector<32x32xi32> to vector<32x32xf32>
    %68 = arith.subf %62, %67 : vector<32x32xf32>
    %cst_24 = arith.constant 2.200000e+00 : f32
    %69 = vector.broadcast %cst_24 : f32 to vector<32x32xf32>
    %70 = arith.cmpf oge, %6, %69 : vector<32x32xf32>
    %71 = arith.extui %70 : vector<32x32xi1> to vector<32x32xi32>
    %72 = arith.sitofp %71 : vector<32x32xi32> to vector<32x32xf32>
    %73 = arith.subf %67, %72 : vector<32x32xf32>
    %cst_25 = arith.constant -2.200000e+00 : f32
    %74 = vector.broadcast %cst_25 : f32 to vector<32x32xf32>
    %75 = arith.subf %6, %74 : vector<32x32xf32>
    %cst_26 = arith.constant 2.500000e+00 : f32
    %76 = vector.broadcast %cst_26 : f32 to vector<32x32xf32>
    %77 = arith.mulf %75, %76 : vector<32x32xf32>
    %78 = arith.mulf %77, %23 : vector<32x32xf32>
    %cst_27 = arith.constant -1.400000e+00 : f32
    %79 = vector.broadcast %cst_27 : f32 to vector<32x32xf32>
    %80 = arith.subf %79, %6 : vector<32x32xf32>
    %cst_28 = arith.constant 2.500000e+00 : f32
    %81 = vector.broadcast %cst_28 : f32 to vector<32x32xf32>
    %82 = arith.mulf %80, %81 : vector<32x32xf32>
    %83 = arith.mulf %82, %28 : vector<32x32xf32>
    %84 = arith.addf %78, %83 : vector<32x32xf32>
    %cst_29 = arith.constant -1.800000e+00 : f32
    %85 = vector.broadcast %cst_29 : f32 to vector<32x32xf32>
    %86 = arith.subf %6, %85 : vector<32x32xf32>
    %cst_30 = arith.constant 2.500000e+00 : f32
    %87 = vector.broadcast %cst_30 : f32 to vector<32x32xf32>
    %88 = arith.mulf %86, %87 : vector<32x32xf32>
    %89 = arith.mulf %88, %28 : vector<32x32xf32>
    %cst_31 = arith.constant -1.000000e+00 : f32
    %90 = vector.broadcast %cst_31 : f32 to vector<32x32xf32>
    %91 = arith.subf %90, %6 : vector<32x32xf32>
    %cst_32 = arith.constant 2.500000e+00 : f32
    %92 = vector.broadcast %cst_32 : f32 to vector<32x32xf32>
    %93 = arith.mulf %91, %92 : vector<32x32xf32>
    %94 = arith.mulf %93, %33 : vector<32x32xf32>
    %95 = arith.addf %89, %94 : vector<32x32xf32>
    %cst_33 = arith.constant -1.400000e+00 : f32
    %96 = vector.broadcast %cst_33 : f32 to vector<32x32xf32>
    %97 = arith.subf %6, %96 : vector<32x32xf32>
    %cst_34 = arith.constant 2.500000e+00 : f32
    %98 = vector.broadcast %cst_34 : f32 to vector<32x32xf32>
    %99 = arith.mulf %97, %98 : vector<32x32xf32>
    %100 = arith.mulf %99, %33 : vector<32x32xf32>
    %cst_35 = arith.constant -6.000000e-01 : f32
    %101 = vector.broadcast %cst_35 : f32 to vector<32x32xf32>
    %102 = arith.subf %101, %6 : vector<32x32xf32>
    %cst_36 = arith.constant 2.500000e+00 : f32
    %103 = vector.broadcast %cst_36 : f32 to vector<32x32xf32>
    %104 = arith.mulf %102, %103 : vector<32x32xf32>
    %105 = arith.mulf %104, %38 : vector<32x32xf32>
    %106 = arith.addf %100, %105 : vector<32x32xf32>
    %cst_37 = arith.constant -1.000000e+00 : f32
    %107 = vector.broadcast %cst_37 : f32 to vector<32x32xf32>
    %108 = arith.subf %6, %107 : vector<32x32xf32>
    %cst_38 = arith.constant 2.500000e+00 : f32
    %109 = vector.broadcast %cst_38 : f32 to vector<32x32xf32>
    %110 = arith.mulf %108, %109 : vector<32x32xf32>
    %111 = arith.mulf %110, %38 : vector<32x32xf32>
    %cst_39 = arith.constant -2.000000e-01 : f32
    %112 = vector.broadcast %cst_39 : f32 to vector<32x32xf32>
    %113 = arith.subf %112, %6 : vector<32x32xf32>
    %cst_40 = arith.constant 2.500000e+00 : f32
    %114 = vector.broadcast %cst_40 : f32 to vector<32x32xf32>
    %115 = arith.mulf %113, %114 : vector<32x32xf32>
    %116 = arith.mulf %115, %43 : vector<32x32xf32>
    %117 = arith.addf %111, %116 : vector<32x32xf32>
    %cst_41 = arith.constant -6.000000e-01 : f32
    %118 = vector.broadcast %cst_41 : f32 to vector<32x32xf32>
    %119 = arith.subf %6, %118 : vector<32x32xf32>
    %cst_42 = arith.constant 2.500000e+00 : f32
    %120 = vector.broadcast %cst_42 : f32 to vector<32x32xf32>
    %121 = arith.mulf %119, %120 : vector<32x32xf32>
    %122 = arith.mulf %121, %43 : vector<32x32xf32>
    %cst_43 = arith.constant 2.000000e-01 : f32
    %123 = vector.broadcast %cst_43 : f32 to vector<32x32xf32>
    %124 = arith.subf %123, %6 : vector<32x32xf32>
    %cst_44 = arith.constant 2.500000e+00 : f32
    %125 = vector.broadcast %cst_44 : f32 to vector<32x32xf32>
    %126 = arith.mulf %124, %125 : vector<32x32xf32>
    %127 = arith.mulf %126, %48 : vector<32x32xf32>
    %128 = arith.addf %122, %127 : vector<32x32xf32>
    %cst_45 = arith.constant -2.000000e-01 : f32
    %129 = vector.broadcast %cst_45 : f32 to vector<32x32xf32>
    %130 = arith.subf %6, %129 : vector<32x32xf32>
    %cst_46 = arith.constant 2.500000e+00 : f32
    %131 = vector.broadcast %cst_46 : f32 to vector<32x32xf32>
    %132 = arith.mulf %130, %131 : vector<32x32xf32>
    %133 = arith.mulf %132, %48 : vector<32x32xf32>
    %cst_47 = arith.constant 6.000000e-01 : f32
    %134 = vector.broadcast %cst_47 : f32 to vector<32x32xf32>
    %135 = arith.subf %134, %6 : vector<32x32xf32>
    %cst_48 = arith.constant 2.500000e+00 : f32
    %136 = vector.broadcast %cst_48 : f32 to vector<32x32xf32>
    %137 = arith.mulf %135, %136 : vector<32x32xf32>
    %138 = arith.mulf %137, %53 : vector<32x32xf32>
    %139 = arith.addf %133, %138 : vector<32x32xf32>
    %cst_49 = arith.constant 2.000000e-01 : f32
    %140 = vector.broadcast %cst_49 : f32 to vector<32x32xf32>
    %141 = arith.subf %6, %140 : vector<32x32xf32>
    %cst_50 = arith.constant 2.500000e+00 : f32
    %142 = vector.broadcast %cst_50 : f32 to vector<32x32xf32>
    %143 = arith.mulf %141, %142 : vector<32x32xf32>
    %144 = arith.mulf %143, %53 : vector<32x32xf32>
    %cst_51 = arith.constant 1.000000e+00 : f32
    %145 = vector.broadcast %cst_51 : f32 to vector<32x32xf32>
    %146 = arith.subf %145, %6 : vector<32x32xf32>
    %cst_52 = arith.constant 2.500000e+00 : f32
    %147 = vector.broadcast %cst_52 : f32 to vector<32x32xf32>
    %148 = arith.mulf %146, %147 : vector<32x32xf32>
    %149 = arith.mulf %148, %58 : vector<32x32xf32>
    %150 = arith.addf %144, %149 : vector<32x32xf32>
    %cst_53 = arith.constant 6.000000e-01 : f32
    %151 = vector.broadcast %cst_53 : f32 to vector<32x32xf32>
    %152 = arith.subf %6, %151 : vector<32x32xf32>
    %cst_54 = arith.constant 2.500000e+00 : f32
    %153 = vector.broadcast %cst_54 : f32 to vector<32x32xf32>
    %154 = arith.mulf %152, %153 : vector<32x32xf32>
    %155 = arith.mulf %154, %58 : vector<32x32xf32>
    %cst_55 = arith.constant 1.400000e+00 : f32
    %156 = vector.broadcast %cst_55 : f32 to vector<32x32xf32>
    %157 = arith.subf %156, %6 : vector<32x32xf32>
    %cst_56 = arith.constant 2.500000e+00 : f32
    %158 = vector.broadcast %cst_56 : f32 to vector<32x32xf32>
    %159 = arith.mulf %157, %158 : vector<32x32xf32>
    %160 = arith.mulf %159, %63 : vector<32x32xf32>
    %161 = arith.addf %155, %160 : vector<32x32xf32>
    %cst_57 = arith.constant 1.000000e+00 : f32
    %162 = vector.broadcast %cst_57 : f32 to vector<32x32xf32>
    %163 = arith.subf %6, %162 : vector<32x32xf32>
    %cst_58 = arith.constant 2.500000e+00 : f32
    %164 = vector.broadcast %cst_58 : f32 to vector<32x32xf32>
    %165 = arith.mulf %163, %164 : vector<32x32xf32>
    %166 = arith.mulf %165, %63 : vector<32x32xf32>
    %cst_59 = arith.constant 1.800000e+00 : f32
    %167 = vector.broadcast %cst_59 : f32 to vector<32x32xf32>
    %168 = arith.subf %167, %6 : vector<32x32xf32>
    %cst_60 = arith.constant 2.500000e+00 : f32
    %169 = vector.broadcast %cst_60 : f32 to vector<32x32xf32>
    %170 = arith.mulf %168, %169 : vector<32x32xf32>
    %171 = arith.mulf %170, %68 : vector<32x32xf32>
    %172 = arith.addf %166, %171 : vector<32x32xf32>
    %cst_61 = arith.constant 1.400000e+00 : f32
    %173 = vector.broadcast %cst_61 : f32 to vector<32x32xf32>
    %174 = arith.subf %6, %173 : vector<32x32xf32>
    %cst_62 = arith.constant 2.500000e+00 : f32
    %175 = vector.broadcast %cst_62 : f32 to vector<32x32xf32>
    %176 = arith.mulf %174, %175 : vector<32x32xf32>
    %177 = arith.mulf %176, %68 : vector<32x32xf32>
    %cst_63 = arith.constant 2.200000e+00 : f32
    %178 = vector.broadcast %cst_63 : f32 to vector<32x32xf32>
    %179 = arith.subf %178, %6 : vector<32x32xf32>
    %cst_64 = arith.constant 2.500000e+00 : f32
    %180 = vector.broadcast %cst_64 : f32 to vector<32x32xf32>
    %181 = arith.mulf %179, %180 : vector<32x32xf32>
    %182 = arith.mulf %181, %73 : vector<32x32xf32>
    %183 = arith.addf %177, %182 : vector<32x32xf32>
    %cst_65 = arith.constant -2.200000e+00 : f32
    %184 = vector.broadcast %cst_65 : f32 to vector<32x32xf32>
    %185 = arith.subf %6, %184 : vector<32x32xf32>
    %cst_66 = arith.constant 1.250000e+00 : f32
    %186 = vector.broadcast %cst_66 : f32 to vector<32x32xf32>
    %187 = arith.mulf %185, %186 : vector<32x32xf32>
    %188 = arith.mulf %187, %84 : vector<32x32xf32>
    %cst_67 = arith.constant -1.000000e+00 : f32
    %189 = vector.broadcast %cst_67 : f32 to vector<32x32xf32>
    %190 = arith.subf %189, %6 : vector<32x32xf32>
    %cst_68 = arith.constant 1.250000e+00 : f32
    %191 = vector.broadcast %cst_68 : f32 to vector<32x32xf32>
    %192 = arith.mulf %190, %191 : vector<32x32xf32>
    %193 = arith.mulf %192, %95 : vector<32x32xf32>
    %194 = arith.addf %188, %193 : vector<32x32xf32>
    %cst_69 = arith.constant -1.800000e+00 : f32
    %195 = vector.broadcast %cst_69 : f32 to vector<32x32xf32>
    %196 = arith.subf %6, %195 : vector<32x32xf32>
    %cst_70 = arith.constant 1.250000e+00 : f32
    %197 = vector.broadcast %cst_70 : f32 to vector<32x32xf32>
    %198 = arith.mulf %196, %197 : vector<32x32xf32>
    %199 = arith.mulf %198, %95 : vector<32x32xf32>
    %cst_71 = arith.constant -6.000000e-01 : f32
    %200 = vector.broadcast %cst_71 : f32 to vector<32x32xf32>
    %201 = arith.subf %200, %6 : vector<32x32xf32>
    %cst_72 = arith.constant 1.250000e+00 : f32
    %202 = vector.broadcast %cst_72 : f32 to vector<32x32xf32>
    %203 = arith.mulf %201, %202 : vector<32x32xf32>
    %204 = arith.mulf %203, %106 : vector<32x32xf32>
    %205 = arith.addf %199, %204 : vector<32x32xf32>
    %cst_73 = arith.constant -1.400000e+00 : f32
    %206 = vector.broadcast %cst_73 : f32 to vector<32x32xf32>
    %207 = arith.subf %6, %206 : vector<32x32xf32>
    %cst_74 = arith.constant 1.250000e+00 : f32
    %208 = vector.broadcast %cst_74 : f32 to vector<32x32xf32>
    %209 = arith.mulf %207, %208 : vector<32x32xf32>
    %210 = arith.mulf %209, %106 : vector<32x32xf32>
    %cst_75 = arith.constant -2.000000e-01 : f32
    %211 = vector.broadcast %cst_75 : f32 to vector<32x32xf32>
    %212 = arith.subf %211, %6 : vector<32x32xf32>
    %cst_76 = arith.constant 1.250000e+00 : f32
    %213 = vector.broadcast %cst_76 : f32 to vector<32x32xf32>
    %214 = arith.mulf %212, %213 : vector<32x32xf32>
    %215 = arith.mulf %214, %117 : vector<32x32xf32>
    %216 = arith.addf %210, %215 : vector<32x32xf32>
    %cst_77 = arith.constant -1.000000e+00 : f32
    %217 = vector.broadcast %cst_77 : f32 to vector<32x32xf32>
    %218 = arith.subf %6, %217 : vector<32x32xf32>
    %cst_78 = arith.constant 1.250000e+00 : f32
    %219 = vector.broadcast %cst_78 : f32 to vector<32x32xf32>
    %220 = arith.mulf %218, %219 : vector<32x32xf32>
    %221 = arith.mulf %220, %117 : vector<32x32xf32>
    %cst_79 = arith.constant 2.000000e-01 : f32
    %222 = vector.broadcast %cst_79 : f32 to vector<32x32xf32>
    %223 = arith.subf %222, %6 : vector<32x32xf32>
    %cst_80 = arith.constant 1.250000e+00 : f32
    %224 = vector.broadcast %cst_80 : f32 to vector<32x32xf32>
    %225 = arith.mulf %223, %224 : vector<32x32xf32>
    %226 = arith.mulf %225, %128 : vector<32x32xf32>
    %227 = arith.addf %221, %226 : vector<32x32xf32>
    %cst_81 = arith.constant -6.000000e-01 : f32
    %228 = vector.broadcast %cst_81 : f32 to vector<32x32xf32>
    %229 = arith.subf %6, %228 : vector<32x32xf32>
    %cst_82 = arith.constant 1.250000e+00 : f32
    %230 = vector.broadcast %cst_82 : f32 to vector<32x32xf32>
    %231 = arith.mulf %229, %230 : vector<32x32xf32>
    %232 = arith.mulf %231, %128 : vector<32x32xf32>
    %cst_83 = arith.constant 6.000000e-01 : f32
    %233 = vector.broadcast %cst_83 : f32 to vector<32x32xf32>
    %234 = arith.subf %233, %6 : vector<32x32xf32>
    %cst_84 = arith.constant 1.250000e+00 : f32
    %235 = vector.broadcast %cst_84 : f32 to vector<32x32xf32>
    %236 = arith.mulf %234, %235 : vector<32x32xf32>
    %237 = arith.mulf %236, %139 : vector<32x32xf32>
    %238 = arith.addf %232, %237 : vector<32x32xf32>
    %cst_85 = arith.constant -2.000000e-01 : f32
    %239 = vector.broadcast %cst_85 : f32 to vector<32x32xf32>
    %240 = arith.subf %6, %239 : vector<32x32xf32>
    %cst_86 = arith.constant 1.250000e+00 : f32
    %241 = vector.broadcast %cst_86 : f32 to vector<32x32xf32>
    %242 = arith.mulf %240, %241 : vector<32x32xf32>
    %243 = arith.mulf %242, %139 : vector<32x32xf32>
    %cst_87 = arith.constant 1.000000e+00 : f32
    %244 = vector.broadcast %cst_87 : f32 to vector<32x32xf32>
    %245 = arith.subf %244, %6 : vector<32x32xf32>
    %cst_88 = arith.constant 1.250000e+00 : f32
    %246 = vector.broadcast %cst_88 : f32 to vector<32x32xf32>
    %247 = arith.mulf %245, %246 : vector<32x32xf32>
    %248 = arith.mulf %247, %150 : vector<32x32xf32>
    %249 = arith.addf %243, %248 : vector<32x32xf32>
    %cst_89 = arith.constant 2.000000e-01 : f32
    %250 = vector.broadcast %cst_89 : f32 to vector<32x32xf32>
    %251 = arith.subf %6, %250 : vector<32x32xf32>
    %cst_90 = arith.constant 1.250000e+00 : f32
    %252 = vector.broadcast %cst_90 : f32 to vector<32x32xf32>
    %253 = arith.mulf %251, %252 : vector<32x32xf32>
    %254 = arith.mulf %253, %150 : vector<32x32xf32>
    %cst_91 = arith.constant 1.400000e+00 : f32
    %255 = vector.broadcast %cst_91 : f32 to vector<32x32xf32>
    %256 = arith.subf %255, %6 : vector<32x32xf32>
    %cst_92 = arith.constant 1.250000e+00 : f32
    %257 = vector.broadcast %cst_92 : f32 to vector<32x32xf32>
    %258 = arith.mulf %256, %257 : vector<32x32xf32>
    %259 = arith.mulf %258, %161 : vector<32x32xf32>
    %260 = arith.addf %254, %259 : vector<32x32xf32>
    %cst_93 = arith.constant 6.000000e-01 : f32
    %261 = vector.broadcast %cst_93 : f32 to vector<32x32xf32>
    %262 = arith.subf %6, %261 : vector<32x32xf32>
    %cst_94 = arith.constant 1.250000e+00 : f32
    %263 = vector.broadcast %cst_94 : f32 to vector<32x32xf32>
    %264 = arith.mulf %262, %263 : vector<32x32xf32>
    %265 = arith.mulf %264, %161 : vector<32x32xf32>
    %cst_95 = arith.constant 1.800000e+00 : f32
    %266 = vector.broadcast %cst_95 : f32 to vector<32x32xf32>
    %267 = arith.subf %266, %6 : vector<32x32xf32>
    %cst_96 = arith.constant 1.250000e+00 : f32
    %268 = vector.broadcast %cst_96 : f32 to vector<32x32xf32>
    %269 = arith.mulf %267, %268 : vector<32x32xf32>
    %270 = arith.mulf %269, %172 : vector<32x32xf32>
    %271 = arith.addf %265, %270 : vector<32x32xf32>
    %cst_97 = arith.constant 1.000000e+00 : f32
    %272 = vector.broadcast %cst_97 : f32 to vector<32x32xf32>
    %273 = arith.subf %6, %272 : vector<32x32xf32>
    %cst_98 = arith.constant 1.250000e+00 : f32
    %274 = vector.broadcast %cst_98 : f32 to vector<32x32xf32>
    %275 = arith.mulf %273, %274 : vector<32x32xf32>
    %276 = arith.mulf %275, %172 : vector<32x32xf32>
    %cst_99 = arith.constant 2.200000e+00 : f32
    %277 = vector.broadcast %cst_99 : f32 to vector<32x32xf32>
    %278 = arith.subf %277, %6 : vector<32x32xf32>
    %cst_100 = arith.constant 1.250000e+00 : f32
    %279 = vector.broadcast %cst_100 : f32 to vector<32x32xf32>
    %280 = arith.mulf %278, %279 : vector<32x32xf32>
    %281 = arith.mulf %280, %183 : vector<32x32xf32>
    %282 = arith.addf %276, %281 : vector<32x32xf32>
    %cst_101 = arith.constant -2.200000e+00 : f32
    %283 = vector.broadcast %cst_101 : f32 to vector<32x32xf32>
    %284 = arith.subf %6, %283 : vector<32x32xf32>
    %cst_102 = arith.constant 0.833333313 : f32
    %285 = vector.broadcast %cst_102 : f32 to vector<32x32xf32>
    %286 = arith.mulf %284, %285 : vector<32x32xf32>
    %287 = arith.mulf %286, %194 : vector<32x32xf32>
    %cst_103 = arith.constant -6.000000e-01 : f32
    %288 = vector.broadcast %cst_103 : f32 to vector<32x32xf32>
    %289 = arith.subf %288, %6 : vector<32x32xf32>
    %cst_104 = arith.constant 0.833333313 : f32
    %290 = vector.broadcast %cst_104 : f32 to vector<32x32xf32>
    %291 = arith.mulf %289, %290 : vector<32x32xf32>
    %292 = arith.mulf %291, %205 : vector<32x32xf32>
    %293 = arith.addf %287, %292 : vector<32x32xf32>
    %cst_105 = arith.constant -1.800000e+00 : f32
    %294 = vector.broadcast %cst_105 : f32 to vector<32x32xf32>
    %295 = arith.subf %6, %294 : vector<32x32xf32>
    %cst_106 = arith.constant 0.833333313 : f32
    %296 = vector.broadcast %cst_106 : f32 to vector<32x32xf32>
    %297 = arith.mulf %295, %296 : vector<32x32xf32>
    %298 = arith.mulf %297, %205 : vector<32x32xf32>
    %cst_107 = arith.constant -2.000000e-01 : f32
    %299 = vector.broadcast %cst_107 : f32 to vector<32x32xf32>
    %300 = arith.subf %299, %6 : vector<32x32xf32>
    %cst_108 = arith.constant 0.833333313 : f32
    %301 = vector.broadcast %cst_108 : f32 to vector<32x32xf32>
    %302 = arith.mulf %300, %301 : vector<32x32xf32>
    %303 = arith.mulf %302, %216 : vector<32x32xf32>
    %304 = arith.addf %298, %303 : vector<32x32xf32>
    %cst_109 = arith.constant -1.400000e+00 : f32
    %305 = vector.broadcast %cst_109 : f32 to vector<32x32xf32>
    %306 = arith.subf %6, %305 : vector<32x32xf32>
    %cst_110 = arith.constant 0.833333313 : f32
    %307 = vector.broadcast %cst_110 : f32 to vector<32x32xf32>
    %308 = arith.mulf %306, %307 : vector<32x32xf32>
    %309 = arith.mulf %308, %216 : vector<32x32xf32>
    %cst_111 = arith.constant 2.000000e-01 : f32
    %310 = vector.broadcast %cst_111 : f32 to vector<32x32xf32>
    %311 = arith.subf %310, %6 : vector<32x32xf32>
    %cst_112 = arith.constant 0.833333313 : f32
    %312 = vector.broadcast %cst_112 : f32 to vector<32x32xf32>
    %313 = arith.mulf %311, %312 : vector<32x32xf32>
    %314 = arith.mulf %313, %227 : vector<32x32xf32>
    %315 = arith.addf %309, %314 : vector<32x32xf32>
    %cst_113 = arith.constant -1.000000e+00 : f32
    %316 = vector.broadcast %cst_113 : f32 to vector<32x32xf32>
    %317 = arith.subf %6, %316 : vector<32x32xf32>
    %cst_114 = arith.constant 0.833333313 : f32
    %318 = vector.broadcast %cst_114 : f32 to vector<32x32xf32>
    %319 = arith.mulf %317, %318 : vector<32x32xf32>
    %320 = arith.mulf %319, %227 : vector<32x32xf32>
    %cst_115 = arith.constant 6.000000e-01 : f32
    %321 = vector.broadcast %cst_115 : f32 to vector<32x32xf32>
    %322 = arith.subf %321, %6 : vector<32x32xf32>
    %cst_116 = arith.constant 0.833333313 : f32
    %323 = vector.broadcast %cst_116 : f32 to vector<32x32xf32>
    %324 = arith.mulf %322, %323 : vector<32x32xf32>
    %325 = arith.mulf %324, %238 : vector<32x32xf32>
    %326 = arith.addf %320, %325 : vector<32x32xf32>
    %cst_117 = arith.constant -6.000000e-01 : f32
    %327 = vector.broadcast %cst_117 : f32 to vector<32x32xf32>
    %328 = arith.subf %6, %327 : vector<32x32xf32>
    %cst_118 = arith.constant 0.833333313 : f32
    %329 = vector.broadcast %cst_118 : f32 to vector<32x32xf32>
    %330 = arith.mulf %328, %329 : vector<32x32xf32>
    %331 = arith.mulf %330, %238 : vector<32x32xf32>
    %cst_119 = arith.constant 1.000000e+00 : f32
    %332 = vector.broadcast %cst_119 : f32 to vector<32x32xf32>
    %333 = arith.subf %332, %6 : vector<32x32xf32>
    %cst_120 = arith.constant 0.833333313 : f32
    %334 = vector.broadcast %cst_120 : f32 to vector<32x32xf32>
    %335 = arith.mulf %333, %334 : vector<32x32xf32>
    %336 = arith.mulf %335, %249 : vector<32x32xf32>
    %337 = arith.addf %331, %336 : vector<32x32xf32>
    %cst_121 = arith.constant -2.000000e-01 : f32
    %338 = vector.broadcast %cst_121 : f32 to vector<32x32xf32>
    %339 = arith.subf %6, %338 : vector<32x32xf32>
    %cst_122 = arith.constant 0.833333313 : f32
    %340 = vector.broadcast %cst_122 : f32 to vector<32x32xf32>
    %341 = arith.mulf %339, %340 : vector<32x32xf32>
    %342 = arith.mulf %341, %249 : vector<32x32xf32>
    %cst_123 = arith.constant 1.400000e+00 : f32
    %343 = vector.broadcast %cst_123 : f32 to vector<32x32xf32>
    %344 = arith.subf %343, %6 : vector<32x32xf32>
    %cst_124 = arith.constant 0.833333313 : f32
    %345 = vector.broadcast %cst_124 : f32 to vector<32x32xf32>
    %346 = arith.mulf %344, %345 : vector<32x32xf32>
    %347 = arith.mulf %346, %260 : vector<32x32xf32>
    %348 = arith.addf %342, %347 : vector<32x32xf32>
    %cst_125 = arith.constant 2.000000e-01 : f32
    %349 = vector.broadcast %cst_125 : f32 to vector<32x32xf32>
    %350 = arith.subf %6, %349 : vector<32x32xf32>
    %cst_126 = arith.constant 0.833333313 : f32
    %351 = vector.broadcast %cst_126 : f32 to vector<32x32xf32>
    %352 = arith.mulf %350, %351 : vector<32x32xf32>
    %353 = arith.mulf %352, %260 : vector<32x32xf32>
    %cst_127 = arith.constant 1.800000e+00 : f32
    %354 = vector.broadcast %cst_127 : f32 to vector<32x32xf32>
    %355 = arith.subf %354, %6 : vector<32x32xf32>
    %cst_128 = arith.constant 0.833333313 : f32
    %356 = vector.broadcast %cst_128 : f32 to vector<32x32xf32>
    %357 = arith.mulf %355, %356 : vector<32x32xf32>
    %358 = arith.mulf %357, %271 : vector<32x32xf32>
    %359 = arith.addf %353, %358 : vector<32x32xf32>
    %cst_129 = arith.constant 6.000000e-01 : f32
    %360 = vector.broadcast %cst_129 : f32 to vector<32x32xf32>
    %361 = arith.subf %6, %360 : vector<32x32xf32>
    %cst_130 = arith.constant 0.833333313 : f32
    %362 = vector.broadcast %cst_130 : f32 to vector<32x32xf32>
    %363 = arith.mulf %361, %362 : vector<32x32xf32>
    %364 = arith.mulf %363, %271 : vector<32x32xf32>
    %cst_131 = arith.constant 2.200000e+00 : f32
    %365 = vector.broadcast %cst_131 : f32 to vector<32x32xf32>
    %366 = arith.subf %365, %6 : vector<32x32xf32>
    %cst_132 = arith.constant 0.833333313 : f32
    %367 = vector.broadcast %cst_132 : f32 to vector<32x32xf32>
    %368 = arith.mulf %366, %367 : vector<32x32xf32>
    %369 = arith.mulf %368, %282 : vector<32x32xf32>
    %370 = arith.addf %364, %369 : vector<32x32xf32>
    %c0_133 = arith.constant 0 : index
    %c0_134 = arith.constant 0 : index
    %c0_135 = arith.constant 0 : index
    %c0_136 = arith.constant 0 : index
    %371 = vector.load %arg4[%c0_133, %c0_134, %c0_135, %c0_136] : memref<2x9x32x32xf32, #tpu.memory_space<vmem>>, vector<1x1x32x32xf32>
    %372 = vector.shape_cast %371 : vector<1x1x32x32xf32> to vector<32x32xf32>
    %cst_137 = arith.constant dense<0.000000e+00> : vector<32x32xf32>
    %373 = tpu.matmul %14, %372, %cst_137 {dimension_numbers = #tpu.dot_dimension_numbers<[1], [0], [0], [1], [0, 0, 1, 1], [], []>} : vector<32x32xf32>, vector<32x32xf32>, vector<32x32xf32> -> vector<32x32xf32>
    %c0_138 = arith.constant 0 : index
    %c1 = arith.constant 1 : index
    %c0_139 = arith.constant 0 : index
    %c0_140 = arith.constant 0 : index
    %374 = vector.load %arg4[%c0_138, %c1, %c0_139, %c0_140] : memref<2x9x32x32xf32, #tpu.memory_space<vmem>>, vector<1x1x32x32xf32>
    %375 = vector.shape_cast %374 : vector<1x1x32x32xf32> to vector<32x32xf32>
    %cst_141 = arith.constant dense<0.000000e+00> : vector<32x32xf32>
    %376 = tpu.matmul %293, %375, %cst_141 {dimension_numbers = #tpu.dot_dimension_numbers<[1], [0], [0], [1], [0, 0, 1, 1], [], []>} : vector<32x32xf32>, vector<32x32xf32>, vector<32x32xf32> -> vector<32x32xf32>
    %377 = arith.addf %373, %376 : vector<32x32xf32>
    %c0_142 = arith.constant 0 : index
    %c2 = arith.constant 2 : index
    %c0_143 = arith.constant 0 : index
    %c0_144 = arith.constant 0 : index
    %378 = vector.load %arg4[%c0_142, %c2, %c0_143, %c0_144] : memref<2x9x32x32xf32, #tpu.memory_space<vmem>>, vector<1x1x32x32xf32>
    %379 = vector.shape_cast %378 : vector<1x1x32x32xf32> to vector<32x32xf32>
    %cst_145 = arith.constant dense<0.000000e+00> : vector<32x32xf32>
    %380 = tpu.matmul %304, %379, %cst_145 {dimension_numbers = #tpu.dot_dimension_numbers<[1], [0], [0], [1], [0, 0, 1, 1], [], []>} : vector<32x32xf32>, vector<32x32xf32>, vector<32x32xf32> -> vector<32x32xf32>
    %381 = arith.addf %377, %380 : vector<32x32xf32>
    %c0_146 = arith.constant 0 : index
    %c3 = arith.constant 3 : index
    %c0_147 = arith.constant 0 : index
    %c0_148 = arith.constant 0 : index
    %382 = vector.load %arg4[%c0_146, %c3, %c0_147, %c0_148] : memref<2x9x32x32xf32, #tpu.memory_space<vmem>>, vector<1x1x32x32xf32>
    %383 = vector.shape_cast %382 : vector<1x1x32x32xf32> to vector<32x32xf32>
    %cst_149 = arith.constant dense<0.000000e+00> : vector<32x32xf32>
    %384 = tpu.matmul %315, %383, %cst_149 {dimension_numbers = #tpu.dot_dimension_numbers<[1], [0], [0], [1], [0, 0, 1, 1], [], []>} : vector<32x32xf32>, vector<32x32xf32>, vector<32x32xf32> -> vector<32x32xf32>
    %385 = arith.addf %381, %384 : vector<32x32xf32>
    %c0_150 = arith.constant 0 : index
    %c4 = arith.constant 4 : index
    %c0_151 = arith.constant 0 : index
    %c0_152 = arith.constant 0 : index
    %386 = vector.load %arg4[%c0_150, %c4, %c0_151, %c0_152] : memref<2x9x32x32xf32, #tpu.memory_space<vmem>>, vector<1x1x32x32xf32>
    %387 = vector.shape_cast %386 : vector<1x1x32x32xf32> to vector<32x32xf32>
    %cst_153 = arith.constant dense<0.000000e+00> : vector<32x32xf32>
    %388 = tpu.matmul %326, %387, %cst_153 {dimension_numbers = #tpu.dot_dimension_numbers<[1], [0], [0], [1], [0, 0, 1, 1], [], []>} : vector<32x32xf32>, vector<32x32xf32>, vector<32x32xf32> -> vector<32x32xf32>
    %389 = arith.addf %385, %388 : vector<32x32xf32>
    %c0_154 = arith.constant 0 : index
    %c5 = arith.constant 5 : index
    %c0_155 = arith.constant 0 : index
    %c0_156 = arith.constant 0 : index
    %390 = vector.load %arg4[%c0_154, %c5, %c0_155, %c0_156] : memref<2x9x32x32xf32, #tpu.memory_space<vmem>>, vector<1x1x32x32xf32>
    %391 = vector.shape_cast %390 : vector<1x1x32x32xf32> to vector<32x32xf32>
    %cst_157 = arith.constant dense<0.000000e+00> : vector<32x32xf32>
    %392 = tpu.matmul %337, %391, %cst_157 {dimension_numbers = #tpu.dot_dimension_numbers<[1], [0], [0], [1], [0, 0, 1, 1], [], []>} : vector<32x32xf32>, vector<32x32xf32>, vector<32x32xf32> -> vector<32x32xf32>
    %393 = arith.addf %389, %392 : vector<32x32xf32>
    %c0_158 = arith.constant 0 : index
    %c6 = arith.constant 6 : index
    %c0_159 = arith.constant 0 : index
    %c0_160 = arith.constant 0 : index
    %394 = vector.load %arg4[%c0_158, %c6, %c0_159, %c0_160] : memref<2x9x32x32xf32, #tpu.memory_space<vmem>>, vector<1x1x32x32xf32>
    %395 = vector.shape_cast %394 : vector<1x1x32x32xf32> to vector<32x32xf32>
    %cst_161 = arith.constant dense<0.000000e+00> : vector<32x32xf32>
    %396 = tpu.matmul %348, %395, %cst_161 {dimension_numbers = #tpu.dot_dimension_numbers<[1], [0], [0], [1], [0, 0, 1, 1], [], []>} : vector<32x32xf32>, vector<32x32xf32>, vector<32x32xf32> -> vector<32x32xf32>
    %397 = arith.addf %393, %396 : vector<32x32xf32>
    %c0_162 = arith.constant 0 : index
    %c7 = arith.constant 7 : index
    %c0_163 = arith.constant 0 : index
    %c0_164 = arith.constant 0 : index
    %398 = vector.load %arg4[%c0_162, %c7, %c0_163, %c0_164] : memref<2x9x32x32xf32, #tpu.memory_space<vmem>>, vector<1x1x32x32xf32>
    %399 = vector.shape_cast %398 : vector<1x1x32x32xf32> to vector<32x32xf32>
    %cst_165 = arith.constant dense<0.000000e+00> : vector<32x32xf32>
    %400 = tpu.matmul %359, %399, %cst_165 {dimension_numbers = #tpu.dot_dimension_numbers<[1], [0], [0], [1], [0, 0, 1, 1], [], []>} : vector<32x32xf32>, vector<32x32xf32>, vector<32x32xf32> -> vector<32x32xf32>
    %401 = arith.addf %397, %400 : vector<32x32xf32>
    %c0_166 = arith.constant 0 : index
    %c8 = arith.constant 8 : index
    %c0_167 = arith.constant 0 : index
    %c0_168 = arith.constant 0 : index
    %402 = vector.load %arg4[%c0_166, %c8, %c0_167, %c0_168] : memref<2x9x32x32xf32, #tpu.memory_space<vmem>>, vector<1x1x32x32xf32>
    %403 = vector.shape_cast %402 : vector<1x1x32x32xf32> to vector<32x32xf32>
    %cst_169 = arith.constant dense<0.000000e+00> : vector<32x32xf32>
    %404 = tpu.matmul %370, %403, %cst_169 {dimension_numbers = #tpu.dot_dimension_numbers<[1], [0], [0], [1], [0, 0, 1, 1], [], []>} : vector<32x32xf32>, vector<32x32xf32>, vector<32x32xf32> -> vector<32x32xf32>
    %405 = arith.addf %401, %404 : vector<32x32xf32>
    %c0_170 = arith.constant 0 : index
    %c0_171 = arith.constant 0 : index
    %406 = vector.load %arg8[%c0_170, %c0_171] : memref<64x32xf32, #tpu.memory_space<vmem>>, vector<32x32xf32>
    tpu.vector_store %arg8[%c0_170, %c0_171], %405 {strides = array<i32>} : memref<64x32xf32, #tpu.memory_space<vmem>>, vector<32x32xf32>,
    %c32 = arith.constant 32 : index
    %c0_172 = arith.constant 0 : index
    %407 = vector.load %arg7[%c32, %c0_172] : memref<64x32xf32, #tpu.memory_space<vmem>>, vector<32x32xf32>
    %cst_173 = arith.constant 5.000000e-01 : f32
    %408 = vector.broadcast %cst_173 : f32 to vector<32x32xf32>
    %409 = arith.mulf %408, %407 : vector<32x32xf32>
    %410 = math.tanh %409 : vector<32x32xf32>
    %cst_174 = arith.constant 1.000000e+00 : f32
    %411 = vector.broadcast %cst_174 : f32 to vector<32x32xf32>
    %412 = arith.addf %410, %411 : vector<32x32xf32>
    %cst_175 = arith.constant 5.000000e-01 : f32
    %413 = vector.broadcast %cst_175 : f32 to vector<32x32xf32>
    %414 = arith.mulf %413, %412 : vector<32x32xf32>
    %415 = arith.mulf %407, %414 : vector<32x32xf32>
    %cst_176 = arith.constant -2.200000e+00 : f32
    %416 = vector.broadcast %cst_176 : f32 to vector<32x32xf32>
    %417 = arith.cmpf oge, %407, %416 : vector<32x32xf32>
    %418 = arith.extui %417 : vector<32x32xi1> to vector<32x32xi32>
    %419 = arith.sitofp %418 : vector<32x32xi32> to vector<32x32xf32>
    %cst_177 = arith.constant -1.800000e+00 : f32
    %420 = vector.broadcast %cst_177 : f32 to vector<32x32xf32>
    %421 = arith.cmpf oge, %407, %420 : vector<32x32xf32>
    %422 = arith.extui %421 : vector<32x32xi1> to vector<32x32xi32>
    %423 = arith.sitofp %422 : vector<32x32xi32> to vector<32x32xf32>
    %424 = arith.subf %419, %423 : vector<32x32xf32>
    %cst_178 = arith.constant -1.400000e+00 : f32
    %425 = vector.broadcast %cst_178 : f32 to vector<32x32xf32>
    %426 = arith.cmpf oge, %407, %425 : vector<32x32xf32>
    %427 = arith.extui %426 : vector<32x32xi1> to vector<32x32xi32>
    %428 = arith.sitofp %427 : vector<32x32xi32> to vector<32x32xf32>
    %429 = arith.subf %423, %428 : vector<32x32xf32>
    %cst_179 = arith.constant -1.000000e+00 : f32
    %430 = vector.broadcast %cst_179 : f32 to vector<32x32xf32>
    %431 = arith.cmpf oge, %407, %430 : vector<32x32xf32>
    %432 = arith.extui %431 : vector<32x32xi1> to vector<32x32xi32>
    %433 = arith.sitofp %432 : vector<32x32xi32> to vector<32x32xf32>
    %434 = arith.subf %428, %433 : vector<32x32xf32>
    %cst_180 = arith.constant -6.000000e-01 : f32
    %435 = vector.broadcast %cst_180 : f32 to vector<32x32xf32>
    %436 = arith.cmpf oge, %407, %435 : vector<32x32xf32>
    %437 = arith.extui %436 : vector<32x32xi1> to vector<32x32xi32>
    %438 = arith.sitofp %437 : vector<32x32xi32> to vector<32x32xf32>
    %439 = arith.subf %433, %438 : vector<32x32xf32>
    %cst_181 = arith.constant -2.000000e-01 : f32
    %440 = vector.broadcast %cst_181 : f32 to vector<32x32xf32>
    %441 = arith.cmpf oge, %407, %440 : vector<32x32xf32>
    %442 = arith.extui %441 : vector<32x32xi1> to vector<32x32xi32>
    %443 = arith.sitofp %442 : vector<32x32xi32> to vector<32x32xf32>
    %444 = arith.subf %438, %443 : vector<32x32xf32>
    %cst_182 = arith.constant 2.000000e-01 : f32
    %445 = vector.broadcast %cst_182 : f32 to vector<32x32xf32>
    %446 = arith.cmpf oge, %407, %445 : vector<32x32xf32>
    %447 = arith.extui %446 : vector<32x32xi1> to vector<32x32xi32>
    %448 = arith.sitofp %447 : vector<32x32xi32> to vector<32x32xf32>
    %449 = arith.subf %443, %448 : vector<32x32xf32>
    %cst_183 = arith.constant 6.000000e-01 : f32
    %450 = vector.broadcast %cst_183 : f32 to vector<32x32xf32>
    %451 = arith.cmpf oge, %407, %450 : vector<32x32xf32>
    %452 = arith.extui %451 : vector<32x32xi1> to vector<32x32xi32>
    %453 = arith.sitofp %452 : vector<32x32xi32> to vector<32x32xf32>
    %454 = arith.subf %448, %453 : vector<32x32xf32>
    %cst_184 = arith.constant 1.000000e+00 : f32
    %455 = vector.broadcast %cst_184 : f32 to vector<32x32xf32>
    %456 = arith.cmpf oge, %407, %455 : vector<32x32xf32>
    %457 = arith.extui %456 : vector<32x32xi1> to vector<32x32xi32>
    %458 = arith.sitofp %457 : vector<32x32xi32> to vector<32x32xf32>
    %459 = arith.subf %453, %458 : vector<32x32xf32>
    %cst_185 = arith.constant 1.400000e+00 : f32
    %460 = vector.broadcast %cst_185 : f32 to vector<32x32xf32>
    %461 = arith.cmpf oge, %407, %460 : vector<32x32xf32>
    %462 = arith.extui %461 : vector<32x32xi1> to vector<32x32xi32>
    %463 = arith.sitofp %462 : vector<32x32xi32> to vector<32x32xf32>
    %464 = arith.subf %458, %463 : vector<32x32xf32>
    %cst_186 = arith.constant 1.800000e+00 : f32
    %465 = vector.broadcast %cst_186 : f32 to vector<32x32xf32>
    %466 = arith.cmpf oge, %407, %465 : vector<32x32xf32>
    %467 = arith.extui %466 : vector<32x32xi1> to vector<32x32xi32>
    %468 = arith.sitofp %467 : vector<32x32xi32> to vector<32x32xf32>
    %469 = arith.subf %463, %468 : vector<32x32xf32>
    %cst_187 = arith.constant 2.200000e+00 : f32
    %470 = vector.broadcast %cst_187 : f32 to vector<32x32xf32>
    %471 = arith.cmpf oge, %407, %470 : vector<32x32xf32>
    %472 = arith.extui %471 : vector<32x32xi1> to vector<32x32xi32>
    %473 = arith.sitofp %472 : vector<32x32xi32> to vector<32x32xf32>
    %474 = arith.subf %468, %473 : vector<32x32xf32>
    %cst_188 = arith.constant -2.200000e+00 : f32
    %475 = vector.broadcast %cst_188 : f32 to vector<32x32xf32>
    %476 = arith.subf %407, %475 : vector<32x32xf32>
    %cst_189 = arith.constant 2.500000e+00 : f32
    %477 = vector.broadcast %cst_189 : f32 to vector<32x32xf32>
    %478 = arith.mulf %476, %477 : vector<32x32xf32>
    %479 = arith.mulf %478, %424 : vector<32x32xf32>
    %cst_190 = arith.constant -1.400000e+00 : f32
    %480 = vector.broadcast %cst_190 : f32 to vector<32x32xf32>
    %481 = arith.subf %480, %407 : vector<32x32xf32>
    %cst_191 = arith.constant 2.500000e+00 : f32
    %482 = vector.broadcast %cst_191 : f32 to vector<32x32xf32>
    %483 = arith.mulf %481, %482 : vector<32x32xf32>
    %484 = arith.mulf %483, %429 : vector<32x32xf32>
    %485 = arith.addf %479, %484 : vector<32x32xf32>
    %cst_192 = arith.constant -1.800000e+00 : f32
    %486 = vector.broadcast %cst_192 : f32 to vector<32x32xf32>
    %487 = arith.subf %407, %486 : vector<32x32xf32>
    %cst_193 = arith.constant 2.500000e+00 : f32
    %488 = vector.broadcast %cst_193 : f32 to vector<32x32xf32>
    %489 = arith.mulf %487, %488 : vector<32x32xf32>
    %490 = arith.mulf %489, %429 : vector<32x32xf32>
    %cst_194 = arith.constant -1.000000e+00 : f32
    %491 = vector.broadcast %cst_194 : f32 to vector<32x32xf32>
    %492 = arith.subf %491, %407 : vector<32x32xf32>
    %cst_195 = arith.constant 2.500000e+00 : f32
    %493 = vector.broadcast %cst_195 : f32 to vector<32x32xf32>
    %494 = arith.mulf %492, %493 : vector<32x32xf32>
    %495 = arith.mulf %494, %434 : vector<32x32xf32>
    %496 = arith.addf %490, %495 : vector<32x32xf32>
    %cst_196 = arith.constant -1.400000e+00 : f32
    %497 = vector.broadcast %cst_196 : f32 to vector<32x32xf32>
    %498 = arith.subf %407, %497 : vector<32x32xf32>
    %cst_197 = arith.constant 2.500000e+00 : f32
    %499 = vector.broadcast %cst_197 : f32 to vector<32x32xf32>
    %500 = arith.mulf %498, %499 : vector<32x32xf32>
    %501 = arith.mulf %500, %434 : vector<32x32xf32>
    %cst_198 = arith.constant -6.000000e-01 : f32
    %502 = vector.broadcast %cst_198 : f32 to vector<32x32xf32>
    %503 = arith.subf %502, %407 : vector<32x32xf32>
    %cst_199 = arith.constant 2.500000e+00 : f32
    %504 = vector.broadcast %cst_199 : f32 to vector<32x32xf32>
    %505 = arith.mulf %503, %504 : vector<32x32xf32>
    %506 = arith.mulf %505, %439 : vector<32x32xf32>
    %507 = arith.addf %501, %506 : vector<32x32xf32>
    %cst_200 = arith.constant -1.000000e+00 : f32
    %508 = vector.broadcast %cst_200 : f32 to vector<32x32xf32>
    %509 = arith.subf %407, %508 : vector<32x32xf32>
    %cst_201 = arith.constant 2.500000e+00 : f32
    %510 = vector.broadcast %cst_201 : f32 to vector<32x32xf32>
    %511 = arith.mulf %509, %510 : vector<32x32xf32>
    %512 = arith.mulf %511, %439 : vector<32x32xf32>
    %cst_202 = arith.constant -2.000000e-01 : f32
    %513 = vector.broadcast %cst_202 : f32 to vector<32x32xf32>
    %514 = arith.subf %513, %407 : vector<32x32xf32>
    %cst_203 = arith.constant 2.500000e+00 : f32
    %515 = vector.broadcast %cst_203 : f32 to vector<32x32xf32>
    %516 = arith.mulf %514, %515 : vector<32x32xf32>
    %517 = arith.mulf %516, %444 : vector<32x32xf32>
    %518 = arith.addf %512, %517 : vector<32x32xf32>
    %cst_204 = arith.constant -6.000000e-01 : f32
    %519 = vector.broadcast %cst_204 : f32 to vector<32x32xf32>
    %520 = arith.subf %407, %519 : vector<32x32xf32>
    %cst_205 = arith.constant 2.500000e+00 : f32
    %521 = vector.broadcast %cst_205 : f32 to vector<32x32xf32>
    %522 = arith.mulf %520, %521 : vector<32x32xf32>
    %523 = arith.mulf %522, %444 : vector<32x32xf32>
    %cst_206 = arith.constant 2.000000e-01 : f32
    %524 = vector.broadcast %cst_206 : f32 to vector<32x32xf32>
    %525 = arith.subf %524, %407 : vector<32x32xf32>
    %cst_207 = arith.constant 2.500000e+00 : f32
    %526 = vector.broadcast %cst_207 : f32 to vector<32x32xf32>
    %527 = arith.mulf %525, %526 : vector<32x32xf32>
    %528 = arith.mulf %527, %449 : vector<32x32xf32>
    %529 = arith.addf %523, %528 : vector<32x32xf32>
    %cst_208 = arith.constant -2.000000e-01 : f32
    %530 = vector.broadcast %cst_208 : f32 to vector<32x32xf32>
    %531 = arith.subf %407, %530 : vector<32x32xf32>
    %cst_209 = arith.constant 2.500000e+00 : f32
    %532 = vector.broadcast %cst_209 : f32 to vector<32x32xf32>
    %533 = arith.mulf %531, %532 : vector<32x32xf32>
    %534 = arith.mulf %533, %449 : vector<32x32xf32>
    %cst_210 = arith.constant 6.000000e-01 : f32
    %535 = vector.broadcast %cst_210 : f32 to vector<32x32xf32>
    %536 = arith.subf %535, %407 : vector<32x32xf32>
    %cst_211 = arith.constant 2.500000e+00 : f32
    %537 = vector.broadcast %cst_211 : f32 to vector<32x32xf32>
    %538 = arith.mulf %536, %537 : vector<32x32xf32>
    %539 = arith.mulf %538, %454 : vector<32x32xf32>
    %540 = arith.addf %534, %539 : vector<32x32xf32>
    %cst_212 = arith.constant 2.000000e-01 : f32
    %541 = vector.broadcast %cst_212 : f32 to vector<32x32xf32>
    %542 = arith.subf %407, %541 : vector<32x32xf32>
    %cst_213 = arith.constant 2.500000e+00 : f32
    %543 = vector.broadcast %cst_213 : f32 to vector<32x32xf32>
    %544 = arith.mulf %542, %543 : vector<32x32xf32>
    %545 = arith.mulf %544, %454 : vector<32x32xf32>
    %cst_214 = arith.constant 1.000000e+00 : f32
    %546 = vector.broadcast %cst_214 : f32 to vector<32x32xf32>
    %547 = arith.subf %546, %407 : vector<32x32xf32>
    %cst_215 = arith.constant 2.500000e+00 : f32
    %548 = vector.broadcast %cst_215 : f32 to vector<32x32xf32>
    %549 = arith.mulf %547, %548 : vector<32x32xf32>
    %550 = arith.mulf %549, %459 : vector<32x32xf32>
    %551 = arith.addf %545, %550 : vector<32x32xf32>
    %cst_216 = arith.constant 6.000000e-01 : f32
    %552 = vector.broadcast %cst_216 : f32 to vector<32x32xf32>
    %553 = arith.subf %407, %552 : vector<32x32xf32>
    %cst_217 = arith.constant 2.500000e+00 : f32
    %554 = vector.broadcast %cst_217 : f32 to vector<32x32xf32>
    %555 = arith.mulf %553, %554 : vector<32x32xf32>
    %556 = arith.mulf %555, %459 : vector<32x32xf32>
    %cst_218 = arith.constant 1.400000e+00 : f32
    %557 = vector.broadcast %cst_218 : f32 to vector<32x32xf32>
    %558 = arith.subf %557, %407 : vector<32x32xf32>
    %cst_219 = arith.constant 2.500000e+00 : f32
    %559 = vector.broadcast %cst_219 : f32 to vector<32x32xf32>
    %560 = arith.mulf %558, %559 : vector<32x32xf32>
    %561 = arith.mulf %560, %464 : vector<32x32xf32>
    %562 = arith.addf %556, %561 : vector<32x32xf32>
    %cst_220 = arith.constant 1.000000e+00 : f32
    %563 = vector.broadcast %cst_220 : f32 to vector<32x32xf32>
    %564 = arith.subf %407, %563 : vector<32x32xf32>
    %cst_221 = arith.constant 2.500000e+00 : f32
    %565 = vector.broadcast %cst_221 : f32 to vector<32x32xf32>
    %566 = arith.mulf %564, %565 : vector<32x32xf32>
    %567 = arith.mulf %566, %464 : vector<32x32xf32>
    %cst_222 = arith.constant 1.800000e+00 : f32
    %568 = vector.broadcast %cst_222 : f32 to vector<32x32xf32>
    %569 = arith.subf %568, %407 : vector<32x32xf32>
    %cst_223 = arith.constant 2.500000e+00 : f32
    %570 = vector.broadcast %cst_223 : f32 to vector<32x32xf32>
    %571 = arith.mulf %569, %570 : vector<32x32xf32>
    %572 = arith.mulf %571, %469 : vector<32x32xf32>
    %573 = arith.addf %567, %572 : vector<32x32xf32>
    %cst_224 = arith.constant 1.400000e+00 : f32
    %574 = vector.broadcast %cst_224 : f32 to vector<32x32xf32>
    %575 = arith.subf %407, %574 : vector<32x32xf32>
    %cst_225 = arith.constant 2.500000e+00 : f32
    %576 = vector.broadcast %cst_225 : f32 to vector<32x32xf32>
    %577 = arith.mulf %575, %576 : vector<32x32xf32>
    %578 = arith.mulf %577, %469 : vector<32x32xf32>
    %cst_226 = arith.constant 2.200000e+00 : f32
    %579 = vector.broadcast %cst_226 : f32 to vector<32x32xf32>
    %580 = arith.subf %579, %407 : vector<32x32xf32>
    %cst_227 = arith.constant 2.500000e+00 : f32
    %581 = vector.broadcast %cst_227 : f32 to vector<32x32xf32>
    %582 = arith.mulf %580, %581 : vector<32x32xf32>
    %583 = arith.mulf %582, %474 : vector<32x32xf32>
    %584 = arith.addf %578, %583 : vector<32x32xf32>
    %cst_228 = arith.constant -2.200000e+00 : f32
    %585 = vector.broadcast %cst_228 : f32 to vector<32x32xf32>
    %586 = arith.subf %407, %585 : vector<32x32xf32>
    %cst_229 = arith.constant 1.250000e+00 : f32
    %587 = vector.broadcast %cst_229 : f32 to vector<32x32xf32>
    %588 = arith.mulf %586, %587 : vector<32x32xf32>
    %589 = arith.mulf %588, %485 : vector<32x32xf32>
    %cst_230 = arith.constant -1.000000e+00 : f32
    %590 = vector.broadcast %cst_230 : f32 to vector<32x32xf32>
    %591 = arith.subf %590, %407 : vector<32x32xf32>
    %cst_231 = arith.constant 1.250000e+00 : f32
    %592 = vector.broadcast %cst_231 : f32 to vector<32x32xf32>
    %593 = arith.mulf %591, %592 : vector<32x32xf32>
    %594 = arith.mulf %593, %496 : vector<32x32xf32>
    %595 = arith.addf %589, %594 : vector<32x32xf32>
    %cst_232 = arith.constant -1.800000e+00 : f32
    %596 = vector.broadcast %cst_232 : f32 to vector<32x32xf32>
    %597 = arith.subf %407, %596 : vector<32x32xf32>
    %cst_233 = arith.constant 1.250000e+00 : f32
    %598 = vector.broadcast %cst_233 : f32 to vector<32x32xf32>
    %599 = arith.mulf %597, %598 : vector<32x32xf32>
    %600 = arith.mulf %599, %496 : vector<32x32xf32>
    %cst_234 = arith.constant -6.000000e-01 : f32
    %601 = vector.broadcast %cst_234 : f32 to vector<32x32xf32>
    %602 = arith.subf %601, %407 : vector<32x32xf32>
    %cst_235 = arith.constant 1.250000e+00 : f32
    %603 = vector.broadcast %cst_235 : f32 to vector<32x32xf32>
    %604 = arith.mulf %602, %603 : vector<32x32xf32>
    %605 = arith.mulf %604, %507 : vector<32x32xf32>
    %606 = arith.addf %600, %605 : vector<32x32xf32>
    %cst_236 = arith.constant -1.400000e+00 : f32
    %607 = vector.broadcast %cst_236 : f32 to vector<32x32xf32>
    %608 = arith.subf %407, %607 : vector<32x32xf32>
    %cst_237 = arith.constant 1.250000e+00 : f32
    %609 = vector.broadcast %cst_237 : f32 to vector<32x32xf32>
    %610 = arith.mulf %608, %609 : vector<32x32xf32>
    %611 = arith.mulf %610, %507 : vector<32x32xf32>
    %cst_238 = arith.constant -2.000000e-01 : f32
    %612 = vector.broadcast %cst_238 : f32 to vector<32x32xf32>
    %613 = arith.subf %612, %407 : vector<32x32xf32>
    %cst_239 = arith.constant 1.250000e+00 : f32
    %614 = vector.broadcast %cst_239 : f32 to vector<32x32xf32>
    %615 = arith.mulf %613, %614 : vector<32x32xf32>
    %616 = arith.mulf %615, %518 : vector<32x32xf32>
    %617 = arith.addf %611, %616 : vector<32x32xf32>
    %cst_240 = arith.constant -1.000000e+00 : f32
    %618 = vector.broadcast %cst_240 : f32 to vector<32x32xf32>
    %619 = arith.subf %407, %618 : vector<32x32xf32>
    %cst_241 = arith.constant 1.250000e+00 : f32
    %620 = vector.broadcast %cst_241 : f32 to vector<32x32xf32>
    %621 = arith.mulf %619, %620 : vector<32x32xf32>
    %622 = arith.mulf %621, %518 : vector<32x32xf32>
    %cst_242 = arith.constant 2.000000e-01 : f32
    %623 = vector.broadcast %cst_242 : f32 to vector<32x32xf32>
    %624 = arith.subf %623, %407 : vector<32x32xf32>
    %cst_243 = arith.constant 1.250000e+00 : f32
    %625 = vector.broadcast %cst_243 : f32 to vector<32x32xf32>
    %626 = arith.mulf %624, %625 : vector<32x32xf32>
    %627 = arith.mulf %626, %529 : vector<32x32xf32>
    %628 = arith.addf %622, %627 : vector<32x32xf32>
    %cst_244 = arith.constant -6.000000e-01 : f32
    %629 = vector.broadcast %cst_244 : f32 to vector<32x32xf32>
    %630 = arith.subf %407, %629 : vector<32x32xf32>
    %cst_245 = arith.constant 1.250000e+00 : f32
    %631 = vector.broadcast %cst_245 : f32 to vector<32x32xf32>
    %632 = arith.mulf %630, %631 : vector<32x32xf32>
    %633 = arith.mulf %632, %529 : vector<32x32xf32>
    %cst_246 = arith.constant 6.000000e-01 : f32
    %634 = vector.broadcast %cst_246 : f32 to vector<32x32xf32>
    %635 = arith.subf %634, %407 : vector<32x32xf32>
    %cst_247 = arith.constant 1.250000e+00 : f32
    %636 = vector.broadcast %cst_247 : f32 to vector<32x32xf32>
    %637 = arith.mulf %635, %636 : vector<32x32xf32>
    %638 = arith.mulf %637, %540 : vector<32x32xf32>
    %639 = arith.addf %633, %638 : vector<32x32xf32>
    %cst_248 = arith.constant -2.000000e-01 : f32
    %640 = vector.broadcast %cst_248 : f32 to vector<32x32xf32>
    %641 = arith.subf %407, %640 : vector<32x32xf32>
    %cst_249 = arith.constant 1.250000e+00 : f32
    %642 = vector.broadcast %cst_249 : f32 to vector<32x32xf32>
    %643 = arith.mulf %641, %642 : vector<32x32xf32>
    %644 = arith.mulf %643, %540 : vector<32x32xf32>
    %cst_250 = arith.constant 1.000000e+00 : f32
    %645 = vector.broadcast %cst_250 : f32 to vector<32x32xf32>
    %646 = arith.subf %645, %407 : vector<32x32xf32>
    %cst_251 = arith.constant 1.250000e+00 : f32
    %647 = vector.broadcast %cst_251 : f32 to vector<32x32xf32>
    %648 = arith.mulf %646, %647 : vector<32x32xf32>
    %649 = arith.mulf %648, %551 : vector<32x32xf32>
    %650 = arith.addf %644, %649 : vector<32x32xf32>
    %cst_252 = arith.constant 2.000000e-01 : f32
    %651 = vector.broadcast %cst_252 : f32 to vector<32x32xf32>
    %652 = arith.subf %407, %651 : vector<32x32xf32>
    %cst_253 = arith.constant 1.250000e+00 : f32
    %653 = vector.broadcast %cst_253 : f32 to vector<32x32xf32>
    %654 = arith.mulf %652, %653 : vector<32x32xf32>
    %655 = arith.mulf %654, %551 : vector<32x32xf32>
    %cst_254 = arith.constant 1.400000e+00 : f32
    %656 = vector.broadcast %cst_254 : f32 to vector<32x32xf32>
    %657 = arith.subf %656, %407 : vector<32x32xf32>
    %cst_255 = arith.constant 1.250000e+00 : f32
    %658 = vector.broadcast %cst_255 : f32 to vector<32x32xf32>
    %659 = arith.mulf %657, %658 : vector<32x32xf32>
    %660 = arith.mulf %659, %562 : vector<32x32xf32>
    %661 = arith.addf %655, %660 : vector<32x32xf32>
    %cst_256 = arith.constant 6.000000e-01 : f32
    %662 = vector.broadcast %cst_256 : f32 to vector<32x32xf32>
    %663 = arith.subf %407, %662 : vector<32x32xf32>
    %cst_257 = arith.constant 1.250000e+00 : f32
    %664 = vector.broadcast %cst_257 : f32 to vector<32x32xf32>
    %665 = arith.mulf %663, %664 : vector<32x32xf32>
    %666 = arith.mulf %665, %562 : vector<32x32xf32>
    %cst_258 = arith.constant 1.800000e+00 : f32
    %667 = vector.broadcast %cst_258 : f32 to vector<32x32xf32>
    %668 = arith.subf %667, %407 : vector<32x32xf32>
    %cst_259 = arith.constant 1.250000e+00 : f32
    %669 = vector.broadcast %cst_259 : f32 to vector<32x32xf32>
    %670 = arith.mulf %668, %669 : vector<32x32xf32>
    %671 = arith.mulf %670, %573 : vector<32x32xf32>
    %672 = arith.addf %666, %671 : vector<32x32xf32>
    %cst_260 = arith.constant 1.000000e+00 : f32
    %673 = vector.broadcast %cst_260 : f32 to vector<32x32xf32>
    %674 = arith.subf %407, %673 : vector<32x32xf32>
    %cst_261 = arith.constant 1.250000e+00 : f32
    %675 = vector.broadcast %cst_261 : f32 to vector<32x32xf32>
    %676 = arith.mulf %674, %675 : vector<32x32xf32>
    %677 = arith.mulf %676, %573 : vector<32x32xf32>
    %cst_262 = arith.constant 2.200000e+00 : f32
    %678 = vector.broadcast %cst_262 : f32 to vector<32x32xf32>
    %679 = arith.subf %678, %407 : vector<32x32xf32>
    %cst_263 = arith.constant 1.250000e+00 : f32
    %680 = vector.broadcast %cst_263 : f32 to vector<32x32xf32>
    %681 = arith.mulf %679, %680 : vector<32x32xf32>
    %682 = arith.mulf %681, %584 : vector<32x32xf32>
    %683 = arith.addf %677, %682 : vector<32x32xf32>
    %cst_264 = arith.constant -2.200000e+00 : f32
    %684 = vector.broadcast %cst_264 : f32 to vector<32x32xf32>
    %685 = arith.subf %407, %684 : vector<32x32xf32>
    %cst_265 = arith.constant 0.833333313 : f32
    %686 = vector.broadcast %cst_265 : f32 to vector<32x32xf32>
    %687 = arith.mulf %685, %686 : vector<32x32xf32>
    %688 = arith.mulf %687, %595 : vector<32x32xf32>
    %cst_266 = arith.constant -6.000000e-01 : f32
    %689 = vector.broadcast %cst_266 : f32 to vector<32x32xf32>
    %690 = arith.subf %689, %407 : vector<32x32xf32>
    %cst_267 = arith.constant 0.833333313 : f32
    %691 = vector.broadcast %cst_267 : f32 to vector<32x32xf32>
    %692 = arith.mulf %690, %691 : vector<32x32xf32>
    %693 = arith.mulf %692, %606 : vector<32x32xf32>
    %694 = arith.addf %688, %693 : vector<32x32xf32>
    %cst_268 = arith.constant -1.800000e+00 : f32
    %695 = vector.broadcast %cst_268 : f32 to vector<32x32xf32>
    %696 = arith.subf %407, %695 : vector<32x32xf32>
    %cst_269 = arith.constant 0.833333313 : f32
    %697 = vector.broadcast %cst_269 : f32 to vector<32x32xf32>
    %698 = arith.mulf %696, %697 : vector<32x32xf32>
    %699 = arith.mulf %698, %606 : vector<32x32xf32>
    %cst_270 = arith.constant -2.000000e-01 : f32
    %700 = vector.broadcast %cst_270 : f32 to vector<32x32xf32>
    %701 = arith.subf %700, %407 : vector<32x32xf32>
    %cst_271 = arith.constant 0.833333313 : f32
    %702 = vector.broadcast %cst_271 : f32 to vector<32x32xf32>
    %703 = arith.mulf %701, %702 : vector<32x32xf32>
    %704 = arith.mulf %703, %617 : vector<32x32xf32>
    %705 = arith.addf %699, %704 : vector<32x32xf32>
    %cst_272 = arith.constant -1.400000e+00 : f32
    %706 = vector.broadcast %cst_272 : f32 to vector<32x32xf32>
    %707 = arith.subf %407, %706 : vector<32x32xf32>
    %cst_273 = arith.constant 0.833333313 : f32
    %708 = vector.broadcast %cst_273 : f32 to vector<32x32xf32>
    %709 = arith.mulf %707, %708 : vector<32x32xf32>
    %710 = arith.mulf %709, %617 : vector<32x32xf32>
    %cst_274 = arith.constant 2.000000e-01 : f32
    %711 = vector.broadcast %cst_274 : f32 to vector<32x32xf32>
    %712 = arith.subf %711, %407 : vector<32x32xf32>
    %cst_275 = arith.constant 0.833333313 : f32
    %713 = vector.broadcast %cst_275 : f32 to vector<32x32xf32>
    %714 = arith.mulf %712, %713 : vector<32x32xf32>
    %715 = arith.mulf %714, %628 : vector<32x32xf32>
    %716 = arith.addf %710, %715 : vector<32x32xf32>
    %cst_276 = arith.constant -1.000000e+00 : f32
    %717 = vector.broadcast %cst_276 : f32 to vector<32x32xf32>
    %718 = arith.subf %407, %717 : vector<32x32xf32>
    %cst_277 = arith.constant 0.833333313 : f32
    %719 = vector.broadcast %cst_277 : f32 to vector<32x32xf32>
    %720 = arith.mulf %718, %719 : vector<32x32xf32>
    %721 = arith.mulf %720, %628 : vector<32x32xf32>
    %cst_278 = arith.constant 6.000000e-01 : f32
    %722 = vector.broadcast %cst_278 : f32 to vector<32x32xf32>
    %723 = arith.subf %722, %407 : vector<32x32xf32>
    %cst_279 = arith.constant 0.833333313 : f32
    %724 = vector.broadcast %cst_279 : f32 to vector<32x32xf32>
    %725 = arith.mulf %723, %724 : vector<32x32xf32>
    %726 = arith.mulf %725, %639 : vector<32x32xf32>
    %727 = arith.addf %721, %726 : vector<32x32xf32>
    %cst_280 = arith.constant -6.000000e-01 : f32
    %728 = vector.broadcast %cst_280 : f32 to vector<32x32xf32>
    %729 = arith.subf %407, %728 : vector<32x32xf32>
    %cst_281 = arith.constant 0.833333313 : f32
    %730 = vector.broadcast %cst_281 : f32 to vector<32x32xf32>
    %731 = arith.mulf %729, %730 : vector<32x32xf32>
    %732 = arith.mulf %731, %639 : vector<32x32xf32>
    %cst_282 = arith.constant 1.000000e+00 : f32
    %733 = vector.broadcast %cst_282 : f32 to vector<32x32xf32>
    %734 = arith.subf %733, %407 : vector<32x32xf32>
    %cst_283 = arith.constant 0.833333313 : f32
    %735 = vector.broadcast %cst_283 : f32 to vector<32x32xf32>
    %736 = arith.mulf %734, %735 : vector<32x32xf32>
    %737 = arith.mulf %736, %650 : vector<32x32xf32>
    %738 = arith.addf %732, %737 : vector<32x32xf32>
    %cst_284 = arith.constant -2.000000e-01 : f32
    %739 = vector.broadcast %cst_284 : f32 to vector<32x32xf32>
    %740 = arith.subf %407, %739 : vector<32x32xf32>
    %cst_285 = arith.constant 0.833333313 : f32
    %741 = vector.broadcast %cst_285 : f32 to vector<32x32xf32>
    %742 = arith.mulf %740, %741 : vector<32x32xf32>
    %743 = arith.mulf %742, %650 : vector<32x32xf32>
    %cst_286 = arith.constant 1.400000e+00 : f32
    %744 = vector.broadcast %cst_286 : f32 to vector<32x32xf32>
    %745 = arith.subf %744, %407 : vector<32x32xf32>
    %cst_287 = arith.constant 0.833333313 : f32
    %746 = vector.broadcast %cst_287 : f32 to vector<32x32xf32>
    %747 = arith.mulf %745, %746 : vector<32x32xf32>
    %748 = arith.mulf %747, %661 : vector<32x32xf32>
    %749 = arith.addf %743, %748 : vector<32x32xf32>
    %cst_288 = arith.constant 2.000000e-01 : f32
    %750 = vector.broadcast %cst_288 : f32 to vector<32x32xf32>
    %751 = arith.subf %407, %750 : vector<32x32xf32>
    %cst_289 = arith.constant 0.833333313 : f32
    %752 = vector.broadcast %cst_289 : f32 to vector<32x32xf32>
    %753 = arith.mulf %751, %752 : vector<32x32xf32>
    %754 = arith.mulf %753, %661 : vector<32x32xf32>
    %cst_290 = arith.constant 1.800000e+00 : f32
    %755 = vector.broadcast %cst_290 : f32 to vector<32x32xf32>
    %756 = arith.subf %755, %407 : vector<32x32xf32>
    %cst_291 = arith.constant 0.833333313 : f32
    %757 = vector.broadcast %cst_291 : f32 to vector<32x32xf32>
    %758 = arith.mulf %756, %757 : vector<32x32xf32>
    %759 = arith.mulf %758, %672 : vector<32x32xf32>
    %760 = arith.addf %754, %759 : vector<32x32xf32>
    %cst_292 = arith.constant 6.000000e-01 : f32
    %761 = vector.broadcast %cst_292 : f32 to vector<32x32xf32>
    %762 = arith.subf %407, %761 : vector<32x32xf32>
    %cst_293 = arith.constant 0.833333313 : f32
    %763 = vector.broadcast %cst_293 : f32 to vector<32x32xf32>
    %764 = arith.mulf %762, %763 : vector<32x32xf32>
    %765 = arith.mulf %764, %672 : vector<32x32xf32>
    %cst_294 = arith.constant 2.200000e+00 : f32
    %766 = vector.broadcast %cst_294 : f32 to vector<32x32xf32>
    %767 = arith.subf %766, %407 : vector<32x32xf32>
    %cst_295 = arith.constant 0.833333313 : f32
    %768 = vector.broadcast %cst_295 : f32 to vector<32x32xf32>
    %769 = arith.mulf %767, %768 : vector<32x32xf32>
    %770 = arith.mulf %769, %683 : vector<32x32xf32>
    %771 = arith.addf %765, %770 : vector<32x32xf32>
    %c0_296 = arith.constant 0 : index
    %c0_297 = arith.constant 0 : index
    %c0_298 = arith.constant 0 : index
    %c0_299 = arith.constant 0 : index
    %772 = vector.load %arg4[%c0_296, %c0_297, %c0_298, %c0_299] : memref<2x9x32x32xf32, #tpu.memory_space<vmem>>, vector<1x1x32x32xf32>
    %773 = vector.shape_cast %772 : vector<1x1x32x32xf32> to vector<32x32xf32>
    %cst_300 = arith.constant dense<0.000000e+00> : vector<32x32xf32>
    %774 = tpu.matmul %415, %773, %cst_300 {dimension_numbers = #tpu.dot_dimension_numbers<[1], [0], [0], [1], [0, 0, 1, 1], [], []>} : vector<32x32xf32>, vector<32x32xf32>, vector<32x32xf32> -> vector<32x32xf32>
    %c0_301 = arith.constant 0 : index
    %c1_302 = arith.constant 1 : index
    %c0_303 = arith.constant 0 : index
    %c0_304 = arith.constant 0 : index
    %775 = vector.load %arg4[%c0_301, %c1_302, %c0_303, %c0_304] : memref<2x9x32x32xf32, #tpu.memory_space<vmem>>, vector<1x1x32x32xf32>
    %776 = vector.shape_cast %775 : vector<1x1x32x32xf32> to vector<32x32xf32>
    %cst_305 = arith.constant dense<0.000000e+00> : vector<32x32xf32>
    %777 = tpu.matmul %694, %776, %cst_305 {dimension_numbers = #tpu.dot_dimension_numbers<[1], [0], [0], [1], [0, 0, 1, 1], [], []>} : vector<32x32xf32>, vector<32x32xf32>, vector<32x32xf32> -> vector<32x32xf32>
    %778 = arith.addf %774, %777 : vector<32x32xf32>
    %c0_306 = arith.constant 0 : index
    %c2_307 = arith.constant 2 : index
    %c0_308 = arith.constant 0 : index
    %c0_309 = arith.constant 0 : index
    %779 = vector.load %arg4[%c0_306, %c2_307, %c0_308, %c0_309] : memref<2x9x32x32xf32, #tpu.memory_space<vmem>>, vector<1x1x32x32xf32>
    %780 = vector.shape_cast %779 : vector<1x1x32x32xf32> to vector<32x32xf32>
    %cst_310 = arith.constant dense<0.000000e+00> : vector<32x32xf32>
    %781 = tpu.matmul %705, %780, %cst_310 {dimension_numbers = #tpu.dot_dimension_numbers<[1], [0], [0], [1], [0, 0, 1, 1], [], []>} : vector<32x32xf32>, vector<32x32xf32>, vector<32x32xf32> -> vector<32x32xf32>
    %782 = arith.addf %778, %781 : vector<32x32xf32>
    %c0_311 = arith.constant 0 : index
    %c3_312 = arith.constant 3 : index
    %c0_313 = arith.constant 0 : index
    %c0_314 = arith.constant 0 : index
    %783 = vector.load %arg4[%c0_311, %c3_312, %c0_313, %c0_314] : memref<2x9x32x32xf32, #tpu.memory_space<vmem>>, vector<1x1x32x32xf32>
    %784 = vector.shape_cast %783 : vector<1x1x32x32xf32> to vector<32x32xf32>
    %cst_315 = arith.constant dense<0.000000e+00> : vector<32x32xf32>
    %785 = tpu.matmul %716, %784, %cst_315 {dimension_numbers = #tpu.dot_dimension_numbers<[1], [0], [0], [1], [0, 0, 1, 1], [], []>} : vector<32x32xf32>, vector<32x32xf32>, vector<32x32xf32> -> vector<32x32xf32>
    %786 = arith.addf %782, %785 : vector<32x32xf32>
    %c0_316 = arith.constant 0 : index
    %c4_317 = arith.constant 4 : index
    %c0_318 = arith.constant 0 : index
    %c0_319 = arith.constant 0 : index
    %787 = vector.load %arg4[%c0_316, %c4_317, %c0_318, %c0_319] : memref<2x9x32x32xf32, #tpu.memory_space<vmem>>, vector<1x1x32x32xf32>
    %788 = vector.shape_cast %787 : vector<1x1x32x32xf32> to vector<32x32xf32>
    %cst_320 = arith.constant dense<0.000000e+00> : vector<32x32xf32>
    %789 = tpu.matmul %727, %788, %cst_320 {dimension_numbers = #tpu.dot_dimension_numbers<[1], [0], [0], [1], [0, 0, 1, 1], [], []>} : vector<32x32xf32>, vector<32x32xf32>, vector<32x32xf32> -> vector<32x32xf32>
    %790 = arith.addf %786, %789 : vector<32x32xf32>
    %c0_321 = arith.constant 0 : index
    %c5_322 = arith.constant 5 : index
    %c0_323 = arith.constant 0 : index
    %c0_324 = arith.constant 0 : index
    %791 = vector.load %arg4[%c0_321, %c5_322, %c0_323, %c0_324] : memref<2x9x32x32xf32, #tpu.memory_space<vmem>>, vector<1x1x32x32xf32>
    %792 = vector.shape_cast %791 : vector<1x1x32x32xf32> to vector<32x32xf32>
    %cst_325 = arith.constant dense<0.000000e+00> : vector<32x32xf32>
    %793 = tpu.matmul %738, %792, %cst_325 {dimension_numbers = #tpu.dot_dimension_numbers<[1], [0], [0], [1], [0, 0, 1, 1], [], []>} : vector<32x32xf32>, vector<32x32xf32>, vector<32x32xf32> -> vector<32x32xf32>
    %794 = arith.addf %790, %793 : vector<32x32xf32>
    %c0_326 = arith.constant 0 : index
    %c6_327 = arith.constant 6 : index
    %c0_328 = arith.constant 0 : index
    %c0_329 = arith.constant 0 : index
    %795 = vector.load %arg4[%c0_326, %c6_327, %c0_328, %c0_329] : memref<2x9x32x32xf32, #tpu.memory_space<vmem>>, vector<1x1x32x32xf32>
    %796 = vector.shape_cast %795 : vector<1x1x32x32xf32> to vector<32x32xf32>
    %cst_330 = arith.constant dense<0.000000e+00> : vector<32x32xf32>
    %797 = tpu.matmul %749, %796, %cst_330 {dimension_numbers = #tpu.dot_dimension_numbers<[1], [0], [0], [1], [0, 0, 1, 1], [], []>} : vector<32x32xf32>, vector<32x32xf32>, vector<32x32xf32> -> vector<32x32xf32>
    %798 = arith.addf %794, %797 : vector<32x32xf32>
    %c0_331 = arith.constant 0 : index
    %c7_332 = arith.constant 7 : index
    %c0_333 = arith.constant 0 : index
    %c0_334 = arith.constant 0 : index
    %799 = vector.load %arg4[%c0_331, %c7_332, %c0_333, %c0_334] : memref<2x9x32x32xf32, #tpu.memory_space<vmem>>, vector<1x1x32x32xf32>
    %800 = vector.shape_cast %799 : vector<1x1x32x32xf32> to vector<32x32xf32>
    %cst_335 = arith.constant dense<0.000000e+00> : vector<32x32xf32>
    %801 = tpu.matmul %760, %800, %cst_335 {dimension_numbers = #tpu.dot_dimension_numbers<[1], [0], [0], [1], [0, 0, 1, 1], [], []>} : vector<32x32xf32>, vector<32x32xf32>, vector<32x32xf32> -> vector<32x32xf32>
    %802 = arith.addf %798, %801 : vector<32x32xf32>
    %c0_336 = arith.constant 0 : index
    %c8_337 = arith.constant 8 : index
    %c0_338 = arith.constant 0 : index
    %c0_339 = arith.constant 0 : index
    %803 = vector.load %arg4[%c0_336, %c8_337, %c0_338, %c0_339] : memref<2x9x32x32xf32, #tpu.memory_space<vmem>>, vector<1x1x32x32xf32>
    %804 = vector.shape_cast %803 : vector<1x1x32x32xf32> to vector<32x32xf32>
    %cst_340 = arith.constant dense<0.000000e+00> : vector<32x32xf32>
    %805 = tpu.matmul %771, %804, %cst_340 {dimension_numbers = #tpu.dot_dimension_numbers<[1], [0], [0], [1], [0, 0, 1, 1], [], []>} : vector<32x32xf32>, vector<32x32xf32>, vector<32x32xf32> -> vector<32x32xf32>
    %806 = arith.addf %802, %805 : vector<32x32xf32>
    %c32_341 = arith.constant 32 : index
    %c0_342 = arith.constant 0 : index
    %807 = vector.load %arg8[%c32_341, %c0_342] : memref<64x32xf32, #tpu.memory_space<vmem>>, vector<32x32xf32>
    tpu.vector_store %arg8[%c32_341, %c0_342], %806 {strides = array<i32>} : memref<64x32xf32, #tpu.memory_space<vmem>>, vector<32x32xf32>,
    %c0_343 = arith.constant 0 : index
    %c0_344 = arith.constant 0 : index
    %808 = vector.load %arg2[%c0_343, %c0_344] : memref<64x64xf32, #tpu.memory_space<vmem>>, vector<64x64xf32>
    %c0_345 = arith.constant 0 : index
    %c0_346 = arith.constant 0 : index
    %809 = vector.load %arg8[%c0_345, %c0_346] : memref<64x32xf32, #tpu.memory_space<vmem>>, vector<64x32xf32>
    %cst_347 = arith.constant dense<0.000000e+00> : vector<64x32xf32>
    %810 = tpu.matmul %808, %809, %cst_347 {dimension_numbers = #tpu.dot_dimension_numbers<[1], [0], [0], [1], [0, 0, 1, 1], [], []>} : vector<64x64xf32>, vector<64x32xf32>, vector<64x32xf32> -> vector<64x32xf32>
    %c0_348 = arith.constant 0 : index
    %c0_349 = arith.constant 0 : index
    %811 = vector.load %arg7[%c0_348, %c0_349] : memref<64x32xf32, #tpu.memory_space<vmem>>, vector<64x32xf32>
    tpu.vector_store %arg7[%c0_348, %c0_349], %810 {strides = array<i32>} : memref<64x32xf32, #tpu.memory_space<vmem>>, vector<64x32xf32>,
    %c0_350 = arith.constant 0 : index
    %c0_351 = arith.constant 0 : index
    %812 = vector.load %arg7[%c0_350, %c0_351] : memref<64x32xf32, #tpu.memory_space<vmem>>, vector<32x32xf32>
    %cst_352 = arith.constant 5.000000e-01 : f32
    %813 = vector.broadcast %cst_352 : f32 to vector<32x32xf32>
    %814 = arith.mulf %813, %812 : vector<32x32xf32>
    %815 = math.tanh %814 : vector<32x32xf32>
    %cst_353 = arith.constant 1.000000e+00 : f32
    %816 = vector.broadcast %cst_353 : f32 to vector<32x32xf32>
    %817 = arith.addf %815, %816 : vector<32x32xf32>
    %cst_354 = arith.constant 5.000000e-01 : f32
    %818 = vector.broadcast %cst_354 : f32 to vector<32x32xf32>
    %819 = arith.mulf %818, %817 : vector<32x32xf32>
    %820 = arith.mulf %812, %819 : vector<32x32xf32>
    %cst_355 = arith.constant -2.200000e+00 : f32
    %821 = vector.broadcast %cst_355 : f32 to vector<32x32xf32>
    %822 = arith.cmpf oge, %812, %821 : vector<32x32xf32>
    %823 = arith.extui %822 : vector<32x32xi1> to vector<32x32xi32>
    %824 = arith.sitofp %823 : vector<32x32xi32> to vector<32x32xf32>
    %cst_356 = arith.constant -1.800000e+00 : f32
    %825 = vector.broadcast %cst_356 : f32 to vector<32x32xf32>
    %826 = arith.cmpf oge, %812, %825 : vector<32x32xf32>
    %827 = arith.extui %826 : vector<32x32xi1> to vector<32x32xi32>
    %828 = arith.sitofp %827 : vector<32x32xi32> to vector<32x32xf32>
    %829 = arith.subf %824, %828 : vector<32x32xf32>
    %cst_357 = arith.constant -1.400000e+00 : f32
    %830 = vector.broadcast %cst_357 : f32 to vector<32x32xf32>
    %831 = arith.cmpf oge, %812, %830 : vector<32x32xf32>
    %832 = arith.extui %831 : vector<32x32xi1> to vector<32x32xi32>
    %833 = arith.sitofp %832 : vector<32x32xi32> to vector<32x32xf32>
    %834 = arith.subf %828, %833 : vector<32x32xf32>
    %cst_358 = arith.constant -1.000000e+00 : f32
    %835 = vector.broadcast %cst_358 : f32 to vector<32x32xf32>
    %836 = arith.cmpf oge, %812, %835 : vector<32x32xf32>
    %837 = arith.extui %836 : vector<32x32xi1> to vector<32x32xi32>
    %838 = arith.sitofp %837 : vector<32x32xi32> to vector<32x32xf32>
    %839 = arith.subf %833, %838 : vector<32x32xf32>
    %cst_359 = arith.constant -6.000000e-01 : f32
    %840 = vector.broadcast %cst_359 : f32 to vector<32x32xf32>
    %841 = arith.cmpf oge, %812, %840 : vector<32x32xf32>
    %842 = arith.extui %841 : vector<32x32xi1> to vector<32x32xi32>
    %843 = arith.sitofp %842 : vector<32x32xi32> to vector<32x32xf32>
    %844 = arith.subf %838, %843 : vector<32x32xf32>
    %cst_360 = arith.constant -2.000000e-01 : f32
    %845 = vector.broadcast %cst_360 : f32 to vector<32x32xf32>
    %846 = arith.cmpf oge, %812, %845 : vector<32x32xf32>
    %847 = arith.extui %846 : vector<32x32xi1> to vector<32x32xi32>
    %848 = arith.sitofp %847 : vector<32x32xi32> to vector<32x32xf32>
    %849 = arith.subf %843, %848 : vector<32x32xf32>
    %cst_361 = arith.constant 2.000000e-01 : f32
    %850 = vector.broadcast %cst_361 : f32 to vector<32x32xf32>
    %851 = arith.cmpf oge, %812, %850 : vector<32x32xf32>
    %852 = arith.extui %851 : vector<32x32xi1> to vector<32x32xi32>
    %853 = arith.sitofp %852 : vector<32x32xi32> to vector<32x32xf32>
    %854 = arith.subf %848, %853 : vector<32x32xf32>
    %cst_362 = arith.constant 6.000000e-01 : f32
    %855 = vector.broadcast %cst_362 : f32 to vector<32x32xf32>
    %856 = arith.cmpf oge, %812, %855 : vector<32x32xf32>
    %857 = arith.extui %856 : vector<32x32xi1> to vector<32x32xi32>
    %858 = arith.sitofp %857 : vector<32x32xi32> to vector<32x32xf32>
    %859 = arith.subf %853, %858 : vector<32x32xf32>
    %cst_363 = arith.constant 1.000000e+00 : f32
    %860 = vector.broadcast %cst_363 : f32 to vector<32x32xf32>
    %861 = arith.cmpf oge, %812, %860 : vector<32x32xf32>
    %862 = arith.extui %861 : vector<32x32xi1> to vector<32x32xi32>
    %863 = arith.sitofp %862 : vector<32x32xi32> to vector<32x32xf32>
    %864 = arith.subf %858, %863 : vector<32x32xf32>
    %cst_364 = arith.constant 1.400000e+00 : f32
    %865 = vector.broadcast %cst_364 : f32 to vector<32x32xf32>
    %866 = arith.cmpf oge, %812, %865 : vector<32x32xf32>
    %867 = arith.extui %866 : vector<32x32xi1> to vector<32x32xi32>
    %868 = arith.sitofp %867 : vector<32x32xi32> to vector<32x32xf32>
    %869 = arith.subf %863, %868 : vector<32x32xf32>
    %cst_365 = arith.constant 1.800000e+00 : f32
    %870 = vector.broadcast %cst_365 : f32 to vector<32x32xf32>
    %871 = arith.cmpf oge, %812, %870 : vector<32x32xf32>
    %872 = arith.extui %871 : vector<32x32xi1> to vector<32x32xi32>
    %873 = arith.sitofp %872 : vector<32x32xi32> to vector<32x32xf32>
    %874 = arith.subf %868, %873 : vector<32x32xf32>
    %cst_366 = arith.constant 2.200000e+00 : f32
    %875 = vector.broadcast %cst_366 : f32 to vector<32x32xf32>
    %876 = arith.cmpf oge, %812, %875 : vector<32x32xf32>
    %877 = arith.extui %876 : vector<32x32xi1> to vector<32x32xi32>
    %878 = arith.sitofp %877 : vector<32x32xi32> to vector<32x32xf32>
    %879 = arith.subf %873, %878 : vector<32x32xf32>
    %cst_367 = arith.constant -2.200000e+00 : f32
    %880 = vector.broadcast %cst_367 : f32 to vector<32x32xf32>
    %881 = arith.subf %812, %880 : vector<32x32xf32>
    %cst_368 = arith.constant 2.500000e+00 : f32
    %882 = vector.broadcast %cst_368 : f32 to vector<32x32xf32>
    %883 = arith.mulf %881, %882 : vector<32x32xf32>
    %884 = arith.mulf %883, %829 : vector<32x32xf32>
    %cst_369 = arith.constant -1.400000e+00 : f32
    %885 = vector.broadcast %cst_369 : f32 to vector<32x32xf32>
    %886 = arith.subf %885, %812 : vector<32x32xf32>
    %cst_370 = arith.constant 2.500000e+00 : f32
    %887 = vector.broadcast %cst_370 : f32 to vector<32x32xf32>
    %888 = arith.mulf %886, %887 : vector<32x32xf32>
    %889 = arith.mulf %888, %834 : vector<32x32xf32>
    %890 = arith.addf %884, %889 : vector<32x32xf32>
    %cst_371 = arith.constant -1.800000e+00 : f32
    %891 = vector.broadcast %cst_371 : f32 to vector<32x32xf32>
    %892 = arith.subf %812, %891 : vector<32x32xf32>
    %cst_372 = arith.constant 2.500000e+00 : f32
    %893 = vector.broadcast %cst_372 : f32 to vector<32x32xf32>
    %894 = arith.mulf %892, %893 : vector<32x32xf32>
    %895 = arith.mulf %894, %834 : vector<32x32xf32>
    %cst_373 = arith.constant -1.000000e+00 : f32
    %896 = vector.broadcast %cst_373 : f32 to vector<32x32xf32>
    %897 = arith.subf %896, %812 : vector<32x32xf32>
    %cst_374 = arith.constant 2.500000e+00 : f32
    %898 = vector.broadcast %cst_374 : f32 to vector<32x32xf32>
    %899 = arith.mulf %897, %898 : vector<32x32xf32>
    %900 = arith.mulf %899, %839 : vector<32x32xf32>
    %901 = arith.addf %895, %900 : vector<32x32xf32>
    %cst_375 = arith.constant -1.400000e+00 : f32
    %902 = vector.broadcast %cst_375 : f32 to vector<32x32xf32>
    %903 = arith.subf %812, %902 : vector<32x32xf32>
    %cst_376 = arith.constant 2.500000e+00 : f32
    %904 = vector.broadcast %cst_376 : f32 to vector<32x32xf32>
    %905 = arith.mulf %903, %904 : vector<32x32xf32>
    %906 = arith.mulf %905, %839 : vector<32x32xf32>
    %cst_377 = arith.constant -6.000000e-01 : f32
    %907 = vector.broadcast %cst_377 : f32 to vector<32x32xf32>
    %908 = arith.subf %907, %812 : vector<32x32xf32>
    %cst_378 = arith.constant 2.500000e+00 : f32
    %909 = vector.broadcast %cst_378 : f32 to vector<32x32xf32>
    %910 = arith.mulf %908, %909 : vector<32x32xf32>
    %911 = arith.mulf %910, %844 : vector<32x32xf32>
    %912 = arith.addf %906, %911 : vector<32x32xf32>
    %cst_379 = arith.constant -1.000000e+00 : f32
    %913 = vector.broadcast %cst_379 : f32 to vector<32x32xf32>
    %914 = arith.subf %812, %913 : vector<32x32xf32>
    %cst_380 = arith.constant 2.500000e+00 : f32
    %915 = vector.broadcast %cst_380 : f32 to vector<32x32xf32>
    %916 = arith.mulf %914, %915 : vector<32x32xf32>
    %917 = arith.mulf %916, %844 : vector<32x32xf32>
    %cst_381 = arith.constant -2.000000e-01 : f32
    %918 = vector.broadcast %cst_381 : f32 to vector<32x32xf32>
    %919 = arith.subf %918, %812 : vector<32x32xf32>
    %cst_382 = arith.constant 2.500000e+00 : f32
    %920 = vector.broadcast %cst_382 : f32 to vector<32x32xf32>
    %921 = arith.mulf %919, %920 : vector<32x32xf32>
    %922 = arith.mulf %921, %849 : vector<32x32xf32>
    %923 = arith.addf %917, %922 : vector<32x32xf32>
    %cst_383 = arith.constant -6.000000e-01 : f32
    %924 = vector.broadcast %cst_383 : f32 to vector<32x32xf32>
    %925 = arith.subf %812, %924 : vector<32x32xf32>
    %cst_384 = arith.constant 2.500000e+00 : f32
    %926 = vector.broadcast %cst_384 : f32 to vector<32x32xf32>
    %927 = arith.mulf %925, %926 : vector<32x32xf32>
    %928 = arith.mulf %927, %849 : vector<32x32xf32>
    %cst_385 = arith.constant 2.000000e-01 : f32
    %929 = vector.broadcast %cst_385 : f32 to vector<32x32xf32>
    %930 = arith.subf %929, %812 : vector<32x32xf32>
    %cst_386 = arith.constant 2.500000e+00 : f32
    %931 = vector.broadcast %cst_386 : f32 to vector<32x32xf32>
    %932 = arith.mulf %930, %931 : vector<32x32xf32>
    %933 = arith.mulf %932, %854 : vector<32x32xf32>
    %934 = arith.addf %928, %933 : vector<32x32xf32>
    %cst_387 = arith.constant -2.000000e-01 : f32
    %935 = vector.broadcast %cst_387 : f32 to vector<32x32xf32>
    %936 = arith.subf %812, %935 : vector<32x32xf32>
    %cst_388 = arith.constant 2.500000e+00 : f32
    %937 = vector.broadcast %cst_388 : f32 to vector<32x32xf32>
    %938 = arith.mulf %936, %937 : vector<32x32xf32>
    %939 = arith.mulf %938, %854 : vector<32x32xf32>
    %cst_389 = arith.constant 6.000000e-01 : f32
    %940 = vector.broadcast %cst_389 : f32 to vector<32x32xf32>
    %941 = arith.subf %940, %812 : vector<32x32xf32>
    %cst_390 = arith.constant 2.500000e+00 : f32
    %942 = vector.broadcast %cst_390 : f32 to vector<32x32xf32>
    %943 = arith.mulf %941, %942 : vector<32x32xf32>
    %944 = arith.mulf %943, %859 : vector<32x32xf32>
    %945 = arith.addf %939, %944 : vector<32x32xf32>
    %cst_391 = arith.constant 2.000000e-01 : f32
    %946 = vector.broadcast %cst_391 : f32 to vector<32x32xf32>
    %947 = arith.subf %812, %946 : vector<32x32xf32>
    %cst_392 = arith.constant 2.500000e+00 : f32
    %948 = vector.broadcast %cst_392 : f32 to vector<32x32xf32>
    %949 = arith.mulf %947, %948 : vector<32x32xf32>
    %950 = arith.mulf %949, %859 : vector<32x32xf32>
    %cst_393 = arith.constant 1.000000e+00 : f32
    %951 = vector.broadcast %cst_393 : f32 to vector<32x32xf32>
    %952 = arith.subf %951, %812 : vector<32x32xf32>
    %cst_394 = arith.constant 2.500000e+00 : f32
    %953 = vector.broadcast %cst_394 : f32 to vector<32x32xf32>
    %954 = arith.mulf %952, %953 : vector<32x32xf32>
    %955 = arith.mulf %954, %864 : vector<32x32xf32>
    %956 = arith.addf %950, %955 : vector<32x32xf32>
    %cst_395 = arith.constant 6.000000e-01 : f32
    %957 = vector.broadcast %cst_395 : f32 to vector<32x32xf32>
    %958 = arith.subf %812, %957 : vector<32x32xf32>
    %cst_396 = arith.constant 2.500000e+00 : f32
    %959 = vector.broadcast %cst_396 : f32 to vector<32x32xf32>
    %960 = arith.mulf %958, %959 : vector<32x32xf32>
    %961 = arith.mulf %960, %864 : vector<32x32xf32>
    %cst_397 = arith.constant 1.400000e+00 : f32
    %962 = vector.broadcast %cst_397 : f32 to vector<32x32xf32>
    %963 = arith.subf %962, %812 : vector<32x32xf32>
    %cst_398 = arith.constant 2.500000e+00 : f32
    %964 = vector.broadcast %cst_398 : f32 to vector<32x32xf32>
    %965 = arith.mulf %963, %964 : vector<32x32xf32>
    %966 = arith.mulf %965, %869 : vector<32x32xf32>
    %967 = arith.addf %961, %966 : vector<32x32xf32>
    %cst_399 = arith.constant 1.000000e+00 : f32
    %968 = vector.broadcast %cst_399 : f32 to vector<32x32xf32>
    %969 = arith.subf %812, %968 : vector<32x32xf32>
    %cst_400 = arith.constant 2.500000e+00 : f32
    %970 = vector.broadcast %cst_400 : f32 to vector<32x32xf32>
    %971 = arith.mulf %969, %970 : vector<32x32xf32>
    %972 = arith.mulf %971, %869 : vector<32x32xf32>
    %cst_401 = arith.constant 1.800000e+00 : f32
    %973 = vector.broadcast %cst_401 : f32 to vector<32x32xf32>
    %974 = arith.subf %973, %812 : vector<32x32xf32>
    %cst_402 = arith.constant 2.500000e+00 : f32
    %975 = vector.broadcast %cst_402 : f32 to vector<32x32xf32>
    %976 = arith.mulf %974, %975 : vector<32x32xf32>
    %977 = arith.mulf %976, %874 : vector<32x32xf32>
    %978 = arith.addf %972, %977 : vector<32x32xf32>
    %cst_403 = arith.constant 1.400000e+00 : f32
    %979 = vector.broadcast %cst_403 : f32 to vector<32x32xf32>
    %980 = arith.subf %812, %979 : vector<32x32xf32>
    %cst_404 = arith.constant 2.500000e+00 : f32
    %981 = vector.broadcast %cst_404 : f32 to vector<32x32xf32>
    %982 = arith.mulf %980, %981 : vector<32x32xf32>
    %983 = arith.mulf %982, %874 : vector<32x32xf32>
    %cst_405 = arith.constant 2.200000e+00 : f32
    %984 = vector.broadcast %cst_405 : f32 to vector<32x32xf32>
    %985 = arith.subf %984, %812 : vector<32x32xf32>
    %cst_406 = arith.constant 2.500000e+00 : f32
    %986 = vector.broadcast %cst_406 : f32 to vector<32x32xf32>
    %987 = arith.mulf %985, %986 : vector<32x32xf32>
    %988 = arith.mulf %987, %879 : vector<32x32xf32>
    %989 = arith.addf %983, %988 : vector<32x32xf32>
    %cst_407 = arith.constant -2.200000e+00 : f32
    %990 = vector.broadcast %cst_407 : f32 to vector<32x32xf32>
    %991 = arith.subf %812, %990 : vector<32x32xf32>
    %cst_408 = arith.constant 1.250000e+00 : f32
    %992 = vector.broadcast %cst_408 : f32 to vector<32x32xf32>
    %993 = arith.mulf %991, %992 : vector<32x32xf32>
    %994 = arith.mulf %993, %890 : vector<32x32xf32>
    %cst_409 = arith.constant -1.000000e+00 : f32
    %995 = vector.broadcast %cst_409 : f32 to vector<32x32xf32>
    %996 = arith.subf %995, %812 : vector<32x32xf32>
    %cst_410 = arith.constant 1.250000e+00 : f32
    %997 = vector.broadcast %cst_410 : f32 to vector<32x32xf32>
    %998 = arith.mulf %996, %997 : vector<32x32xf32>
    %999 = arith.mulf %998, %901 : vector<32x32xf32>
    %1000 = arith.addf %994, %999 : vector<32x32xf32>
    %cst_411 = arith.constant -1.800000e+00 : f32
    %1001 = vector.broadcast %cst_411 : f32 to vector<32x32xf32>
    %1002 = arith.subf %812, %1001 : vector<32x32xf32>
    %cst_412 = arith.constant 1.250000e+00 : f32
    %1003 = vector.broadcast %cst_412 : f32 to vector<32x32xf32>
    %1004 = arith.mulf %1002, %1003 : vector<32x32xf32>
    %1005 = arith.mulf %1004, %901 : vector<32x32xf32>
    %cst_413 = arith.constant -6.000000e-01 : f32
    %1006 = vector.broadcast %cst_413 : f32 to vector<32x32xf32>
    %1007 = arith.subf %1006, %812 : vector<32x32xf32>
    %cst_414 = arith.constant 1.250000e+00 : f32
    %1008 = vector.broadcast %cst_414 : f32 to vector<32x32xf32>
    %1009 = arith.mulf %1007, %1008 : vector<32x32xf32>
    %1010 = arith.mulf %1009, %912 : vector<32x32xf32>
    %1011 = arith.addf %1005, %1010 : vector<32x32xf32>
    %cst_415 = arith.constant -1.400000e+00 : f32
    %1012 = vector.broadcast %cst_415 : f32 to vector<32x32xf32>
    %1013 = arith.subf %812, %1012 : vector<32x32xf32>
    %cst_416 = arith.constant 1.250000e+00 : f32
    %1014 = vector.broadcast %cst_416 : f32 to vector<32x32xf32>
    %1015 = arith.mulf %1013, %1014 : vector<32x32xf32>
    %1016 = arith.mulf %1015, %912 : vector<32x32xf32>
    %cst_417 = arith.constant -2.000000e-01 : f32
    %1017 = vector.broadcast %cst_417 : f32 to vector<32x32xf32>
    %1018 = arith.subf %1017, %812 : vector<32x32xf32>
    %cst_418 = arith.constant 1.250000e+00 : f32
    %1019 = vector.broadcast %cst_418 : f32 to vector<32x32xf32>
    %1020 = arith.mulf %1018, %1019 : vector<32x32xf32>
    %1021 = arith.mulf %1020, %923 : vector<32x32xf32>
    %1022 = arith.addf %1016, %1021 : vector<32x32xf32>
    %cst_419 = arith.constant -1.000000e+00 : f32
    %1023 = vector.broadcast %cst_419 : f32 to vector<32x32xf32>
    %1024 = arith.subf %812, %1023 : vector<32x32xf32>
    %cst_420 = arith.constant 1.250000e+00 : f32
    %1025 = vector.broadcast %cst_420 : f32 to vector<32x32xf32>
    %1026 = arith.mulf %1024, %1025 : vector<32x32xf32>
    %1027 = arith.mulf %1026, %923 : vector<32x32xf32>
    %cst_421 = arith.constant 2.000000e-01 : f32
    %1028 = vector.broadcast %cst_421 : f32 to vector<32x32xf32>
    %1029 = arith.subf %1028, %812 : vector<32x32xf32>
    %cst_422 = arith.constant 1.250000e+00 : f32
    %1030 = vector.broadcast %cst_422 : f32 to vector<32x32xf32>
    %1031 = arith.mulf %1029, %1030 : vector<32x32xf32>
    %1032 = arith.mulf %1031, %934 : vector<32x32xf32>
    %1033 = arith.addf %1027, %1032 : vector<32x32xf32>
    %cst_423 = arith.constant -6.000000e-01 : f32
    %1034 = vector.broadcast %cst_423 : f32 to vector<32x32xf32>
    %1035 = arith.subf %812, %1034 : vector<32x32xf32>
    %cst_424 = arith.constant 1.250000e+00 : f32
    %1036 = vector.broadcast %cst_424 : f32 to vector<32x32xf32>
    %1037 = arith.mulf %1035, %1036 : vector<32x32xf32>
    %1038 = arith.mulf %1037, %934 : vector<32x32xf32>
    %cst_425 = arith.constant 6.000000e-01 : f32
    %1039 = vector.broadcast %cst_425 : f32 to vector<32x32xf32>
    %1040 = arith.subf %1039, %812 : vector<32x32xf32>
    %cst_426 = arith.constant 1.250000e+00 : f32
    %1041 = vector.broadcast %cst_426 : f32 to vector<32x32xf32>
    %1042 = arith.mulf %1040, %1041 : vector<32x32xf32>
    %1043 = arith.mulf %1042, %945 : vector<32x32xf32>
    %1044 = arith.addf %1038, %1043 : vector<32x32xf32>
    %cst_427 = arith.constant -2.000000e-01 : f32
    %1045 = vector.broadcast %cst_427 : f32 to vector<32x32xf32>
    %1046 = arith.subf %812, %1045 : vector<32x32xf32>
    %cst_428 = arith.constant 1.250000e+00 : f32
    %1047 = vector.broadcast %cst_428 : f32 to vector<32x32xf32>
    %1048 = arith.mulf %1046, %1047 : vector<32x32xf32>
    %1049 = arith.mulf %1048, %945 : vector<32x32xf32>
    %cst_429 = arith.constant 1.000000e+00 : f32
    %1050 = vector.broadcast %cst_429 : f32 to vector<32x32xf32>
    %1051 = arith.subf %1050, %812 : vector<32x32xf32>
    %cst_430 = arith.constant 1.250000e+00 : f32
    %1052 = vector.broadcast %cst_430 : f32 to vector<32x32xf32>
    %1053 = arith.mulf %1051, %1052 : vector<32x32xf32>
    %1054 = arith.mulf %1053, %956 : vector<32x32xf32>
    %1055 = arith.addf %1049, %1054 : vector<32x32xf32>
    %cst_431 = arith.constant 2.000000e-01 : f32
    %1056 = vector.broadcast %cst_431 : f32 to vector<32x32xf32>
    %1057 = arith.subf %812, %1056 : vector<32x32xf32>
    %cst_432 = arith.constant 1.250000e+00 : f32
    %1058 = vector.broadcast %cst_432 : f32 to vector<32x32xf32>
    %1059 = arith.mulf %1057, %1058 : vector<32x32xf32>
    %1060 = arith.mulf %1059, %956 : vector<32x32xf32>
    %cst_433 = arith.constant 1.400000e+00 : f32
    %1061 = vector.broadcast %cst_433 : f32 to vector<32x32xf32>
    %1062 = arith.subf %1061, %812 : vector<32x32xf32>
    %cst_434 = arith.constant 1.250000e+00 : f32
    %1063 = vector.broadcast %cst_434 : f32 to vector<32x32xf32>
    %1064 = arith.mulf %1062, %1063 : vector<32x32xf32>
    %1065 = arith.mulf %1064, %967 : vector<32x32xf32>
    %1066 = arith.addf %1060, %1065 : vector<32x32xf32>
    %cst_435 = arith.constant 6.000000e-01 : f32
    %1067 = vector.broadcast %cst_435 : f32 to vector<32x32xf32>
    %1068 = arith.subf %812, %1067 : vector<32x32xf32>
    %cst_436 = arith.constant 1.250000e+00 : f32
    %1069 = vector.broadcast %cst_436 : f32 to vector<32x32xf32>
    %1070 = arith.mulf %1068, %1069 : vector<32x32xf32>
    %1071 = arith.mulf %1070, %967 : vector<32x32xf32>
    %cst_437 = arith.constant 1.800000e+00 : f32
    %1072 = vector.broadcast %cst_437 : f32 to vector<32x32xf32>
    %1073 = arith.subf %1072, %812 : vector<32x32xf32>
    %cst_438 = arith.constant 1.250000e+00 : f32
    %1074 = vector.broadcast %cst_438 : f32 to vector<32x32xf32>
    %1075 = arith.mulf %1073, %1074 : vector<32x32xf32>
    %1076 = arith.mulf %1075, %978 : vector<32x32xf32>
    %1077 = arith.addf %1071, %1076 : vector<32x32xf32>
    %cst_439 = arith.constant 1.000000e+00 : f32
    %1078 = vector.broadcast %cst_439 : f32 to vector<32x32xf32>
    %1079 = arith.subf %812, %1078 : vector<32x32xf32>
    %cst_440 = arith.constant 1.250000e+00 : f32
    %1080 = vector.broadcast %cst_440 : f32 to vector<32x32xf32>
    %1081 = arith.mulf %1079, %1080 : vector<32x32xf32>
    %1082 = arith.mulf %1081, %978 : vector<32x32xf32>
    %cst_441 = arith.constant 2.200000e+00 : f32
    %1083 = vector.broadcast %cst_441 : f32 to vector<32x32xf32>
    %1084 = arith.subf %1083, %812 : vector<32x32xf32>
    %cst_442 = arith.constant 1.250000e+00 : f32
    %1085 = vector.broadcast %cst_442 : f32 to vector<32x32xf32>
    %1086 = arith.mulf %1084, %1085 : vector<32x32xf32>
    %1087 = arith.mulf %1086, %989 : vector<32x32xf32>
    %1088 = arith.addf %1082, %1087 : vector<32x32xf32>
    %cst_443 = arith.constant -2.200000e+00 : f32
    %1089 = vector.broadcast %cst_443 : f32 to vector<32x32xf32>
    %1090 = arith.subf %812, %1089 : vector<32x32xf32>
    %cst_444 = arith.constant 0.833333313 : f32
    %1091 = vector.broadcast %cst_444 : f32 to vector<32x32xf32>
    %1092 = arith.mulf %1090, %1091 : vector<32x32xf32>
    %1093 = arith.mulf %1092, %1000 : vector<32x32xf32>
    %cst_445 = arith.constant -6.000000e-01 : f32
    %1094 = vector.broadcast %cst_445 : f32 to vector<32x32xf32>
    %1095 = arith.subf %1094, %812 : vector<32x32xf32>
    %cst_446 = arith.constant 0.833333313 : f32
    %1096 = vector.broadcast %cst_446 : f32 to vector<32x32xf32>
    %1097 = arith.mulf %1095, %1096 : vector<32x32xf32>
    %1098 = arith.mulf %1097, %1011 : vector<32x32xf32>
    %1099 = arith.addf %1093, %1098 : vector<32x32xf32>
    %cst_447 = arith.constant -1.800000e+00 : f32
    %1100 = vector.broadcast %cst_447 : f32 to vector<32x32xf32>
    %1101 = arith.subf %812, %1100 : vector<32x32xf32>
    %cst_448 = arith.constant 0.833333313 : f32
    %1102 = vector.broadcast %cst_448 : f32 to vector<32x32xf32>
    %1103 = arith.mulf %1101, %1102 : vector<32x32xf32>
    %1104 = arith.mulf %1103, %1011 : vector<32x32xf32>
    %cst_449 = arith.constant -2.000000e-01 : f32
    %1105 = vector.broadcast %cst_449 : f32 to vector<32x32xf32>
    %1106 = arith.subf %1105, %812 : vector<32x32xf32>
    %cst_450 = arith.constant 0.833333313 : f32
    %1107 = vector.broadcast %cst_450 : f32 to vector<32x32xf32>
    %1108 = arith.mulf %1106, %1107 : vector<32x32xf32>
    %1109 = arith.mulf %1108, %1022 : vector<32x32xf32>
    %1110 = arith.addf %1104, %1109 : vector<32x32xf32>
    %cst_451 = arith.constant -1.400000e+00 : f32
    %1111 = vector.broadcast %cst_451 : f32 to vector<32x32xf32>
    %1112 = arith.subf %812, %1111 : vector<32x32xf32>
    %cst_452 = arith.constant 0.833333313 : f32
    %1113 = vector.broadcast %cst_452 : f32 to vector<32x32xf32>
    %1114 = arith.mulf %1112, %1113 : vector<32x32xf32>
    %1115 = arith.mulf %1114, %1022 : vector<32x32xf32>
    %cst_453 = arith.constant 2.000000e-01 : f32
    %1116 = vector.broadcast %cst_453 : f32 to vector<32x32xf32>
    %1117 = arith.subf %1116, %812 : vector<32x32xf32>
    %cst_454 = arith.constant 0.833333313 : f32
    %1118 = vector.broadcast %cst_454 : f32 to vector<32x32xf32>
    %1119 = arith.mulf %1117, %1118 : vector<32x32xf32>
    %1120 = arith.mulf %1119, %1033 : vector<32x32xf32>
    %1121 = arith.addf %1115, %1120 : vector<32x32xf32>
    %cst_455 = arith.constant -1.000000e+00 : f32
    %1122 = vector.broadcast %cst_455 : f32 to vector<32x32xf32>
    %1123 = arith.subf %812, %1122 : vector<32x32xf32>
    %cst_456 = arith.constant 0.833333313 : f32
    %1124 = vector.broadcast %cst_456 : f32 to vector<32x32xf32>
    %1125 = arith.mulf %1123, %1124 : vector<32x32xf32>
    %1126 = arith.mulf %1125, %1033 : vector<32x32xf32>
    %cst_457 = arith.constant 6.000000e-01 : f32
    %1127 = vector.broadcast %cst_457 : f32 to vector<32x32xf32>
    %1128 = arith.subf %1127, %812 : vector<32x32xf32>
    %cst_458 = arith.constant 0.833333313 : f32
    %1129 = vector.broadcast %cst_458 : f32 to vector<32x32xf32>
    %1130 = arith.mulf %1128, %1129 : vector<32x32xf32>
    %1131 = arith.mulf %1130, %1044 : vector<32x32xf32>
    %1132 = arith.addf %1126, %1131 : vector<32x32xf32>
    %cst_459 = arith.constant -6.000000e-01 : f32
    %1133 = vector.broadcast %cst_459 : f32 to vector<32x32xf32>
    %1134 = arith.subf %812, %1133 : vector<32x32xf32>
    %cst_460 = arith.constant 0.833333313 : f32
    %1135 = vector.broadcast %cst_460 : f32 to vector<32x32xf32>
    %1136 = arith.mulf %1134, %1135 : vector<32x32xf32>
    %1137 = arith.mulf %1136, %1044 : vector<32x32xf32>
    %cst_461 = arith.constant 1.000000e+00 : f32
    %1138 = vector.broadcast %cst_461 : f32 to vector<32x32xf32>
    %1139 = arith.subf %1138, %812 : vector<32x32xf32>
    %cst_462 = arith.constant 0.833333313 : f32
    %1140 = vector.broadcast %cst_462 : f32 to vector<32x32xf32>
    %1141 = arith.mulf %1139, %1140 : vector<32x32xf32>
    %1142 = arith.mulf %1141, %1055 : vector<32x32xf32>
    %1143 = arith.addf %1137, %1142 : vector<32x32xf32>
    %cst_463 = arith.constant -2.000000e-01 : f32
    %1144 = vector.broadcast %cst_463 : f32 to vector<32x32xf32>
    %1145 = arith.subf %812, %1144 : vector<32x32xf32>
    %cst_464 = arith.constant 0.833333313 : f32
    %1146 = vector.broadcast %cst_464 : f32 to vector<32x32xf32>
    %1147 = arith.mulf %1145, %1146 : vector<32x32xf32>
    %1148 = arith.mulf %1147, %1055 : vector<32x32xf32>
    %cst_465 = arith.constant 1.400000e+00 : f32
    %1149 = vector.broadcast %cst_465 : f32 to vector<32x32xf32>
    %1150 = arith.subf %1149, %812 : vector<32x32xf32>
    %cst_466 = arith.constant 0.833333313 : f32
    %1151 = vector.broadcast %cst_466 : f32 to vector<32x32xf32>
    %1152 = arith.mulf %1150, %1151 : vector<32x32xf32>
    %1153 = arith.mulf %1152, %1066 : vector<32x32xf32>
    %1154 = arith.addf %1148, %1153 : vector<32x32xf32>
    %cst_467 = arith.constant 2.000000e-01 : f32
    %1155 = vector.broadcast %cst_467 : f32 to vector<32x32xf32>
    %1156 = arith.subf %812, %1155 : vector<32x32xf32>
    %cst_468 = arith.constant 0.833333313 : f32
    %1157 = vector.broadcast %cst_468 : f32 to vector<32x32xf32>
    %1158 = arith.mulf %1156, %1157 : vector<32x32xf32>
    %1159 = arith.mulf %1158, %1066 : vector<32x32xf32>
    %cst_469 = arith.constant 1.800000e+00 : f32
    %1160 = vector.broadcast %cst_469 : f32 to vector<32x32xf32>
    %1161 = arith.subf %1160, %812 : vector<32x32xf32>
    %cst_470 = arith.constant 0.833333313 : f32
    %1162 = vector.broadcast %cst_470 : f32 to vector<32x32xf32>
    %1163 = arith.mulf %1161, %1162 : vector<32x32xf32>
    %1164 = arith.mulf %1163, %1077 : vector<32x32xf32>
    %1165 = arith.addf %1159, %1164 : vector<32x32xf32>
    %cst_471 = arith.constant 6.000000e-01 : f32
    %1166 = vector.broadcast %cst_471 : f32 to vector<32x32xf32>
    %1167 = arith.subf %812, %1166 : vector<32x32xf32>
    %cst_472 = arith.constant 0.833333313 : f32
    %1168 = vector.broadcast %cst_472 : f32 to vector<32x32xf32>
    %1169 = arith.mulf %1167, %1168 : vector<32x32xf32>
    %1170 = arith.mulf %1169, %1077 : vector<32x32xf32>
    %cst_473 = arith.constant 2.200000e+00 : f32
    %1171 = vector.broadcast %cst_473 : f32 to vector<32x32xf32>
    %1172 = arith.subf %1171, %812 : vector<32x32xf32>
    %cst_474 = arith.constant 0.833333313 : f32
    %1173 = vector.broadcast %cst_474 : f32 to vector<32x32xf32>
    %1174 = arith.mulf %1172, %1173 : vector<32x32xf32>
    %1175 = arith.mulf %1174, %1088 : vector<32x32xf32>
    %1176 = arith.addf %1170, %1175 : vector<32x32xf32>
    %c1_475 = arith.constant 1 : index
    %c0_476 = arith.constant 0 : index
    %c0_477 = arith.constant 0 : index
    %c0_478 = arith.constant 0 : index
    %1177 = vector.load %arg4[%c1_475, %c0_476, %c0_477, %c0_478] : memref<2x9x32x32xf32, #tpu.memory_space<vmem>>, vector<1x1x32x32xf32>
    %1178 = vector.shape_cast %1177 : vector<1x1x32x32xf32> to vector<32x32xf32>
    %cst_479 = arith.constant dense<0.000000e+00> : vector<32x32xf32>
    %1179 = tpu.matmul %820, %1178, %cst_479 {dimension_numbers = #tpu.dot_dimension_numbers<[1], [0], [0], [1], [0, 0, 1, 1], [], []>} : vector<32x32xf32>, vector<32x32xf32>, vector<32x32xf32> -> vector<32x32xf32>
    %c1_480 = arith.constant 1 : index
    %c1_481 = arith.constant 1 : index
    %c0_482 = arith.constant 0 : index
    %c0_483 = arith.constant 0 : index
    %1180 = vector.load %arg4[%c1_480, %c1_481, %c0_482, %c0_483] : memref<2x9x32x32xf32, #tpu.memory_space<vmem>>, vector<1x1x32x32xf32>
    %1181 = vector.shape_cast %1180 : vector<1x1x32x32xf32> to vector<32x32xf32>
    %cst_484 = arith.constant dense<0.000000e+00> : vector<32x32xf32>
    %1182 = tpu.matmul %1099, %1181, %cst_484 {dimension_numbers = #tpu.dot_dimension_numbers<[1], [0], [0], [1], [0, 0, 1, 1], [], []>} : vector<32x32xf32>, vector<32x32xf32>, vector<32x32xf32> -> vector<32x32xf32>
    %1183 = arith.addf %1179, %1182 : vector<32x32xf32>
    %c1_485 = arith.constant 1 : index
    %c2_486 = arith.constant 2 : index
    %c0_487 = arith.constant 0 : index
    %c0_488 = arith.constant 0 : index
    %1184 = vector.load %arg4[%c1_485, %c2_486, %c0_487, %c0_488] : memref<2x9x32x32xf32, #tpu.memory_space<vmem>>, vector<1x1x32x32xf32>
    %1185 = vector.shape_cast %1184 : vector<1x1x32x32xf32> to vector<32x32xf32>
    %cst_489 = arith.constant dense<0.000000e+00> : vector<32x32xf32>
    %1186 = tpu.matmul %1110, %1185, %cst_489 {dimension_numbers = #tpu.dot_dimension_numbers<[1], [0], [0], [1], [0, 0, 1, 1], [], []>} : vector<32x32xf32>, vector<32x32xf32>, vector<32x32xf32> -> vector<32x32xf32>
    %1187 = arith.addf %1183, %1186 : vector<32x32xf32>
    %c1_490 = arith.constant 1 : index
    %c3_491 = arith.constant 3 : index
    %c0_492 = arith.constant 0 : index
    %c0_493 = arith.constant 0 : index
    %1188 = vector.load %arg4[%c1_490, %c3_491, %c0_492, %c0_493] : memref<2x9x32x32xf32, #tpu.memory_space<vmem>>, vector<1x1x32x32xf32>
    %1189 = vector.shape_cast %1188 : vector<1x1x32x32xf32> to vector<32x32xf32>
    %cst_494 = arith.constant dense<0.000000e+00> : vector<32x32xf32>
    %1190 = tpu.matmul %1121, %1189, %cst_494 {dimension_numbers = #tpu.dot_dimension_numbers<[1], [0], [0], [1], [0, 0, 1, 1], [], []>} : vector<32x32xf32>, vector<32x32xf32>, vector<32x32xf32> -> vector<32x32xf32>
    %1191 = arith.addf %1187, %1190 : vector<32x32xf32>
    %c1_495 = arith.constant 1 : index
    %c4_496 = arith.constant 4 : index
    %c0_497 = arith.constant 0 : index
    %c0_498 = arith.constant 0 : index
    %1192 = vector.load %arg4[%c1_495, %c4_496, %c0_497, %c0_498] : memref<2x9x32x32xf32, #tpu.memory_space<vmem>>, vector<1x1x32x32xf32>
    %1193 = vector.shape_cast %1192 : vector<1x1x32x32xf32> to vector<32x32xf32>
    %cst_499 = arith.constant dense<0.000000e+00> : vector<32x32xf32>
    %1194 = tpu.matmul %1132, %1193, %cst_499 {dimension_numbers = #tpu.dot_dimension_numbers<[1], [0], [0], [1], [0, 0, 1, 1], [], []>} : vector<32x32xf32>, vector<32x32xf32>, vector<32x32xf32> -> vector<32x32xf32>
    %1195 = arith.addf %1191, %1194 : vector<32x32xf32>
    %c1_500 = arith.constant 1 : index
    %c5_501 = arith.constant 5 : index
    %c0_502 = arith.constant 0 : index
    %c0_503 = arith.constant 0 : index
    %1196 = vector.load %arg4[%c1_500, %c5_501, %c0_502, %c0_503] : memref<2x9x32x32xf32, #tpu.memory_space<vmem>>, vector<1x1x32x32xf32>
    %1197 = vector.shape_cast %1196 : vector<1x1x32x32xf32> to vector<32x32xf32>
    %cst_504 = arith.constant dense<0.000000e+00> : vector<32x32xf32>
    %1198 = tpu.matmul %1143, %1197, %cst_504 {dimension_numbers = #tpu.dot_dimension_numbers<[1], [0], [0], [1], [0, 0, 1, 1], [], []>} : vector<32x32xf32>, vector<32x32xf32>, vector<32x32xf32> -> vector<32x32xf32>
    %1199 = arith.addf %1195, %1198 : vector<32x32xf32>
    %c1_505 = arith.constant 1 : index
    %c6_506 = arith.constant 6 : index
    %c0_507 = arith.constant 0 : index
    %c0_508 = arith.constant 0 : index
    %1200 = vector.load %arg4[%c1_505, %c6_506, %c0_507, %c0_508] : memref<2x9x32x32xf32, #tpu.memory_space<vmem>>, vector<1x1x32x32xf32>
    %1201 = vector.shape_cast %1200 : vector<1x1x32x32xf32> to vector<32x32xf32>
    %cst_509 = arith.constant dense<0.000000e+00> : vector<32x32xf32>
    %1202 = tpu.matmul %1154, %1201, %cst_509 {dimension_numbers = #tpu.dot_dimension_numbers<[1], [0], [0], [1], [0, 0, 1, 1], [], []>} : vector<32x32xf32>, vector<32x32xf32>, vector<32x32xf32> -> vector<32x32xf32>
    %1203 = arith.addf %1199, %1202 : vector<32x32xf32>
    %c1_510 = arith.constant 1 : index
    %c7_511 = arith.constant 7 : index
    %c0_512 = arith.constant 0 : index
    %c0_513 = arith.constant 0 : index
    %1204 = vector.load %arg4[%c1_510, %c7_511, %c0_512, %c0_513] : memref<2x9x32x32xf32, #tpu.memory_space<vmem>>, vector<1x1x32x32xf32>
    %1205 = vector.shape_cast %1204 : vector<1x1x32x32xf32> to vector<32x32xf32>
    %cst_514 = arith.constant dense<0.000000e+00> : vector<32x32xf32>
    %1206 = tpu.matmul %1165, %1205, %cst_514 {dimension_numbers = #tpu.dot_dimension_numbers<[1], [0], [0], [1], [0, 0, 1, 1], [], []>} : vector<32x32xf32>, vector<32x32xf32>, vector<32x32xf32> -> vector<32x32xf32>
    %1207 = arith.addf %1203, %1206 : vector<32x32xf32>
    %c1_515 = arith.constant 1 : index
    %c8_516 = arith.constant 8 : index
    %c0_517 = arith.constant 0 : index
    %c0_518 = arith.constant 0 : index
    %1208 = vector.load %arg4[%c1_515, %c8_516, %c0_517, %c0_518] : memref<2x9x32x32xf32, #tpu.memory_space<vmem>>, vector<1x1x32x32xf32>
    %1209 = vector.shape_cast %1208 : vector<1x1x32x32xf32> to vector<32x32xf32>
    %cst_519 = arith.constant dense<0.000000e+00> : vector<32x32xf32>
    %1210 = tpu.matmul %1176, %1209, %cst_519 {dimension_numbers = #tpu.dot_dimension_numbers<[1], [0], [0], [1], [0, 0, 1, 1], [], []>} : vector<32x32xf32>, vector<32x32xf32>, vector<32x32xf32> -> vector<32x32xf32>
    %1211 = arith.addf %1207, %1210 : vector<32x32xf32>
    %c0_520 = arith.constant 0 : index
    %c0_521 = arith.constant 0 : index
    %1212 = vector.load %arg8[%c0_520, %c0_521] : memref<64x32xf32, #tpu.memory_space<vmem>>, vector<32x32xf32>
    tpu.vector_store %arg8[%c0_520, %c0_521], %1211 {strides = array<i32>} : memref<64x32xf32, #tpu.memory_space<vmem>>, vector<32x32xf32>,
    %c32_522 = arith.constant 32 : index
    %c0_523 = arith.constant 0 : index
    %1213 = vector.load %arg7[%c32_522, %c0_523] : memref<64x32xf32, #tpu.memory_space<vmem>>, vector<32x32xf32>
    %cst_524 = arith.constant 5.000000e-01 : f32
    %1214 = vector.broadcast %cst_524 : f32 to vector<32x32xf32>
    %1215 = arith.mulf %1214, %1213 : vector<32x32xf32>
    %1216 = math.tanh %1215 : vector<32x32xf32>
    %cst_525 = arith.constant 1.000000e+00 : f32
    %1217 = vector.broadcast %cst_525 : f32 to vector<32x32xf32>
    %1218 = arith.addf %1216, %1217 : vector<32x32xf32>
    %cst_526 = arith.constant 5.000000e-01 : f32
    %1219 = vector.broadcast %cst_526 : f32 to vector<32x32xf32>
    %1220 = arith.mulf %1219, %1218 : vector<32x32xf32>
    %1221 = arith.mulf %1213, %1220 : vector<32x32xf32>
    %cst_527 = arith.constant -2.200000e+00 : f32
    %1222 = vector.broadcast %cst_527 : f32 to vector<32x32xf32>
    %1223 = arith.cmpf oge, %1213, %1222 : vector<32x32xf32>
    %1224 = arith.extui %1223 : vector<32x32xi1> to vector<32x32xi32>
    %1225 = arith.sitofp %1224 : vector<32x32xi32> to vector<32x32xf32>
    %cst_528 = arith.constant -1.800000e+00 : f32
    %1226 = vector.broadcast %cst_528 : f32 to vector<32x32xf32>
    %1227 = arith.cmpf oge, %1213, %1226 : vector<32x32xf32>
    %1228 = arith.extui %1227 : vector<32x32xi1> to vector<32x32xi32>
    %1229 = arith.sitofp %1228 : vector<32x32xi32> to vector<32x32xf32>
    %1230 = arith.subf %1225, %1229 : vector<32x32xf32>
    %cst_529 = arith.constant -1.400000e+00 : f32
    %1231 = vector.broadcast %cst_529 : f32 to vector<32x32xf32>
    %1232 = arith.cmpf oge, %1213, %1231 : vector<32x32xf32>
    %1233 = arith.extui %1232 : vector<32x32xi1> to vector<32x32xi32>
    %1234 = arith.sitofp %1233 : vector<32x32xi32> to vector<32x32xf32>
    %1235 = arith.subf %1229, %1234 : vector<32x32xf32>
    %cst_530 = arith.constant -1.000000e+00 : f32
    %1236 = vector.broadcast %cst_530 : f32 to vector<32x32xf32>
    %1237 = arith.cmpf oge, %1213, %1236 : vector<32x32xf32>
    %1238 = arith.extui %1237 : vector<32x32xi1> to vector<32x32xi32>
    %1239 = arith.sitofp %1238 : vector<32x32xi32> to vector<32x32xf32>
    %1240 = arith.subf %1234, %1239 : vector<32x32xf32>
    %cst_531 = arith.constant -6.000000e-01 : f32
    %1241 = vector.broadcast %cst_531 : f32 to vector<32x32xf32>
    %1242 = arith.cmpf oge, %1213, %1241 : vector<32x32xf32>
    %1243 = arith.extui %1242 : vector<32x32xi1> to vector<32x32xi32>
    %1244 = arith.sitofp %1243 : vector<32x32xi32> to vector<32x32xf32>
    %1245 = arith.subf %1239, %1244 : vector<32x32xf32>
    %cst_532 = arith.constant -2.000000e-01 : f32
    %1246 = vector.broadcast %cst_532 : f32 to vector<32x32xf32>
    %1247 = arith.cmpf oge, %1213, %1246 : vector<32x32xf32>
    %1248 = arith.extui %1247 : vector<32x32xi1> to vector<32x32xi32>
    %1249 = arith.sitofp %1248 : vector<32x32xi32> to vector<32x32xf32>
    %1250 = arith.subf %1244, %1249 : vector<32x32xf32>
    %cst_533 = arith.constant 2.000000e-01 : f32
    %1251 = vector.broadcast %cst_533 : f32 to vector<32x32xf32>
    %1252 = arith.cmpf oge, %1213, %1251 : vector<32x32xf32>
    %1253 = arith.extui %1252 : vector<32x32xi1> to vector<32x32xi32>
    %1254 = arith.sitofp %1253 : vector<32x32xi32> to vector<32x32xf32>
    %1255 = arith.subf %1249, %1254 : vector<32x32xf32>
    %cst_534 = arith.constant 6.000000e-01 : f32
    %1256 = vector.broadcast %cst_534 : f32 to vector<32x32xf32>
    %1257 = arith.cmpf oge, %1213, %1256 : vector<32x32xf32>
    %1258 = arith.extui %1257 : vector<32x32xi1> to vector<32x32xi32>
    %1259 = arith.sitofp %1258 : vector<32x32xi32> to vector<32x32xf32>
    %1260 = arith.subf %1254, %1259 : vector<32x32xf32>
    %cst_535 = arith.constant 1.000000e+00 : f32
    %1261 = vector.broadcast %cst_535 : f32 to vector<32x32xf32>
    %1262 = arith.cmpf oge, %1213, %1261 : vector<32x32xf32>
    %1263 = arith.extui %1262 : vector<32x32xi1> to vector<32x32xi32>
    %1264 = arith.sitofp %1263 : vector<32x32xi32> to vector<32x32xf32>
    %1265 = arith.subf %1259, %1264 : vector<32x32xf32>
    %cst_536 = arith.constant 1.400000e+00 : f32
    %1266 = vector.broadcast %cst_536 : f32 to vector<32x32xf32>
    %1267 = arith.cmpf oge, %1213, %1266 : vector<32x32xf32>
    %1268 = arith.extui %1267 : vector<32x32xi1> to vector<32x32xi32>
    %1269 = arith.sitofp %1268 : vector<32x32xi32> to vector<32x32xf32>
    %1270 = arith.subf %1264, %1269 : vector<32x32xf32>
    %cst_537 = arith.constant 1.800000e+00 : f32
    %1271 = vector.broadcast %cst_537 : f32 to vector<32x32xf32>
    %1272 = arith.cmpf oge, %1213, %1271 : vector<32x32xf32>
    %1273 = arith.extui %1272 : vector<32x32xi1> to vector<32x32xi32>
    %1274 = arith.sitofp %1273 : vector<32x32xi32> to vector<32x32xf32>
    %1275 = arith.subf %1269, %1274 : vector<32x32xf32>
    %cst_538 = arith.constant 2.200000e+00 : f32
    %1276 = vector.broadcast %cst_538 : f32 to vector<32x32xf32>
    %1277 = arith.cmpf oge, %1213, %1276 : vector<32x32xf32>
    %1278 = arith.extui %1277 : vector<32x32xi1> to vector<32x32xi32>
    %1279 = arith.sitofp %1278 : vector<32x32xi32> to vector<32x32xf32>
    %1280 = arith.subf %1274, %1279 : vector<32x32xf32>
    %cst_539 = arith.constant -2.200000e+00 : f32
    %1281 = vector.broadcast %cst_539 : f32 to vector<32x32xf32>
    %1282 = arith.subf %1213, %1281 : vector<32x32xf32>
    %cst_540 = arith.constant 2.500000e+00 : f32
    %1283 = vector.broadcast %cst_540 : f32 to vector<32x32xf32>
    %1284 = arith.mulf %1282, %1283 : vector<32x32xf32>
    %1285 = arith.mulf %1284, %1230 : vector<32x32xf32>
    %cst_541 = arith.constant -1.400000e+00 : f32
    %1286 = vector.broadcast %cst_541 : f32 to vector<32x32xf32>
    %1287 = arith.subf %1286, %1213 : vector<32x32xf32>
    %cst_542 = arith.constant 2.500000e+00 : f32
    %1288 = vector.broadcast %cst_542 : f32 to vector<32x32xf32>
    %1289 = arith.mulf %1287, %1288 : vector<32x32xf32>
    %1290 = arith.mulf %1289, %1235 : vector<32x32xf32>
    %1291 = arith.addf %1285, %1290 : vector<32x32xf32>
    %cst_543 = arith.constant -1.800000e+00 : f32
    %1292 = vector.broadcast %cst_543 : f32 to vector<32x32xf32>
    %1293 = arith.subf %1213, %1292 : vector<32x32xf32>
    %cst_544 = arith.constant 2.500000e+00 : f32
    %1294 = vector.broadcast %cst_544 : f32 to vector<32x32xf32>
    %1295 = arith.mulf %1293, %1294 : vector<32x32xf32>
    %1296 = arith.mulf %1295, %1235 : vector<32x32xf32>
    %cst_545 = arith.constant -1.000000e+00 : f32
    %1297 = vector.broadcast %cst_545 : f32 to vector<32x32xf32>
    %1298 = arith.subf %1297, %1213 : vector<32x32xf32>
    %cst_546 = arith.constant 2.500000e+00 : f32
    %1299 = vector.broadcast %cst_546 : f32 to vector<32x32xf32>
    %1300 = arith.mulf %1298, %1299 : vector<32x32xf32>
    %1301 = arith.mulf %1300, %1240 : vector<32x32xf32>
    %1302 = arith.addf %1296, %1301 : vector<32x32xf32>
    %cst_547 = arith.constant -1.400000e+00 : f32
    %1303 = vector.broadcast %cst_547 : f32 to vector<32x32xf32>
    %1304 = arith.subf %1213, %1303 : vector<32x32xf32>
    %cst_548 = arith.constant 2.500000e+00 : f32
    %1305 = vector.broadcast %cst_548 : f32 to vector<32x32xf32>
    %1306 = arith.mulf %1304, %1305 : vector<32x32xf32>
    %1307 = arith.mulf %1306, %1240 : vector<32x32xf32>
    %cst_549 = arith.constant -6.000000e-01 : f32
    %1308 = vector.broadcast %cst_549 : f32 to vector<32x32xf32>
    %1309 = arith.subf %1308, %1213 : vector<32x32xf32>
    %cst_550 = arith.constant 2.500000e+00 : f32
    %1310 = vector.broadcast %cst_550 : f32 to vector<32x32xf32>
    %1311 = arith.mulf %1309, %1310 : vector<32x32xf32>
    %1312 = arith.mulf %1311, %1245 : vector<32x32xf32>
    %1313 = arith.addf %1307, %1312 : vector<32x32xf32>
    %cst_551 = arith.constant -1.000000e+00 : f32
    %1314 = vector.broadcast %cst_551 : f32 to vector<32x32xf32>
    %1315 = arith.subf %1213, %1314 : vector<32x32xf32>
    %cst_552 = arith.constant 2.500000e+00 : f32
    %1316 = vector.broadcast %cst_552 : f32 to vector<32x32xf32>
    %1317 = arith.mulf %1315, %1316 : vector<32x32xf32>
    %1318 = arith.mulf %1317, %1245 : vector<32x32xf32>
    %cst_553 = arith.constant -2.000000e-01 : f32
    %1319 = vector.broadcast %cst_553 : f32 to vector<32x32xf32>
    %1320 = arith.subf %1319, %1213 : vector<32x32xf32>
    %cst_554 = arith.constant 2.500000e+00 : f32
    %1321 = vector.broadcast %cst_554 : f32 to vector<32x32xf32>
    %1322 = arith.mulf %1320, %1321 : vector<32x32xf32>
    %1323 = arith.mulf %1322, %1250 : vector<32x32xf32>
    %1324 = arith.addf %1318, %1323 : vector<32x32xf32>
    %cst_555 = arith.constant -6.000000e-01 : f32
    %1325 = vector.broadcast %cst_555 : f32 to vector<32x32xf32>
    %1326 = arith.subf %1213, %1325 : vector<32x32xf32>
    %cst_556 = arith.constant 2.500000e+00 : f32
    %1327 = vector.broadcast %cst_556 : f32 to vector<32x32xf32>
    %1328 = arith.mulf %1326, %1327 : vector<32x32xf32>
    %1329 = arith.mulf %1328, %1250 : vector<32x32xf32>
    %cst_557 = arith.constant 2.000000e-01 : f32
    %1330 = vector.broadcast %cst_557 : f32 to vector<32x32xf32>
    %1331 = arith.subf %1330, %1213 : vector<32x32xf32>
    %cst_558 = arith.constant 2.500000e+00 : f32
    %1332 = vector.broadcast %cst_558 : f32 to vector<32x32xf32>
    %1333 = arith.mulf %1331, %1332 : vector<32x32xf32>
    %1334 = arith.mulf %1333, %1255 : vector<32x32xf32>
    %1335 = arith.addf %1329, %1334 : vector<32x32xf32>
    %cst_559 = arith.constant -2.000000e-01 : f32
    %1336 = vector.broadcast %cst_559 : f32 to vector<32x32xf32>
    %1337 = arith.subf %1213, %1336 : vector<32x32xf32>
    %cst_560 = arith.constant 2.500000e+00 : f32
    %1338 = vector.broadcast %cst_560 : f32 to vector<32x32xf32>
    %1339 = arith.mulf %1337, %1338 : vector<32x32xf32>
    %1340 = arith.mulf %1339, %1255 : vector<32x32xf32>
    %cst_561 = arith.constant 6.000000e-01 : f32
    %1341 = vector.broadcast %cst_561 : f32 to vector<32x32xf32>
    %1342 = arith.subf %1341, %1213 : vector<32x32xf32>
    %cst_562 = arith.constant 2.500000e+00 : f32
    %1343 = vector.broadcast %cst_562 : f32 to vector<32x32xf32>
    %1344 = arith.mulf %1342, %1343 : vector<32x32xf32>
    %1345 = arith.mulf %1344, %1260 : vector<32x32xf32>
    %1346 = arith.addf %1340, %1345 : vector<32x32xf32>
    %cst_563 = arith.constant 2.000000e-01 : f32
    %1347 = vector.broadcast %cst_563 : f32 to vector<32x32xf32>
    %1348 = arith.subf %1213, %1347 : vector<32x32xf32>
    %cst_564 = arith.constant 2.500000e+00 : f32
    %1349 = vector.broadcast %cst_564 : f32 to vector<32x32xf32>
    %1350 = arith.mulf %1348, %1349 : vector<32x32xf32>
    %1351 = arith.mulf %1350, %1260 : vector<32x32xf32>
    %cst_565 = arith.constant 1.000000e+00 : f32
    %1352 = vector.broadcast %cst_565 : f32 to vector<32x32xf32>
    %1353 = arith.subf %1352, %1213 : vector<32x32xf32>
    %cst_566 = arith.constant 2.500000e+00 : f32
    %1354 = vector.broadcast %cst_566 : f32 to vector<32x32xf32>
    %1355 = arith.mulf %1353, %1354 : vector<32x32xf32>
    %1356 = arith.mulf %1355, %1265 : vector<32x32xf32>
    %1357 = arith.addf %1351, %1356 : vector<32x32xf32>
    %cst_567 = arith.constant 6.000000e-01 : f32
    %1358 = vector.broadcast %cst_567 : f32 to vector<32x32xf32>
    %1359 = arith.subf %1213, %1358 : vector<32x32xf32>
    %cst_568 = arith.constant 2.500000e+00 : f32
    %1360 = vector.broadcast %cst_568 : f32 to vector<32x32xf32>
    %1361 = arith.mulf %1359, %1360 : vector<32x32xf32>
    %1362 = arith.mulf %1361, %1265 : vector<32x32xf32>
    %cst_569 = arith.constant 1.400000e+00 : f32
    %1363 = vector.broadcast %cst_569 : f32 to vector<32x32xf32>
    %1364 = arith.subf %1363, %1213 : vector<32x32xf32>
    %cst_570 = arith.constant 2.500000e+00 : f32
    %1365 = vector.broadcast %cst_570 : f32 to vector<32x32xf32>
    %1366 = arith.mulf %1364, %1365 : vector<32x32xf32>
    %1367 = arith.mulf %1366, %1270 : vector<32x32xf32>
    %1368 = arith.addf %1362, %1367 : vector<32x32xf32>
    %cst_571 = arith.constant 1.000000e+00 : f32
    %1369 = vector.broadcast %cst_571 : f32 to vector<32x32xf32>
    %1370 = arith.subf %1213, %1369 : vector<32x32xf32>
    %cst_572 = arith.constant 2.500000e+00 : f32
    %1371 = vector.broadcast %cst_572 : f32 to vector<32x32xf32>
    %1372 = arith.mulf %1370, %1371 : vector<32x32xf32>
    %1373 = arith.mulf %1372, %1270 : vector<32x32xf32>
    %cst_573 = arith.constant 1.800000e+00 : f32
    %1374 = vector.broadcast %cst_573 : f32 to vector<32x32xf32>
    %1375 = arith.subf %1374, %1213 : vector<32x32xf32>
    %cst_574 = arith.constant 2.500000e+00 : f32
    %1376 = vector.broadcast %cst_574 : f32 to vector<32x32xf32>
    %1377 = arith.mulf %1375, %1376 : vector<32x32xf32>
    %1378 = arith.mulf %1377, %1275 : vector<32x32xf32>
    %1379 = arith.addf %1373, %1378 : vector<32x32xf32>
    %cst_575 = arith.constant 1.400000e+00 : f32
    %1380 = vector.broadcast %cst_575 : f32 to vector<32x32xf32>
    %1381 = arith.subf %1213, %1380 : vector<32x32xf32>
    %cst_576 = arith.constant 2.500000e+00 : f32
    %1382 = vector.broadcast %cst_576 : f32 to vector<32x32xf32>
    %1383 = arith.mulf %1381, %1382 : vector<32x32xf32>
    %1384 = arith.mulf %1383, %1275 : vector<32x32xf32>
    %cst_577 = arith.constant 2.200000e+00 : f32
    %1385 = vector.broadcast %cst_577 : f32 to vector<32x32xf32>
    %1386 = arith.subf %1385, %1213 : vector<32x32xf32>
    %cst_578 = arith.constant 2.500000e+00 : f32
    %1387 = vector.broadcast %cst_578 : f32 to vector<32x32xf32>
    %1388 = arith.mulf %1386, %1387 : vector<32x32xf32>
    %1389 = arith.mulf %1388, %1280 : vector<32x32xf32>
    %1390 = arith.addf %1384, %1389 : vector<32x32xf32>
    %cst_579 = arith.constant -2.200000e+00 : f32
    %1391 = vector.broadcast %cst_579 : f32 to vector<32x32xf32>
    %1392 = arith.subf %1213, %1391 : vector<32x32xf32>
    %cst_580 = arith.constant 1.250000e+00 : f32
    %1393 = vector.broadcast %cst_580 : f32 to vector<32x32xf32>
    %1394 = arith.mulf %1392, %1393 : vector<32x32xf32>
    %1395 = arith.mulf %1394, %1291 : vector<32x32xf32>
    %cst_581 = arith.constant -1.000000e+00 : f32
    %1396 = vector.broadcast %cst_581 : f32 to vector<32x32xf32>
    %1397 = arith.subf %1396, %1213 : vector<32x32xf32>
    %cst_582 = arith.constant 1.250000e+00 : f32
    %1398 = vector.broadcast %cst_582 : f32 to vector<32x32xf32>
    %1399 = arith.mulf %1397, %1398 : vector<32x32xf32>
    %1400 = arith.mulf %1399, %1302 : vector<32x32xf32>
    %1401 = arith.addf %1395, %1400 : vector<32x32xf32>
    %cst_583 = arith.constant -1.800000e+00 : f32
    %1402 = vector.broadcast %cst_583 : f32 to vector<32x32xf32>
    %1403 = arith.subf %1213, %1402 : vector<32x32xf32>
    %cst_584 = arith.constant 1.250000e+00 : f32
    %1404 = vector.broadcast %cst_584 : f32 to vector<32x32xf32>
    %1405 = arith.mulf %1403, %1404 : vector<32x32xf32>
    %1406 = arith.mulf %1405, %1302 : vector<32x32xf32>
    %cst_585 = arith.constant -6.000000e-01 : f32
    %1407 = vector.broadcast %cst_585 : f32 to vector<32x32xf32>
    %1408 = arith.subf %1407, %1213 : vector<32x32xf32>
    %cst_586 = arith.constant 1.250000e+00 : f32
    %1409 = vector.broadcast %cst_586 : f32 to vector<32x32xf32>
    %1410 = arith.mulf %1408, %1409 : vector<32x32xf32>
    %1411 = arith.mulf %1410, %1313 : vector<32x32xf32>
    %1412 = arith.addf %1406, %1411 : vector<32x32xf32>
    %cst_587 = arith.constant -1.400000e+00 : f32
    %1413 = vector.broadcast %cst_587 : f32 to vector<32x32xf32>
    %1414 = arith.subf %1213, %1413 : vector<32x32xf32>
    %cst_588 = arith.constant 1.250000e+00 : f32
    %1415 = vector.broadcast %cst_588 : f32 to vector<32x32xf32>
    %1416 = arith.mulf %1414, %1415 : vector<32x32xf32>
    %1417 = arith.mulf %1416, %1313 : vector<32x32xf32>
    %cst_589 = arith.constant -2.000000e-01 : f32
    %1418 = vector.broadcast %cst_589 : f32 to vector<32x32xf32>
    %1419 = arith.subf %1418, %1213 : vector<32x32xf32>
    %cst_590 = arith.constant 1.250000e+00 : f32
    %1420 = vector.broadcast %cst_590 : f32 to vector<32x32xf32>
    %1421 = arith.mulf %1419, %1420 : vector<32x32xf32>
    %1422 = arith.mulf %1421, %1324 : vector<32x32xf32>
    %1423 = arith.addf %1417, %1422 : vector<32x32xf32>
    %cst_591 = arith.constant -1.000000e+00 : f32
    %1424 = vector.broadcast %cst_591 : f32 to vector<32x32xf32>
    %1425 = arith.subf %1213, %1424 : vector<32x32xf32>
    %cst_592 = arith.constant 1.250000e+00 : f32
    %1426 = vector.broadcast %cst_592 : f32 to vector<32x32xf32>
    %1427 = arith.mulf %1425, %1426 : vector<32x32xf32>
    %1428 = arith.mulf %1427, %1324 : vector<32x32xf32>
    %cst_593 = arith.constant 2.000000e-01 : f32
    %1429 = vector.broadcast %cst_593 : f32 to vector<32x32xf32>
    %1430 = arith.subf %1429, %1213 : vector<32x32xf32>
    %cst_594 = arith.constant 1.250000e+00 : f32
    %1431 = vector.broadcast %cst_594 : f32 to vector<32x32xf32>
    %1432 = arith.mulf %1430, %1431 : vector<32x32xf32>
    %1433 = arith.mulf %1432, %1335 : vector<32x32xf32>
    %1434 = arith.addf %1428, %1433 : vector<32x32xf32>
    %cst_595 = arith.constant -6.000000e-01 : f32
    %1435 = vector.broadcast %cst_595 : f32 to vector<32x32xf32>
    %1436 = arith.subf %1213, %1435 : vector<32x32xf32>
    %cst_596 = arith.constant 1.250000e+00 : f32
    %1437 = vector.broadcast %cst_596 : f32 to vector<32x32xf32>
    %1438 = arith.mulf %1436, %1437 : vector<32x32xf32>
    %1439 = arith.mulf %1438, %1335 : vector<32x32xf32>
    %cst_597 = arith.constant 6.000000e-01 : f32
    %1440 = vector.broadcast %cst_597 : f32 to vector<32x32xf32>
    %1441 = arith.subf %1440, %1213 : vector<32x32xf32>
    %cst_598 = arith.constant 1.250000e+00 : f32
    %1442 = vector.broadcast %cst_598 : f32 to vector<32x32xf32>
    %1443 = arith.mulf %1441, %1442 : vector<32x32xf32>
    %1444 = arith.mulf %1443, %1346 : vector<32x32xf32>
    %1445 = arith.addf %1439, %1444 : vector<32x32xf32>
    %cst_599 = arith.constant -2.000000e-01 : f32
    %1446 = vector.broadcast %cst_599 : f32 to vector<32x32xf32>
    %1447 = arith.subf %1213, %1446 : vector<32x32xf32>
    %cst_600 = arith.constant 1.250000e+00 : f32
    %1448 = vector.broadcast %cst_600 : f32 to vector<32x32xf32>
    %1449 = arith.mulf %1447, %1448 : vector<32x32xf32>
    %1450 = arith.mulf %1449, %1346 : vector<32x32xf32>
    %cst_601 = arith.constant 1.000000e+00 : f32
    %1451 = vector.broadcast %cst_601 : f32 to vector<32x32xf32>
    %1452 = arith.subf %1451, %1213 : vector<32x32xf32>
    %cst_602 = arith.constant 1.250000e+00 : f32
    %1453 = vector.broadcast %cst_602 : f32 to vector<32x32xf32>
    %1454 = arith.mulf %1452, %1453 : vector<32x32xf32>
    %1455 = arith.mulf %1454, %1357 : vector<32x32xf32>
    %1456 = arith.addf %1450, %1455 : vector<32x32xf32>
    %cst_603 = arith.constant 2.000000e-01 : f32
    %1457 = vector.broadcast %cst_603 : f32 to vector<32x32xf32>
    %1458 = arith.subf %1213, %1457 : vector<32x32xf32>
    %cst_604 = arith.constant 1.250000e+00 : f32
    %1459 = vector.broadcast %cst_604 : f32 to vector<32x32xf32>
    %1460 = arith.mulf %1458, %1459 : vector<32x32xf32>
    %1461 = arith.mulf %1460, %1357 : vector<32x32xf32>
    %cst_605 = arith.constant 1.400000e+00 : f32
    %1462 = vector.broadcast %cst_605 : f32 to vector<32x32xf32>
    %1463 = arith.subf %1462, %1213 : vector<32x32xf32>
    %cst_606 = arith.constant 1.250000e+00 : f32
    %1464 = vector.broadcast %cst_606 : f32 to vector<32x32xf32>
    %1465 = arith.mulf %1463, %1464 : vector<32x32xf32>
    %1466 = arith.mulf %1465, %1368 : vector<32x32xf32>
    %1467 = arith.addf %1461, %1466 : vector<32x32xf32>
    %cst_607 = arith.constant 6.000000e-01 : f32
    %1468 = vector.broadcast %cst_607 : f32 to vector<32x32xf32>
    %1469 = arith.subf %1213, %1468 : vector<32x32xf32>
    %cst_608 = arith.constant 1.250000e+00 : f32
    %1470 = vector.broadcast %cst_608 : f32 to vector<32x32xf32>
    %1471 = arith.mulf %1469, %1470 : vector<32x32xf32>
    %1472 = arith.mulf %1471, %1368 : vector<32x32xf32>
    %cst_609 = arith.constant 1.800000e+00 : f32
    %1473 = vector.broadcast %cst_609 : f32 to vector<32x32xf32>
    %1474 = arith.subf %1473, %1213 : vector<32x32xf32>
    %cst_610 = arith.constant 1.250000e+00 : f32
    %1475 = vector.broadcast %cst_610 : f32 to vector<32x32xf32>
    %1476 = arith.mulf %1474, %1475 : vector<32x32xf32>
    %1477 = arith.mulf %1476, %1379 : vector<32x32xf32>
    %1478 = arith.addf %1472, %1477 : vector<32x32xf32>
    %cst_611 = arith.constant 1.000000e+00 : f32
    %1479 = vector.broadcast %cst_611 : f32 to vector<32x32xf32>
    %1480 = arith.subf %1213, %1479 : vector<32x32xf32>
    %cst_612 = arith.constant 1.250000e+00 : f32
    %1481 = vector.broadcast %cst_612 : f32 to vector<32x32xf32>
    %1482 = arith.mulf %1480, %1481 : vector<32x32xf32>
    %1483 = arith.mulf %1482, %1379 : vector<32x32xf32>
    %cst_613 = arith.constant 2.200000e+00 : f32
    %1484 = vector.broadcast %cst_613 : f32 to vector<32x32xf32>
    %1485 = arith.subf %1484, %1213 : vector<32x32xf32>
    %cst_614 = arith.constant 1.250000e+00 : f32
    %1486 = vector.broadcast %cst_614 : f32 to vector<32x32xf32>
    %1487 = arith.mulf %1485, %1486 : vector<32x32xf32>
    %1488 = arith.mulf %1487, %1390 : vector<32x32xf32>
    %1489 = arith.addf %1483, %1488 : vector<32x32xf32>
    %cst_615 = arith.constant -2.200000e+00 : f32
    %1490 = vector.broadcast %cst_615 : f32 to vector<32x32xf32>
    %1491 = arith.subf %1213, %1490 : vector<32x32xf32>
    %cst_616 = arith.constant 0.833333313 : f32
    %1492 = vector.broadcast %cst_616 : f32 to vector<32x32xf32>
    %1493 = arith.mulf %1491, %1492 : vector<32x32xf32>
    %1494 = arith.mulf %1493, %1401 : vector<32x32xf32>
    %cst_617 = arith.constant -6.000000e-01 : f32
    %1495 = vector.broadcast %cst_617 : f32 to vector<32x32xf32>
    %1496 = arith.subf %1495, %1213 : vector<32x32xf32>
    %cst_618 = arith.constant 0.833333313 : f32
    %1497 = vector.broadcast %cst_618 : f32 to vector<32x32xf32>
    %1498 = arith.mulf %1496, %1497 : vector<32x32xf32>
    %1499 = arith.mulf %1498, %1412 : vector<32x32xf32>
    %1500 = arith.addf %1494, %1499 : vector<32x32xf32>
    %cst_619 = arith.constant -1.800000e+00 : f32
    %1501 = vector.broadcast %cst_619 : f32 to vector<32x32xf32>
    %1502 = arith.subf %1213, %1501 : vector<32x32xf32>
    %cst_620 = arith.constant 0.833333313 : f32
    %1503 = vector.broadcast %cst_620 : f32 to vector<32x32xf32>
    %1504 = arith.mulf %1502, %1503 : vector<32x32xf32>
    %1505 = arith.mulf %1504, %1412 : vector<32x32xf32>
    %cst_621 = arith.constant -2.000000e-01 : f32
    %1506 = vector.broadcast %cst_621 : f32 to vector<32x32xf32>
    %1507 = arith.subf %1506, %1213 : vector<32x32xf32>
    %cst_622 = arith.constant 0.833333313 : f32
    %1508 = vector.broadcast %cst_622 : f32 to vector<32x32xf32>
    %1509 = arith.mulf %1507, %1508 : vector<32x32xf32>
    %1510 = arith.mulf %1509, %1423 : vector<32x32xf32>
    %1511 = arith.addf %1505, %1510 : vector<32x32xf32>
    %cst_623 = arith.constant -1.400000e+00 : f32
    %1512 = vector.broadcast %cst_623 : f32 to vector<32x32xf32>
    %1513 = arith.subf %1213, %1512 : vector<32x32xf32>
    %cst_624 = arith.constant 0.833333313 : f32
    %1514 = vector.broadcast %cst_624 : f32 to vector<32x32xf32>
    %1515 = arith.mulf %1513, %1514 : vector<32x32xf32>
    %1516 = arith.mulf %1515, %1423 : vector<32x32xf32>
    %cst_625 = arith.constant 2.000000e-01 : f32
    %1517 = vector.broadcast %cst_625 : f32 to vector<32x32xf32>
    %1518 = arith.subf %1517, %1213 : vector<32x32xf32>
    %cst_626 = arith.constant 0.833333313 : f32
    %1519 = vector.broadcast %cst_626 : f32 to vector<32x32xf32>
    %1520 = arith.mulf %1518, %1519 : vector<32x32xf32>
    %1521 = arith.mulf %1520, %1434 : vector<32x32xf32>
    %1522 = arith.addf %1516, %1521 : vector<32x32xf32>
    %cst_627 = arith.constant -1.000000e+00 : f32
    %1523 = vector.broadcast %cst_627 : f32 to vector<32x32xf32>
    %1524 = arith.subf %1213, %1523 : vector<32x32xf32>
    %cst_628 = arith.constant 0.833333313 : f32
    %1525 = vector.broadcast %cst_628 : f32 to vector<32x32xf32>
    %1526 = arith.mulf %1524, %1525 : vector<32x32xf32>
    %1527 = arith.mulf %1526, %1434 : vector<32x32xf32>
    %cst_629 = arith.constant 6.000000e-01 : f32
    %1528 = vector.broadcast %cst_629 : f32 to vector<32x32xf32>
    %1529 = arith.subf %1528, %1213 : vector<32x32xf32>
    %cst_630 = arith.constant 0.833333313 : f32
    %1530 = vector.broadcast %cst_630 : f32 to vector<32x32xf32>
    %1531 = arith.mulf %1529, %1530 : vector<32x32xf32>
    %1532 = arith.mulf %1531, %1445 : vector<32x32xf32>
    %1533 = arith.addf %1527, %1532 : vector<32x32xf32>
    %cst_631 = arith.constant -6.000000e-01 : f32
    %1534 = vector.broadcast %cst_631 : f32 to vector<32x32xf32>
    %1535 = arith.subf %1213, %1534 : vector<32x32xf32>
    %cst_632 = arith.constant 0.833333313 : f32
    %1536 = vector.broadcast %cst_632 : f32 to vector<32x32xf32>
    %1537 = arith.mulf %1535, %1536 : vector<32x32xf32>
    %1538 = arith.mulf %1537, %1445 : vector<32x32xf32>
    %cst_633 = arith.constant 1.000000e+00 : f32
    %1539 = vector.broadcast %cst_633 : f32 to vector<32x32xf32>
    %1540 = arith.subf %1539, %1213 : vector<32x32xf32>
    %cst_634 = arith.constant 0.833333313 : f32
    %1541 = vector.broadcast %cst_634 : f32 to vector<32x32xf32>
    %1542 = arith.mulf %1540, %1541 : vector<32x32xf32>
    %1543 = arith.mulf %1542, %1456 : vector<32x32xf32>
    %1544 = arith.addf %1538, %1543 : vector<32x32xf32>
    %cst_635 = arith.constant -2.000000e-01 : f32
    %1545 = vector.broadcast %cst_635 : f32 to vector<32x32xf32>
    %1546 = arith.subf %1213, %1545 : vector<32x32xf32>
    %cst_636 = arith.constant 0.833333313 : f32
    %1547 = vector.broadcast %cst_636 : f32 to vector<32x32xf32>
    %1548 = arith.mulf %1546, %1547 : vector<32x32xf32>
    %1549 = arith.mulf %1548, %1456 : vector<32x32xf32>
    %cst_637 = arith.constant 1.400000e+00 : f32
    %1550 = vector.broadcast %cst_637 : f32 to vector<32x32xf32>
    %1551 = arith.subf %1550, %1213 : vector<32x32xf32>
    %cst_638 = arith.constant 0.833333313 : f32
    %1552 = vector.broadcast %cst_638 : f32 to vector<32x32xf32>
    %1553 = arith.mulf %1551, %1552 : vector<32x32xf32>
    %1554 = arith.mulf %1553, %1467 : vector<32x32xf32>
    %1555 = arith.addf %1549, %1554 : vector<32x32xf32>
    %cst_639 = arith.constant 2.000000e-01 : f32
    %1556 = vector.broadcast %cst_639 : f32 to vector<32x32xf32>
    %1557 = arith.subf %1213, %1556 : vector<32x32xf32>
    %cst_640 = arith.constant 0.833333313 : f32
    %1558 = vector.broadcast %cst_640 : f32 to vector<32x32xf32>
    %1559 = arith.mulf %1557, %1558 : vector<32x32xf32>
    %1560 = arith.mulf %1559, %1467 : vector<32x32xf32>
    %cst_641 = arith.constant 1.800000e+00 : f32
    %1561 = vector.broadcast %cst_641 : f32 to vector<32x32xf32>
    %1562 = arith.subf %1561, %1213 : vector<32x32xf32>
    %cst_642 = arith.constant 0.833333313 : f32
    %1563 = vector.broadcast %cst_642 : f32 to vector<32x32xf32>
    %1564 = arith.mulf %1562, %1563 : vector<32x32xf32>
    %1565 = arith.mulf %1564, %1478 : vector<32x32xf32>
    %1566 = arith.addf %1560, %1565 : vector<32x32xf32>
    %cst_643 = arith.constant 6.000000e-01 : f32
    %1567 = vector.broadcast %cst_643 : f32 to vector<32x32xf32>
    %1568 = arith.subf %1213, %1567 : vector<32x32xf32>
    %cst_644 = arith.constant 0.833333313 : f32
    %1569 = vector.broadcast %cst_644 : f32 to vector<32x32xf32>
    %1570 = arith.mulf %1568, %1569 : vector<32x32xf32>
    %1571 = arith.mulf %1570, %1478 : vector<32x32xf32>
    %cst_645 = arith.constant 2.200000e+00 : f32
    %1572 = vector.broadcast %cst_645 : f32 to vector<32x32xf32>
    %1573 = arith.subf %1572, %1213 : vector<32x32xf32>
    %cst_646 = arith.constant 0.833333313 : f32
    %1574 = vector.broadcast %cst_646 : f32 to vector<32x32xf32>
    %1575 = arith.mulf %1573, %1574 : vector<32x32xf32>
    %1576 = arith.mulf %1575, %1489 : vector<32x32xf32>
    %1577 = arith.addf %1571, %1576 : vector<32x32xf32>
    %c1_647 = arith.constant 1 : index
    %c0_648 = arith.constant 0 : index
    %c0_649 = arith.constant 0 : index
    %c0_650 = arith.constant 0 : index
    %1578 = vector.load %arg4[%c1_647, %c0_648, %c0_649, %c0_650] : memref<2x9x32x32xf32, #tpu.memory_space<vmem>>, vector<1x1x32x32xf32>
    %1579 = vector.shape_cast %1578 : vector<1x1x32x32xf32> to vector<32x32xf32>
    %cst_651 = arith.constant dense<0.000000e+00> : vector<32x32xf32>
    %1580 = tpu.matmul %1221, %1579, %cst_651 {dimension_numbers = #tpu.dot_dimension_numbers<[1], [0], [0], [1], [0, 0, 1, 1], [], []>} : vector<32x32xf32>, vector<32x32xf32>, vector<32x32xf32> -> vector<32x32xf32>
    %c1_652 = arith.constant 1 : index
    %c1_653 = arith.constant 1 : index
    %c0_654 = arith.constant 0 : index
    %c0_655 = arith.constant 0 : index
    %1581 = vector.load %arg4[%c1_652, %c1_653, %c0_654, %c0_655] : memref<2x9x32x32xf32, #tpu.memory_space<vmem>>, vector<1x1x32x32xf32>
    %1582 = vector.shape_cast %1581 : vector<1x1x32x32xf32> to vector<32x32xf32>
    %cst_656 = arith.constant dense<0.000000e+00> : vector<32x32xf32>
    %1583 = tpu.matmul %1500, %1582, %cst_656 {dimension_numbers = #tpu.dot_dimension_numbers<[1], [0], [0], [1], [0, 0, 1, 1], [], []>} : vector<32x32xf32>, vector<32x32xf32>, vector<32x32xf32> -> vector<32x32xf32>
    %1584 = arith.addf %1580, %1583 : vector<32x32xf32>
    %c1_657 = arith.constant 1 : index
    %c2_658 = arith.constant 2 : index
    %c0_659 = arith.constant 0 : index
    %c0_660 = arith.constant 0 : index
    %1585 = vector.load %arg4[%c1_657, %c2_658, %c0_659, %c0_660] : memref<2x9x32x32xf32, #tpu.memory_space<vmem>>, vector<1x1x32x32xf32>
    %1586 = vector.shape_cast %1585 : vector<1x1x32x32xf32> to vector<32x32xf32>
    %cst_661 = arith.constant dense<0.000000e+00> : vector<32x32xf32>
    %1587 = tpu.matmul %1511, %1586, %cst_661 {dimension_numbers = #tpu.dot_dimension_numbers<[1], [0], [0], [1], [0, 0, 1, 1], [], []>} : vector<32x32xf32>, vector<32x32xf32>, vector<32x32xf32> -> vector<32x32xf32>
    %1588 = arith.addf %1584, %1587 : vector<32x32xf32>
    %c1_662 = arith.constant 1 : index
    %c3_663 = arith.constant 3 : index
    %c0_664 = arith.constant 0 : index
    %c0_665 = arith.constant 0 : index
    %1589 = vector.load %arg4[%c1_662, %c3_663, %c0_664, %c0_665] : memref<2x9x32x32xf32, #tpu.memory_space<vmem>>, vector<1x1x32x32xf32>
    %1590 = vector.shape_cast %1589 : vector<1x1x32x32xf32> to vector<32x32xf32>
    %cst_666 = arith.constant dense<0.000000e+00> : vector<32x32xf32>
    %1591 = tpu.matmul %1522, %1590, %cst_666 {dimension_numbers = #tpu.dot_dimension_numbers<[1], [0], [0], [1], [0, 0, 1, 1], [], []>} : vector<32x32xf32>, vector<32x32xf32>, vector<32x32xf32> -> vector<32x32xf32>
    %1592 = arith.addf %1588, %1591 : vector<32x32xf32>
    %c1_667 = arith.constant 1 : index
    %c4_668 = arith.constant 4 : index
    %c0_669 = arith.constant 0 : index
    %c0_670 = arith.constant 0 : index
    %1593 = vector.load %arg4[%c1_667, %c4_668, %c0_669, %c0_670] : memref<2x9x32x32xf32, #tpu.memory_space<vmem>>, vector<1x1x32x32xf32>
    %1594 = vector.shape_cast %1593 : vector<1x1x32x32xf32> to vector<32x32xf32>
    %cst_671 = arith.constant dense<0.000000e+00> : vector<32x32xf32>
    %1595 = tpu.matmul %1533, %1594, %cst_671 {dimension_numbers = #tpu.dot_dimension_numbers<[1], [0], [0], [1], [0, 0, 1, 1], [], []>} : vector<32x32xf32>, vector<32x32xf32>, vector<32x32xf32> -> vector<32x32xf32>
    %1596 = arith.addf %1592, %1595 : vector<32x32xf32>
    %c1_672 = arith.constant 1 : index
    %c5_673 = arith.constant 5 : index
    %c0_674 = arith.constant 0 : index
    %c0_675 = arith.constant 0 : index
    %1597 = vector.load %arg4[%c1_672, %c5_673, %c0_674, %c0_675] : memref<2x9x32x32xf32, #tpu.memory_space<vmem>>, vector<1x1x32x32xf32>
    %1598 = vector.shape_cast %1597 : vector<1x1x32x32xf32> to vector<32x32xf32>
    %cst_676 = arith.constant dense<0.000000e+00> : vector<32x32xf32>
    %1599 = tpu.matmul %1544, %1598, %cst_676 {dimension_numbers = #tpu.dot_dimension_numbers<[1], [0], [0], [1], [0, 0, 1, 1], [], []>} : vector<32x32xf32>, vector<32x32xf32>, vector<32x32xf32> -> vector<32x32xf32>
    %1600 = arith.addf %1596, %1599 : vector<32x32xf32>
    %c1_677 = arith.constant 1 : index
    %c6_678 = arith.constant 6 : index
    %c0_679 = arith.constant 0 : index
    %c0_680 = arith.constant 0 : index
    %1601 = vector.load %arg4[%c1_677, %c6_678, %c0_679, %c0_680] : memref<2x9x32x32xf32, #tpu.memory_space<vmem>>, vector<1x1x32x32xf32>
    %1602 = vector.shape_cast %1601 : vector<1x1x32x32xf32> to vector<32x32xf32>
    %cst_681 = arith.constant dense<0.000000e+00> : vector<32x32xf32>
    %1603 = tpu.matmul %1555, %1602, %cst_681 {dimension_numbers = #tpu.dot_dimension_numbers<[1], [0], [0], [1], [0, 0, 1, 1], [], []>} : vector<32x32xf32>, vector<32x32xf32>, vector<32x32xf32> -> vector<32x32xf32>
    %1604 = arith.addf %1600, %1603 : vector<32x32xf32>
    %c1_682 = arith.constant 1 : index
    %c7_683 = arith.constant 7 : index
    %c0_684 = arith.constant 0 : index
    %c0_685 = arith.constant 0 : index
    %1605 = vector.load %arg4[%c1_682, %c7_683, %c0_684, %c0_685] : memref<2x9x32x32xf32, #tpu.memory_space<vmem>>, vector<1x1x32x32xf32>
    %1606 = vector.shape_cast %1605 : vector<1x1x32x32xf32> to vector<32x32xf32>
    %cst_686 = arith.constant dense<0.000000e+00> : vector<32x32xf32>
    %1607 = tpu.matmul %1566, %1606, %cst_686 {dimension_numbers = #tpu.dot_dimension_numbers<[1], [0], [0], [1], [0, 0, 1, 1], [], []>} : vector<32x32xf32>, vector<32x32xf32>, vector<32x32xf32> -> vector<32x32xf32>
    %1608 = arith.addf %1604, %1607 : vector<32x32xf32>
    %c1_687 = arith.constant 1 : index
    %c8_688 = arith.constant 8 : index
    %c0_689 = arith.constant 0 : index
    %c0_690 = arith.constant 0 : index
    %1609 = vector.load %arg4[%c1_687, %c8_688, %c0_689, %c0_690] : memref<2x9x32x32xf32, #tpu.memory_space<vmem>>, vector<1x1x32x32xf32>
    %1610 = vector.shape_cast %1609 : vector<1x1x32x32xf32> to vector<32x32xf32>
    %cst_691 = arith.constant dense<0.000000e+00> : vector<32x32xf32>
    %1611 = tpu.matmul %1577, %1610, %cst_691 {dimension_numbers = #tpu.dot_dimension_numbers<[1], [0], [0], [1], [0, 0, 1, 1], [], []>} : vector<32x32xf32>, vector<32x32xf32>, vector<32x32xf32> -> vector<32x32xf32>
    %1612 = arith.addf %1608, %1611 : vector<32x32xf32>
    %c32_692 = arith.constant 32 : index
    %c0_693 = arith.constant 0 : index
    %1613 = vector.load %arg8[%c32_692, %c0_693] : memref<64x32xf32, #tpu.memory_space<vmem>>, vector<32x32xf32>
    tpu.vector_store %arg8[%c32_692, %c0_693], %1612 {strides = array<i32>} : memref<64x32xf32, #tpu.memory_space<vmem>>, vector<32x32xf32>,
    %c0_694 = arith.constant 0 : index
    %c0_695 = arith.constant 0 : index
    %1614 = vector.load %arg8[%c0_694, %c0_695] : memref<64x32xf32, #tpu.memory_space<vmem>>, vector<64x32xf32>
    %c0_696 = arith.constant 0 : index
    %c0_697 = arith.constant 0 : index
    %1615 = vector.load %arg5[%c0_696, %c0_697] : memref<32x4xf32, #tpu.memory_space<vmem>>, vector<32x4xf32>
    %cst_698 = arith.constant dense<0.000000e+00> : vector<64x4xf32>
    %1616 = tpu.matmul %1614, %1615, %cst_698 {dimension_numbers = #tpu.dot_dimension_numbers<[1], [0], [0], [1], [0, 0, 1, 1], [], []>} : vector<64x32xf32>, vector<32x4xf32>, vector<64x4xf32> -> vector<64x4xf32>
    %c0_699 = arith.constant 0 : index
    %c0_700 = arith.constant 0 : index
    %1617 = vector.load %arg2[%c0_699, %c0_700] : memref<64x64xf32, #tpu.memory_space<vmem>>, vector<64x64xf32>
    %cst_701 = arith.constant dense<0.000000e+00> : vector<64x4xf32>
    %1618 = tpu.matmul %1617, %1616, %cst_701 {dimension_numbers = #tpu.dot_dimension_numbers<[1], [0], [0], [1], [0, 0, 1, 1], [], []>} : vector<64x64xf32>, vector<64x4xf32>, vector<64x4xf32> -> vector<64x4xf32>
    %cst_702 = arith.constant dense<0xFF800000> : vector<64xf32>
    %1619 = vector.multi_reduction <maximumf>, %1618, %cst_702 [1] : vector<64x4xf32> to vector<64xf32>
    %1620 = vector.shape_cast %1619 : vector<64xf32> to vector<64x1xf32>
    %1621 = vector.broadcast %1620 : vector<64x1xf32> to vector<64x4xf32>
    %1622 = arith.subf %1618, %1621 : vector<64x4xf32>
    %1623 = math.exp %1622 : vector<64x4xf32>
    %cst_703 = arith.constant dense<0.000000e+00> : vector<64xf32>
    %1624 = vector.multi_reduction <add>, %1623, %cst_703 [1] : vector<64x4xf32> to vector<64xf32>
    %1625 = vector.shape_cast %1624 : vector<64xf32> to vector<64x1xf32>
    %1626 = math.log %1625 : vector<64x1xf32>
    %1627 = vector.broadcast %1626 : vector<64x1xf32> to vector<64x4xf32>
    %1628 = arith.subf %1622, %1627 : vector<64x4xf32>
    %c0_704 = arith.constant 0 : index
    %c0_705 = arith.constant 0 : index
    %1629 = vector.load %arg6[%c0_704, %c0_705] : memref<64x4xf32, #tpu.memory_space<vmem>>, vector<64x4xf32>
    tpu.vector_store %arg6[%c0_704, %c0_705], %1628 {strides = array<i32>} : memref<64x4xf32, #tpu.memory_space<vmem>>, vector<64x4xf32>,
    return
  }
  func.func @transform_0(%arg0: i32) -> (i32, i32) {
    %c0_i32 = arith.constant 0 : i32
    %c0_i32_0 = arith.constant 0 : i32
    %c0_i32_1 = arith.constant 0 : i32
    return %c0_i32, %c0_i32_0 : i32, i32
  }
  func.func @transform_1(%arg0: i32) -> (i32, i32) {
    %c0_i32 = arith.constant 0 : i32
    %c0_i32_0 = arith.constant 0 : i32
    %c0_i32_1 = arith.constant 0 : i32
    return %c0_i32, %c0_i32_0 : i32, i32
  }
  func.func @transform_2(%arg0: i32) -> (i32, i32) {
    %c0_i32 = arith.constant 0 : i32
    %c0_i32_0 = arith.constant 0 : i32
    %c0_i32_1 = arith.constant 0 : i32
    return %c0_i32, %c0_i32_0 : i32, i32
  }
  func.func @transform_3(%arg0: i32) -> (i32, i32, i32, i32) {
    %c0_i32 = arith.constant 0 : i32
    %c0_i32_0 = arith.constant 0 : i32
    %c0_i32_1 = arith.constant 0 : i32
    %c0_i32_2 = arith.constant 0 : i32
    %c0_i32_3 = arith.constant 0 : i32
    return %c0_i32, %c0_i32_0, %c0_i32_1, %c0_i32_2 : i32, i32, i32, i32
  }
  func.func @transform_4(%arg0: i32) -> (i32, i32) {
    %c0_i32 = arith.constant 0 : i32
    %c0_i32_0 = arith.constant 0 : i32
    %c0_i32_1 = arith.constant 0 : i32
    return %c0_i32, %c0_i32_0 : i32, i32
  }
  func.func @transform_5(%arg0: i32) -> (i32, i32) {
    %c0_i32 = arith.constant 0 : i32
    %c0_i32_0 = arith.constant 0 : i32
    %c0_i32_1 = arith.constant 0 : i32
    return %c0_i32, %c0_i32_0 : i32, i32
  }
}

</mosaic_0001>

<bundles_post_ra>
// kernel: tpu_custom_call.1
= control target key start
LH: loop header
LB: loop body
LE: loop exit
PB: predicated region body
PF: predicated region fallthrough
CT: control target
= control target key end

     0   :  { %10 = vsyncpa [#allocation5], 0  ;;  %s6292_s21 = smov [#allocation4]   ;;  %s6293_s23 = smov 128   ;;  %s9157_s0 = inlined_call_operand.vmem [shape: f32[64,16], index: 0, kind: input, shape index: {}]   ;;  %s9158_s1 = inlined_call_operand.vmem [shape: f32[64,64], index: 1, kind: input, shape index: {}]   ;;  %s9159_s2 = inlined_call_operand.vmem [shape: f32[16,32], index: 2, kind: input, shape index: {}]   ;;  %s9160_s3 = inlined_call_operand.hbm [shape: f32[2,9,32,32], index: 3, kind: input, shape index: {}]   ;;  %s9161_s4 = inlined_call_operand.vmem [shape: f32[32,4], index: 4, kind: input, shape index: {}]   ;;  %s9162_s5 = inlined_call_operand.vmem [shape: f32[64,4], index: 5, kind: output, shape index: {}]  }
   0x1   :  { %s21_s20 = sshll.u32 %s9160_s3, 4  ;;  %s23_s22 = sshll.u32 %s6292_s21, 4  ;;  %s22_s20 = int_to_ptr.hbm [resolvable:$true] %s21_s20  ;;  %s24_s22 = int_to_ptr.vmem [resolvable:$true] %s23_s22 }
   0x2   :  { %s6294_s24 = smov 8  }
   0x3   :  { %29 = dma.hbm_to_vmem [thread:$0]  %s22_s20, 9216, %s24_s22, [#allocation5], %s6293_s23, %s6293_s23, %s6294_s24  }
   0x4   :  { %6290 = dma.done.wait [#allocation5], 9216  }
   0x5   :  { %6291 = vsyncadd [#allocation5], 4294958080  ;;  %v51_v0 = vld [vmem:[%s9157_s0 + $0x38] sm:$0xff]  ;;  %v50_v1 = vld [vmem:[%s9157_s0 + $0x30] sm:$0xff]  ;;  %vm52_vm0 = vcmask 523264   ;;  %vm120_vm1 = vcmask 130048  }
   0x6   :  { %85 = vmatpush.msra.mxu0 %v51_v0  ;;  %v49_v2 = vld [vmem:[%s9157_s0 + $0x28] sm:$0xff]  ;;  %v48_v3 = vld [vmem:[%s9157_s0 + $0x20] sm:$0xff]  ;;  %v47_v4 = vld [vmem:[%s9157_s0 + $0x18] sm:$0xff]  ;;  %vm186_vm2 = vcmask 261120   ;;  %v9163_v46 = vmov 0.0  }
   0x7   :  { %v46_v5 = vld [vmem:[%s9157_s0 + $0x10] sm:$0xff]  ;;  %v45_v6 = vld [vmem:[%s9157_s0 + $0x8] sm:$0xff]  ;;  %v44_v7 = vld [vmem:[%s9157_s0] sm:$0xff] }
   0x8   :  { %86 = vmatpush.msra.mxu0 %v50_v1  ;;  %v36_v8 = vld [vmem:[%s9158_s1] sm:$0xff]  ;;  %v37_v9 = vld [vmem:[%s9158_s1 + $0x8] sm:$0xff]  ;;  %v38_v10 = vld [vmem:[%s9158_s1 + $0x10] sm:$0xff] }
   0x9   :  { %v39_v11 = vld [vmem:[%s9158_s1 + $0x18] sm:$0xff]  ;;  %v119_v12 = vld [vmem:[%s9159_s2 + $0x8] sm:$0xff]  ;;  %v40_v13 = vld [vmem:[%s9158_s1 + $0x20] sm:$0xff] }
   0xa   :  { %87 = vmatpush.msra.mxu0 %v49_v2  ;;  %159 = vmatpush.msra.mxu1 %v119_v12  ;;  %v41_v14 = vld [vmem:[%s9158_s1 + $0x28] sm:$0xff]  ;;  %v42_v15 = vld [vmem:[%s9158_s1 + $0x30] sm:$0xff]  ;;  %v43_v16 = vld [vmem:[%s9158_s1 + $0x38] sm:$0xff] }
   0xb   :  { %v118_v17 = vld [vmem:[%s9159_s2] sm:$0xff]  ;;  %v1030_v26 = vld [vmem:[#allocation4 + $0x18] sm:$0xff]  ;;  %v1029_v30 = vld [vmem:[#allocation4 + $0x10] sm:$0xff] }
   0xc   :  { %88 = vmatpush.msra.mxu0 %v48_v3  ;;  %160 = vmatpush.msra.mxu1 %v118_v17  ;;  %v1035_v27 = vld [vmem:[#allocation4 + $0x38] sm:$0xff]  ;;  %v1034_v31 = vld [vmem:[#allocation4 + $0x30] sm:$0xff]  ;;  %v1028_v34 = vld [vmem:[#allocation4 + $0x8] sm:$0xff] }
   0xd   :  { %1101 = vmatpush.msra.mxu3 %v1030_v26  ;;  %v1222_v28 = vld [vmem:[#allocation4 + $0x98] sm:$0xff]  ;;  %1060 = vmatpush.msra.mxu2 %v1035_v27  ;;  %v1221_v32 = vld [vmem:[#allocation4 + $0x90] sm:$0xff]  ;;  %v1033_v35 = vld [vmem:[#allocation4 + $0x28] sm:$0xff] }
   0xe   :  { %89 = vmatpush.msra.mxu0 %v47_v4  ;;  %v1372_v29 = vld [vmem:[#allocation4 + $0xf8] sm:$0xff]  ;;  %1247 = vmatpush.msrb.mxu1 %v1222_v28  ;;  %v1371_v33 = vld [vmem:[#allocation4 + $0xf0] sm:$0xff]  ;;  %v1220_v36 = vld [vmem:[#allocation4 + $0x88] sm:$0xff] }
   0xf   :  { %1102 = vmatpush.msra.mxu3 %v1029_v30  ;;  %1061 = vmatpush.msra.mxu2 %v1034_v31  ;;  %v1370_v37 = vld [vmem:[#allocation4 + $0xe8] sm:$0xff]  ;;  %v1027_v38 = vld [vmem:[#allocation4] sm:$0xff] }
  0x10   :  { %90 = vmatpush.msra.mxu0 %v46_v5  ;;  %1248 = vmatpush.msrb.mxu1 %v1221_v32  ;;  %v1032_v39 = vld [vmem:[#allocation4 + $0x20] sm:$0xff] }
  0x11   :  { %1103 = vmatpush.msra.mxu3 %v1028_v34  ;;  %1062 = vmatpush.msra.mxu2 %v1033_v35  ;;  %v1219_v40 = vld [vmem:[#allocation4 + $0x80] sm:$0xff] }
  0x12   :  { %91 = vmatpush.msra.mxu0 %v45_v6  ;;  %1249 = vmatpush.msrb.mxu1 %v1220_v36  ;;  %v1369_v41 = vld [vmem:[#allocation4 + $0xe0] sm:$0xff] }
  0x13   :  { %1104 = vmatpush.msra.mxu3 %v1027_v38  ;;  %1063 = vmatpush.msra.mxu2 %v1032_v39 }
  0x14   :  { %92 = vmatpush.msra.mxu0 %v44_v7  ;;  %1250 = vmatpush.msrb.mxu1 %v1219_v40 }
  0x15   :  { %5637 = vmatmul.msk.f32.vlgmr.msra.gmra.mxu0 %vm52_vm0, %v36_v8 }
  0x16   :  { %1397 = vmatpush.msrb.mxu0 %v1372_v29 }
  0x18   :  { %1398 = vmatpush.msrb.mxu0 %v1371_v33 }
  0x1a   :  { %1399 = vmatpush.msrb.mxu0 %v1370_v37 }
  0x1c   :  { %1400 = vmatpush.msrb.mxu0 %v1369_v41 }
  0x1d   :  { %5638 = vmatmul.msk.f32.gmra.mxu0 %vm52_vm0, %v37_v9 }
  0x25   :  { %5639 = vmatmul.msk.f32.gmra.mxu0 %vm52_vm0, %v38_v10 }
  0x2d   :  { %5640 = vmatmul.msk.f32.gmra.mxu0 %vm52_vm0, %v39_v11 }
  0x35   :  { %5641 = vmatmul.msk.f32.gmra.mxu0 %vm52_vm0, %v40_v13 }
  0x3d   :  { %5642 = vmatmul.msk.f32.gmra.mxu0 %vm52_vm0, %v41_v14 }
  0x45   :  { %5643 = vmatmul.msk.f32.gmra.mxu0 %vm52_vm0, %v42_v15 }
  0x4d   :  { %5644 = vmatmul.msk.f32.gmra.mxu0 %vm52_vm0, %v43_v16 }
  0x92   :  { %v94_v18 = vpop.f32.mrf.mxu0 }
  0x93   :  { %5645 = vmatmul.msk.f32.vlgmr.msra.gmra.mxu1 %vm120_vm1, %v94_v18 }
  0x94   :  { %6173 = vmatpush.msra.mxu1 %v1372_v29 }
  0x96   :  { %6174 = vmatpush.msra.mxu1 %v1371_v33 }
  0x98   :  { %6175 = vmatpush.msra.mxu1 %v1370_v37 }
  0x9a   :  { %v97_v19 = vpop.f32.mrf.mxu0  ;;  %6176 = vmatpush.msra.mxu1 %v1369_v41 }
  0x9b   :  { %5646 = vmatmul.msk.f32.gmra.mxu1 %vm120_vm1, %v97_v19 }
  0xa2   :  { %v100_v20 = vpop.f32.mrf.mxu0 }
  0xa3   :  { %5647 = vmatmul.msk.f32.gmra.mxu1 %vm120_vm1, %v100_v20 }
  0xaa   :  { %v103_v21 = vpop.f32.mrf.mxu0 }
  0xab   :  { %5648 = vmatmul.msk.f32.gmra.mxu1 %vm120_vm1, %v103_v21 }
  0xb2   :  { %v106_v22 = vpop.f32.mrf.mxu0 }
  0xb3   :  { %5649 = vmatmul.msk.f32.gmra.mxu1 %vm120_vm1, %v106_v22 }
  0xba   :  { %v109_v23 = vpop.f32.mrf.mxu0 }
  0xbb   :  { %5650 = vmatmul.msk.f32.gmra.mxu1 %vm120_vm1, %v109_v23 }
  0xc2   :  { %v112_v24 = vpop.f32.mrf.mxu0 }
  0xc3   :  { %5651 = vmatmul.msk.f32.gmra.mxu1 %vm120_vm1, %v112_v24 }
  0xca   :  { %v115_v25 = vpop.f32.mrf.mxu0 }
  0xcb   :  { %5652 = vmatmul.msk.f32.gmra.mxu1 %vm120_vm1, %v115_v25 }
 0x110   :  { %v162_v42 = vpop.f32.mrf.mxu1 }
 0x111   :  { %187 = vst.msk [vmem:[#allocation2] sm:$0xff] %vm186_vm2, %v162_v42 }
 0x118   :  { %v6400_v43 = vld [vmem:[#allocation2] sm:$0xff]  ;;  %v165_v44 = vpop.f32.mrf.mxu1 }
 0x119   :  { %188 = vst.msk [vmem:[#allocation2 + $0x8] sm:$0xff] %vm186_vm2, %v165_v44  ;;  %v199_v45 = vmul.f32 0.5, %v6400_v43  ;;  %vm219_vm3 = vcmp.ge.f32.partialorder %v6400_v43, -2.2  ;;  %vm231_vm4 = vcmp.ge.f32.partialorder %v6400_v43, -1.8 }
 0x11a   :  { %v5653_v47 = vsel %vm219_vm3, 1.0, %v9163_v46  ;;  %v5657_v48 = vsel %vm231_vm4, 1.0, %v9163_v46  ;;  %vm247_vm5 = vcmp.ge.f32.partialorder %v6400_v43, -1.4  ;;  %vm263_vm6 = vcmp.ge.f32.partialorder %v6400_v43, -1.0 }
 0x11b   :  { %6185 = vtanh.f32 %v199_v45  ;;  %v243_v49 = vsub.f32 %v5653_v47, %v5657_v48  ;;  %v5661_v50 = vsel %vm247_vm5, 1.0, %v9163_v46  ;;  %v5665_v51 = vsel %vm263_vm6, 1.0, %v9163_v46 }
 0x11c   :  { %v259_v52 = vsub.f32 %v5657_v48, %v5661_v50  ;;  %v275_v53 = vsub.f32 %v5661_v50, %v5665_v51  ;;  %vm279_vm7 = vcmp.ge.f32.partialorder %v6400_v43, -0.6  ;;  %vm295_vm8 = vcmp.ge.f32.partialorder %v6400_v43, -0.2 }
 0x11d   :  { %v5669_v54 = vsel %vm279_vm7, 1.0, %v9163_v46  ;;  %v5673_v55 = vsel %vm295_vm8, 1.0, %v9163_v46  ;;  %v5701_v56 = vadd.f32 2.2, %v6400_v43  ;;  %v419_v57 = vsub.f32 -1.4, %v6400_v43 }
 0x11e   :  { %v291_v58 = vsub.f32 %v5665_v51, %v5669_v54  ;;  %v307_v59 = vsub.f32 %v5669_v54, %v5673_v55  ;;  %v6419_v60 = vadd.f32 1.8, %v6400_v43  ;;  %v447_v61 = vsub.f32 -1.0, %v6400_v43 }
 0x11f   :  { %v411_v62 = vmul.f32 2.5, %v5701_v56  ;;  %v423_v63 = vmul.f32 2.5, %v419_v57  ;;  %v6423_v0 = vadd.f32 1.4, %v6400_v43  ;;  %v475_v1 = vsub.f32 -0.6, %v6400_v43 }
 0x120   :  { %v168_v2 = vpop.f32.mrf.mxu1  ;;  %v439_v3 = vmul.f32 2.5, %v6419_v60  ;;  %v451_v4 = vmul.f32 2.5, %v447_v61  ;;  %v687_v5 = vmul.f32 1.25, %v5701_v56  ;;  %v695_v6 = vmul.f32 1.25, %v447_v61 }
 0x121   :  { %v6186_v7 = vpop.eup %6185  ;;  %189 = vst.msk [vmem:[#allocation2 + $0x10] sm:$0xff] %vm186_vm2, %v168_v2  ;;  %v415_v8 = vmul.f32 %v411_v62, %v243_v49  ;;  %v427_v9 = vmul.f32 %v423_v63, %v259_v52  ;;  %v467_v10 = vmul.f32 2.5, %v6423_v0  ;;  %v479_v11 = vmul.f32 2.5, %v475_v1 }
 0x122   :  { %v207_v12 = vadd.f32 1.0, %v6186_v7  ;;  %v443_v13 = vmul.f32 %v439_v3, %v259_v52  ;;  %v455_v14 = vmul.f32 %v451_v4, %v275_v53  ;;  %v707_v15 = vmul.f32 1.25, %v6419_v60 }
 0x123   :  { %v431_v16 = vadd.f32 %v427_v9, %v415_v8  ;;  %v471_v17 = vmul.f32 %v467_v10, %v275_v53  ;;  %v483_v18 = vmul.f32 %v479_v11, %v291_v58  ;;  %v715_v19 = vmul.f32 1.25, %v475_v1 }
 0x124   :  { %v211_v20 = vmul.f32 0.5, %v207_v12  ;;  %v459_v21 = vadd.f32 %v455_v14, %v443_v13  ;;  %v867_v22 = vmul.f32 0.8333333, %v5701_v56  ;;  %v875_v23 = vmul.f32 0.8333333, %v475_v1 }
 0x125   :  { %v6430_v24 = vadd.f32 %v483_v18, %v471_v17  ;;  %v691_v25 = vmul.f32 %v687_v5, %v431_v16  ;;  %vm311_vm9 = vcmp.ge.f32.partialorder %v6400_v43, 0.2  ;;  %vm327_vm10 = vcmp.ge.f32.partialorder %v6400_v43, 0.6 }
 0x126   :  { %v215_v26 = vmul.f32 %v211_v20, %v6400_v43  ;;  %v699_v27 = vmul.f32 %v695_v6, %v459_v21  ;;  %v711_v28 = vmul.f32 %v707_v15, %v459_v21  ;;  %v5677_v29 = vsel %vm311_vm9, 1.0, %v9163_v46 }
 0x127   :  { %v719_v30 = vmul.f32 %v715_v19, %v6430_v24  ;;  %v323_v31 = vsub.f32 %v5673_v55, %v5677_v29  ;;  %v5681_v32 = vsel %vm327_vm10, 1.0, %v9163_v46  ;;  %v5713_v33 = vadd.f32 1.0, %v6400_v43 }
 0x128   :  { %v171_v34 = vpop.f32.mrf.mxu1  ;;  %5745 = vmatmul.msk.f32.vlgmr.msra.gmra.mxu3 %vm186_vm2, %v215_v26  ;;  %v703_v35 = vadd.f32 %v699_v27, %v691_v25  ;;  %v6440_v36 = vsub.f32 %v5677_v29, %v5681_v32  ;;  %v6443_v37 = vsub.f32 -0.2, %v6400_v43  ;;  %v5717_v38 = vadd.f32 0.6, %v6400_v43 }
 0x129   :  { %190 = vst.msk [vmem:[#allocation2 + $0x18] sm:$0xff] %vm186_vm2, %v171_v34  ;;  %v6447_v39 = vadd.f32 %v719_v30, %v711_v28  ;;  %v495_v40 = vmul.f32 2.5, %v5713_v33  ;;  %v6450_v41 = vsub.f32 0.2, %v6400_v43  ;;  %v6453_v42 = vadd.f32 0.2, %v6400_v43 }
 0x12a   :  { %v871_v44 = vmul.f32 %v867_v22, %v703_v35  ;;  %v507_v45 = vmul.f32 2.5, %v6443_v37  ;;  %v523_v47 = vmul.f32 2.5, %v5717_v38  ;;  %v559_v48 = vsub.f32 0.6, %v6400_v43 }
 0x12b   :  { %9304 = vst [vmem:[#allocation7_spill] sm:$0xff] %v6453_v42  ;;  %v879_v49 = vmul.f32 %v875_v23, %v6447_v39  ;;  %v499_v50 = vmul.f32 %v495_v40, %v291_v58  ;;  %v535_v51 = vmul.f32 2.5, %v6450_v41  ;;  %v551_v52 = vmul.f32 2.5, %v6453_v42 }
 0x12c   :  { %v511_v53 = vmul.f32 %v507_v45, %v307_v59  ;;  %v527_v54 = vmul.f32 %v523_v47, %v307_v59  ;;  %v563_v55 = vmul.f32 2.5, %v559_v48  ;;  %v747_v62 = vmul.f32 1.25, %v5713_v33 }
 0x12d   :  { %v883_v56 = vadd.f32 %v879_v49, %v871_v44  ;;  %v539_v57 = vmul.f32 %v535_v51, %v323_v31  ;;  %v555_v61 = vmul.f32 %v551_v52, %v323_v31  ;;  %v755_v2 = vmul.f32 1.25, %v6450_v41 }
 0x12e   :  { %v6460_v63 = vadd.f32 %v511_v53, %v499_v50  ;;  %v567_v1 = vmul.f32 %v563_v55, %v6440_v36  ;;  %v767_v3 = vmul.f32 1.25, %v5717_v38  ;;  %v775_v4 = vmul.f32 1.25, %v559_v48 }
 0x12f   :  { %5741 = vmatmul.msk.f32.vlgmr.msra.gmra.mxu2 %vm186_vm2, %v883_v56  ;;  %v543_v58 = vadd.f32 %v539_v57, %v527_v54  ;;  %v787_v5 = vmul.f32 1.25, %v6453_v42  ;;  %v927_v6 = vmul.f32 0.8333333, %v5713_v33  ;;  %v935_v8 = vmul.f32 0.8333333, %v559_v48  ;;  %v6501_v54 = vld [vmem:[#allocation2 + $0x8] sm:$0xff] }
 0x130   :  { %v571_v59 = vadd.f32 %v567_v1, %v555_v61  ;;  %v751_v7 = vmul.f32 %v747_v62, %v6460_v63  ;;  %vm343_vm11 = vcmp.ge.f32.partialorder %v6400_v43, 1.0  ;;  %vm359_vm12 = vcmp.ge.f32.partialorder %v6400_v43, 1.4 }
 0x131   :  { %v759_v9 = vmul.f32 %v755_v2, %v543_v58  ;;  %v771_v10 = vmul.f32 %v767_v3, %v543_v58  ;;  %v5685_v11 = vsel %vm343_vm11, 1.0, %v9163_v46  ;;  %v947_v14 = vmul.f32 0.8333333, %v5717_v38 }
 0x132   :  { %v779_v12 = vmul.f32 %v775_v4, %v571_v59  ;;  %v6470_v13 = vmul.f32 %v787_v5, %v571_v59  ;;  %v5689_v15 = vsel %vm359_vm12, 1.0, %v9163_v46  ;;  %v355_v17 = vsub.f32 %v5681_v32, %v5685_v11 }
 0x133   :  { %v6473_v16 = vadd.f32 %v759_v9, %v751_v7  ;;  %vm375_vm13 = vcmp.ge.f32.partialorder %v6400_v43, 1.8  ;;  %vm391_vm14 = vcmp.ge.f32.partialorder %v6400_v43, 2.2  ;;  %v371_v19 = vsub.f32 %v5685_v11, %v5689_v15 }
 0x134   :  { %9305 = vst [vmem:[#allocation8_spill] sm:$0xff] %v6470_v13  ;;  %v783_v18 = vadd.f32 %v779_v12, %v771_v10  ;;  %v6478_v20 = vsel %vm375_vm13, 1.0, %v9163_v46  ;;  %v5725_v21 = vadd.f32 -0.2, %v6400_v43  ;;  %v6484_v25 = vsel %vm391_vm14, 1.0, %v9163_v46 }
 0x135   :  { %9306 = vst [vmem:[#allocation9_spill] sm:$0xff] %v6478_v20  ;;  %v931_v22 = vmul.f32 %v927_v6, %v6473_v16  ;;  %v387_v23 = vsub.f32 %v5689_v15, %v6478_v20  ;;  %v6487_v26 = vsub.f32 1.0, %v6400_v43  ;;  %v5729_v30 = vadd.f32 -0.6, %v6400_v43 }
 0x136   :  { %9307 = vst [vmem:[#allocation10_spill] sm:$0xff] %v6484_v25  ;;  %v939_v27 = vmul.f32 %v935_v8, %v783_v18  ;;  %v6489_v28 = vmul.f32 %v947_v14, %v783_v18  ;;  %v579_v29 = vmul.f32 2.5, %v5725_v21  ;;  %v615_v32 = vsub.f32 1.4, %v6400_v43 }
 0x137   :  { %9308 = vst [vmem:[#allocation11_spill] sm:$0xff] %v6487_v26  ;;  %v591_v31 = vmul.f32 2.5, %v6487_v26  ;;  %v5733_v33 = vadd.f32 -1.0, %v6400_v43  ;;  %v643_v34 = vsub.f32 1.8, %v6400_v43  ;;  %v607_v40 = vmul.f32 2.5, %v5729_v30 }
 0x138   :  { %9309 = vst [vmem:[#allocation12_spill] sm:$0xff] %v6489_v28  ;;  %v943_v35 = vadd.f32 %v939_v27, %v931_v22  ;;  %v583_v38 = vmul.f32 %v579_v29, %v6440_v36  ;;  %v5737_v44 = vadd.f32 -1.4, %v6400_v43  ;;  %v619_v47 = vmul.f32 2.5, %v615_v32 }
 0x139   :  { %v595_v45 = vmul.f32 %v591_v31, %v355_v17  ;;  %v635_v48 = vmul.f32 2.5, %v5733_v33  ;;  %v647_v49 = vmul.f32 2.5, %v643_v34  ;;  %v611_v51 = vmul.f32 %v607_v40, %v355_v17 }
 0x13a   :  { %5757 = vmatmul.msk.f32.vlgmr.msrb.gmra.mxu1 %vm186_vm2, %v943_v35  ;;  %v663_v52 = vmul.f32 2.5, %v5737_v44  ;;  %v807_v53 = vmul.f32 1.25, %v5725_v21  ;;  %v623_v56 = vmul.f32 %v619_v47, %v371_v19  ;;  %v795_v43 = vmul.f32 1.25, %v6487_v26 }
 0x13b   :  { %v599_v55 = vadd.f32 %v595_v45, %v583_v38  ;;  %v639_v36 = vmul.f32 %v635_v48, %v371_v19  ;;  %v651_v57 = vmul.f32 %v647_v49, %v387_v23  ;;  %v815_v62 = vmul.f32 1.25, %v615_v32 }
 0x13c   :  { %v6503_v61 = vmul.f32 %v663_v52, %v387_v23  ;;  %v827_v1 = vmul.f32 1.25, %v5729_v30  ;;  %v627_v2 = vadd.f32 %v623_v56, %v611_v51  ;;  %v835_v4 = vmul.f32 1.25, %v643_v34 }
 0x13d   :  { %v655_v3 = vadd.f32 %v651_v57, %v639_v36  ;;  %v811_v58 = vmul.f32 %v807_v53, %v599_v55  ;;  %v847_v5 = vmul.f32 1.25, %v5733_v33  ;;  %v975_v6 = vmul.f32 0.8333333, %v615_v32 }
 0x13e   :  { %9310 = vst [vmem:[#allocation13_spill] sm:$0xff] %v6503_v61  ;;  %v987_v59 = vmul.f32 0.8333333, %v5725_v21  ;;  %v200_v7 = vmul.f32 0.5, %v6501_v54  ;;  %v819_v8 = vmul.f32 %v815_v62, %v627_v2  ;;  %v831_v9 = vmul.f32 %v827_v1, %v627_v2 }
 0x13f   :  { %v839_v10 = vmul.f32 %v835_v4, %v655_v3  ;;  %v995_v11 = vmul.f32 0.8333333, %v643_v34  ;;  %v6507_v12 = vmul.f32 %v847_v5, %v655_v3  ;;  %v1007_v14 = vmul.f32 0.8333333, %v5729_v30 }
 0x140   :  { %6187 = vtanh.f32 %v200_v7  ;;  %vm220_vm15 = vcmp.ge.f32.partialorder %v6501_v54, -2.2  ;;  %v823_v15 = vadd.f32 %v819_v8, %v811_v58  ;;  %vm232_vm1 = vcmp.ge.f32.partialorder %v6501_v54, -1.8 }
 0x141   :  { %9311 = vst [vmem:[#allocation14_spill] sm:$0xff] %v6507_v12  ;;  %v843_v17 = vadd.f32 %v839_v10, %v831_v9  ;;  %v5654_v18 = vsel %vm220_vm15, 1.0, %v9163_v46  ;;  %v5658_v19 = vsel %vm232_vm1, 1.0, %v9163_v46  ;;  %vm248_vm3 = vcmp.ge.f32.partialorder %v6501_v54, -1.4 }
 0x142   :  { %vm264_vm4 = vcmp.ge.f32.partialorder %v6501_v54, -1.0  ;;  %vm280_vm5 = vcmp.ge.f32.partialorder %v6501_v54, -0.6  ;;  %v6516_v21 = vmul.f32 %v975_v6, %v823_v15  ;;  %v991_v22 = vmul.f32 %v987_v59, %v823_v15 }
 0x143   :  { %v999_v23 = vmul.f32 %v995_v11, %v843_v17  ;;  %v6518_v27 = vmul.f32 %v1007_v14, %v843_v17  ;;  %v6520_v29 = vmul.f32 %v795_v43, %v599_v55  ;;  %v5662_v30 = vsel %vm248_vm3, 1.0, %v9163_v46 }
 0x144   :  { %9312 = vst [vmem:[#allocation15_spill] sm:$0xff] %v6516_v21  ;;  %v5666_v31 = vsel %vm264_vm4, 1.0, %v9163_v46  ;;  %v5670_v32 = vsel %vm280_vm5, 1.0, %v9163_v46  ;;  %v244_v34 = vsub.f32 %v5654_v18, %v5658_v19  ;;  %v260_v35 = vsub.f32 %v5658_v19, %v5662_v30 }
 0x145   :  { %9313 = vst [vmem:[#allocation16_spill] sm:$0xff] %v6518_v27  ;;  %v1003_v33 = vadd.f32 %v999_v23, %v991_v22  ;;  %v276_v38 = vsub.f32 %v5662_v30, %v5666_v31  ;;  %v6525_v44 = vsub.f32 %v5666_v31, %v5670_v32  ;;  %v5702_v45 = vadd.f32 2.2, %v6501_v54 }
 0x146   :  { %9314 = vst [vmem:[#allocation17_spill] sm:$0xff] %v6520_v29  ;;  %v6188_v40 = vpop.eup %6187  ;;  %v420_v47 = vsub.f32 -1.4, %v6501_v54  ;;  %v6530_v48 = vadd.f32 1.8, %v6501_v54  ;;  %v448_v51 = vsub.f32 -1.0, %v6501_v54 }
 0x147   :  { %5769 = vmatmul.msk.f32.vlgmr.msrb.gmra.mxu0 %vm186_vm2, %v1003_v33  ;;  %v208_v49 = vadd.f32 1.0, %v6188_v40  ;;  %v6535_v52 = vadd.f32 1.4, %v6501_v54  ;;  %v476_v53 = vsub.f32 -0.6, %v6501_v54  ;;  %v412_v55 = vmul.f32 2.5, %v5702_v45 }
 0x148   :  { %v424_v56 = vmul.f32 2.5, %v420_v47  ;;  %v440_v36 = vmul.f32 2.5, %v6530_v48  ;;  %v688_v57 = vmul.f32 1.25, %v5702_v45  ;;  %v452_v62 = vmul.f32 2.5, %v448_v51 }
 0x149   :  { %v212_v43 = vmul.f32 0.5, %v208_v49  ;;  %v468_v1 = vmul.f32 2.5, %v6535_v52  ;;  %v480_v2 = vmul.f32 2.5, %v476_v53  ;;  %v416_v3 = vmul.f32 %v412_v55, %v244_v34 }
 0x14a   :  { %v428_v58 = vmul.f32 %v424_v56, %v260_v35  ;;  %v444_v4 = vmul.f32 %v440_v36, %v260_v35  ;;  %v696_v5 = vmul.f32 1.25, %v448_v51  ;;  %v456_v59 = vmul.f32 %v452_v62, %v276_v38 }
 0x14b   :  { %v216_v6 = vmul.f32 %v212_v43, %v6501_v54  ;;  %v472_v7 = vmul.f32 %v468_v1, %v276_v38  ;;  %v484_v8 = vmul.f32 %v480_v2, %v6525_v44  ;;  %v708_v10 = vmul.f32 1.25, %v6530_v48 }
 0x14c   :  { %v432_v9 = vadd.f32 %v428_v58, %v416_v3  ;;  %v716_v11 = vmul.f32 1.25, %v476_v53  ;;  %v868_v14 = vmul.f32 0.8333333, %v5702_v45  ;;  %v460_v15 = vadd.f32 %v456_v59, %v444_v4 }
 0x14d   :  { %5746 = vmatmul.msk.f32.gmra.mxu3 %vm186_vm2, %v216_v6  ;;  %v6544_v17 = vadd.f32 %v484_v8, %v472_v7  ;;  %v876_v18 = vmul.f32 0.8333333, %v476_v53  ;;  %vm296_vm6 = vcmp.ge.f32.partialorder %v6501_v54, -0.2  ;;  %vm312_vm7 = vcmp.ge.f32.partialorder %v6501_v54, 0.2 }
 0x14e   :  { %v692_v19 = vmul.f32 %v688_v57, %v432_v9  ;;  %v5674_v22 = vsel %vm296_vm6, 1.0, %v9163_v46  ;;  %vm328_vm8 = vcmp.ge.f32.partialorder %v6501_v54, 0.6  ;;  %v700_v23 = vmul.f32 %v696_v5, %v460_v15 }
 0x14f   :  { %v712_v30 = vmul.f32 %v708_v10, %v460_v15  ;;  %v720_v31 = vmul.f32 %v716_v11, %v6544_v17  ;;  %v308_v33 = vsub.f32 %v5670_v32, %v5674_v22  ;;  %v5678_v34 = vsel %vm312_vm7, 1.0, %v9163_v46 }
 0x150   :  { %v5682_v35 = vsel %vm328_vm8, 1.0, %v9163_v46  ;;  %vm344_vm9 = vcmp.ge.f32.partialorder %v6501_v54, 1.0  ;;  %vm360_vm10 = vcmp.ge.f32.partialorder %v6501_v54, 1.4  ;;  %v704_v38 = vadd.f32 %v700_v23, %v692_v19 }
 0x151   :  { %v6555_v40 = vadd.f32 %v720_v31, %v712_v30  ;;  %v324_v45 = vsub.f32 %v5674_v22, %v5678_v34  ;;  %v340_v47 = vsub.f32 %v5678_v34, %v5682_v35  ;;  %v5686_v49 = vsel %vm344_vm9, 1.0, %v9163_v46 }
 0x152   :  { %v5690_v51 = vsel %vm360_vm10, 1.0, %v9163_v46  ;;  %vm376_vm11 = vcmp.ge.f32.partialorder %v6501_v54, 1.8  ;;  %v5714_v32 = vadd.f32 1.0, %v6501_v54  ;;  %v872_v53 = vmul.f32 %v868_v14, %v704_v38 }
 0x153   :  { %v880_v55 = vmul.f32 %v876_v18, %v6555_v40  ;;  %v356_v56 = vsub.f32 %v5682_v35, %v5686_v49  ;;  %v6562_v36 = vsub.f32 %v5686_v49, %v5690_v51  ;;  %v6565_v57 = vsel %vm376_vm11, 1.0, %v9163_v46  ;;  %v6603_v49 = vld [vmem:[#allocation2 + $0x10] sm:$0xff] }
 0x154   :  { %9315 = vst [vmem:[#allocation18_spill] sm:$0xff] %v6565_v57  ;;  %v496_v43 = vmul.f32 2.5, %v5714_v32  ;;  %v6568_v62 = vsub.f32 -0.2, %v6501_v54  ;;  %v6571_v1 = vadd.f32 0.6, %v6501_v54  ;;  %v6574_v3 = vsub.f32 %v5690_v51, %v6565_v57 }
 0x155   :  { %v884_v2 = vadd.f32 %v880_v55, %v872_v53  ;;  %v6577_v58 = vsub.f32 0.2, %v6501_v54  ;;  %v6580_v4 = vadd.f32 0.2, %v6501_v54  ;;  %v560_v7 = vsub.f32 0.6, %v6501_v54 }
 0x156   :  { %9316 = vst [vmem:[#allocation19_spill] sm:$0xff] %v6571_v1  ;;  %v500_v5 = vmul.f32 %v496_v43, %v6525_v44  ;;  %v508_v6 = vmul.f32 2.5, %v6568_v62  ;;  %v524_v59 = vmul.f32 2.5, %v6571_v1  ;;  %v6590_v10 = vadd.f32 -0.2, %v6501_v54 }
 0x157   :  { %9317 = vst [vmem:[#allocation20_spill] sm:$0xff] %v6580_v4  ;;  %5742 = vmatmul.msk.f32.gmra.mxu2 %vm186_vm2, %v884_v2  ;;  %v536_v8 = vmul.f32 2.5, %v6577_v58  ;;  %v552_v9 = vmul.f32 2.5, %v6580_v4  ;;  %v6593_v11 = vsub.f32 1.0, %v6501_v54  ;;  %v564_v15 = vmul.f32 2.5, %v560_v7 }
 0x158   :  { %v512_v14 = vmul.f32 %v508_v6, %v308_v33  ;;  %v528_v44 = vmul.f32 %v524_v59, %v308_v33  ;;  %v6596_v18 = vadd.f32 -0.6, %v6501_v54  ;;  %v580_v23 = vmul.f32 2.5, %v6590_v10 }
 0x159   :  { %9318 = vst [vmem:[#allocation21_spill] sm:$0xff] %v6593_v11  ;;  %v540_v19 = vmul.f32 %v536_v8, %v324_v45  ;;  %v556_v22 = vmul.f32 %v552_v9, %v324_v45  ;;  %v592_v30 = vmul.f32 2.5, %v6593_v11  ;;  %v568_v34 = vmul.f32 %v564_v15, %v340_v47 }
 0x15a   :  { %v6600_v31 = vadd.f32 %v512_v14, %v500_v5  ;;  %v608_v35 = vmul.f32 2.5, %v6596_v18  ;;  %v748_v38 = vmul.f32 1.25, %v5714_v32  ;;  %v6605_v33 = vmul.f32 %v580_v23, %v340_v47 }
 0x15b   :  { %v544_v51 = vadd.f32 %v540_v19, %v528_v44  ;;  %v6607_v53 = vmul.f32 %v592_v30, %v356_v56  ;;  %v756_v55 = vmul.f32 1.25, %v6577_v58  ;;  %v6610_v45 = vadd.f32 %v568_v34, %v556_v22  ;;  %v1122_v34 = vld [vmem:[#allocation4 + $0x58] sm:$0xff] }
 0x15c   :  { %v6612_v43 = vmul.f32 %v608_v35, %v356_v56  ;;  %v752_v2 = vmul.f32 %v748_v38, %v6600_v31  ;;  %v768_v5 = vmul.f32 1.25, %v6571_v1  ;;  %v776_v59 = vmul.f32 1.25, %v560_v7  ;;  %1147 = vmatpush.msrb.mxu2 %v1122_v34  ;;  %2422 = vmatpush.msra.mxu0 %v1122_v34 }
 0x15d   :  { %9319 = vst [vmem:[#allocation22_spill] sm:$0xff] %v6610_v45  ;;  %v760_v6 = vmul.f32 %v756_v55, %v544_v51  ;;  %v928_v8 = vmul.f32 0.8333333, %v5714_v32  ;;  %v936_v9 = vmul.f32 0.8333333, %v560_v7  ;;  %v201_v47 = vmul.f32 0.5, %v6603_v49 }
 0x15e   :  { %v772_v14 = vmul.f32 %v768_v5, %v544_v51  ;;  %vm221_vm12 = vcmp.ge.f32.partialorder %v6603_v49, -2.2  ;;  %vm233_vm13 = vcmp.ge.f32.partialorder %v6603_v49, -1.8  ;;  %v780_v56 = vmul.f32 %v776_v59, %v6610_v45 }
 0x15f   :  { %v6619_v44 = vadd.f32 %v760_v6, %v752_v2  ;;  %v5655_v15 = vsel %vm221_vm12, 1.0, %v9163_v46  ;;  %v5659_v19 = vsel %vm233_vm13, 1.0, %v9163_v46  ;;  %6189 = vtanh.f32 %v201_v47 }
 0x160   :  { %v245_v22 = vsub.f32 %v5655_v15, %v5659_v19  ;;  %vm249_vm14 = vcmp.ge.f32.partialorder %v6603_v49, -1.4  ;;  %vm265_vm15 = vcmp.ge.f32.partialorder %v6603_v49, -1.0  ;;  %v6626_v32 = vadd.f32 %v780_v56, %v772_v14 }
 0x161   :  { %v932_v7 = vmul.f32 %v928_v8, %v6619_v44  ;;  %v5663_v23 = vsel %vm249_vm14, 1.0, %v9163_v46  ;;  %v5667_v30 = vsel %vm265_vm15, 1.0, %v9163_v46  ;;  %vm281_vm1 = vcmp.ge.f32.partialorder %v6603_v49, -0.6 }
 0x162   :  { %9320 = vst [vmem:[#allocation23_spill] sm:$0xff] %v6626_v32  ;;  %v261_v35 = vsub.f32 %v5659_v19, %v5663_v23  ;;  %v277_v38 = vsub.f32 %v5663_v23, %v5667_v30  ;;  %v5703_v51 = vadd.f32 2.2, %v6603_v49  ;;  %v940_v55 = vmul.f32 %v936_v9, %v6626_v32 }
 0x163   :  { %v5671_v2 = vsel %vm281_vm1, 1.0, %v9163_v46  ;;  %v421_v5 = vsub.f32 -1.4, %v6603_v49  ;;  %v6637_v6 = vadd.f32 1.8, %v6603_v49  ;;  %v449_v14 = vsub.f32 -1.0, %v6603_v49 }
 0x164   :  { %v293_v59 = vsub.f32 %v5667_v30, %v5671_v2  ;;  %v413_v8 = vmul.f32 2.5, %v5703_v51  ;;  %v6641_v47 = vadd.f32 1.4, %v6603_v49  ;;  %v944_v56 = vadd.f32 %v940_v55, %v932_v7 }
 0x165   :  { %9321 = vst [vmem:[#allocation24_spill] sm:$0xff] %v6637_v6  ;;  %v425_v15 = vmul.f32 2.5, %v421_v5  ;;  %v441_v19 = vmul.f32 2.5, %v6637_v6  ;;  %v477_v9 = vsub.f32 -0.6, %v6603_v49  ;;  %v6190_v23 = vpop.eup %6189  ;;  %v453_v50 = vmul.f32 2.5, %v449_v14 }
 0x166   :  { %v417_v34 = vmul.f32 %v413_v8, %v245_v22  ;;  %v469_v46 = vmul.f32 2.5, %v6641_v47  ;;  %v689_v32 = vmul.f32 1.25, %v5703_v51  ;;  %5758 = vmatmul.msk.f32.gmra.mxu1 %vm186_vm2, %v944_v56  ;;  %v209_v30 = vadd.f32 1.0, %v6190_v23 }
 0x167   :  { %v429_v1 = vmul.f32 %v425_v15, %v261_v35  ;;  %v445_v45 = vmul.f32 %v441_v19, %v261_v35  ;;  %v481_v11 = vmul.f32 2.5, %v477_v9  ;;  %v457_v4 = vmul.f32 %v453_v50, %v277_v38 }
 0x168   :  { %v473_v28 = vmul.f32 %v469_v46, %v277_v38  ;;  %v697_v7 = vmul.f32 1.25, %v449_v14  ;;  %v709_v55 = vmul.f32 1.25, %v6637_v6  ;;  %v213_v5 = vmul.f32 0.5, %v209_v30 }
 0x169   :  { %v433_v21 = vadd.f32 %v429_v1, %v417_v34  ;;  %v485_v57 = vmul.f32 %v481_v11, %v293_v59  ;;  %v717_v26 = vmul.f32 1.25, %v477_v9  ;;  %v461_v22 = vadd.f32 %v457_v4, %v445_v45 }
 0x16a   :  { %v869_v8 = vmul.f32 0.8333333, %v5703_v51  ;;  %v877_v42 = vmul.f32 0.8333333, %v477_v9  ;;  %vm297_vm3 = vcmp.ge.f32.partialorder %v6603_v49, -0.2  ;;  %v217_v56 = vmul.f32 %v213_v5, %v6603_v49 }
 0x16b   :  { %v6650_v23 = vadd.f32 %v485_v57, %v473_v28  ;;  %v693_v35 = vmul.f32 %v689_v32, %v433_v21  ;;  %v9323_v15 = vmov 0.0   ;;  %v701_v46 = vmul.f32 %v697_v7, %v461_v22  ;;  %v1172_v32 = vld [vmem:[#allocation4 + $0x78] sm:$0xff] }
 0x16c   :  { %v5675_v50 = vsel %vm297_vm3, 1.0, %v9323_v15  ;;  %v713_v38 = vmul.f32 %v709_v55, %v461_v22  ;;  %vm313_vm4 = vcmp.ge.f32.partialorder %v6603_v49, 0.2  ;;  %5747 = vmatmul.msk.f32.gmra.mxu3 %vm186_vm2, %v217_v56  ;;  %vm329_vm5 = vcmp.ge.f32.partialorder %v6603_v49, 0.6 }
 0x16d   :  { %9322 = vst [vmem:[#allocation25_spill] sm:$0xff] %v6650_v23  ;;  %v309_v14 = vsub.f32 %v5671_v2, %v5675_v50  ;;  %v721_v1 = vmul.f32 %v717_v26, %v6650_v23  ;;  %v5679_v4 = vsel %vm313_vm4, 1.0, %v9323_v15  ;;  %v5715_v11 = vadd.f32 1.0, %v6603_v49  ;;  %1197 = vmatpush.msrb.mxu3 %v1172_v32 }
 0x16e   :  { %v705_v28 = vadd.f32 %v701_v46, %v693_v35  ;;  %v325_v57 = vsub.f32 %v5675_v50, %v5679_v4  ;;  %v6660_v21 = vsel %vm329_vm5, 1.0, %v9323_v15  ;;  %v6663_v45 = vsub.f32 -0.2, %v6603_v49 }
 0x16f   :  { %v6665_v51 = vadd.f32 %v721_v1, %v713_v38  ;;  %v6668_v2 = vsub.f32 %v5679_v4, %v6660_v21  ;;  %v497_v26 = vmul.f32 2.5, %v5715_v11  ;;  %v6671_v19 = vadd.f32 0.6, %v6603_v49  ;;  %v6685_v38 = vld [vmem:[#allocation2 + $0x18] sm:$0xff] }
 0x170   :  { %v873_v9 = vmul.f32 %v869_v8, %v705_v28  ;;  %v509_v34 = vmul.f32 2.5, %v6663_v45  ;;  %v6675_v30 = vsub.f32 0.2, %v6603_v49  ;;  %v6678_v7 = vadd.f32 0.2, %v6603_v49 }
 0x171   :  { %9324 = vst [vmem:[#allocation26_spill] sm:$0xff] %v6665_v51  ;;  %v881_v55 = vmul.f32 %v877_v42, %v6665_v51  ;;  %v501_v5 = vmul.f32 %v497_v26, %v293_v59  ;;  %v525_v22 = vmul.f32 2.5, %v6671_v19  ;;  %v561_v56 = vsub.f32 0.6, %v6603_v49 }
 0x172   :  { %9325 = vst [vmem:[#allocation27_spill] sm:$0xff] %v6671_v19  ;;  %v513_v35 = vmul.f32 %v509_v34, %v309_v14  ;;  %v537_v50 = vmul.f32 2.5, %v6675_v30  ;;  %v553_v8 = vmul.f32 2.5, %v6678_v7  ;;  %v749_v46 = vmul.f32 1.25, %v5715_v11 }
 0x173   :  { %9326 = vst [vmem:[#allocation28_spill] sm:$0xff] %v6678_v7  ;;  %v885_v1 = vadd.f32 %v881_v55, %v873_v9  ;;  %v529_v4 = vmul.f32 %v525_v22, %v309_v14  ;;  %v565_v28 = vmul.f32 2.5, %v561_v56  ;;  %v757_v32 = vmul.f32 1.25, %v6675_v30 }
 0x174   :  { %v6688_v29 = vadd.f32 %v513_v35, %v501_v5  ;;  %v541_v42 = vmul.f32 %v537_v50, %v325_v57  ;;  %v557_v59 = vmul.f32 %v553_v8, %v325_v57  ;;  %v769_v26 = vmul.f32 1.25, %v6671_v19 }
 0x175   :  { %5743 = vmatmul.msk.f32.gmra.mxu2 %vm186_vm2, %v885_v1  ;;  %v569_v34 = vmul.f32 %v565_v28, %v6668_v2  ;;  %v777_v13 = vmul.f32 1.25, %v561_v56  ;;  %v929_v7 = vmul.f32 0.8333333, %v5715_v11  ;;  %v937_v27 = vmul.f32 0.8333333, %v561_v56  ;;  %v1171_v28 = vld [vmem:[#allocation4 + $0x70] sm:$0xff] }
 0x176   :  { %9327 = vst [vmem:[#allocation29_spill] sm:$0xff] %v6688_v29  ;;  %v545_v12 = vadd.f32 %v541_v42, %v529_v4  ;;  %v753_v9 = vmul.f32 %v749_v46, %v6688_v29  ;;  %v202_v14 = vmul.f32 0.5, %v6685_v38  ;;  %vm222_vm6 = vcmp.ge.f32.partialorder %v6685_v38, -2.2  ;;  %v1121_v4 = vld [vmem:[#allocation4 + $0x50] sm:$0xff]  ;;  %1198 = vmatpush.msrb.mxu3 %v1171_v28 }
 0x177   :  { %v6696_v55 = vadd.f32 %v569_v34, %v557_v59  ;;  %v5656_v57 = vsel %vm222_vm6, 1.0, %v9323_v15  ;;  %vm234_vm7 = vcmp.ge.f32.partialorder %v6685_v38, -1.8  ;;  %vm250_vm8 = vcmp.ge.f32.partialorder %v6685_v38, -1.4  ;;  %1148 = vmatpush.msrb.mxu2 %v1121_v4  ;;  %v1120_v34 = vld [vmem:[#allocation4 + $0x48] sm:$0xff]  ;;  %2423 = vmatpush.msra.mxu0 %v1121_v4 }
 0x178   :  { %v761_v5 = vmul.f32 %v757_v32, %v545_v12  ;;  %v773_v22 = vmul.f32 %v769_v26, %v545_v12  ;;  %6191 = vtanh.f32 %v202_v14  ;;  %v5660_v11 = vsel %vm234_vm7, 1.0, %v9323_v15  ;;  %v1170_v12 = vld [vmem:[#allocation4 + $0x68] sm:$0xff]  ;;  %v174_v32 = vpop.f32.mrf.mxu1 }
 0x179   :  { %9328 = vst [vmem:[#allocation30_spill] sm:$0xff] %v6696_v55  ;;  %v781_v56 = vmul.f32 %v777_v13, %v6696_v55  ;;  %v246_v35 = vsub.f32 %v5656_v57, %v5660_v11  ;;  %v5664_v50 = vsel %vm250_vm8, 1.0, %v9323_v15  ;;  %vm266_vm9 = vcmp.ge.f32.partialorder %v6685_v38, -1.0  ;;  %1199 = vmatpush.msrb.mxu3 %v1170_v12  ;;  %1149 = vmatpush.msrb.mxu2 %v1120_v34 }
 0x17a   :  { %v6705_v8 = vadd.f32 %v761_v5, %v753_v9  ;;  %v262_v46 = vsub.f32 %v5660_v11, %v5664_v50  ;;  %v5668_v1 = vsel %vm266_vm9, 1.0, %v9323_v15  ;;  %vm282_vm10 = vcmp.ge.f32.partialorder %v6685_v38, -0.6  ;;  %191 = vst.msk [vmem:[#allocation2 + $0x20] sm:$0xff] %vm186_vm2, %v174_v32  ;;  %v1119_v11 = vld [vmem:[#allocation4 + $0x40] sm:$0xff]  ;;  %2424 = vmatpush.msra.mxu0 %v1120_v34 }
 0x17b   :  { %v6709_v42 = vadd.f32 %v781_v56, %v773_v22  ;;  %v278_v59 = vsub.f32 %v5664_v50, %v5668_v1  ;;  %v5672_v13 = vsel %vm282_vm10, 1.0, %v9323_v15  ;;  %v5704_v26 = vadd.f32 2.2, %v6685_v38  ;;  %v1169_v22 = vld [vmem:[#allocation4 + $0x60] sm:$0xff]  ;;  %1150 = vmatpush.msrb.mxu2 %v1119_v11 }
 0x17c   :  { %9329 = vst [vmem:[#allocation31_spill] sm:$0xff] %v6705_v8  ;;  %v933_v9 = vmul.f32 %v929_v7, %v6705_v8  ;;  %v6715_v14 = vsub.f32 %v5668_v1, %v5672_v13  ;;  %v422_v57 = vsub.f32 -1.4, %v6685_v38  ;;  %v6719_v5 = vadd.f32 1.8, %v6685_v38  ;;  %1200 = vmatpush.msrb.mxu3 %v1169_v22  ;;  %2425 = vmatpush.msra.mxu0 %v1119_v11 }
 0x17d   :  { %9330 = vst [vmem:[#allocation32_spill] sm:$0xff] %v6709_v42  ;;  %v941_v56 = vmul.f32 %v937_v27, %v6709_v42  ;;  %v414_v50 = vmul.f32 2.5, %v5704_v26  ;;  %v450_v28 = vsub.f32 -1.0, %v6685_v38  ;;  %v6724_v19 = vadd.f32 1.4, %v6685_v38 }
 0x17e   :  { %9331 = vst [vmem:[#allocation33_spill] sm:$0xff] %v6719_v5  ;;  %v6192_v7 = vpop.eup %6191  ;;  %v426_v1 = vmul.f32 2.5, %v422_v57  ;;  %v442_v32 = vmul.f32 2.5, %v6719_v5  ;;  %v478_v55 = vsub.f32 -0.6, %v6685_v38  ;;  %v690_v61 = vmul.f32 1.25, %v5704_v26 }
 0x17f   :  { %v945_v25 = vadd.f32 %v941_v56, %v933_v9  ;;  %v210_v4 = vadd.f32 1.0, %v6192_v7  ;;  %v418_v20 = vmul.f32 %v414_v50, %v246_v35  ;;  %v454_v27 = vmul.f32 2.5, %v450_v28 }
 0x180   :  { %v430_v42 = vmul.f32 %v426_v1, %v262_v46  ;;  %v446_v51 = vmul.f32 %v442_v32, %v262_v46  ;;  %v470_v8 = vmul.f32 2.5, %v6724_v19  ;;  %v482_v12 = vmul.f32 2.5, %v478_v55 }
 0x181   :  { %5759 = vmatmul.msk.f32.gmra.mxu1 %vm186_vm2, %v945_v25  ;;  %v214_v57 = vmul.f32 0.5, %v210_v4  ;;  %v458_v6 = vmul.f32 %v454_v27, %v278_v59  ;;  %v698_v29 = vmul.f32 1.25, %v450_v28  ;;  %v710_v23 = vmul.f32 1.25, %v6719_v5  ;;  %v177_v25 = vpop.f32.mrf.mxu1 }
 0x182   :  { %v434_v34 = vadd.f32 %v430_v42, %v418_v20  ;;  %v474_v9 = vmul.f32 %v470_v8, %v278_v59  ;;  %v486_v35 = vmul.f32 %v482_v12, %v6715_v14  ;;  %v718_v56 = vmul.f32 1.25, %v478_v55  ;;  %192 = vst.msk [vmem:[#allocation2 + $0x28] sm:$0xff] %vm186_vm2, %v177_v25 }
 0x183   :  { %v218_v22 = vmul.f32 %v214_v57, %v6685_v38  ;;  %v462_v50 = vadd.f32 %v458_v6, %v446_v51  ;;  %v870_v46 = vmul.f32 0.8333333, %v5704_v26  ;;  %v878_v7 = vmul.f32 0.8333333, %v478_v55 }
 0x184   :  { %v6733_v1 = vadd.f32 %v486_v35, %v474_v9  ;;  %v694_v11 = vmul.f32 %v690_v61, %v434_v34  ;;  %vm298_vm11 = vcmp.ge.f32.partialorder %v6685_v38, -0.2  ;;  %vm314_vm12 = vcmp.ge.f32.partialorder %v6685_v38, 0.2 }
 0x185   :  { %5748 = vmatmul.msk.f32.gmra.mxu3 %vm186_vm2, %v218_v22  ;;  %v702_v20 = vmul.f32 %v698_v29, %v462_v50  ;;  %v714_v8 = vmul.f32 %v710_v23, %v462_v50  ;;  %v5676_v42 = vsel %vm298_vm11, 1.0, %v9323_v15  ;;  %v5680_v59 = vsel %vm314_vm12, 1.0, %v9323_v15 }
 0x186   :  { %v722_v6 = vmul.f32 %v718_v56, %v6733_v1  ;;  %v310_v51 = vsub.f32 %v5672_v13, %v5676_v42  ;;  %v326_v55 = vsub.f32 %v5676_v42, %v5680_v59  ;;  %vm330_vm13 = vcmp.ge.f32.partialorder %v6685_v38, 0.6 }
 0x187   :  { %v706_v61 = vadd.f32 %v702_v20, %v694_v11  ;;  %v6744_v26 = vsel %vm330_vm13, 1.0, %v9323_v15  ;;  %v5716_v28 = vadd.f32 1.0, %v6685_v38  ;;  %v6748_v29 = vsub.f32 -0.2, %v6685_v38 }
 0x188   :  { %v6750_v23 = vadd.f32 %v722_v6, %v714_v8  ;;  %v6753_v32 = vsub.f32 %v5680_v59, %v6744_v26  ;;  %v6756_v4 = vadd.f32 0.6, %v6685_v38  ;;  %v6759_v13 = vsub.f32 0.2, %v6685_v38 }
 0x189   :  { %v874_v27 = vmul.f32 %v870_v46, %v706_v61  ;;  %v498_v12 = vmul.f32 2.5, %v5716_v28  ;;  %v510_v57 = vmul.f32 2.5, %v6748_v29  ;;  %v6763_v34 = vadd.f32 0.2, %v6685_v38 }
 0x18a   :  { %9332 = vst [vmem:[#allocation34_spill] sm:$0xff] %v6750_v23  ;;  %v882_v9 = vmul.f32 %v878_v7, %v6750_v23  ;;  %v526_v35 = vmul.f32 2.5, %v6756_v4  ;;  %v538_v56 = vmul.f32 2.5, %v6759_v13  ;;  %v562_v22 = vsub.f32 0.6, %v6685_v38 }
 0x18b   :  { %9333 = vst [vmem:[#allocation35_spill] sm:$0xff] %v6763_v34  ;;  %v502_v50 = vmul.f32 %v498_v12, %v6715_v14  ;;  %v514_v11 = vmul.f32 %v510_v57, %v310_v51  ;;  %v554_v25 = vmul.f32 2.5, %v6763_v34  ;;  %v750_v46 = vmul.f32 1.25, %v5716_v28 }
 0x18c   :  { %v886_v20 = vadd.f32 %v882_v9, %v874_v27  ;;  %v530_v8 = vmul.f32 %v526_v35, %v310_v51  ;;  %v542_v42 = vmul.f32 %v538_v56, %v326_v55  ;;  %v566_v59 = vmul.f32 2.5, %v562_v22 }
 0x18d   :  { %v6771_v6 = vadd.f32 %v514_v11, %v502_v50  ;;  %v558_v61 = vmul.f32 %v554_v25, %v326_v55  ;;  %v758_v7 = vmul.f32 1.25, %v6759_v13  ;;  %v770_v23 = vmul.f32 1.25, %v6756_v4 }
 0x18e   :  { %5744 = vmatmul.msk.f32.gmra.mxu2 %vm186_vm2, %v886_v20  ;;  %v546_v5 = vadd.f32 %v542_v42, %v530_v8  ;;  %v570_v14 = vmul.f32 %v566_v59, %v6753_v32  ;;  %v778_v12 = vmul.f32 1.25, %v562_v22  ;;  %v930_v57 = vmul.f32 0.8333333, %v5716_v28 }
 0x18f   :  { %v754_v34 = vmul.f32 %v750_v46, %v6771_v6  ;;  %v938_v27 = vmul.f32 0.8333333, %v562_v22  ;;  %v727_v51 = vmul.f32 1.25, %v6423_v0  ;;  %v735_v9 = vmul.f32 1.25, %v6443_v37 }
 0x190   :  { %v6780_v35 = vadd.f32 %v570_v14, %v558_v61  ;;  %v762_v55 = vmul.f32 %v758_v7, %v546_v5  ;;  %v774_v56 = vmul.f32 %v770_v23, %v546_v5  ;;  %v907_v50 = vmul.f32 0.8333333, %v6423_v0 }
 0x191   :  { %v731_v11 = vmul.f32 %v727_v51, %v6430_v24  ;;  %v739_v25 = vmul.f32 %v735_v9, %v6460_v63  ;;  %v915_v20 = vmul.f32 0.8333333, %v6450_v41  ;;  %v887_v28 = vmul.f32 0.8333333, %v6419_v60 }
 0x192   :  { %v6787_v46 = vadd.f32 %v762_v55, %v754_v34  ;;  %v782_v22 = vmul.f32 %v778_v12, %v6780_v35  ;;  %v895_v8 = vmul.f32 0.8333333, %v6443_v37  ;;  %v6793_v42 = vadd.f32 %v6607_v53, %v6605_v33  ;;  %v180_v34 = vpop.f32.mrf.mxu1 }
 0x193   :  { %v743_v5 = vadd.f32 %v739_v25, %v731_v11  ;;  %v919_v0 = vmul.f32 %v915_v20, %v6473_v16  ;;  %v891_v24 = vmul.f32 %v887_v28, %v6447_v39  ;;  %v6798_v63 = vsub.f32 1.4, %v6501_v54  ;;  %193 = vst.msk [vmem:[#allocation2 + $0x30] sm:$0xff] %vm186_vm2, %v180_v34 }
 0x194   :  { %v6800_v41 = vadd.f32 %v782_v22, %v774_v56  ;;  %v934_v60 = vmul.f32 %v930_v57, %v6787_v46  ;;  %v6804_v23 = vadd.f32 -1.0, %v6501_v54  ;;  %v644_v37 = vsub.f32 1.8, %v6501_v54 }
 0x195   :  { %v911_v33 = vmul.f32 %v907_v50, %v743_v5  ;;  %v899_v53 = vmul.f32 %v895_v8, %v743_v5  ;;  %v620_v59 = vmul.f32 2.5, %v6798_v63  ;;  %v808_v16 = vmul.f32 1.25, %v6590_v10 }
 0x196   :  { %v942_v39 = vmul.f32 %v938_v27, %v6800_v41  ;;  %v636_v61 = vmul.f32 2.5, %v6804_v23  ;;  %v648_v7 = vmul.f32 2.5, %v644_v37  ;;  %v816_v14 = vmul.f32 1.25, %v6798_v63 }
 0x197   :  { %v923_v12 = vadd.f32 %v919_v0, %v911_v33  ;;  %v903_v57 = vadd.f32 %v899_v53, %v891_v24  ;;  %v624_v54 = vmul.f32 %v620_v59, %v6562_v36  ;;  %v812_v51 = vmul.f32 %v808_v16, %v6793_v42 }
 0x198   :  { %v946_v9 = vadd.f32 %v942_v39, %v934_v60  ;;  %v640_v55 = vmul.f32 %v636_v61, %v6562_v36  ;;  %v652_v56 = vmul.f32 %v648_v7, %v6574_v3  ;;  %v828_v50 = vmul.f32 1.25, %v6596_v18 }
 0x199   :  { %5753 = vmatmul.msk.f32.vlgmr.msrb.gmra.mxu3 %vm186_vm2, %v923_v12  ;;  %5749 = vmatmul.msk.f32.vlgmr.msrb.gmra.mxu2 %vm186_vm2, %v903_v57  ;;  %v628_v27 = vadd.f32 %v624_v54, %v6612_v43  ;;  %v836_v11 = vmul.f32 1.25, %v644_v37  ;;  %v988_v25 = vmul.f32 0.8333333, %v6590_v10  ;;  %v996_v20 = vmul.f32 0.8333333, %v644_v37 }
 0x19a   :  { %5760 = vmatmul.msk.f32.gmra.mxu1 %vm186_vm2, %v946_v9  ;;  %v6823_v28 = vadd.f32 %v652_v56, %v640_v55  ;;  %v728_v36 = vmul.f32 1.25, %v6535_v52  ;;  %v736_v22 = vmul.f32 1.25, %v6568_v62  ;;  %v908_v8 = vmul.f32 0.8333333, %v6535_v52  ;;  %v1272_v9 = vld [vmem:[#allocation4 + $0xb8] sm:$0xff]  ;;  %v1421_v56 = vld [vmem:[#allocation4 + $0x110] sm:$0xff] }
 0x19b   :  { %v820_v5 = vmul.f32 %v816_v14, %v628_v27  ;;  %v832_v0 = vmul.f32 %v828_v50, %v628_v27  ;;  %v916_v24 = vmul.f32 0.8333333, %v6577_v58  ;;  %v888_v43 = vmul.f32 0.8333333, %v6530_v48  ;;  %v1422_v55 = vld [vmem:[#allocation4 + $0x118] sm:$0xff]  ;;  %v183_v50 = vpop.f32.mrf.mxu1  ;;  %1297 = vmatpush.msra.mxu2 %v1272_v9 }
 0x19c   :  { %v840_v60 = vmul.f32 %v836_v11, %v6823_v28  ;;  %v732_v10 = vmul.f32 %v728_v36, %v6544_v17  ;;  %v740_v37 = vmul.f32 %v736_v22, %v6600_v31  ;;  %v896_v34 = vmul.f32 0.8333333, %v6568_v62  ;;  %1447 = vmatpush.msrb.mxu1 %v1422_v55  ;;  %v1420_v36 = vld [vmem:[#allocation4 + $0x108] sm:$0xff]  ;;  %194 = vst.msk [vmem:[#allocation2 + $0x38] sm:$0xff] %vm186_vm2, %v183_v50  ;;  %v9335_v50 = vld [vmem:[#allocation29_spill] sm:$0xff] }
 0x19d   :  { %v6834_v33 = vadd.f32 %v820_v5, %v812_v51  ;;  %v920_v53 = vmul.f32 %v916_v24, %v6619_v44  ;;  %v892_v52 = vmul.f32 %v888_v43, %v6555_v40  ;;  %vm345_vm14 = vcmp.ge.f32.partialorder %v6603_v49, 1.0 }
 0x19e   :  { %v6839_v59 = vadd.f32 %v840_v60, %v832_v0  ;;  %v744_v58 = vadd.f32 %v740_v37, %v732_v10  ;;  %v5687_v48 = vsel %vm345_vm14, 1.0, %v9323_v15  ;;  %vm361_vm15 = vcmp.ge.f32.partialorder %v6603_v49, 1.4  ;;  %1448 = vmatpush.msrb.mxu1 %v1421_v56  ;;  %v1322_v37 = vld [vmem:[#allocation4 + $0xd8] sm:$0xff] }
 0x19f   :  { %v992_v17 = vmul.f32 %v988_v25, %v6834_v33  ;;  %v357_v31 = vsub.f32 %v6660_v21, %v5687_v48  ;;  %v5691_v62 = vsel %vm361_vm15, 1.0, %v9323_v15  ;;  %vm377_vm1 = vcmp.ge.f32.partialorder %v6603_v49, 1.8  ;;  %1347 = vmatpush.msra.mxu3 %v1322_v37  ;;  %2618 = vmatpush.msrb.mxu0 %v1322_v37 }
 0x1a0   :  { %v1000_v44 = vmul.f32 %v996_v20, %v6839_v59  ;;  %v912_v40 = vmul.f32 %v908_v8, %v744_v58  ;;  %v900_v16 = vmul.f32 %v896_v34, %v744_v58  ;;  %v373_v39 = vsub.f32 %v5687_v48, %v5691_v62  ;;  %v1419_v58 = vld [vmem:[#allocation4 + $0x100] sm:$0xff]  ;;  %1449 = vmatpush.msrb.mxu1 %v1420_v36 }
 0x1a1   :  { %v6849_v61 = vsel %vm377_vm1, 1.0, %v9323_v15  ;;  %v5727_v7 = vadd.f32 -0.2, %v6603_v49  ;;  %v6853_v14 = vsub.f32 1.0, %v6603_v49  ;;  %v6856_v12 = vadd.f32 -0.6, %v6603_v49 }
 0x1a2   :  { %v1004_v21 = vadd.f32 %v1000_v44, %v992_v17  ;;  %v924_v57 = vadd.f32 %v920_v53, %v912_v40  ;;  %v904_v54 = vadd.f32 %v900_v16, %v892_v52  ;;  %v6859_v51 = vsub.f32 %v5691_v62, %v6849_v61  ;;  %1450 = vmatpush.msrb.mxu1 %v1419_v58 }
 0x1a3   :  { %v581_v27 = vmul.f32 2.5, %v5727_v7  ;;  %v593_v11 = vmul.f32 2.5, %v6853_v14  ;;  %v609_v25 = vmul.f32 2.5, %v6856_v12  ;;  %v6864_v20 = vsub.f32 1.4, %v6603_v49 }
 0x1a4   :  { %5770 = vmatmul.msk.f32.vlgmr.msra.gmra.mxu1 %vm186_vm2, %v1004_v21  ;;  %5754 = vmatmul.msk.f32.gmra.mxu3 %vm186_vm2, %v924_v57  ;;  %v6869_v22 = vadd.f32 -1.0, %v6603_v49  ;;  %v645_v8 = vsub.f32 1.8, %v6603_v49  ;;  %v809_v5 = vmul.f32 1.25, %v5727_v7  ;;  %v829_v0 = vmul.f32 1.25, %v6856_v12 }
 0x1a5   :  { %5750 = vmatmul.msk.f32.gmra.mxu2 %vm186_vm2, %v904_v54  ;;  %v585_v24 = vmul.f32 %v581_v27, %v6668_v2  ;;  %v597_v43 = vmul.f32 %v593_v11, %v357_v31  ;;  %v613_v60 = vmul.f32 %v609_v25, %v357_v31  ;;  %v621_v10 = vmul.f32 2.5, %v6864_v20  ;;  %v9336_v27 = vld [vmem:[#allocation24_spill] sm:$0xff] }
 0x1a6   :  { %v637_v34 = vmul.f32 2.5, %v6869_v22  ;;  %v649_v53 = vmul.f32 2.5, %v645_v8  ;;  %v817_v49 = vmul.f32 1.25, %v6864_v20  ;;  %v837_v52 = vmul.f32 1.25, %v645_v8 }
 0x1a7   :  { %v6879_v48 = vadd.f32 %v597_v43, %v585_v24  ;;  %v625_v17 = vmul.f32 %v621_v10, %v373_v39  ;;  %v989_v62 = vmul.f32 0.8333333, %v5727_v7  ;;  %v997_v2 = vmul.f32 0.8333333, %v645_v8  ;;  %v9334_v7 = vld [vmem:[#allocation25_spill] sm:$0xff]  ;;  %v9337_v8 = vld [vmem:[#allocation31_spill] sm:$0xff] }
 0x1a8   :  { %v641_v31 = vmul.f32 %v637_v34, %v373_v39  ;;  %v653_v44 = vmul.f32 %v649_v53, %v6859_v51  ;;  %v729_v40 = vmul.f32 1.25, %v6641_v47  ;;  %v737_v16 = vmul.f32 1.25, %v6663_v45 }
 0x1a9   :  { %v629_v21 = vadd.f32 %v625_v17, %v613_v60  ;;  %v813_v57 = vmul.f32 %v809_v5, %v6879_v48  ;;  %v909_v54 = vmul.f32 0.8333333, %v6641_v47  ;;  %v917_v9 = vmul.f32 0.8333333, %v6675_v30  ;;  %v9338_v60 = vld [vmem:[#allocation26_spill] sm:$0xff] }
 0x1aa   :  { %v6887_v55 = vadd.f32 %v653_v44, %v641_v31  ;;  %v733_v56 = vmul.f32 %v729_v40, %v9334_v7  ;;  %v741_v39 = vmul.f32 %v737_v16, %v9335_v50  ;;  %v889_v11 = vmul.f32 0.8333333, %v9336_v27 }
 0x1ab   :  { %v821_v25 = vmul.f32 %v817_v49, %v629_v21  ;;  %v833_v36 = vmul.f32 %v829_v0, %v629_v21  ;;  %v921_v24 = vmul.f32 %v917_v9, %v9337_v8  ;;  %v897_v43 = vmul.f32 0.8333333, %v6663_v45 }
 0x1ac   :  { %v841_v5 = vmul.f32 %v837_v52, %v6887_v55  ;;  %v745_v47 = vadd.f32 %v741_v39, %v733_v56  ;;  %v893_v30 = vmul.f32 %v889_v11, %v9338_v60  ;;  %vm346_vm3 = vcmp.ge.f32.partialorder %v6685_v38, 1.0  ;;  %v1320_v60 = vld [vmem:[#allocation4 + $0xc8] sm:$0xff] }
 0x1ad   :  { %v6897_v10 = vadd.f32 %v821_v25, %v813_v57  ;;  %v5688_v37 = vsel %vm346_vm3, 1.0, %v9323_v15  ;;  %vm362_vm4 = vcmp.ge.f32.partialorder %v6685_v38, 1.4  ;;  %vm378_vm5 = vcmp.ge.f32.partialorder %v6685_v38, 1.8 }
 0x1ae   :  { %v6902_v0 = vadd.f32 %v841_v5, %v833_v36  ;;  %v913_v34 = vmul.f32 %v909_v54, %v745_v47  ;;  %v901_v53 = vmul.f32 %v897_v43, %v745_v47  ;;  %v358_v45 = vsub.f32 %v6744_v26, %v5688_v37  ;;  %v1321_v43 = vld [vmem:[#allocation4 + $0xd0] sm:$0xff] }
 0x1af   :  { %v993_v49 = vmul.f32 %v989_v62, %v6897_v10  ;;  %v5692_v52 = vsel %vm362_vm4, 1.0, %v9323_v15  ;;  %v6908_v58 = vsel %vm378_vm5, 1.0, %v9323_v15  ;;  %v5728_v17 = vadd.f32 -0.2, %v6685_v38  ;;  %1348 = vmatpush.msra.mxu3 %v1321_v43  ;;  %2619 = vmatpush.msrb.mxu0 %v1321_v43 }
 0x1b0   :  { %v1001_v31 = vmul.f32 %v997_v2, %v6902_v0  ;;  %v925_v44 = vadd.f32 %v921_v24, %v913_v34  ;;  %v905_v40 = vadd.f32 %v901_v53, %v893_v30  ;;  %v374_v16 = vsub.f32 %v5688_v37, %v5692_v52  ;;  %v1271_v24 = vld [vmem:[#allocation4 + $0xb0] sm:$0xff]  ;;  %v1270_v30 = vld [vmem:[#allocation4 + $0xa8] sm:$0xff] }
 0x1b1   :  { %v6913_v21 = vsub.f32 %v5692_v52, %v6908_v58  ;;  %v582_v57 = vmul.f32 2.5, %v5728_v17  ;;  %v6916_v26 = vsub.f32 1.0, %v6685_v38  ;;  %v6919_v62 = vadd.f32 -0.6, %v6685_v38  ;;  %1298 = vmatpush.msra.mxu2 %v1271_v24  ;;  %v1319_v52 = vld [vmem:[#allocation4 + $0xc0] sm:$0xff]  ;;  %1349 = vmatpush.msra.mxu3 %v1320_v60 }
 0x1b2   :  { %v1005_v54 = vadd.f32 %v1001_v31, %v993_v49  ;;  %5755 = vmatmul.msk.f32.gmra.mxu3 %vm186_vm2, %v925_v44  ;;  %5751 = vmatmul.msk.f32.gmra.mxu2 %vm186_vm2, %v905_v40  ;;  %v6924_v2 = vsub.f32 1.4, %v6685_v38  ;;  %v6927_v9 = vadd.f32 -1.0, %v6685_v38  ;;  %v646_v7 = vsub.f32 1.8, %v6685_v38  ;;  %v1269_v31 = vld [vmem:[#allocation4 + $0xa0] sm:$0xff] }
 0x1b3   :  { %v586_v56 = vmul.f32 %v582_v57, %v6753_v32  ;;  %v594_v50 = vmul.f32 2.5, %v6916_v26  ;;  %v610_v39 = vmul.f32 2.5, %v6919_v62  ;;  %v810_v27 = vmul.f32 1.25, %v5728_v17  ;;  %1299 = vmatpush.msra.mxu2 %v1270_v30  ;;  %2620 = vmatpush.msrb.mxu0 %v1320_v60  ;;  %v6249_v30 = vld [vmem:[#allocation2] sm:$0xff] }
 0x1b4   :  { %5771 = vmatmul.msk.f32.gmra.mxu1 %vm186_vm2, %v1005_v54  ;;  %v622_v11 = vmul.f32 2.5, %v6924_v2  ;;  %v638_v25 = vmul.f32 2.5, %v6927_v9  ;;  %v650_v36 = vmul.f32 2.5, %v646_v7  ;;  %v818_v8 = vmul.f32 1.25, %v6924_v2  ;;  %1350 = vmatpush.msra.mxu3 %v1319_v52 }
 0x1b5   :  { %v598_v5 = vmul.f32 %v594_v50, %v358_v45  ;;  %v614_v38 = vmul.f32 %v610_v39, %v358_v45  ;;  %v830_v32 = vmul.f32 1.25, %v6919_v62  ;;  %v838_v47 = vmul.f32 1.25, %v646_v7  ;;  %1300 = vmatpush.msra.mxu2 %v1269_v31  ;;  %2621 = vmatpush.msrb.mxu0 %v1319_v52 }
 0x1b6   :  { %v626_v37 = vmul.f32 %v622_v11, %v374_v16  ;;  %v642_v34 = vmul.f32 %v638_v25, %v374_v16  ;;  %v654_v53 = vmul.f32 %v650_v36, %v6913_v21  ;;  %v990_v49 = vmul.f32 0.8333333, %v5728_v17  ;;  %v6947_v17 = vld [vmem:[#allocation2 + $0x20] sm:$0xff]  ;;  %v9339_v25 = vld [vmem:[#allocation33_spill] sm:$0xff] }
 0x1b7   :  { %v6939_v44 = vadd.f32 %v598_v5, %v586_v56  ;;  %v998_v40 = vmul.f32 0.8333333, %v646_v7  ;;  %v730_v45 = vmul.f32 1.25, %v6724_v19  ;;  %v738_v57 = vmul.f32 1.25, %v6748_v29 }
 0x1b8   :  { %v630_v54 = vadd.f32 %v626_v37, %v614_v38  ;;  %v6943_v50 = vadd.f32 %v654_v53, %v642_v34  ;;  %v910_v16 = vmul.f32 0.8333333, %v6724_v19  ;;  %v918_v39 = vmul.f32 0.8333333, %v6759_v13  ;;  %v9340_v38 = vld [vmem:[#allocation34_spill] sm:$0xff] }
 0x1b9   :  { %v814_v56 = vmul.f32 %v810_v27, %v6939_v44  ;;  %v734_v7 = vmul.f32 %v730_v45, %v6733_v1  ;;  %v742_v11 = vmul.f32 %v738_v57, %v6771_v6  ;;  %v890_v36 = vmul.f32 0.8333333, %v9339_v25  ;;  %v9342_v57 = vld [vmem:[#allocation9_spill] sm:$0xff] }
 0x1ba   :  { %v822_v24 = vmul.f32 %v818_v8, %v630_v54  ;;  %v834_v43 = vmul.f32 %v830_v32, %v630_v54  ;;  %v842_v5 = vmul.f32 %v838_v47, %v6943_v50  ;;  %v922_v19 = vmul.f32 %v918_v39, %v6787_v46  ;;  %v9343_v54 = vld [vmem:[#allocation10_spill] sm:$0xff] }
 0x1bb   :  { %v746_v13 = vadd.f32 %v742_v11, %v734_v7  ;;  %v894_v60 = vmul.f32 %v890_v36, %v9340_v38  ;;  %v898_v27 = vmul.f32 0.8333333, %v6748_v29  ;;  %v671_v1 = vsub.f32 2.2, %v6249_v30 }
 0x1bc   :  { %v6957_v37 = vadd.f32 %v822_v24, %v814_v56  ;;  %v6959_v6 = vadd.f32 %v842_v5, %v834_v43  ;;  %vm1508_vm6 = vcmp.ge.f32.partialorder %v6947_v17, -1.8  ;;  %vm1524_vm7 = vcmp.ge.f32.partialorder %v6947_v17, -1.4 }
 0x1bd   :  { %v914_v8 = vmul.f32 %v910_v16, %v746_v13  ;;  %v902_v32 = vmul.f32 %v898_v27, %v746_v13  ;;  %v675_v47 = vmul.f32 2.5, %v671_v1  ;;  %v855_v46 = vmul.f32 1.25, %v671_v1 }
 0x1be   :  { %v994_v34 = vmul.f32 %v990_v49, %v6957_v37  ;;  %v1002_v53 = vmul.f32 %v998_v40, %v6959_v6  ;;  %v1015_v52 = vmul.f32 0.8333333, %v671_v1  ;;  %v6966_v29 = vsel %vm1508_vm6, 1.0, %v9323_v15  ;;  %v9346_v49 = vld [vmem:[#allocation13_spill] sm:$0xff] }
 0x1bf   :  { %9341 = vst [vmem:[#allocation25_spill] sm:$0xff] %v6966_v29  ;;  %v926_v31 = vadd.f32 %v922_v19, %v914_v8  ;;  %v906_v45 = vadd.f32 %v902_v32, %v894_v60  ;;  %v9344_v39 = vsub.f32 %v9342_v57, %v9343_v54  ;;  %v5785_v7 = vsel %vm1524_vm7, 1.0, %v9323_v15 }
 0x1c0   :  { %v1006_v16 = vadd.f32 %v1002_v53, %v994_v34  ;;  %v6973_v11 = vsub.f32 %v6966_v29, %v5785_v7  ;;  %vm1540_vm8 = vcmp.ge.f32.partialorder %v6947_v17, -1.0  ;;  %vm1556_vm9 = vcmp.ge.f32.partialorder %v6947_v17, -0.6 }
 0x1c1   :  { %v679_v56 = vmul.f32 %v675_v47, %v9344_v39  ;;  %5756 = vmatmul.msk.f32.gmra.mxu3 %vm186_vm2, %v926_v31  ;;  %5752 = vmatmul.msk.f32.gmra.mxu2 %vm186_vm2, %v906_v45  ;;  %v5789_v25 = vsel %vm1540_vm8, 1.0, %v9323_v15  ;;  %v5793_v36 = vsel %vm1556_vm9, 1.0, %v9323_v15  ;;  %vm1572_vm10 = vcmp.ge.f32.partialorder %v6947_v17, -0.2  ;;  %v9350_v47 = vld [vmem:[#allocation14_spill] sm:$0xff] }
 0x1c2   :  { %9345 = vst [vmem:[#allocation29_spill] sm:$0xff] %v6973_v11  ;;  %5772 = vmatmul.msk.f32.gmra.mxu1 %vm186_vm2, %v1006_v16  ;;  %v1552_v24 = vsub.f32 %v5785_v7, %v5789_v25  ;;  %v1568_v43 = vsub.f32 %v5789_v25, %v5793_v36  ;;  %v6985_v5 = vsel %vm1572_vm10, 1.0, %v9323_v15  ;;  %v5829_v19 = vadd.f32 1.8, %v6947_v17 }
 0x1c3   :  { %v683_v40 = vadd.f32 %v679_v56, %v9346_v49  ;;  %9347 = vst [vmem:[#allocation24_spill] sm:$0xff] %v6985_v5  ;;  %v6989_v38 = vsub.f32 %v5793_v36, %v6985_v5  ;;  %v9191_v60 = vsub.f32 -1.0, %v6947_v17  ;;  %v6993_v27 = vadd.f32 1.4, %v6947_v17 }
 0x1c4   :  { %v1716_v30 = vmul.f32 2.5, %v5829_v19  ;;  %v6996_v1 = vsub.f32 -0.6, %v6947_v17  ;;  %v6999_v8 = vadd.f32 1.0, %v6947_v17  ;;  %v1780_v32 = vsub.f32 -0.2, %v6947_v17 }
 0x1c5   :  { %v859_v13 = vmul.f32 %v855_v46, %v683_v40  ;;  %v1728_v46 = vmul.f32 2.5, %v9191_v60  ;;  %v1744_v53 = vmul.f32 2.5, %v6993_v27  ;;  %v1984_v31 = vmul.f32 1.25, %v5829_v19 }
 0x1c6   :  { %9348 = vst [vmem:[#allocation31_spill] sm:$0xff] %v6996_v1  ;;  %v1720_v45 = vmul.f32 %v1716_v30, %v6973_v11  ;;  %v1756_v57 = vmul.f32 2.5, %v6996_v1  ;;  %v1772_v54 = vmul.f32 2.5, %v6999_v8  ;;  %v1784_v39 = vmul.f32 2.5, %v1780_v32 }
 0x1c7   :  { %9349 = vst [vmem:[#allocation26_spill] sm:$0xff] %v6999_v8  ;;  %v863_v34 = vadd.f32 %v859_v13, %v9350_v47  ;;  %v1732_v7 = vmul.f32 %v1728_v46, %v1552_v24  ;;  %v1748_v16 = vmul.f32 %v1744_v53, %v1552_v24  ;;  %v1992_v49 = vmul.f32 1.25, %v6996_v1  ;;  %v9351_v47 = vld [vmem:[#allocation16_spill] sm:$0xff]  ;;  %v9354_v24 = vld [vmem:[#allocation17_spill] sm:$0xff]  ;;  %v9355_v53 = vld [vmem:[#allocation7_spill] sm:$0xff] }
 0x1c8   :  { %v1760_v40 = vmul.f32 %v1756_v57, %v1568_v43  ;;  %v1776_v25 = vmul.f32 %v1772_v54, %v1568_v43  ;;  %v1788_v36 = vmul.f32 %v1784_v39, %v6989_v38  ;;  %v2004_v13 = vmul.f32 1.25, %v6993_v27  ;;  %v9356_v54 = vld [vmem:[#allocation11_spill] sm:$0xff]  ;;  %v9366_v1 = vld [vmem:[#allocation20_spill] sm:$0xff] }
 0x1c9   :  { %v1019_v56 = vmul.f32 %v1015_v52, %v863_v34  ;;  %v7013_v29 = vadd.f32 %v1732_v7, %v1720_v45  ;;  %v2012_v30 = vmul.f32 1.25, %v1780_v32  ;;  %v2164_v11 = vmul.f32 0.8333333, %v5829_v19  ;;  %v9353_v34 = vld [vmem:[#allocation8_spill] sm:$0xff] }
 0x1ca   :  { %v1764_v5 = vadd.f32 %v1760_v40, %v1748_v16  ;;  %v7015_v8 = vadd.f32 %v1788_v36, %v1776_v25  ;;  %v2172_v52 = vmul.f32 0.8333333, %v1780_v32  ;;  %v803_v46 = vadd.f32 %v9354_v24, %v9353_v34  ;;  %v9357_v25 = vld [vmem:[#allocation18_spill] sm:$0xff] }
 0x1cb   :  { %v1023_v60 = vadd.f32 %v1019_v56, %v9351_v47  ;;  %9352 = vst [vmem:[#allocation33_spill] sm:$0xff] %v7013_v29  ;;  %v1988_v43 = vmul.f32 %v1984_v31, %v7013_v29  ;;  %v967_v57 = vmul.f32 0.8333333, %v9355_v53  ;;  %v955_v39 = vmul.f32 0.8333333, %v9356_v54  ;;  %v6250_v56 = vld [vmem:[#allocation2 + $0x8] sm:$0xff] }
 0x1cc   :  { %vm392_vm11 = vcmp.ge.f32.partialorder %v6250_v56, 2.2  ;;  %v1996_v45 = vmul.f32 %v1992_v49, %v1764_v5  ;;  %v2008_v7 = vmul.f32 %v2004_v13, %v1764_v5  ;;  %v2016_v19 = vmul.f32 %v2012_v30, %v7015_v8  ;;  %v7031_v53 = vld [vmem:[#allocation2 + $0x28] sm:$0xff]  ;;  %v9360_v49 = vld [vmem:[#allocation15_spill] sm:$0xff] }
 0x1cd   :  { %5773 = vmatmul.msk.f32.vlgmr.msrb.gmra.mxu1 %vm186_vm2, %v1023_v60  ;;  %v5698_v16 = vsel %vm392_vm11, 1.0, %v9323_v15  ;;  %v971_v32 = vmul.f32 %v967_v57, %v803_v46  ;;  %v959_v40 = vmul.f32 %v955_v39, %v803_v46  ;;  %v5738_v47 = vadd.f32 -1.4, %v6250_v56  ;;  %9359 = vst [vmem:[#allocation9_spill] sm:$0xff] %v7031_v53  ;;  %v9361_v13 = vld [vmem:[#allocation12_spill] sm:$0xff] }
 0x1ce   :  { %v404_v36 = vsub.f32 %v9357_v25, %v5698_v16  ;;  %v7026_v60 = vadd.f32 %v1996_v45, %v1988_v43  ;;  %v7028_v31 = vadd.f32 %v2016_v19, %v2008_v7  ;;  %v672_v34 = vsub.f32 2.2, %v6250_v56 }
 0x1cf   :  { %v848_v24 = vmul.f32 1.25, %v6804_v23  ;;  %v983_v5 = vadd.f32 %v9360_v49, %v971_v32  ;;  %v963_v30 = vadd.f32 %v959_v40, %v9361_v13  ;;  %v664_v54 = vmul.f32 2.5, %v5738_v47 }
 0x1d0   :  { %9358 = vst [vmem:[#allocation34_spill] sm:$0xff] %v7026_v60  ;;  %v1008_v57 = vmul.f32 0.8333333, %v6596_v18  ;;  %v2168_v46 = vmul.f32 %v2164_v11, %v7026_v60  ;;  %v2176_v39 = vmul.f32 %v2172_v52, %v7028_v31  ;;  %v676_v43 = vmul.f32 2.5, %v672_v34 }
 0x1d1   :  { %v852_v45 = vmul.f32 %v848_v24, %v6823_v28  ;;  %5765 = vmatmul.msk.f32.vlgmr.msra.gmra.mxu3 %vm186_vm2, %v983_v5  ;;  %5761 = vmatmul.msk.f32.vlgmr.msra.gmra.mxu2 %vm186_vm2, %v963_v30  ;;  %v668_v23 = vmul.f32 %v664_v54, %v6574_v3  ;;  %v856_v56 = vmul.f32 1.25, %v672_v34  ;;  %v1016_v19 = vmul.f32 0.8333333, %v672_v34 }
 0x1d2   :  { %v1012_v7 = vmul.f32 %v1008_v57, %v6839_v59  ;;  %v2180_v16 = vadd.f32 %v2176_v39, %v2168_v46  ;;  %v680_v32 = vmul.f32 %v676_v43, %v404_v36  ;;  %vm1509_vm12 = vcmp.ge.f32.partialorder %v7031_v53, -1.8 }
 0x1d3   :  { %vm1525_vm13 = vcmp.ge.f32.partialorder %v7031_v53, -1.4  ;;  %v7046_v18 = vsel %vm1509_vm12, 1.0, %v9323_v15  ;;  %vm1541_vm14 = vcmp.ge.f32.partialorder %v7031_v53, -1.0  ;;  %vm1557_vm15 = vcmp.ge.f32.partialorder %v7031_v53, -0.6 }
 0x1d4   :  { %9362 = vst [vmem:[#allocation10_spill] sm:$0xff] %v7046_v18  ;;  %v5786_v28 = vsel %vm1525_vm13, 1.0, %v9323_v15  ;;  %5873 = vmatmul.msk.f32.vlgmr.msra.gmra.mxu0 %vm186_vm2, %v2180_v16  ;;  %v684_v3 = vadd.f32 %v680_v32, %v668_v23  ;;  %v5790_v11 = vsel %vm1541_vm14, 1.0, %v9323_v15  ;;  %v5794_v52 = vsel %vm1557_vm15, 1.0, %v9323_v15 }
 0x1d5   :  { %v7053_v59 = vsub.f32 %v7046_v18, %v5786_v28  ;;  %v1553_v40 = vsub.f32 %v5786_v28, %v5790_v11  ;;  %v1569_v25 = vsub.f32 %v5790_v11, %v5794_v52  ;;  %vm1573_vm1 = vcmp.ge.f32.partialorder %v7031_v53, -0.2 }
 0x1d6   :  { %v5830_v36 = vadd.f32 1.8, %v7031_v53  ;;  %v860_v47 = vmul.f32 %v856_v56, %v684_v3  ;;  %v7060_v34 = vsel %vm1573_vm1, 1.0, %v9323_v15  ;;  %v9198_v24 = vsub.f32 -1.0, %v7031_v53 }
 0x1d7   :  { %9363 = vst [vmem:[#allocation13_spill] sm:$0xff] %v7053_v59  ;;  %v7064_v49 = vadd.f32 1.4, %v7031_v53  ;;  %v7067_v5 = vsub.f32 %v5794_v52, %v7060_v34  ;;  %v7070_v30 = vsub.f32 -0.6, %v7031_v53  ;;  %v7073_v54 = vadd.f32 1.0, %v7031_v53 }
 0x1d8   :  { %9364 = vst [vmem:[#allocation14_spill] sm:$0xff] %v7060_v34  ;;  %v1717_v13 = vmul.f32 2.5, %v5830_v36  ;;  %v864_v57 = vadd.f32 %v860_v47, %v852_v45  ;;  %v1729_v46 = vmul.f32 2.5, %v9198_v24  ;;  %v1781_v43 = vsub.f32 -0.2, %v7031_v53 }
 0x1d9   :  { %9365 = vst [vmem:[#allocation16_spill] sm:$0xff] %v7073_v54  ;;  %v1745_v39 = vmul.f32 2.5, %v7064_v49  ;;  %v1757_v56 = vmul.f32 2.5, %v7070_v30  ;;  %v1773_v16 = vmul.f32 2.5, %v7073_v54  ;;  %v1985_v32 = vmul.f32 1.25, %v5830_v36 }
 0x1da   :  { %v1721_v23 = vmul.f32 %v1717_v13, %v7053_v59  ;;  %v1020_v28 = vmul.f32 %v1016_v19, %v864_v57  ;;  %v1733_v3 = vmul.f32 %v1729_v46, %v1553_v40  ;;  %v1785_v52 = vmul.f32 2.5, %v1781_v43  ;;  %v9367_v57 = vld [vmem:[#allocation21_spill] sm:$0xff] }
 0x1db   :  { %v1749_v11 = vmul.f32 %v1745_v39, %v1553_v40  ;;  %v1761_v18 = vmul.f32 %v1757_v56, %v1569_v25  ;;  %v1777_v45 = vmul.f32 %v1773_v16, %v1569_v25  ;;  %v1993_v47 = vmul.f32 1.25, %v7070_v30  ;;  %v9368_v56 = vld [vmem:[#allocation22_spill] sm:$0xff] }
 0x1dc   :  { %v2005_v24 = vmul.f32 1.25, %v7064_v49  ;;  %v1024_v60 = vadd.f32 %v1020_v28, %v1012_v7  ;;  %v7084_v34 = vadd.f32 %v1733_v3, %v1721_v23  ;;  %v1789_v13 = vmul.f32 %v1785_v52, %v7067_v5  ;;  %v9369_v28 = vld [vmem:[#allocation19_spill] sm:$0xff]  ;;  %v6251_v52 = vld [vmem:[#allocation2 + $0x10] sm:$0xff] }
 0x1dd   :  { %v2013_v59 = vmul.f32 1.25, %v1781_v43  ;;  %v1765_v29 = vadd.f32 %v1761_v18, %v1749_v11  ;;  %v2165_v53 = vmul.f32 0.8333333, %v5830_v36  ;;  %v2173_v54 = vmul.f32 0.8333333, %v1781_v43 }
 0x1de   :  { %v788_v19 = vmul.f32 1.25, %v9366_v1  ;;  %5774 = vmatmul.msk.f32.gmra.mxu1 %vm186_vm2, %v1024_v60  ;;  %v7089_v40 = vadd.f32 %v1789_v13, %v1777_v45  ;;  %v1989_v25 = vmul.f32 %v1985_v32, %v7084_v34  ;;  %v796_v46 = vmul.f32 1.25, %v9367_v57  ;;  %v9370_v45 = vld [vmem:[#allocation23_spill] sm:$0xff] }
 0x1df   :  { %v968_v7 = vmul.f32 0.8333333, %v9366_v1  ;;  %v1997_v39 = vmul.f32 %v1993_v47, %v1765_v29  ;;  %v2009_v23 = vmul.f32 %v2005_v24, %v1765_v29  ;;  %v976_v18 = vmul.f32 0.8333333, %v6798_v63 }
 0x1e0   :  { %v792_v16 = vmul.f32 %v788_v19, %v9368_v56  ;;  %v2017_v36 = vmul.f32 %v2013_v59, %v7089_v40  ;;  %v800_v43 = vmul.f32 %v796_v46, %v6793_v42  ;;  %v948_v60 = vmul.f32 0.8333333, %v9369_v28 }
 0x1e1   :  { %v956_v3 = vmul.f32 0.8333333, %v9367_v57  ;;  %v7100_v11 = vadd.f32 %v1997_v39, %v1989_v25  ;;  %v980_v32 = vmul.f32 %v976_v18, %v6834_v33  ;;  %vm393_vm3 = vcmp.ge.f32.partialorder %v6251_v52, 2.2  ;;  %v7109_v25 = vld [vmem:[#allocation2 + $0x30] sm:$0xff] }
 0x1e2   :  { %v5739_v1 = vadd.f32 -1.4, %v6251_v52  ;;  %v7103_v29 = vadd.f32 %v2017_v36, %v2009_v23  ;;  %v804_v24 = vadd.f32 %v800_v43, %v792_v16  ;;  %v952_v63 = vmul.f32 %v948_v60, %v9370_v45 }
 0x1e3   :  { %v5699_v59 = vsel %vm393_vm3, 1.0, %v9323_v15  ;;  %v2169_v42 = vmul.f32 %v2165_v53, %v7100_v11  ;;  %v673_v19 = vsub.f32 2.2, %v6251_v52  ;;  %v849_v39 = vmul.f32 1.25, %v6869_v22 }
 0x1e4   :  { %v405_v47 = vsub.f32 %v6849_v61, %v5699_v59  ;;  %v665_v13 = vmul.f32 2.5, %v5739_v1  ;;  %v2177_v33 = vmul.f32 %v2173_v54, %v7103_v29  ;;  %v972_v57 = vmul.f32 %v968_v7, %v804_v24 }
 0x1e5   :  { %v960_v46 = vmul.f32 %v956_v3, %v804_v24  ;;  %v677_v56 = vmul.f32 2.5, %v673_v19  ;;  %v857_v16 = vmul.f32 1.25, %v673_v19  ;;  %v1009_v18 = vmul.f32 0.8333333, %v6856_v12 }
 0x1e6   :  { %v669_v23 = vmul.f32 %v665_v13, %v6859_v51  ;;  %v2181_v36 = vadd.f32 %v2177_v33, %v2169_v42  ;;  %v984_v53 = vadd.f32 %v980_v32, %v972_v57  ;;  %v853_v61 = vmul.f32 %v849_v39, %v6887_v55 }
 0x1e7   :  { %v964_v43 = vadd.f32 %v960_v46, %v952_v63  ;;  %v681_v28 = vmul.f32 %v677_v56, %v405_v47  ;;  %v1013_v60 = vmul.f32 %v1009_v18, %v6902_v0  ;;  %v1017_v52 = vmul.f32 0.8333333, %v673_v19 }
 0x1e8   :  { %vm1510_vm4 = vcmp.ge.f32.partialorder %v7109_v25, -1.8  ;;  %5874 = vmatmul.msk.f32.gmra.mxu0 %vm186_vm2, %v2181_v36  ;;  %5766 = vmatmul.msk.f32.gmra.mxu3 %vm186_vm2, %v984_v53  ;;  %vm1526_vm5 = vcmp.ge.f32.partialorder %v7109_v25, -1.4  ;;  %vm1542_vm6 = vcmp.ge.f32.partialorder %v7109_v25, -1.0  ;;  %v9208_v45 = vsub.f32 -1.0, %v7109_v25 }
 0x1e9   :  { %v7121_v51 = vsel %vm1510_vm4, 1.0, %v9323_v15  ;;  %vm1558_vm7 = vcmp.ge.f32.partialorder %v7109_v25, -0.6  ;;  %5762 = vmatmul.msk.f32.gmra.mxu2 %vm186_vm2, %v964_v43  ;;  %v685_v12 = vadd.f32 %v681_v28, %v669_v23  ;;  %v5787_v22 = vsel %vm1526_vm5, 1.0, %v9323_v15 }
 0x1ea   :  { %9371 = vst [vmem:[#allocation8_spill] sm:$0xff] %v7121_v51  ;;  %v5791_v55 = vsel %vm1542_vm6, 1.0, %v9323_v15  ;;  %v5795_v0 = vsel %vm1558_vm7, 1.0, %v9323_v15  ;;  %v7131_v54 = vsub.f32 %v7121_v51, %v5787_v22  ;;  %vm1574_vm8 = vcmp.ge.f32.partialorder %v7109_v25, -0.2 }
 0x1eb   :  { %v1554_v7 = vsub.f32 %v5787_v22, %v5791_v55  ;;  %v1570_v3 = vsub.f32 %v5791_v55, %v5795_v0  ;;  %v861_v32 = vmul.f32 %v857_v16, %v685_v12  ;;  %v7135_v1 = vsel %vm1574_vm8, 1.0, %v9323_v15 }
 0x1ec   :  { %v5831_v24 = vadd.f32 1.8, %v7109_v25  ;;  %v7140_v63 = vsub.f32 %v5795_v0, %v7135_v1  ;;  %v7143_v59 = vadd.f32 1.4, %v7109_v25  ;;  %v7146_v42 = vsub.f32 -0.6, %v7109_v25 }
 0x1ed   :  { %v7149_v47 = vadd.f32 1.0, %v7109_v25  ;;  %v865_v13 = vadd.f32 %v861_v32, %v853_v61  ;;  %v1730_v33 = vmul.f32 2.5, %v9208_v45  ;;  %v1782_v57 = vsub.f32 -0.2, %v7109_v25 }
 0x1ee   :  { %v1718_v19 = vmul.f32 2.5, %v5831_v24  ;;  %v1746_v46 = vmul.f32 2.5, %v7143_v59  ;;  %v1758_v39 = vmul.f32 2.5, %v7146_v42  ;;  %v1986_v56 = vmul.f32 1.25, %v5831_v24 }
 0x1ef   :  { %9372 = vst [vmem:[#allocation17_spill] sm:$0xff] %v7149_v47  ;;  %v1774_v23 = vmul.f32 2.5, %v7149_v47  ;;  %v1021_v16 = vmul.f32 %v1017_v52, %v865_v13  ;;  %v1734_v36 = vmul.f32 %v1730_v33, %v1554_v7  ;;  %v1786_v53 = vmul.f32 2.5, %v1782_v57  ;;  %v2311_v33 = vld [vmem:[#allocation4 + $0x38] sm:$0xff] }
 0x1f0   :  { %v1722_v18 = vmul.f32 %v1718_v19, %v7131_v54  ;;  %v1750_v43 = vmul.f32 %v1746_v46, %v1554_v7  ;;  %v1762_v61 = vmul.f32 %v1758_v39, %v1570_v3  ;;  %v1994_v12 = vmul.f32 1.25, %v7146_v42  ;;  %v2446_v46 = vld [vmem:[#allocation4 + $0x78] sm:$0xff]  ;;  %v2445_v39 = vld [vmem:[#allocation4 + $0x70] sm:$0xff]  ;;  %2336 = vmatpush.msrb.mxu2 %v2311_v33 }
 0x1f1   :  { %v1778_v28 = vmul.f32 %v1774_v23, %v1570_v3  ;;  %v1025_v22 = vadd.f32 %v1021_v16, %v1013_v60  ;;  %v1790_v0 = vmul.f32 %v1786_v53, %v7140_v63  ;;  %v2006_v32 = vmul.f32 1.25, %v7143_v59  ;;  %v9373_v3 = vld [vmem:[#allocation28_spill] sm:$0xff]  ;;  %2471 = vmatpush.msra.mxu1 %v2446_v46 }
 0x1f2   :  { %v7159_v55 = vadd.f32 %v1734_v36, %v1722_v18  ;;  %v1766_v45 = vadd.f32 %v1762_v61, %v1750_v43  ;;  %v2014_v51 = vmul.f32 1.25, %v1782_v57  ;;  %v2166_v47 = vmul.f32 0.8333333, %v5831_v24  ;;  %v9374_v36 = vld [vmem:[#allocation30_spill] sm:$0xff]  ;;  %v9375_v43 = vld [vmem:[#allocation27_spill] sm:$0xff] }
 0x1f3   :  { %v2174_v52 = vmul.f32 0.8333333, %v1782_v57  ;;  %5775 = vmatmul.msk.f32.gmra.mxu1 %vm186_vm2, %v1025_v22  ;;  %v7164_v13 = vadd.f32 %v1790_v0, %v1778_v28  ;;  %v789_v19 = vmul.f32 1.25, %v9373_v3  ;;  %v797_v60 = vmul.f32 1.25, %v6853_v14  ;;  %v2444_v28 = vld [vmem:[#allocation4 + $0x68] sm:$0xff]  ;;  %v2307_v22 = vld [vmem:[#allocation4 + $0x18] sm:$0xff] }
 0x1f4   :  { %v1990_v7 = vmul.f32 %v1986_v56, %v7159_v55  ;;  %v1998_v23 = vmul.f32 %v1994_v12, %v1766_v45  ;;  %v2010_v16 = vmul.f32 %v2006_v32, %v1766_v45  ;;  %v969_v18 = vmul.f32 0.8333333, %v9373_v3  ;;  %v6252_v32 = vld [vmem:[#allocation2 + $0x18] sm:$0xff]  ;;  %2472 = vmatpush.msra.mxu1 %v2445_v39  ;;  %2377 = vmatpush.msrb.mxu3 %v2307_v22  ;;  %v9376_v3 = vld [vmem:[#allocation32_spill] sm:$0xff] }
 0x1f5   :  { %v977_v24 = vmul.f32 0.8333333, %v6864_v20  ;;  %v2018_v57 = vmul.f32 %v2014_v51, %v7164_v13  ;;  %v793_v53 = vmul.f32 %v789_v19, %v9374_v36  ;;  %v801_v56 = vmul.f32 %v797_v60, %v6879_v48  ;;  %v2443_v60 = vld [vmem:[#allocation4 + $0x60] sm:$0xff] }
 0x1f6   :  { %v949_v61 = vmul.f32 0.8333333, %v9375_v43  ;;  %v7175_v0 = vadd.f32 %v1998_v23, %v1990_v7  ;;  %v957_v12 = vmul.f32 0.8333333, %v6853_v14  ;;  %vm394_vm9 = vcmp.ge.f32.partialorder %v6252_v32, 2.2  ;;  %2473 = vmatpush.msra.mxu1 %v2444_v28 }
 0x1f7   :  { %v981_v45 = vmul.f32 %v977_v24, %v6897_v10  ;;  %v7179_v20 = vadd.f32 %v2018_v57, %v2010_v16  ;;  %v805_v51 = vadd.f32 %v801_v56, %v793_v53  ;;  %v5700_v48 = vsel %vm394_vm9, 1.0, %v9323_v15  ;;  %v7187_v24 = vld [vmem:[#allocation2 + $0x38] sm:$0xff] }
 0x1f8   :  { %v953_v19 = vmul.f32 %v949_v61, %v9376_v3  ;;  %v2170_v33 = vmul.f32 %v2166_v47, %v7175_v0  ;;  %v406_v7 = vsub.f32 %v6908_v58, %v5700_v48  ;;  %v5740_v46 = vadd.f32 -1.4, %v6252_v32  ;;  %2474 = vmatpush.msra.mxu1 %v2443_v60 }
 0x1f9   :  { %v674_v10 = vsub.f32 2.2, %v6252_v32  ;;  %v2178_v14 = vmul.f32 %v2174_v52, %v7179_v20  ;;  %v973_v23 = vmul.f32 %v969_v18, %v805_v51  ;;  %v961_v39 = vmul.f32 %v957_v12, %v805_v51 }
 0x1fa   :  { %v850_v16 = vmul.f32 1.25, %v6927_v9  ;;  %v666_v57 = vmul.f32 2.5, %v5740_v46  ;;  %v1010_v56 = vmul.f32 0.8333333, %v6919_v62  ;;  %vm1511_vm10 = vcmp.ge.f32.partialorder %v7187_v24, -1.8 }
 0x1fb   :  { %v678_v36 = vmul.f32 2.5, %v674_v10  ;;  %v858_v53 = vmul.f32 1.25, %v674_v10  ;;  %v2182_v47 = vadd.f32 %v2178_v14, %v2170_v33  ;;  %v985_v43 = vadd.f32 %v981_v45, %v973_v23 }
 0x1fc   :  { %v965_v58 = vadd.f32 %v961_v39, %v953_v19  ;;  %v854_v61 = vmul.f32 %v850_v16, %v6943_v50  ;;  %v670_v28 = vmul.f32 %v666_v57, %v6913_v21  ;;  %v1014_v18 = vmul.f32 %v1010_v56, %v6959_v6 }
 0x1fd   :  { %v682_v52 = vmul.f32 %v678_v36, %v406_v7  ;;  %v1018_v22 = vmul.f32 0.8333333, %v674_v10  ;;  %5875 = vmatmul.msk.f32.gmra.mxu0 %vm186_vm2, %v2182_v47  ;;  %5767 = vmatmul.msk.f32.gmra.mxu3 %vm186_vm2, %v985_v43  ;;  %vm1527_vm11 = vcmp.ge.f32.partialorder %v7187_v24, -1.4  ;;  %vm1543_vm12 = vcmp.ge.f32.partialorder %v7187_v24, -1.0 }
 0x1fe   :  { %v9212_v62 = vsub.f32 -1.0, %v7187_v24  ;;  %5763 = vmatmul.msk.f32.gmra.mxu2 %vm186_vm2, %v965_v58  ;;  %v7201_v21 = vsel %vm1511_vm10, 1.0, %v9323_v15  ;;  %v5788_v50 = vsel %vm1527_vm11, 1.0, %v9323_v15  ;;  %v5792_v6 = vsel %vm1543_vm12, 1.0, %v9323_v15 }
 0x1ff   :  { %v686_v9 = vadd.f32 %v682_v52, %v670_v28  ;;  %v7206_v45 = vsub.f32 %v7201_v21, %v5788_v50  ;;  %v1555_v12 = vsub.f32 %v5788_v50, %v5792_v6  ;;  %vm1559_vm13 = vcmp.ge.f32.partialorder %v7187_v24, -0.6 }
 0x200   :  { %vm1575_vm14 = vcmp.ge.f32.partialorder %v7187_v24, -0.2  ;;  %v5796_v51 = vsel %vm1559_vm13, 1.0, %v9323_v15  ;;  %v5832_v19 = vadd.f32 1.8, %v7187_v24  ;;  %v1731_v33 = vmul.f32 2.5, %v9212_v62 }
 0x201   :  { %9377 = vst [vmem:[#allocation7_spill] sm:$0xff] %v7206_v45  ;;  %v862_v32 = vmul.f32 %v858_v53, %v686_v9  ;;  %v7212_v3 = vsel %vm1575_vm14, 1.0, %v9323_v15  ;;  %v1571_v48 = vsub.f32 %v5792_v6, %v5796_v51  ;;  %v7221_v7 = vadd.f32 1.4, %v7187_v24 }
 0x202   :  { %v7216_v60 = vsub.f32 %v5796_v51, %v7212_v3  ;;  %v1719_v10 = vmul.f32 2.5, %v5832_v19  ;;  %v7224_v14 = vsub.f32 -0.6, %v7187_v24  ;;  %v7227_v23 = vadd.f32 1.0, %v7187_v24  ;;  %v2310_v51 = vld [vmem:[#allocation4 + $0x30] sm:$0xff] }
 0x203   :  { %v866_v46 = vadd.f32 %v862_v32, %v854_v61  ;;  %v1735_v39 = vmul.f32 %v1731_v33, %v1555_v12  ;;  %v1747_v16 = vmul.f32 2.5, %v7221_v7  ;;  %v1783_v57 = vsub.f32 -0.2, %v7187_v24  ;;  %v2306_v33 = vld [vmem:[#allocation4 + $0x10] sm:$0xff]  ;;  %2337 = vmatpush.msrb.mxu2 %v2310_v51 }
 0x204   :  { %9378 = vst [vmem:[#allocation11_spill] sm:$0xff] %v7227_v23  ;;  %v1987_v36 = vmul.f32 1.25, %v5832_v19  ;;  %v1723_v56 = vmul.f32 %v1719_v10, %v7206_v45  ;;  %v1759_v47 = vmul.f32 2.5, %v7224_v14  ;;  %v1775_v43 = vmul.f32 2.5, %v7227_v23  ;;  %2378 = vmatpush.msrb.mxu3 %v2306_v33 }
 0x205   :  { %v1022_v53 = vmul.f32 %v1018_v22, %v866_v46  ;;  %v1751_v58 = vmul.f32 %v1747_v16, %v1555_v12  ;;  %v1787_v61 = vmul.f32 2.5, %v1783_v57  ;;  %v1995_v28 = vmul.f32 1.25, %v7224_v14  ;;  %v2305_v22 = vld [vmem:[#allocation4 + $0x8] sm:$0xff] }
 0x206   :  { %v2007_v52 = vmul.f32 1.25, %v7221_v7  ;;  %v7236_v50 = vadd.f32 %v1735_v39, %v1723_v56  ;;  %v1763_v6 = vmul.f32 %v1759_v47, %v1571_v48  ;;  %v1779_v32 = vmul.f32 %v1775_v43, %v1571_v48  ;;  %v2309_v12 = vld [vmem:[#allocation4 + $0x28] sm:$0xff]  ;;  %v9379_v39 = vld [vmem:[#allocation35_spill] sm:$0xff]  ;;  %2379 = vmatpush.msrb.mxu3 %v2305_v22 }
 0x207   :  { %v1026_v9 = vadd.f32 %v1022_v53, %v1014_v18  ;;  %v1791_v46 = vmul.f32 %v1787_v61, %v7216_v60  ;;  %v2015_v10 = vmul.f32 1.25, %v1783_v57  ;;  %v2167_v62 = vmul.f32 0.8333333, %v5832_v19  ;;  %v2304_v56 = vld [vmem:[#allocation4] sm:$0xff]  ;;  %2338 = vmatpush.msrb.mxu2 %v2309_v12  ;;  %v9382_v12 = vld [vmem:[#allocation24_spill] sm:$0xff] }
 0x208   :  { %v2175_v45 = vmul.f32 0.8333333, %v1783_v57  ;;  %v1767_v16 = vadd.f32 %v1763_v6, %v1751_v58  ;;  %v1991_v18 = vmul.f32 %v1987_v36, %v7236_v50  ;;  %v790_v53 = vmul.f32 1.25, %v9379_v39  ;;  %v2308_v47 = vld [vmem:[#allocation4 + $0x20] sm:$0xff]  ;;  %2380 = vmatpush.msrb.mxu3 %v2304_v56 }
 0x209   :  { %5776 = vmatmul.msk.f32.gmra.mxu1 %vm186_vm2, %v1026_v9  ;;  %v798_v48 = vmul.f32 1.25, %v6916_v26  ;;  %v7243_v43 = vadd.f32 %v1791_v46, %v1779_v32  ;;  %v970_v61 = vmul.f32 0.8333333, %v9379_v39  ;;  %v978_v19 = vmul.f32 0.8333333, %v6924_v2  ;;  %2339 = vmatpush.msrb.mxu2 %v2308_v47 }
 0x20a   :  { %v950_v57 = vmul.f32 0.8333333, %v6756_v4  ;;  %v1999_v9 = vmul.f32 %v1995_v28, %v1767_v16  ;;  %v2011_v58 = vmul.f32 %v2007_v52, %v1767_v16  ;;  %v794_v36 = vmul.f32 %v790_v53, %v6780_v35  ;;  %v9381_v52 = vld [vmem:[#allocation26_spill] sm:$0xff] }
 0x20b   :  { %v802_v6 = vmul.f32 %v798_v48, %v6939_v44  ;;  %v2019_v51 = vmul.f32 %v2015_v10, %v7243_v43  ;;  %v982_v33 = vmul.f32 %v978_v19, %v6957_v37  ;;  %v958_v46 = vmul.f32 0.8333333, %v6916_v26 }
 0x20c   :  { %v954_v32 = vmul.f32 %v950_v57, %v6800_v41  ;;  %v7254_v2 = vadd.f32 %v1999_v9, %v1991_v18  ;;  %vm1588_vm15 = vcmp.ge.f32.partialorder %v6947_v17, 0.2  ;;  %v7258_v28 = vadd.f32 0.6, %v6947_v17 }
 0x20d   :  { %v806_v4 = vadd.f32 %v802_v6, %v794_v36  ;;  %v7260_v35 = vadd.f32 %v2019_v51, %v2011_v58  ;;  %v5801_v44 = vsel %vm1588_vm15, 1.0, %v9323_v15  ;;  %v1808_v37 = vsub.f32 0.2, %v6947_v17 }
 0x20e   :  { %9380 = vst [vmem:[#allocation18_spill] sm:$0xff] %v7258_v28  ;;  %v2024_v41 = vmul.f32 1.25, %v9381_v52  ;;  %v2171_v26 = vmul.f32 %v2167_v62, %v7254_v2  ;;  %v1600_v16 = vsub.f32 %v9382_v12, %v5801_v44  ;;  %v1800_v39 = vmul.f32 2.5, %v7258_v28 }
 0x20f   :  { %v974_v22 = vmul.f32 %v970_v61, %v806_v4  ;;  %v962_v10 = vmul.f32 %v958_v46, %v806_v4  ;;  %v2179_v18 = vmul.f32 %v2175_v45, %v7260_v35  ;;  %v1812_v53 = vmul.f32 2.5, %v1808_v37 }
 0x210   :  { %v2028_v48 = vmul.f32 %v2024_v41, %v7015_v8  ;;  %v2032_v19 = vmul.f32 1.25, %v1808_v37  ;;  %v2184_v57 = vmul.f32 0.8333333, %v6993_v27  ;;  %v1804_v58 = vmul.f32 %v1800_v39, %v6989_v38 }
 0x211   :  { %v986_v56 = vadd.f32 %v982_v33, %v974_v22  ;;  %v966_v47 = vadd.f32 %v962_v10, %v954_v32  ;;  %v2183_v9 = vadd.f32 %v2179_v18, %v2171_v26  ;;  %v1816_v62 = vmul.f32 %v1812_v53, %v1600_v16 }
 0x212   :  { %v2192_v61 = vmul.f32 0.8333333, %v1808_v37  ;;  %v2188_v45 = vmul.f32 %v2184_v57, %v7028_v31  ;;  %vm1604_vm1 = vcmp.ge.f32.partialorder %v6947_v17, 0.6  ;;  %vm1620_vm3 = vcmp.ge.f32.partialorder %v6947_v17, 1.0 }
 0x213   :  { %5768 = vmatmul.msk.f32.gmra.mxu3 %vm186_vm2, %v986_v56  ;;  %5764 = vmatmul.msk.f32.gmra.mxu2 %vm186_vm2, %v966_v47  ;;  %vm1636_vm4 = vcmp.ge.f32.partialorder %v6947_v17, 1.4  ;;  %v7279_v27 = vadd.f32 %v1816_v62, %v1804_v58  ;;  %v5805_v38 = vsel %vm1604_vm1, 1.0, %v9323_v15  ;;  %v5809_v8 = vsel %vm1620_vm3, 1.0, %v9323_v15 }
 0x214   :  { %5876 = vmatmul.msk.f32.gmra.mxu0 %vm186_vm2, %v2183_v9  ;;  %v7284_v36 = vsel %vm1636_vm4, 1.0, %v9323_v15  ;;  %v1616_v6 = vsub.f32 %v5801_v44, %v5805_v38  ;;  %v1632_v51 = vsub.f32 %v5805_v38, %v5809_v8  ;;  %v5845_v33 = vadd.f32 0.2, %v6947_v17 }
 0x215   :  { %9383 = vst [vmem:[#allocation15_spill] sm:$0xff] %v7279_v27  ;;  %v7287_v31 = vsub.f32 %v5809_v8, %v7284_v36  ;;  %v2036_v32 = vmul.f32 %v2032_v19, %v7279_v27  ;;  %v7292_v46 = vsub.f32 0.6, %v6947_v17  ;;  %v7295_v4 = vadd.f32 -0.2, %v6947_v17 }
 0x216   :  { %v7298_v37 = vsub.f32 1.0, %v6947_v17  ;;  %v1828_v41 = vmul.f32 2.5, %v5845_v33  ;;  %v7301_v44 = vadd.f32 -0.6, %v6947_v17  ;;  %v1892_v26 = vsub.f32 1.4, %v6947_v17 }
 0x217   :  { %9384 = vst [vmem:[#allocation12_spill] sm:$0xff] %v7292_v46  ;;  %v2064_v22 = vmul.f32 1.25, %v5845_v33  ;;  %v7304_v10 = vadd.f32 %v2036_v32, %v2028_v48  ;;  %v1840_v12 = vmul.f32 2.5, %v7292_v46  ;;  %v1856_v18 = vmul.f32 2.5, %v7295_v4 }
 0x218   :  { %9385 = vst [vmem:[#allocation20_spill] sm:$0xff] %v7298_v37  ;;  %v1868_v39 = vmul.f32 2.5, %v7298_v37  ;;  %v1832_v53 = vmul.f32 %v1828_v41, %v1600_v16  ;;  %v1884_v56 = vmul.f32 2.5, %v7301_v44  ;;  %v1896_v47 = vmul.f32 2.5, %v1892_v26 }
 0x219   :  { %9386 = vst [vmem:[#allocation21_spill] sm:$0xff] %v7304_v10  ;;  %v2072_v19 = vmul.f32 1.25, %v7298_v37  ;;  %v2196_v57 = vmul.f32 %v2192_v61, %v7304_v10  ;;  %v1844_v9 = vmul.f32 %v1840_v12, %v1616_v6  ;;  %v1860_v58 = vmul.f32 %v1856_v18, %v1616_v6  ;;  %v9387_v18 = vld [vmem:[#allocation25_spill] sm:$0xff] }
 0x21a   :  { %v1872_v62 = vmul.f32 %v1868_v39, %v1632_v51  ;;  %v1888_v38 = vmul.f32 %v1884_v56, %v1632_v51  ;;  %v1900_v48 = vmul.f32 %v1896_v47, %v7287_v31  ;;  %v2084_v8 = vmul.f32 1.25, %v7295_v4 }
 0x21b   :  { %v2092_v32 = vmul.f32 1.25, %v1892_v26  ;;  %v2200_v27 = vadd.f32 %v2196_v57, %v2188_v45  ;;  %v7314_v52 = vadd.f32 %v1844_v9, %v1832_v53  ;;  %v2244_v41 = vmul.f32 0.8333333, %v5845_v33 }
 0x21c   :  { %v1876_v16 = vadd.f32 %v1872_v62, %v1860_v58  ;;  %v7316_v46 = vadd.f32 %v1900_v48, %v1888_v38  ;;  %v2252_v28 = vmul.f32 0.8333333, %v1892_v26  ;;  %v1476_v37 = vmul.f32 0.5, %v6947_v17  ;;  %v9391_v58 = vld [vmem:[#allocation31_spill] sm:$0xff]  ;;  %v9392_v48 = vld [vmem:[#allocation9_spill] sm:$0xff] }
 0x21d   :  { %vm1496_vm5 = vcmp.ge.f32.partialorder %v6947_v17, -2.2  ;;  %5877 = vmatmul.msk.f32.vlgmr.msra.gmra.mxu1 %vm186_vm2, %v2200_v27  ;;  %v2068_v61 = vmul.f32 %v2064_v22, %v7314_v52  ;;  %v5825_v39 = vadd.f32 2.2, %v6947_v17  ;;  %v1696_v53 = vsub.f32 -1.4, %v6947_v17 }
 0x21e   :  { %v2076_v6 = vmul.f32 %v2072_v19, %v1876_v16  ;;  %v2088_v51 = vmul.f32 %v2084_v8, %v1876_v16  ;;  %v5777_v12 = vsel %vm1496_vm5, 1.0, %v9323_v15  ;;  %v2096_v45 = vmul.f32 %v2092_v32, %v7316_v46  ;;  %v9393_v32 = vld [vmem:[#allocation29_spill] sm:$0xff] }
 0x21f   :  { %6193 = vtanh.f32 %v1476_v37  ;;  %v1520_v33 = vsub.f32 %v5777_v12, %v9387_v18  ;;  %v9389_v56 = vsub.f32 -1.0, %v6947_v17  ;;  %v1688_v22 = vmul.f32 2.5, %v5825_v39  ;;  %v9395_v18 = vld [vmem:[#allocation14_spill] sm:$0xff] }
 0x220   :  { %v7326_v26 = vadd.f32 %v2076_v6, %v2068_v61  ;;  %v7331_v47 = vadd.f32 %v2096_v45, %v2088_v51  ;;  %v1700_v57 = vmul.f32 2.5, %v1696_v53  ;;  %v1964_v9 = vmul.f32 1.25, %v5825_v39  ;;  %v9394_v61 = vld [vmem:[#allocation33_spill] sm:$0xff] }
 0x221   :  { %v1972_v27 = vmul.f32 1.25, %v9389_v56  ;;  %v2152_v37 = vmul.f32 0.8333333, %v9391_v58  ;;  %v1692_v38 = vmul.f32 %v1688_v22, %v1520_v33  ;;  %vm1589_vm6 = vcmp.ge.f32.partialorder %v9392_v48, 0.2  ;;  %v9396_v33 = vld [vmem:[#allocation16_spill] sm:$0xff] }
 0x222   :  { %9388 = vst [vmem:[#allocation22_spill] sm:$0xff] %v7326_v26  ;;  %v2248_v19 = vmul.f32 %v2244_v41, %v7326_v26  ;;  %v2256_v62 = vmul.f32 %v2252_v28, %v7331_v47  ;;  %v7338_v8 = vadd.f32 0.6, %v9392_v48  ;;  %v1704_v16 = vmul.f32 %v1700_v57, %v9393_v32  ;;  %v9397_v57 = vld [vmem:[#allocation34_spill] sm:$0xff] }
 0x223   :  { %9390 = vst [vmem:[#allocation19_spill] sm:$0xff] %v7331_v47  ;;  %v1976_v6 = vmul.f32 %v1972_v27, %v9394_v61  ;;  %v5802_v51 = vsel %vm1589_vm6, 1.0, %v9323_v15  ;;  %v1809_v41 = vsub.f32 0.2, %v9392_v48  ;;  %v2025_v56 = vmul.f32 1.25, %v9396_v33 }
 0x224   :  { %v2260_v45 = vadd.f32 %v2256_v62, %v2248_v19  ;;  %v1601_v53 = vsub.f32 %v9395_v18, %v5802_v51  ;;  %v1801_v28 = vmul.f32 2.5, %v7338_v8  ;;  %v1708_v58 = vadd.f32 %v1704_v16, %v1692_v38 }
 0x225   :  { %v6194_v12 = vpop.eup %6193  ;;  %v1813_v26 = vmul.f32 2.5, %v1809_v41  ;;  %v2185_v47 = vmul.f32 0.8333333, %v7064_v49  ;;  %v2144_v27 = vmul.f32 0.8333333, %v5825_v39  ;;  %v2156_v32 = vmul.f32 %v2152_v37, %v9397_v57 }
 0x226   :  { %v1484_v22 = vadd.f32 1.0, %v6194_v12  ;;  %5889 = vmatmul.msk.f32.vlgmr.msrb.gmra.mxu0 %vm186_vm2, %v2260_v45  ;;  %v1805_v61 = vmul.f32 %v1801_v28, %v7067_v5  ;;  %v2033_v10 = vmul.f32 1.25, %v1809_v41  ;;  %v1968_v62 = vmul.f32 %v1964_v9, %v1708_v58 }
 0x227   :  { %v1817_v18 = vmul.f32 %v1813_v26, %v1601_v53  ;;  %vm1605_vm7 = vcmp.ge.f32.partialorder %v9392_v48, 0.6  ;;  %v2029_v33 = vmul.f32 %v2025_v56, %v7089_v40  ;;  %vm1621_vm8 = vcmp.ge.f32.partialorder %v9392_v48, 1.0 }
 0x228   :  { %v1488_v19 = vmul.f32 0.5, %v1484_v22  ;;  %v5806_v38 = vsel %vm1605_vm7, 1.0, %v9323_v15  ;;  %vm1637_vm9 = vcmp.ge.f32.partialorder %v9392_v48, 1.4  ;;  %v1980_v39 = vadd.f32 %v1976_v6, %v1968_v62 }
 0x229   :  { %v7357_v37 = vadd.f32 %v1817_v18, %v1805_v61  ;;  %v2189_v5 = vmul.f32 %v2185_v47, %v7103_v29  ;;  %v2193_v16 = vmul.f32 0.8333333, %v1809_v41  ;;  %v5810_v26 = vsel %vm1621_vm8, 1.0, %v9323_v15 }
 0x22a   :  { %v1492_v49 = vmul.f32 %v1488_v19, %v6947_v17  ;;  %v7362_v9 = vsel %vm1637_vm9, 1.0, %v9323_v15  ;;  %v5846_v40 = vadd.f32 0.2, %v9392_v48  ;;  %v2148_v12 = vmul.f32 %v2144_v27, %v1980_v39 }
 0x22b   :  { %9398 = vst [vmem:[#allocation23_spill] sm:$0xff] %v7357_v37  ;;  %v2037_v45 = vmul.f32 %v2033_v10, %v7357_v37  ;;  %v1617_v28 = vsub.f32 %v5802_v51, %v5806_v38  ;;  %v1633_v17 = vsub.f32 %v5806_v38, %v5810_v26  ;;  %v7368_v6 = vsub.f32 %v5810_v26, %v7362_v9 }
 0x22c   :  { %5869 = vmatmul.msk.f32.vlgmr.msrb.gmra.mxu3 %vm186_vm2, %v1492_v49  ;;  %v1829_v56 = vmul.f32 2.5, %v5846_v40  ;;  %v7371_v29 = vsub.f32 0.6, %v9392_v48  ;;  %v7374_v47 = vadd.f32 -0.2, %v9392_v48  ;;  %v2160_v41 = vadd.f32 %v2156_v32, %v2148_v12 }
 0x22d   :  { %v7376_v22 = vadd.f32 %v2037_v45, %v2029_v33  ;;  %v7379_v58 = vsub.f32 1.0, %v9392_v48  ;;  %v7382_v10 = vadd.f32 -0.6, %v9392_v48  ;;  %v1893_v61 = vsub.f32 1.4, %v9392_v48 }
 0x22e   :  { %9399 = vst [vmem:[#allocation28_spill] sm:$0xff] %v7371_v29  ;;  %v1833_v51 = vmul.f32 %v1829_v56, %v1601_v53  ;;  %v1841_v27 = vmul.f32 2.5, %v7371_v29  ;;  %v1857_v57 = vmul.f32 2.5, %v7374_v47  ;;  %5865 = vmatmul.msk.f32.vlgmr.msrb.gmra.mxu2 %vm186_vm2, %v2160_v41  ;;  %v2065_v62 = vmul.f32 1.25, %v5846_v40 }
 0x22f   :  { %9400 = vst [vmem:[#allocation30_spill] sm:$0xff] %v7376_v22  ;;  %v2197_v19 = vmul.f32 %v2193_v16, %v7376_v22  ;;  %v1869_v33 = vmul.f32 2.5, %v7379_v58  ;;  %v1885_v32 = vmul.f32 2.5, %v7382_v10  ;;  %v1897_v49 = vmul.f32 2.5, %v1893_v61 }
 0x230   :  { %9401 = vst [vmem:[#allocation27_spill] sm:$0xff] %v7379_v58  ;;  %v1845_v18 = vmul.f32 %v1841_v27, %v1617_v28  ;;  %v1861_v38 = vmul.f32 %v1857_v57, %v1617_v28  ;;  %v2073_v53 = vmul.f32 1.25, %v7379_v58  ;;  %v2085_v45 = vmul.f32 1.25, %v7374_v47 }
 0x231   :  { %v2201_v39 = vadd.f32 %v2197_v19, %v2189_v5  ;;  %v1873_v26 = vmul.f32 %v1869_v33, %v1633_v17  ;;  %v1889_v12 = vmul.f32 %v1885_v32, %v1633_v17  ;;  %vm1653_vm10 = vcmp.ge.f32.partialorder %v9392_v48, 1.8  ;;  %v9403_v32 = vld [vmem:[#allocation10_spill] sm:$0xff] }
 0x232   :  { %v7394_v56 = vadd.f32 %v1845_v18, %v1833_v51  ;;  %v1901_v16 = vmul.f32 %v1897_v49, %v7368_v6  ;;  %v2093_v41 = vmul.f32 1.25, %v1893_v61  ;;  %v2245_v27 = vmul.f32 0.8333333, %v5846_v40 }
 0x233   :  { %5878 = vmatmul.msk.f32.gmra.mxu1 %vm186_vm2, %v2201_v39  ;;  %v1877_v22 = vadd.f32 %v1873_v26, %v1861_v38  ;;  %v1477_v28 = vmul.f32 0.5, %v9392_v48  ;;  %vm1497_vm11 = vcmp.ge.f32.partialorder %v9392_v48, -2.2  ;;  %v5826_v51 = vadd.f32 2.2, %v9392_v48 }
 0x234   :  { %9402 = vst [vmem:[#allocation32_spill] sm:$0xff] %v7394_v56  ;;  %v7400_v5 = vadd.f32 %v1901_v16, %v1889_v12  ;;  %v2069_v17 = vmul.f32 %v2065_v62, %v7394_v56  ;;  %v5778_v57 = vsel %vm1497_vm11, 1.0, %v9323_v15  ;;  %v2253_v40 = vmul.f32 0.8333333, %v1893_v61 }
 0x235   :  { %v2077_v19 = vmul.f32 %v2073_v53, %v1877_v22  ;;  %v2089_v33 = vmul.f32 %v2085_v45, %v1877_v22  ;;  %6195 = vtanh.f32 %v1477_v28  ;;  %v1521_v18 = vsub.f32 %v5778_v57, %v9403_v32  ;;  %v9407_v28 = vld [vmem:[#allocation13_spill] sm:$0xff] }
 0x236   :  { %v2097_v38 = vmul.f32 %v2093_v41, %v7400_v5  ;;  %v1689_v49 = vmul.f32 2.5, %v5826_v51  ;;  %v1697_v39 = vsub.f32 -1.4, %v9392_v48  ;;  %v9405_v12 = vsub.f32 -1.0, %v9392_v48 }
 0x237   :  { %v7408_v26 = vadd.f32 %v2077_v19, %v2069_v17  ;;  %vm1590_vm12 = vcmp.ge.f32.partialorder %v7109_v25, 0.2  ;;  %v7418_v22 = vsel %vm1653_vm10, 1.0, %v9323_v15  ;;  %v2153_v53 = vmul.f32 0.8333333, %v7070_v30 }
 0x238   :  { %v1973_v62 = vmul.f32 1.25, %v9405_v12  ;;  %v7412_v16 = vadd.f32 %v2097_v38, %v2089_v33  ;;  %v1693_v58 = vmul.f32 %v1689_v49, %v1521_v18  ;;  %v1701_v56 = vmul.f32 2.5, %v1697_v39  ;;  %9406 = vst [vmem:[#allocation24_spill] sm:$0xff] %v7418_v22 }
 0x239   :  { %9404 = vst [vmem:[#allocation35_spill] sm:$0xff] %v7408_v26  ;;  %v2249_v61 = vmul.f32 %v2245_v27, %v7408_v26  ;;  %v5803_v45 = vsel %vm1590_vm12, 1.0, %v9323_v15  ;;  %v1965_v57 = vmul.f32 1.25, %v5826_v51  ;;  %v7426_v19 = vadd.f32 0.6, %v7109_v25 }
 0x23a   :  { %v2257_v41 = vmul.f32 %v2253_v40, %v7412_v16  ;;  %v1705_v17 = vmul.f32 %v1701_v56, %v9407_v28  ;;  %v1977_v32 = vmul.f32 %v1973_v62, %v7084_v34  ;;  %v1602_v18 = vsub.f32 %v7135_v1, %v5803_v45  ;;  %v9408_v28 = vld [vmem:[#allocation17_spill] sm:$0xff] }
 0x23b   :  { %v6196_v33 = vpop.eup %6195  ;;  %v1810_v38 = vsub.f32 0.2, %v7109_v25  ;;  %vm1622_vm13 = vcmp.ge.f32.partialorder %v7109_v25, 1.0  ;;  %v1802_v40 = vmul.f32 2.5, %v7426_v19  ;;  %v2145_v39 = vmul.f32 0.8333333, %v5826_v51 }
 0x23c   :  { %v2261_v30 = vadd.f32 %v2257_v41, %v2249_v61  ;;  %v1485_v27 = vadd.f32 1.0, %v6196_v33  ;;  %v1709_v49 = vadd.f32 %v1705_v17, %v1693_v58  ;;  %v2157_v56 = vmul.f32 %v2153_v53, %v7100_v11 }
 0x23d   :  { %v1814_v12 = vmul.f32 2.5, %v1810_v38  ;;  %v2026_v26 = vmul.f32 1.25, %v9408_v28  ;;  %v1806_v1 = vmul.f32 %v1802_v40, %v7140_v63  ;;  %v2186_v37 = vmul.f32 0.8333333, %v7143_v59 }
 0x23e   :  { %5890 = vmatmul.msk.f32.gmra.mxu0 %vm186_vm2, %v2261_v30  ;;  %v1489_v34 = vmul.f32 0.5, %v1485_v27  ;;  %v1969_v62 = vmul.f32 %v1965_v57, %v1709_v49  ;;  %v2034_v61 = vmul.f32 1.25, %v1810_v38  ;;  %vm1606_vm14 = vcmp.ge.f32.partialorder %v7109_v25, 0.6 }
 0x23f   :  { %v1818_v29 = vmul.f32 %v1814_v12, %v1602_v18  ;;  %v5811_v58 = vsel %vm1622_vm13, 1.0, %v9323_v15  ;;  %v5807_v53 = vsel %vm1606_vm14, 1.0, %v9323_v15  ;;  %vm1638_vm15 = vcmp.ge.f32.partialorder %v7109_v25, 1.4 }
 0x240   :  { %v1493_v11 = vmul.f32 %v1489_v34, %v9392_v48  ;;  %v1981_v51 = vadd.f32 %v1977_v32, %v1969_v62  ;;  %v7447_v63 = vsub.f32 %v7362_v9, %v7418_v22  ;;  %v2030_v41 = vmul.f32 %v2026_v26, %v7164_v13 }
 0x241   :  { %v1822_v59 = vadd.f32 %v1818_v29, %v1806_v1  ;;  %v5815_v17 = vsel %vm1638_vm15, 1.0, %v9323_v15  ;;  %v2190_v33 = vmul.f32 %v2186_v37, %v7179_v20  ;;  %v2194_v48 = vmul.f32 0.8333333, %v1810_v38 }
 0x242   :  { %5870 = vmatmul.msk.f32.gmra.mxu3 %vm186_vm2, %v1493_v11  ;;  %v2149_v57 = vmul.f32 %v2145_v39, %v1981_v51  ;;  %v5847_v32 = vadd.f32 0.2, %v7109_v25  ;;  %v1618_v27 = vsub.f32 %v5803_v45, %v5807_v53  ;;  %v1634_v49 = vsub.f32 %v5807_v53, %v5811_v58 }
 0x243   :  { %v2038_v30 = vmul.f32 %v2034_v61, %v1822_v59  ;;  %v7455_v40 = vsub.f32 0.6, %v7109_v25  ;;  %v7457_v29 = vsub.f32 %v5811_v58, %v5815_v17  ;;  %v7460_v26 = vadd.f32 -0.2, %v7109_v25 }
 0x244   :  { %v2161_v9 = vadd.f32 %v2157_v56, %v2149_v57  ;;  %v1830_v13 = vmul.f32 2.5, %v5847_v32  ;;  %v1866_v37 = vsub.f32 1.0, %v7109_v25  ;;  %v7467_v38 = vadd.f32 -0.6, %v7109_v25 }
 0x245   :  { %9409 = vst [vmem:[#allocation25_spill] sm:$0xff] %v7455_v40  ;;  %v7462_v12 = vadd.f32 %v2038_v30, %v2030_v41  ;;  %v1842_v20 = vmul.f32 2.5, %v7455_v40  ;;  %vm1654_vm1 = vcmp.ge.f32.partialorder %v7109_v25, 1.8  ;;  %v1858_v39 = vmul.f32 2.5, %v7460_v26 }
 0x246   :  { %9410 = vst [vmem:[#allocation31_spill] sm:$0xff] %v7457_v29  ;;  %5866 = vmatmul.msk.f32.gmra.mxu2 %vm186_vm2, %v2161_v9  ;;  %v1834_v45 = vmul.f32 %v1830_v13, %v1602_v18  ;;  %v1894_v56 = vsub.f32 1.4, %v7109_v25  ;;  %v1870_v1 = vmul.f32 2.5, %v1866_v37  ;;  %v1886_v61 = vmul.f32 2.5, %v7467_v38 }
 0x247   :  { %9411 = vst [vmem:[#allocation9_spill] sm:$0xff] %v7460_v26  ;;  %v2198_v34 = vmul.f32 %v2194_v48, %v7462_v12  ;;  %v1846_v62 = vmul.f32 %v1842_v20, %v1618_v27  ;;  %v1862_v58 = vmul.f32 %v1858_v39, %v1618_v27  ;;  %v2066_v51 = vmul.f32 1.25, %v5847_v32 }
 0x248   :  { %9412 = vst [vmem:[#allocation29_spill] sm:$0xff] %v7462_v12  ;;  %v1898_v11 = vmul.f32 2.5, %v1894_v56  ;;  %v2074_v53 = vmul.f32 1.25, %v1866_v37  ;;  %v1874_v30 = vmul.f32 %v1870_v1, %v1634_v49  ;;  %v1890_v9 = vmul.f32 %v1886_v61, %v1634_v49 }
 0x249   :  { %9413 = vst [vmem:[#allocation33_spill] sm:$0xff] %v7467_v38  ;;  %v2202_v41 = vadd.f32 %v2198_v34, %v2190_v33  ;;  %v7475_v57 = vadd.f32 %v1846_v62, %v1834_v45  ;;  %v2046_v18 = vmul.f32 1.25, %v7426_v19  ;;  %v2086_v22 = vmul.f32 1.25, %v7460_v26 }
 0x24a   :  { %v1902_v13 = vmul.f32 %v1898_v11, %v7457_v29  ;;  %v2094_v48 = vmul.f32 1.25, %v1894_v56  ;;  %v7484_v27 = vsel %vm1654_vm1, 1.0, %v9323_v15  ;;  %v1878_v20 = vadd.f32 %v1874_v30, %v1862_v58  ;;  %v9416_v58 = vld [vmem:[#allocation8_spill] sm:$0xff] }
 0x24b   :  { %5879 = vmatmul.msk.f32.gmra.mxu1 %vm186_vm2, %v2202_v41  ;;  %9414 = vst [vmem:[#allocation14_spill] sm:$0xff] %v7484_v27  ;;  %v2070_v33 = vmul.f32 %v2066_v51, %v7475_v57  ;;  %v2246_v45 = vmul.f32 0.8333333, %v5847_v32  ;;  %v2254_v49 = vmul.f32 0.8333333, %v1894_v56  ;;  %v1478_v34 = vmul.f32 0.5, %v7109_v25 }
 0x24c   :  { %v7487_v39 = vadd.f32 %v1902_v13, %v1890_v9  ;;  %vm1498_vm3 = vcmp.ge.f32.partialorder %v7109_v25, -2.2  ;;  %v2078_v62 = vmul.f32 %v2074_v53, %v1878_v20  ;;  %v2090_v1 = vmul.f32 %v2086_v22, %v1878_v20  ;;  %v2495_v51 = vld [vmem:[#allocation4 + $0x98] sm:$0xff]  ;;  %v2641_v56 = vld [vmem:[#allocation4 + $0xf0] sm:$0xff] }
 0x24d   :  { %v5779_v61 = vsel %vm1498_vm3, 1.0, %v9323_v15  ;;  %v5827_v11 = vadd.f32 2.2, %v7109_v25  ;;  %6197 = vtanh.f32 %v1478_v34  ;;  %v1698_v32 = vsub.f32 -1.4, %v7109_v25  ;;  %v2642_v9 = vld [vmem:[#allocation4 + $0xf8] sm:$0xff]  ;;  %2520 = vmatpush.msra.mxu2 %v2495_v51 }
 0x24e   :  { %9415 = vst [vmem:[#allocation34_spill] sm:$0xff] %v7487_v39  ;;  %v2098_v41 = vmul.f32 %v2094_v48, %v7487_v39  ;;  %v1522_v30 = vsub.f32 %v5779_v61, %v9416_v58  ;;  %v7496_v13 = vmul.f32 %v2046_v18, %v1822_v59  ;;  %v7499_v12 = vsub.f32 %v5815_v17, %v7484_v27  ;;  %v2640_v39 = vld [vmem:[#allocation4 + $0xe8] sm:$0xff] }
 0x24f   :  { %v7501_v22 = vadd.f32 %v2078_v62, %v2070_v33  ;;  %v1690_v53 = vmul.f32 2.5, %v5827_v11  ;;  %2667 = vmatpush.msrb.mxu1 %v2642_v9  ;;  %v7505_v48 = vmul.f32 0.8333333, %v1866_v37  ;;  %v1702_v34 = vmul.f32 2.5, %v1698_v32  ;;  %v2639_v37 = vld [vmem:[#allocation4 + $0xe0] sm:$0xff] }
 0x250   :  { %9417 = vst [vmem:[#allocation10_spill] sm:$0xff] %v7499_v12  ;;  %v7503_v20 = vadd.f32 %v2098_v41, %v2090_v1  ;;  %v9419_v61 = vsub.f32 -1.0, %v7109_v25  ;;  %v1966_v28 = vmul.f32 1.25, %v5827_v11  ;;  %v2146_v17 = vmul.f32 0.8333333, %v5827_v11 }
 0x251   :  { %v2250_v59 = vmul.f32 %v2246_v45, %v7501_v22  ;;  %v1694_v18 = vmul.f32 %v1690_v53, %v1522_v30  ;;  %2668 = vmatpush.msrb.mxu1 %v2641_v56  ;;  %v1706_v62 = vmul.f32 %v1702_v34, %v7131_v54  ;;  %v2154_v1 = vmul.f32 0.8333333, %v7146_v42 }
 0x252   :  { %9418 = vst [vmem:[#allocation13_spill] sm:$0xff] %v7503_v20  ;;  %v1974_v58 = vmul.f32 1.25, %v9419_v61  ;;  %v2258_v33 = vmul.f32 %v2254_v49, %v7503_v20  ;;  %vm1591_vm4 = vcmp.ge.f32.partialorder %v7187_v24, 0.2  ;;  %v7515_v41 = vmul.f32 1.25, %v7455_v40 }
 0x253   :  { %v5804_v25 = vsel %vm1591_vm4, 1.0, %v9323_v15  ;;  %v7519_v45 = vadd.f32 0.6, %v7187_v24  ;;  %v1811_v11 = vsub.f32 0.2, %v7187_v24  ;;  %2669 = vmatpush.msrb.mxu1 %v2640_v39  ;;  %v6198_v30 = vpop.eup %6197  ;;  %v1710_v32 = vadd.f32 %v1706_v62, %v1694_v18  ;;  %v7529_v18 = vld [vmem:[#allocation4 + $0xb8] sm:$0xff] }
 0x254   :  { %v2262_v49 = vadd.f32 %v2258_v33, %v2250_v59  ;;  %v1978_v54 = vmul.f32 %v1974_v58, %v7159_v55  ;;  %v1603_v42 = vsub.f32 %v7212_v3, %v5804_v25  ;;  %v1486_v51 = vadd.f32 1.0, %v6198_v30  ;;  %6177 = vmatpush.msra.mxu3 %v7529_v18 }
 0x255   :  { %v1803_v9 = vmul.f32 2.5, %v7519_v45  ;;  %v1815_v56 = vmul.f32 2.5, %v1811_v11  ;;  %v2027_v53 = vmul.f32 1.25, %v7227_v23  ;;  %2670 = vmatpush.msrb.mxu1 %v2639_v37  ;;  %v1970_v34 = vmul.f32 %v1966_v28, %v1710_v32 }
 0x256   :  { %5891 = vmatmul.msk.f32.gmra.mxu0 %vm186_vm2, %v2262_v49  ;;  %v2158_v61 = vmul.f32 %v2154_v1, %v7175_v0  ;;  %v2035_v39 = vmul.f32 1.25, %v1811_v11  ;;  %v2187_v59 = vmul.f32 0.8333333, %v7221_v7  ;;  %v1490_v55 = vmul.f32 0.5, %v1486_v51  ;;  %v7537_v0 = vld [vmem:[#allocation2 + $0x30] sm:$0xff] }
 0x257   :  { %v1807_v3 = vmul.f32 %v1803_v9, %v7216_v60  ;;  %v1819_v58 = vmul.f32 %v1815_v56, %v1603_v42  ;;  %vm1607_vm5 = vcmp.ge.f32.partialorder %v7187_v24, 0.6  ;;  %v1982_v33 = vadd.f32 %v1978_v54, %v1970_v34  ;;  %v2494_v34 = vld [vmem:[#allocation4 + $0x90] sm:$0xff] }
 0x258   :  { %v5808_v62 = vsel %vm1607_vm5, 1.0, %v9323_v15  ;;  %vm1623_vm6 = vcmp.ge.f32.partialorder %v7187_v24, 1.0  ;;  %vm1639_vm7 = vcmp.ge.f32.partialorder %v7187_v24, 1.4  ;;  %v1494_v7 = vmul.f32 %v7537_v0, %v1490_v55  ;;  %v2543_v55 = vld [vmem:[#allocation4 + $0xb0] sm:$0xff]  ;;  %2521 = vmatpush.msra.mxu2 %v2494_v34 }
 0x259   :  { %v7540_v28 = vadd.f32 %v1819_v58, %v1807_v3  ;;  %v2031_v60 = vmul.f32 %v2027_v53, %v7243_v43  ;;  %v5812_v1 = vsel %vm1623_vm6, 1.0, %v9323_v15  ;;  %v2150_v37 = vmul.f32 %v2146_v17, %v1982_v33  ;;  %v2542_v43 = vld [vmem:[#allocation4 + $0xa8] sm:$0xff]  ;;  %6178 = vmatpush.msra.mxu3 %v2543_v55  ;;  %v7568_v58 = vpop.f32.mrf.mxu1  ;;  %v2541_v33 = vld [vmem:[#allocation4 + $0xa0] sm:$0xff] }
 0x25a   :  { %v2191_v30 = vmul.f32 %v2187_v59, %v7260_v35  ;;  %v2195_v49 = vmul.f32 0.8333333, %v1811_v11  ;;  %v7546_v32 = vsel %vm1639_vm7, 1.0, %v9323_v15  ;;  %5871 = vmatmul.msk.f32.gmra.mxu3 %vm186_vm2, %v1494_v7  ;;  %v1619_v51 = vsub.f32 %v5804_v25, %v5808_v62  ;;  %9421 = vst [vmem:[#allocation36_spill] sm:$0xff] %v7568_v58 }
 0x25b   :  { %9420 = vst [vmem:[#allocation8_spill] sm:$0xff] %v7546_v32  ;;  %v2039_v54 = vmul.f32 %v2035_v39, %v7540_v28  ;;  %v1635_v9 = vsub.f32 %v5808_v62, %v5812_v1  ;;  %v5848_v56 = vadd.f32 0.2, %v7187_v24  ;;  %v2162_v53 = vadd.f32 %v2158_v61, %v2150_v37  ;;  %v2493_v39 = vld [vmem:[#allocation4 + $0x88] sm:$0xff]  ;;  %6179 = vmatpush.msra.mxu3 %v2542_v43  ;;  %v2492_v37 = vld [vmem:[#allocation4 + $0x80] sm:$0xff] }
 0x25c   :  { %v7552_v17 = vsub.f32 %v5812_v1, %v7546_v32  ;;  %v7555_v35 = vsub.f32 0.6, %v7187_v24  ;;  %v7558_v11 = vadd.f32 -0.2, %v7187_v24  ;;  %v7563_v3 = vsub.f32 1.0, %v7187_v24  ;;  %2522 = vmatpush.msra.mxu2 %v2493_v39 }
 0x25d   :  { %v7560_v25 = vadd.f32 %v2039_v54, %v2031_v60  ;;  %v1831_v59 = vmul.f32 2.5, %v5848_v56  ;;  %v7566_v61 = vadd.f32 -0.6, %v7187_v24  ;;  %5867 = vmatmul.msk.f32.gmra.mxu2 %vm186_vm2, %v2162_v53  ;;  %v1895_v1 = vsub.f32 1.4, %v7187_v24  ;;  %6180 = vmatpush.msra.mxu3 %v2541_v33 }
 0x25e   :  { %v1843_v62 = vmul.f32 2.5, %v7555_v35  ;;  %v1859_v7 = vmul.f32 2.5, %v7558_v11  ;;  %v2067_v60 = vmul.f32 1.25, %v5848_v56  ;;  %v1871_v27 = vmul.f32 2.5, %v7563_v3  ;;  %2523 = vmatpush.msra.mxu2 %v2492_v37 }
 0x25f   :  { %v2199_v54 = vmul.f32 %v2195_v49, %v7560_v25  ;;  %v1835_v34 = vmul.f32 %v1831_v59, %v1603_v42  ;;  %v1887_v23 = vmul.f32 2.5, %v7566_v61  ;;  %v1899_v53 = vmul.f32 2.5, %v1895_v1 }
 0x260   :  { %v1847_v58 = vmul.f32 %v1843_v62, %v1619_v51  ;;  %v1863_v20 = vmul.f32 %v1859_v7, %v1619_v51  ;;  %v2075_v40 = vmul.f32 1.25, %v7563_v3  ;;  %v1875_v32 = vmul.f32 %v1871_v27, %v1635_v9  ;;  %2569 = vmatpush.msrb.mxu2 %v7529_v18 }
 0x261   :  { %v2203_v26 = vadd.f32 %v2199_v54, %v2191_v30  ;;  %v1891_v12 = vmul.f32 %v1887_v23, %v1635_v9  ;;  %v2087_v29 = vmul.f32 1.25, %v7558_v11  ;;  %v2058_v42 = vmul.f32 %v7515_v41, %v7475_v57  ;;  %v7588_v23 = vpop.f32.mrf.mxu3  ;;  %v7590_v30 = vpop.f32.mrf.mxu2 }
 0x262   :  { %v7581_v49 = vadd.f32 %v1847_v58, %v1835_v34  ;;  %v1903_v59 = vmul.f32 %v1899_v53, %v7552_v17  ;;  %v2095_v39 = vmul.f32 1.25, %v1895_v1  ;;  %v1879_v51 = vadd.f32 %v1875_v32, %v1863_v20  ;;  %2570 = vmatpush.msrb.mxu2 %v2543_v55  ;;  %v7609_v54 = vpop.f32.mrf.mxu1  ;;  %v7613_v53 = vld [vmem:[#allocation2 + $0x20] sm:$0xff] }
 0x263   :  { %5880 = vmatmul.msk.f32.gmra.mxu1 %vm186_vm2, %v2203_v26  ;;  %v2247_v62 = vmul.f32 0.8333333, %v5848_v56  ;;  %v1479_v27 = vmul.f32 0.5, %v7187_v24  ;;  %vm1499_vm8 = vcmp.ge.f32.partialorder %v7187_v24, -2.2  ;;  %v9422_v55 = vsub.f32 -1.0, %v7187_v24 }
 0x264   :  { %v7592_v57 = vadd.f32 %v1903_v59, %v1891_v12  ;;  %v2071_v41 = vmul.f32 %v2067_v60, %v7581_v49  ;;  %v5780_v9 = vsel %vm1499_vm8, 1.0, %v9323_v15  ;;  %v5828_v18 = vadd.f32 2.2, %v7187_v24  ;;  %2571 = vmatpush.msrb.mxu2 %v2542_v43  ;;  %9423 = vst [vmem:[#allocation37_spill] sm:$0xff] %v7609_v54  ;;  %v9424_v59 = vld [vmem:[#allocation7_spill] sm:$0xff] }
 0x265   :  { %v2079_v26 = vmul.f32 %v2075_v40, %v1879_v51  ;;  %v2091_v20 = vmul.f32 %v2087_v29, %v1879_v51  ;;  %6199 = vtanh.f32 %v1479_v27  ;;  %v1523_v32 = vsub.f32 %v5780_v9, %v7201_v21 }
 0x266   :  { %v2099_v56 = vmul.f32 %v2095_v39, %v7592_v57  ;;  %v2255_v58 = vmul.f32 0.8333333, %v1895_v1  ;;  %v1691_v7 = vmul.f32 2.5, %v5828_v18  ;;  %v1699_v37 = vsub.f32 -1.4, %v7187_v24  ;;  %2572 = vmatpush.msrb.mxu2 %v2541_v33 }
 0x267   :  { %v7602_v12 = vmul.f32 %v7505_v48, %v7501_v22  ;;  %v7604_v60 = vadd.f32 %v2079_v26, %v2071_v41  ;;  %v1975_v40 = vmul.f32 1.25, %v9422_v55  ;;  %v2155_v29 = vmul.f32 0.8333333, %v7224_v14 }
 0x268   :  { %v7611_v21 = vadd.f32 %v2099_v56, %v2091_v20  ;;  %v1695_v1 = vmul.f32 %v1691_v7, %v1523_v32  ;;  %v1703_v34 = vmul.f32 2.5, %v1699_v37  ;;  %vm1652_vm9 = vcmp.ge.f32.partialorder %v7613_v53, 1.8 }
 0x269   :  { %v2251_v22 = vmul.f32 %v2247_v62, %v7604_v60  ;;  %v1967_v48 = vmul.f32 1.25, %v5828_v18  ;;  %v2147_v43 = vmul.f32 0.8333333, %v5828_v18  ;;  %v7618_v24 = vsel %vm1652_vm9, 1.0, %v9323_v15 }
 0x26a   :  { %v2259_v14 = vmul.f32 %v2255_v58, %v7611_v21  ;;  %v1707_v39 = vmul.f32 %v1703_v34, %v9424_v59  ;;  %v1979_v51 = vmul.f32 %v1975_v40, %v7236_v50  ;;  %v7624_v27 = vadd.f32 -1.0, %v7613_v53  ;;  %v7634_v50 = vpop.f32.mrf.mxu3  ;;  %v7636_v58 = vpop.f32.mrf.mxu2 }
 0x26b   :  { %v6200_v41 = vpop.eup %6199  ;;  %v2159_v9 = vmul.f32 %v2155_v29, %v7254_v2  ;;  %v7629_v33 = vsub.f32 %v7284_v36, %v7618_v24  ;;  %v1920_v62 = vsub.f32 1.8, %v7613_v53  ;;  %v2104_v18 = vmul.f32 1.25, %v7301_v44 }
 0x26c   :  { %v2263_v26 = vadd.f32 %v2259_v14, %v2251_v22  ;;  %v1487_v20 = vadd.f32 1.0, %v6200_v41  ;;  %v1711_v32 = vadd.f32 %v1707_v39, %v1695_v1  ;;  %v1912_v56 = vmul.f32 2.5, %v7624_v27  ;;  %v9425_v14 = vld [vmem:[#allocation18_spill] sm:$0xff]  ;;  %v9426_v39 = vld [vmem:[#allocation12_spill] sm:$0xff] }
 0x26d   :  { %v1924_v7 = vmul.f32 2.5, %v1920_v62  ;;  %v2108_v2 = vmul.f32 %v2104_v18, %v7316_v46  ;;  %v2264_v37 = vmul.f32 0.8333333, %v7295_v4  ;;  %v7641_v36 = vadd.f32 %v2058_v42, %v7496_v13  ;;  %v7649_v41 = vld [vmem:[#allocation2 + $0x38] sm:$0xff] }
 0x26e   :  { %5892 = vmatmul.msk.f32.gmra.mxu0 %vm186_vm2, %v2263_v26  ;;  %v1491_v55 = vmul.f32 0.5, %v1487_v20  ;;  %v1971_v40 = vmul.f32 %v1967_v48, %v1711_v32  ;;  %v1916_v29 = vmul.f32 %v1912_v56, %v7287_v31  ;;  %v2112_v1 = vmul.f32 1.25, %v1920_v62  ;;  %v9427_v42 = vld [vmem:[#allocation26_spill] sm:$0xff]  ;;  %v9428_v20 = vld [vmem:[#allocation15_spill] sm:$0xff]  ;;  %v7659_v56 = vpop.f32.mrf.mxu1 }
 0x26f   :  { %v1928_v34 = vmul.f32 %v1924_v7, %v7629_v33  ;;  %v2226_v22 = vmul.f32 0.8333333, %v7426_v19  ;;  %v2044_v59 = vmul.f32 1.25, %v9425_v14  ;;  %v2052_v46 = vmul.f32 1.25, %v9426_v39  ;;  %9429 = vst [vmem:[#allocation7_spill] sm:$0xff] %v7659_v56 }
 0x270   :  { %v1495_v4 = vmul.f32 %v7649_v41, %v1491_v55  ;;  %v1983_v13 = vadd.f32 %v1979_v51, %v1971_v40  ;;  %v2204_v18 = vmul.f32 0.8333333, %v9427_v42  ;;  %v2212_v48 = vmul.f32 0.8333333, %v9426_v39  ;;  %v7663_v55 = vld [vmem:[#allocation2 + $0x28] sm:$0xff]  ;;  %v9431_v42 = vld [vmem:[#allocation19_spill] sm:$0xff] }
 0x271   :  { %v7654_v26 = vadd.f32 %v1928_v34, %v1916_v29  ;;  %v2230_v31 = vmul.f32 %v2226_v22, %v7641_v36  ;;  %v2048_v32 = vmul.f32 %v2044_v59, %v9428_v20  ;;  %v2056_v19 = vmul.f32 %v2052_v46, %v7314_v52  ;;  %v9430_v52 = vld [vmem:[#allocation21_spill] sm:$0xff] }
 0x272   :  { %vm1655_vm10 = vcmp.ge.f32.partialorder %v7649_v41, 1.8  ;;  %5872 = vmatmul.msk.f32.gmra.mxu3 %vm186_vm2, %v1495_v4  ;;  %v2151_v7 = vmul.f32 %v2147_v43, %v1983_v13  ;;  %v2272_v51 = vmul.f32 0.8333333, %v1920_v62  ;;  %v7666_v40 = vadd.f32 -1.0, %v7663_v55  ;;  %v7676_v13 = vpop.f32.mrf.mxu3  ;;  %v7678_v20 = vpop.f32.mrf.mxu2 }
 0x273   :  { %v1921_v29 = vsub.f32 1.8, %v7663_v55  ;;  %v2116_v34 = vmul.f32 %v2112_v1, %v7654_v26  ;;  %v7670_v22 = vadd.f32 %v2056_v19, %v2048_v32  ;;  %v2208_v59 = vmul.f32 %v2204_v18, %v9430_v52 }
 0x274   :  { %v2105_v39 = vmul.f32 1.25, %v7382_v10  ;;  %v2163_v46 = vadd.f32 %v2159_v9, %v2151_v7  ;;  %v2268_v4 = vmul.f32 %v2264_v37, %v9431_v42  ;;  %v1913_v43 = vmul.f32 2.5, %v7666_v40 }
 0x275   :  { %v1925_v62 = vmul.f32 2.5, %v1921_v29  ;;  %v7680_v56 = vadd.f32 %v2116_v34, %v2108_v2  ;;  %v2242_v1 = vadd.f32 %v7602_v12, %v2230_v31  ;;  %v2216_v32 = vmul.f32 %v2212_v48, %v7670_v22 }
 0x276   :  { %v2265_v18 = vmul.f32 0.8333333, %v7374_v47  ;;  %5868 = vmatmul.msk.f32.gmra.mxu2 %vm186_vm2, %v2163_v46  ;;  %v1917_v9 = vmul.f32 %v1913_v43, %v7368_v6  ;;  %v2109_v19 = vmul.f32 %v2105_v39, %v7400_v5  ;;  %v2113_v7 = vmul.f32 1.25, %v1921_v29  ;;  %v9432_v39 = vld [vmem:[#allocation28_spill] sm:$0xff] }
 0x277   :  { %v1929_v37 = vmul.f32 %v1925_v62, %v7447_v63  ;;  %v2276_v52 = vmul.f32 %v2272_v51, %v7680_v56  ;;  %v2220_v42 = vadd.f32 %v2216_v32, %v2208_v59  ;;  %v2273_v2 = vmul.f32 0.8333333, %v1921_v29  ;;  %v9435_v32 = vld [vmem:[#allocation32_spill] sm:$0xff] }
 0x278   :  { %v2047_v34 = vmul.f32 1.25, %v7519_v45  ;;  %v2269_v48 = vmul.f32 %v2265_v18, %v7412_v16  ;;  %v2055_v47 = vmul.f32 1.25, %v7555_v35  ;;  %v2235_v31 = vmul.f32 0.8333333, %v7563_v3  ;;  %v9433_v16 = vld [vmem:[#allocation16_spill] sm:$0xff]  ;;  %v9434_v3 = vld [vmem:[#allocation23_spill] sm:$0xff] }
 0x279   :  { %v7691_v12 = vadd.f32 %v1929_v37, %v1917_v9  ;;  %v2280_v6 = vadd.f32 %v2276_v52, %v2268_v4  ;;  %v2045_v5 = vmul.f32 1.25, %v7338_v8  ;;  %v2053_v43 = vmul.f32 1.25, %v9432_v39 }
 0x27a   :  { %v2051_v46 = vmul.f32 %v2047_v34, %v7540_v28  ;;  %5887 = vmatmul.msk.f32.vlgmr.msra.gmra.mxu3 %vm186_vm2, %v2242_v1  ;;  %v2059_v29 = vmul.f32 %v2055_v47, %v7581_v49  ;;  %v2227_v59 = vmul.f32 0.8333333, %v7519_v45  ;;  %v2205_v62 = vmul.f32 0.8333333, %v9433_v16  ;;  %v7711_v1 = vpop.f32.mrf.mxu1  ;;  %v7719_v52 = vpop.f32.mrf.mxu3 }
 0x27b   :  { %v2117_v51 = vmul.f32 %v2113_v7, %v7691_v12  ;;  %5893 = vmatmul.msk.f32.vlgmr.msrb.gmra.mxu1 %vm186_vm2, %v2280_v6  ;;  %v2049_v4 = vmul.f32 %v2045_v5, %v9434_v3  ;;  %v2057_v28 = vmul.f32 %v2053_v43, %v9435_v32  ;;  %v2213_v18 = vmul.f32 0.8333333, %v9432_v39  ;;  %9437 = vst [vmem:[#allocation12_spill] sm:$0xff] %v7711_v1  ;;  %v7721_v34 = vpop.f32.mrf.mxu2  ;;  %v9440_v39 = vld [vmem:[#allocation30_spill] sm:$0xff] }
 0x27c   :  { %v7709_v9 = vadd.f32 -1.0, %v7537_v0  ;;  %v7715_v49 = vadd.f32 %v2059_v29, %v2051_v46  ;;  %v2239_v45 = vmul.f32 %v2235_v31, %v7604_v60  ;;  %v1922_v7 = vsub.f32 1.8, %v7537_v0  ;;  %9438 = vst [vmem:[#allocation26_spill] sm:$0xff] %v7719_v52  ;;  %v9441_v29 = vld [vmem:[#allocation31_spill] sm:$0xff]  ;;  %v9442_v32 = vld [vmem:[#allocation10_spill] sm:$0xff] }
 0x27d   :  { %v7713_v37 = vadd.f32 %v2117_v51, %v2109_v19  ;;  %9439 = vst [vmem:[#allocation15_spill] sm:$0xff] %v7721_v34  ;;  %v7726_v47 = vsel %vm1655_vm10, 1.0, %v9323_v15  ;;  %v7728_v6 = vadd.f32 %v2057_v28, %v2049_v4  ;;  %v2106_v5 = vmul.f32 1.25, %v7467_v38  ;;  %v9445_v34 = vld [vmem:[#allocation17_spill] sm:$0xff] }
 0x27e   :  { %9436 = vst [vmem:[#allocation18_spill] sm:$0xff] %v7709_v9  ;;  %v1914_v19 = vmul.f32 2.5, %v7709_v9  ;;  %5881 = vmatmul.msk.f32.vlgmr.msra.gmra.mxu2 %vm186_vm2, %v2220_v42  ;;  %v2231_v60 = vmul.f32 %v2227_v59, %v7715_v49  ;;  %v1926_v31 = vmul.f32 2.5, %v1922_v7  ;;  %v2209_v43 = vmul.f32 %v2205_v62, %v9440_v39  ;;  %v9443_v42 = vld [vmem:[#allocation8_spill] sm:$0xff]  ;;  %v9446_v38 = vld [vmem:[#allocation25_spill] sm:$0xff] }
 0x27f   :  { %v2277_v46 = vmul.f32 %v2273_v2, %v7713_v37  ;;  %v2217_v51 = vmul.f32 %v2213_v18, %v7728_v6  ;;  %v2114_v1 = vmul.f32 1.25, %v1922_v7  ;;  %v7741_v52 = vsub.f32 %v9443_v42, %v7726_v47  ;;  %v9444_v2 = vld [vmem:[#allocation9_spill] sm:$0xff]  ;;  %v9447_v18 = vld [vmem:[#allocation34_spill] sm:$0xff] }
 0x280   :  { %v1918_v16 = vmul.f32 %v1914_v19, %v9441_v29  ;;  %v2243_v4 = vadd.f32 %v2239_v45, %v2231_v60  ;;  %v1930_v28 = vmul.f32 %v1926_v31, %v9442_v32  ;;  %v2266_v59 = vmul.f32 0.8333333, %v9444_v2  ;;  %v9448_v31 = vld [vmem:[#allocation29_spill] sm:$0xff] }
 0x281   :  { %v2281_v3 = vadd.f32 %v2277_v46, %v2269_v48  ;;  %v2206_v54 = vmul.f32 0.8333333, %v9445_v34  ;;  %v2214_v9 = vmul.f32 0.8333333, %v9446_v38  ;;  %v2110_v48 = vmul.f32 %v2106_v5, %v9447_v18  ;;  %v9449_v42 = vld [vmem:[#allocation13_spill] sm:$0xff] }
 0x282   :  { %5888 = vmatmul.msk.f32.gmra.mxu3 %vm186_vm2, %v2243_v4  ;;  %v7747_v62 = vadd.f32 %v1930_v28, %v1918_v16  ;;  %v7751_v45 = vadd.f32 -1.0, %v7649_v41  ;;  %v1923_v19 = vsub.f32 1.8, %v7649_v41  ;;  %v2221_v46 = vadd.f32 %v2217_v51, %v2209_v43  ;;  %v7760_v4 = vpop.f32.mrf.mxu3  ;;  %v7765_v43 = vpop.f32.mrf.mxu1  ;;  %v2690_v51 = vld [vmem:[#allocation4 + $0x110] sm:$0xff] }
 0x283   :  { %5894 = vmatmul.msk.f32.gmra.mxu1 %vm186_vm2, %v2281_v3  ;;  %v2274_v60 = vmul.f32 0.8333333, %v1922_v7  ;;  %v2210_v39 = vmul.f32 %v2206_v54, %v9448_v31  ;;  %v2218_v34 = vmul.f32 %v2214_v9, %v7641_v36  ;;  %v2107_v5 = vmul.f32 1.25, %v7566_v61  ;;  %v7762_v28 = vpop.f32.mrf.mxu2  ;;  %v2691_v7 = vld [vmem:[#allocation4 + $0x118] sm:$0xff] }
 0x284   :  { %v2118_v38 = vmul.f32 %v2114_v1, %v7747_v62  ;;  %v1915_v29 = vmul.f32 2.5, %v7751_v45  ;;  %v1927_v16 = vmul.f32 2.5, %v1923_v19  ;;  %v2270_v2 = vmul.f32 %v2266_v59, %v9449_v42  ;;  %2716 = vmatpush.msra.mxu2 %v2691_v7 }
 0x285   :  { %v2222_v3 = vadd.f32 %v2218_v34, %v2210_v39  ;;  %v2115_v1 = vmul.f32 1.25, %v1923_v19  ;;  %v2111_v59 = vmul.f32 %v2107_v5, %v7592_v57  ;;  %v2689_v39 = vld [vmem:[#allocation4 + $0x108] sm:$0xff]  ;;  %v2267_v34 = vmul.f32 0.8333333, %v7558_v11 }
 0x286   :  { %5882 = vmatmul.msk.f32.gmra.mxu2 %vm186_vm2, %v2221_v46  ;;  %v7768_v54 = vadd.f32 %v2118_v38, %v2110_v48  ;;  %v1919_v36 = vmul.f32 %v1915_v29, %v7552_v17  ;;  %v1931_v9 = vmul.f32 %v1927_v16, %v7741_v52  ;;  %v2275_v17 = vmul.f32 0.8333333, %v1923_v19  ;;  %v2688_v38 = vld [vmem:[#allocation4 + $0x100] sm:$0xff] }
 0x287   :  { %2717 = vmatpush.msra.mxu2 %v2690_v51  ;;  %vm1668_vm11 = vcmp.ge.f32.partialorder %v7613_v53, 2.2  ;;  %v2215_v57 = vmul.f32 0.8333333, %v7555_v35  ;;  %v2271_v42 = vmul.f32 %v2267_v34, %v7611_v21  ;;  %vm1669_vm12 = vcmp.ge.f32.partialorder %v7663_v55, 2.2 }
 0x288   :  { %v2278_v18 = vmul.f32 %v2274_v60, %v7768_v54  ;;  %v7773_v31 = vadd.f32 %v1931_v9, %v1919_v36  ;;  %v9450_v60 = vld [vmem:[#allocation11_spill] sm:$0xff]  ;;  %v5861_v36 = vadd.f32 -1.4, %v7613_v53  ;;  %v7794_v9 = vsub.f32 2.2, %v7613_v53  ;;  %v9451_v34 = vld [vmem:[#allocation24_spill] sm:$0xff] }
 0x289   :  { %2718 = vmatpush.msra.mxu2 %v2689_v39  ;;  %v2207_v16 = vmul.f32 0.8333333, %v9450_v60  ;;  %v2219_v7 = vmul.f32 %v2215_v57, %v7715_v49  ;;  %v1949_v51 = vsub.f32 2.2, %v7663_v55  ;;  %v5822_v53 = vsel %vm1669_vm12, 1.0, %v9323_v15 }
 0x28a   :  { %v2282_v48 = vadd.f32 %v2278_v18, %v2270_v2  ;;  %v2119_v46 = vmul.f32 %v2115_v1, %v7773_v31  ;;  %v7784_v5 = vpop.f32.mrf.mxu3  ;;  %v5821_v2 = vsel %vm1668_vm11, 1.0, %v9323_v15  ;;  %v7796_v1 = vpop.f32.mrf.mxu1  ;;  %v1952_v39 = vmul.f32 2.5, %v7794_v9 }
 0x28b   :  { %v7786_v11 = vpop.f32.mrf.mxu2  ;;  %2719 = vmatpush.msra.mxu2 %v2688_v38  ;;  %v2211_v35 = vmul.f32 %v2207_v16, %v7560_v25  ;;  %v1680_v21 = vsub.f32 %v7618_v24, %v5821_v2  ;;  %v1953_v25 = vmul.f32 2.5, %v1949_v51  ;;  %v2125_v49 = vmul.f32 1.25, %v7666_v40  ;;  %v9452_v38 = vld [vmem:[#allocation20_spill] sm:$0xff] }
 0x28c   :  { %5895 = vmatmul.msk.f32.gmra.mxu1 %vm186_vm2, %v2282_v48  ;;  %v7780_v29 = vadd.f32 %v2119_v46, %v2111_v59  ;;  %v1940_v59 = vmul.f32 2.5, %v5861_v36  ;;  %v1681_v48 = vsub.f32 %v9451_v34, %v5822_v53  ;;  %v2232_v60 = vmul.f32 0.8333333, %v9452_v38  ;;  %v9455_v38 = vld [vmem:[#allocation35_spill] sm:$0xff] }
 0x28d   :  { %v2223_v24 = vadd.f32 %v2219_v7, %v2211_v35  ;;  %v1956_v40 = vmul.f32 %v1952_v39, %v1680_v21  ;;  %v2129_v35 = vmul.f32 %v2125_v49, %v7691_v12  ;;  %v1107_v7 = vadd.f32 %v7588_v23, %v7590_v30  ;;  %v9454_v30 = vld [vmem:[#allocation27_spill] sm:$0xff] }
 0x28e   :  { %5883 = vmatmul.msk.f32.gmra.mxu2 %vm186_vm2, %v2222_v3  ;;  %v2279_v19 = vmul.f32 %v2275_v17, %v7780_v29  ;;  %v5862_v3 = vadd.f32 -1.4, %v7663_v55  ;;  %v2224_v17 = vmul.f32 0.8333333, %v9425_v14  ;;  %v1944_v2 = vmul.f32 %v1940_v59, %v7629_v33 }
 0x28f   :  { %v2285_v14 = vmul.f32 0.8333333, %v7382_v10  ;;  %v2124_v33 = vmul.f32 1.25, %v7624_v27  ;;  %v2132_v12 = vmul.f32 1.25, %v7794_v9  ;;  %v2225_v23 = vmul.f32 0.8333333, %v7338_v8 }
 0x290   :  { %v2283_v18 = vadd.f32 %v2279_v19, %v2271_v42  ;;  %v1941_v46 = vmul.f32 2.5, %v5862_v3  ;;  %v1957_v42 = vmul.f32 %v1953_v25, %v1681_v48  ;;  %v2133_v19 = vmul.f32 1.25, %v1949_v51 }
 0x291   :  { %v2228_v3 = vmul.f32 %v2224_v17, %v7670_v22  ;;  %v2293_v48 = vmul.f32 0.8333333, %v1949_v51  ;;  %v1960_v21 = vadd.f32 %v1956_v40, %v1944_v2  ;;  %v2289_v10 = vmul.f32 %v2285_v14, %v7713_v37  ;;  %v9456_v40 = vld [vmem:[#allocation36_spill] sm:$0xff] }
 0x292   :  { %v7811_v55 = vpop.f32.mrf.mxu3  ;;  %v1945_v57 = vmul.f32 %v1941_v46, %v7447_v63  ;;  %v7824_v63 = vpop.f32.mrf.mxu1  ;;  %v1164_v46 = vadd.f32 %v7762_v28, %v1107_v7  ;;  %v2233_v22 = vmul.f32 0.8333333, %v9454_v30  ;;  %v1110_v28 = vadd.f32 %v7634_v50, %v7636_v58 }
 0x293   :  { %v7813_v16 = vpop.f32.mrf.mxu2  ;;  %vm1670_vm13 = vcmp.ge.f32.partialorder %v7537_v0, 2.2  ;;  %v2128_v37 = vmul.f32 %v2124_v33, %v7654_v26  ;;  %v2229_v17 = vmul.f32 %v2225_v23, %v7728_v6  ;;  %v2292_v26 = vmul.f32 0.8333333, %v7794_v9  ;;  %v9457_v6 = vld [vmem:[#allocation14_spill] sm:$0xff] }
 0x294   :  { %5896 = vmatmul.msk.f32.gmra.mxu1 %vm186_vm2, %v2283_v18  ;;  %v1961_v36 = vadd.f32 %v1957_v42, %v1945_v57  ;;  %v9453_v18 = vld [vmem:[#allocation22_spill] sm:$0xff]  ;;  %v1214_v27 = vadd.f32 %v7760_v4, %v1164_v46  ;;  %v5863_v57 = vadd.f32 -1.4, %v7537_v0  ;;  %v1950_v42 = vsub.f32 2.2, %v7537_v0  ;;  %v1402_v46 = vpop.f32.mrf.mxu0 }
 0x295   :  { %v2236_v53 = vmul.f32 %v2232_v60, %v9453_v18  ;;  %v2237_v60 = vmul.f32 %v2233_v22, %v9455_v38  ;;  %v5823_v50 = vsel %vm1670_vm13, 1.0, %v9323_v15  ;;  %v1165_v58 = vadd.f32 %v7786_v11, %v1110_v28  ;;  %v9459_v22 = vld [vmem:[#allocation37_spill] sm:$0xff] }
 0x296   :  { %5884 = vmatmul.msk.f32.gmra.mxu2 %vm186_vm2, %v2223_v24  ;;  %v2137_v34 = vmul.f32 %v2133_v19, %v1961_v36  ;;  %v2136_v24 = vmul.f32 %v2132_v12, %v1960_v21  ;;  %v2284_v4 = vmul.f32 0.8333333, %v7301_v44  ;;  %v1264_v36 = vadd.f32 %v9456_v40, %v1214_v27  ;;  %v9462_v40 = vld [vmem:[#allocation33_spill] sm:$0xff] }
 0x297   :  { %v2240_v39 = vadd.f32 %v2236_v53, %v2228_v3  ;;  %v1682_v14 = vsub.f32 %v9457_v6, %v5823_v50  ;;  %v1942_v7 = vmul.f32 2.5, %v5863_v57  ;;  %v1954_v3 = vmul.f32 2.5, %v1950_v42 }
 0x298   :  { %v2141_v59 = vadd.f32 %v2137_v34, %v2129_v35  ;;  %v2140_v19 = vadd.f32 %v2136_v24, %v2128_v37  ;;  %v2241_v35 = vadd.f32 %v2237_v60, %v2229_v17  ;;  %v1113_v34 = vadd.f32 %v7676_v13, %v7678_v20 }
 0x299   :  { %vm1671_vm14 = vcmp.ge.f32.partialorder %v7649_v41, 2.2  ;;  %v1215_v44 = vadd.f32 %v7784_v5, %v1165_v58  ;;  %v2288_v11 = vmul.f32 %v2284_v4, %v7680_v56  ;;  %v1946_v33 = vmul.f32 %v1942_v7, %v9442_v32  ;;  %v9461_v4 = vld [vmem:[#allocation26_spill] sm:$0xff]  ;;  %v9463_v7 = vld [vmem:[#allocation7_spill] sm:$0xff] }
 0x29a   :  { %v7832_v25 = vpop.f32.mrf.mxu3  ;;  %v2297_v51 = vmul.f32 %v2293_v48, %v2141_v59  ;;  %v1452_v2 = vpop.f32.mrf.mxu1  ;;  %v2296_v9 = vmul.f32 %v2292_v26, %v2140_v19  ;;  %v1958_v21 = vmul.f32 %v1954_v3, %v1682_v14  ;;  %v5864_v12 = vadd.f32 -1.4, %v7649_v41 }
 0x29b   :  { %v7834_v49 = vpop.f32.mrf.mxu2  ;;  %v1951_v59 = vsub.f32 2.2, %v7649_v41  ;;  %v5824_v13 = vsel %vm1671_vm14, 1.0, %v9323_v15  ;;  %v1166_v20 = vadd.f32 %v7813_v16, %v1113_v34  ;;  %v2134_v30 = vmul.f32 1.25, %v1950_v42 }
 0x29c   :  { %v7842_v8 = vadd.f32 %v2297_v51, %v2289_v10  ;;  %v2300_v5 = vadd.f32 %v2296_v9, %v2288_v11  ;;  %v1265_v51 = vadd.f32 %v9459_v22, %v1215_v44  ;;  %v1962_v28 = vadd.f32 %v1958_v21, %v1946_v33  ;;  %v9464_v33 = vld [vmem:[#allocation12_spill] sm:$0xff] }
 0x29d   :  { %v1683_v32 = vsub.f32 %v7726_v47, %v5824_v13  ;;  %v1943_v27 = vmul.f32 2.5, %v5864_v12  ;;  %v1955_v37 = vmul.f32 2.5, %v1951_v59  ;;  %v1216_v38 = vadd.f32 %v7811_v55, %v1166_v20  ;;  %v9460_v47 = vld [vmem:[#allocation15_spill] sm:$0xff] }
 0x29e   :  { %5885 = vmatmul.msk.f32.vlgmr.msrb.gmra.mxu2 %vm186_vm2, %v2240_v39  ;;  %v9458_v39 = vld [vmem:[#allocation18_spill] sm:$0xff]  ;;  %v2138_v50 = vmul.f32 %v2134_v30, %v1962_v28  ;;  %v1116_v26 = vadd.f32 %v9461_v4, %v9460_v47  ;;  %v2294_v6 = vmul.f32 0.8333333, %v1950_v42  ;;  %v2287_v13 = vmul.f32 0.8333333, %v7566_v61  ;;  %v2427_v28 = vpop.f32.mrf.mxu0 }
 0x29f   :  { %v2126_v23 = vmul.f32 1.25, %v9458_v39  ;;  %v1947_v58 = vmul.f32 %v1943_v27, %v7741_v52  ;;  %v1959_v19 = vmul.f32 %v1955_v37, %v1683_v32  ;;  %v1266_v55 = vadd.f32 %v9463_v7, %v1216_v38 }
 0x2a1   :  { %v2130_v57 = vmul.f32 %v2126_v23, %v7747_v62  ;;  %v2127_v62 = vmul.f32 1.25, %v7751_v45 }
 0x2a2   :  { %v1352_v18 = vpop.f32.mrf.mxu3  ;;  %v1455_v16 = vpop.f32.mrf.mxu1 }
 0x2a3   :  { %v1302_v53 = vpop.f32.mrf.mxu2  ;;  %v2142_v3 = vadd.f32 %v2138_v50, %v2130_v57  ;;  %v2131_v9 = vmul.f32 %v2127_v62, %v7773_v31  ;;  %v2291_v31 = vmul.f32 %v2287_v13, %v7780_v29 }
 0x2a4   :  { %v1314_v0 = vadd.f32 %v1302_v53, %v1264_v36  ;;  %v2286_v36 = vmul.f32 0.8333333, %v9462_v40  ;;  %v2135_v53 = vmul.f32 1.25, %v1951_v59 }
 0x2a5   :  { %v2298_v44 = vmul.f32 %v2294_v6, %v2142_v3 }
 0x2a6   :  { %5886 = vmatmul.msk.f32.gmra.mxu2 %vm186_vm2, %v2241_v35  ;;  %v1364_v48 = vadd.f32 %v1352_v18, %v1314_v0  ;;  %v1167_v35 = vadd.f32 %v7834_v49, %v1116_v26  ;;  %v1963_v18 = vadd.f32 %v1959_v19, %v1947_v58  ;;  %v2290_v42 = vmul.f32 %v2286_v36, %v7768_v54  ;;  %v2430_v37 = vpop.f32.mrf.mxu0 }
 0x2a8   :  { %v1414_v10 = vadd.f32 %v1402_v46, %v1364_v48  ;;  %v2139_v48 = vmul.f32 %v2135_v53, %v1963_v18  ;;  %v2302_v12 = vadd.f32 %v2298_v44, %v2290_v42 }
 0x2aa   :  { %v1464_v56 = vadd.f32 %v1452_v2, %v1414_v10  ;;  %v1355_v24 = vpop.f32.mrf.mxu3  ;;  %v1458_v11 = vpop.f32.mrf.mxu1  ;;  %v2143_v10 = vadd.f32 %v2139_v48, %v2131_v9 }
 0x2ab   :  { %v1305_v17 = vpop.f32.mrf.mxu2 }
 0x2ac   :  { %1468 = vst.msk [vmem:[#allocation3] sm:$0xff] %vm186_vm2, %v1464_v56  ;;  %v1315_v41 = vadd.f32 %v1305_v17, %v1265_v51 }
 0x2ae   :  { %5897 = vmatmul.msk.f32.vlgmr.msra.gmra.mxu2 %vm186_vm2, %v2300_v5  ;;  %v1365_v60 = vadd.f32 %v1355_v24, %v1315_v41  ;;  %v2433_v41 = vpop.f32.mrf.mxu0 }
 0x2b0   :  { %v1415_v2 = vadd.f32 %v7765_v43, %v1365_v60  ;;  %v1217_v43 = vadd.f32 %v7832_v25, %v1167_v35 }
 0x2b2   :  { %v1465_v14 = vadd.f32 %v1455_v16, %v1415_v2  ;;  %v1358_v52 = vpop.f32.mrf.mxu3  ;;  %v1267_v21 = vadd.f32 %v9464_v33, %v1217_v43  ;;  %v1461_v5 = vpop.f32.mrf.mxu1 }
 0x2b3   :  { %v1308_v0 = vpop.f32.mrf.mxu2 }
 0x2b4   :  { %1469 = vst.msk [vmem:[#allocation3 + $0x8] sm:$0xff] %vm186_vm2, %v1465_v14  ;;  %v1316_v34 = vadd.f32 %v1308_v0, %v1266_v55 }
 0x2b6   :  { %5898 = vmatmul.msk.f32.gmra.mxu2 %vm186_vm2, %v7842_v8  ;;  %v1366_v49 = vadd.f32 %v1358_v52, %v1316_v34  ;;  %v2295_v8 = vmul.f32 0.8333333, %v1951_v59  ;;  %v2436_v57 = vpop.f32.mrf.mxu0 }
 0x2b8   :  { %v1416_v45 = vadd.f32 %v7796_v1, %v1366_v49  ;;  %v2299_v23 = vmul.f32 %v2295_v8, %v2143_v10 }
 0x2ba   :  { %v1466_v46 = vadd.f32 %v1458_v11, %v1416_v45  ;;  %v1361_v54 = vpop.f32.mrf.mxu3  ;;  %v2303_v56 = vadd.f32 %v2299_v23, %v2291_v31  ;;  %v2476_v32 = vpop.f32.mrf.mxu1 }
 0x2bb   :  { %v1311_v20 = vpop.f32.mrf.mxu2 }
 0x2bc   :  { %1470 = vst.msk [vmem:[#allocation3 + $0x10] sm:$0xff] %vm186_vm2, %v1466_v46  ;;  %v1317_v25 = vadd.f32 %v1311_v20, %v1267_v21 }
 0x2be   :  { %5899 = vmatmul.msk.f32.gmra.mxu2 %vm186_vm2, %v2302_v12  ;;  %v1367_v39 = vadd.f32 %v1361_v54, %v1317_v25  ;;  %v2623_v40 = vpop.f32.mrf.mxu0 }
 0x2c0   :  { %v1417_v1 = vadd.f32 %v7824_v63, %v1367_v39 }
 0x2c2   :  { %v1467_v30 = vadd.f32 %v1461_v5, %v1417_v1  ;;  %v2479_v29 = vpop.f32.mrf.mxu1  ;;  %v2382_v17 = vpop.f32.mrf.mxu3 }
 0x2c3   :  { %v2341_v61 = vpop.f32.mrf.mxu2 }
 0x2c4   :  { %1471 = vst.msk [vmem:[#allocation3 + $0x18] sm:$0xff] %vm186_vm2, %v1467_v30  ;;  %v2383_v50 = vadd.f32 %v2382_v17, %v2341_v61  ;;  %v2751_v17 = vld [vmem:[#allocation3 + $0x10] sm:$0xff] }
 0x2c6   :  { %5900 = vmatmul.msk.f32.gmra.mxu2 %vm186_vm2, %v2303_v56  ;;  %v2439_v19 = vadd.f32 %v2427_v28, %v2383_v50  ;;  %v2626_v0 = vpop.f32.mrf.mxu0  ;;  %v2745_v50 = vld [vmem:[%s9158_s1 + $0x20] sm:$0xff] }
 0x2c8   :  { %v2488_v2 = vadd.f32 %v2476_v32, %v2439_v19  ;;  %v2747_v19 = vld [vmem:[%s9158_s1 + $0x30] sm:$0xff] }
 0x2ca   :  { %v2482_v16 = vpop.f32.mrf.mxu1  ;;  %v2385_v38 = vpop.f32.mrf.mxu3 }
 0x2cb   :  { %v2344_v59 = vpop.f32.mrf.mxu2 }
 0x2cc   :  { %v2386_v26 = vadd.f32 %v2385_v38, %v2344_v59  ;;  %v2742_v38 = vld [vmem:[%s9158_s1 + $0x8] sm:$0xff] }
 0x2ce   :  { %v2440_v35 = vadd.f32 %v2430_v37, %v2386_v26  ;;  %v3671_v26 = vld [vmem:[#allocation4 + $0x158] sm:$0xff] }
 0x2cf   :  { %3696 = vmatpush.msra.mxu0 %v3671_v26 }
 0x2d0   :  { %v2489_v18 = vadd.f32 %v2479_v29, %v2440_v35  ;;  %v2752_v29 = vld [vmem:[#allocation3 + $0x18] sm:$0xff]  ;;  %v3665_v35 = vld [vmem:[#allocation4 + $0x130] sm:$0xff] }
 0x2d3   :  { %v2629_v10 = vpop.f32.mrf.mxu0 }
 0x2dd   :  { %v2388_v47 = vpop.f32.mrf.mxu3 }
 0x2e0   :  { %v2347_v22 = vpop.f32.mrf.mxu2  ;;  %v2485_v58 = vpop.f32.mrf.mxu1 }
 0x2e1   :  { %v2389_v55 = vadd.f32 %v2388_v47, %v2347_v22  ;;  %v2748_v47 = vld [vmem:[%s9158_s1 + $0x38] sm:$0xff] }
 0x2e3   :  { %v2441_v53 = vadd.f32 %v2433_v41, %v2389_v55  ;;  %v2750_v41 = vld [vmem:[#allocation3 + $0x8] sm:$0xff] }
 0x2e4   :  { %v3669_v55 = vld [vmem:[#allocation4 + $0x148] sm:$0xff] }
 0x2e5   :  { %v2490_v44 = vadd.f32 %v2482_v16, %v2441_v53  ;;  %v2749_v16 = vld [vmem:[#allocation3] sm:$0xff] }
 0x2eb   :  { %v2632_v56 = vpop.f32.mrf.mxu0 }
 0x2f5   :  { %v2391_v3 = vpop.f32.mrf.mxu3 }
 0x2f8   :  { %v2672_v14 = vpop.f32.mrf.mxu1 }
 0x2f9   :  { %v2350_v51 = vpop.f32.mrf.mxu2 }
 0x2fa   :  { %v2392_v42 = vadd.f32 %v2391_v3, %v2350_v51  ;;  %v3756_v3 = vld [vmem:[#allocation4 + $0x168] sm:$0xff] }
 0x2fc   :  { %v2442_v33 = vadd.f32 %v2436_v57, %v2392_v42  ;;  %v2744_v57 = vld [vmem:[%s9158_s1 + $0x18] sm:$0xff] }
 0x2fd   :  { %v2580_v46 = vpop.f32.mrf.mxu3 }
 0x2fe   :  { %v2491_v8 = vadd.f32 %v2485_v58, %v2442_v33  ;;  %v2746_v58 = vld [vmem:[%s9158_s1 + $0x28] sm:$0xff] }
 0x300   :  { %v2675_v9 = vpop.f32.mrf.mxu1 }
 0x301   :  { %v2525_v27 = vpop.f32.mrf.mxu2 }
 0x302   :  { %v2537_v36 = vadd.f32 %v2525_v27, %v2488_v2  ;;  %v3666_v2 = vld [vmem:[#allocation4 + $0x138] sm:$0xff] }
 0x303   :  { %3737 = vmatpush.msra.mxu1 %v3666_v2 }
 0x305   :  { %v2583_v31 = vpop.f32.mrf.mxu3  ;;  %3738 = vmatpush.msra.mxu1 %v3665_v35 }
 0x309   :  { %v2528_v24 = vpop.f32.mrf.mxu2  ;;  %v2678_v39 = vpop.f32.mrf.mxu1 }
 0x30a   :  { %v2538_v52 = vadd.f32 %v2528_v24, %v2489_v18  ;;  %v3956_v18 = vld [vmem:[#allocation4 + $0x1e8] sm:$0xff] }
 0x311   :  { %v2531_v63 = vpop.f32.mrf.mxu2  ;;  %v2681_v59 = vpop.f32.mrf.mxu1 }
 0x312   :  { %v2539_v48 = vadd.f32 %v2531_v63, %v2490_v44  ;;  %v2741_v63 = vld [vmem:[%s9158_s1] sm:$0xff] }
 0x314   :  { %v2588_v21 = vadd.f32 %v2580_v46, %v2539_v48 }
 0x316   :  { %v2637_v54 = vadd.f32 %v2629_v10, %v2588_v21 }
 0x318   :  { %v2686_v1 = vadd.f32 %v2678_v39, %v2637_v54 }
 0x319   :  { %v2534_v60 = vpop.f32.mrf.mxu2 }
 0x31a   :  { %v2540_v25 = vadd.f32 %v2534_v60, %v2491_v8  ;;  %v2743_v60 = vld [vmem:[%s9158_s1 + $0x10] sm:$0xff] }
 0x31c   :  { %v2589_v23 = vadd.f32 %v2583_v31, %v2540_v25 }
 0x31e   :  { %v2638_v61 = vadd.f32 %v2632_v56, %v2589_v23 }
 0x320   :  { %v2687_v22 = vadd.f32 %v2681_v59, %v2638_v61 }
 0x321   :  { %v2574_v4 = vpop.f32.mrf.mxu2 }
 0x322   :  { %v2586_v6 = vadd.f32 %v2574_v4, %v2537_v36  ;;  %v3758_v4 = vld [vmem:[#allocation4 + $0x178] sm:$0xff] }
 0x323   :  { %3783 = vmatpush.msrb.mxu2 %v3758_v4  ;;  %v3958_v36 = vld [vmem:[#allocation4 + $0x1f8] sm:$0xff] }
 0x324   :  { %v2635_v62 = vadd.f32 %v2623_v40, %v2586_v6  ;;  %v3757_v40 = vld [vmem:[#allocation4 + $0x170] sm:$0xff] }
 0x325   :  { %3784 = vmatpush.msrb.mxu2 %v3757_v40  ;;  %v3670_v6 = vld [vmem:[#allocation4 + $0x150] sm:$0xff] }
 0x326   :  { %v2684_v43 = vadd.f32 %v2672_v14, %v2635_v62  ;;  %v3957_v14 = vld [vmem:[#allocation4 + $0x1f0] sm:$0xff]  ;;  %3697 = vmatpush.msra.mxu0 %v3670_v6  ;;  %v3663_v62 = vld [vmem:[#allocation4 + $0x120] sm:$0xff] }
 0x327   :  { %3785 = vmatpush.msrb.mxu2 %v3756_v3 }
 0x328   :  { %3698 = vmatpush.msra.mxu0 %v3669_v55 }
 0x329   :  { %v2577_v7 = vpop.f32.mrf.mxu2 }
 0x32a   :  { %v2587_v34 = vadd.f32 %v2577_v7, %v2538_v52  ;;  %v3664_v7 = vld [vmem:[#allocation4 + $0x128] sm:$0xff]  ;;  %v3668_v52 = vld [vmem:[#allocation4 + $0x140] sm:$0xff] }
 0x32b   :  { %3739 = vmatpush.msra.mxu1 %v3664_v7  ;;  %3699 = vmatpush.msra.mxu0 %v3668_v52 }
 0x32c   :  { %v2636_v45 = vadd.f32 %v2626_v0, %v2587_v34  ;;  %v3755_v0 = vld [vmem:[#allocation4 + $0x160] sm:$0xff] }
 0x32d   :  { %3740 = vmatpush.msra.mxu1 %v3663_v62  ;;  %v3955_v34 = vld [vmem:[#allocation4 + $0x1e0] sm:$0xff]  ;;  %3786 = vmatpush.msrb.mxu2 %v3755_v0 }
 0x32e   :  { %v2685_v12 = vadd.f32 %v2675_v9, %v2636_v45 }
 0x331   :  { %v2721_v49 = vpop.f32.mrf.mxu2 }
 0x332   :  { %v2733_v11 = vadd.f32 %v2721_v49, %v2684_v43 }
 0x334   :  { %2737 = vst.msk [vmem:[#allocation3 + $0x20] sm:$0xff] %vm186_vm2, %v2733_v11 }
 0x339   :  { %v2724_v13 = vpop.f32.mrf.mxu2 }
 0x33a   :  { %v2734_v20 = vadd.f32 %v2724_v13, %v2685_v12 }
 0x33b   :  { %v2753_v24 = vld [vmem:[#allocation3 + $0x20] sm:$0xff] }
 0x33c   :  { %2738 = vst.msk [vmem:[#allocation3 + $0x28] sm:$0xff] %vm186_vm2, %v2734_v20 }
 0x341   :  { %v2727_v5 = vpop.f32.mrf.mxu2 }
 0x342   :  { %v2735_v30 = vadd.f32 %v2727_v5, %v2686_v1 }
 0x343   :  { %v2754_v37 = vld [vmem:[#allocation3 + $0x28] sm:$0xff] }
 0x344   :  { %2739 = vst.msk [vmem:[#allocation3 + $0x30] sm:$0xff] %vm186_vm2, %v2735_v30 }
 0x349   :  { %v2730_v51 = vpop.f32.mrf.mxu2 }
 0x34a   :  { %v2736_v28 = vadd.f32 %v2730_v51, %v2687_v22 }
 0x34b   :  { %v2755_v27 = vld [vmem:[#allocation3 + $0x30] sm:$0xff] }
 0x34c   :  { %2740 = vst.msk [vmem:[#allocation3 + $0x38] sm:$0xff] %vm186_vm2, %v2736_v28 }
 0x353   :  { %v2756_v32 = vld [vmem:[#allocation3 + $0x38] sm:$0xff] }
 0x354   :  { %2789 = vmatpush.msrb.mxu3 %v2756_v32 }
 0x356   :  { %2790 = vmatpush.msrb.mxu3 %v2755_v27 }
 0x358   :  { %2791 = vmatpush.msrb.mxu3 %v2754_v37 }
 0x35a   :  { %2792 = vmatpush.msrb.mxu3 %v2753_v24 }
 0x35c   :  { %2793 = vmatpush.msrb.mxu3 %v2752_v29 }
 0x35e   :  { %2794 = vmatpush.msrb.mxu3 %v2751_v17 }
 0x360   :  { %2795 = vmatpush.msrb.mxu3 %v2750_v41 }
 0x362   :  { %2796 = vmatpush.msrb.mxu3 %v2749_v16 }
 0x363   :  { %5901 = vmatmul.msk.f32.vlgmr.msrb.gmra.mxu3 %vm52_vm0, %v2741_v63 }
 0x364   :  { %3983 = vmatpush.msra.mxu3 %v3958_v36 }
 0x366   :  { %3984 = vmatpush.msra.mxu3 %v3957_v14 }
 0x368   :  { %3985 = vmatpush.msra.mxu3 %v3956_v18 }
 0x36a   :  { %3986 = vmatpush.msra.mxu3 %v3955_v34 }
 0x36b   :  { %5902 = vmatmul.msk.f32.gmra.mxu3 %vm52_vm0, %v2742_v38 }
 0x373   :  { %5903 = vmatmul.msk.f32.gmra.mxu3 %vm52_vm0, %v2743_v60 }
 0x37b   :  { %5904 = vmatmul.msk.f32.gmra.mxu3 %vm52_vm0, %v2744_v57 }
 0x383   :  { %5905 = vmatmul.msk.f32.gmra.mxu3 %vm52_vm0, %v2745_v50 }
 0x38b   :  { %5906 = vmatmul.msk.f32.gmra.mxu3 %vm52_vm0, %v2746_v58 }
 0x393   :  { %5907 = vmatmul.msk.f32.gmra.mxu3 %vm52_vm0, %v2747_v19 }
 0x39b   :  { %5908 = vmatmul.msk.f32.gmra.mxu3 %vm52_vm0, %v2748_v47 }
 0x3e6   :  { %v2798_v53 = vpop.f32.mrf.mxu3 }
 0x3e7   :  { %2822 = vst.msk [vmem:[#allocation2] sm:$0xff] %vm186_vm2, %v2798_v53 }
 0x3ee   :  { %v7932_v43 = vld [vmem:[#allocation2] sm:$0xff]  ;;  %v2801_v49 = vpop.f32.mrf.mxu3 }
 0x3ef   :  { %2823 = vst.msk [vmem:[#allocation2 + $0x8] sm:$0xff] %vm186_vm2, %v2801_v49  ;;  %v2834_v42 = vmul.f32 0.5, %v7932_v43  ;;  %vm2854_vm15 = vcmp.ge.f32.partialorder %v7932_v43, -2.2  ;;  %vm2866_vm1 = vcmp.ge.f32.partialorder %v7932_v43, -1.8 }
 0x3f0   :  { %v5909_v44 = vsel %vm2854_vm15, 1.0, %v9323_v15  ;;  %v5913_v11 = vsel %vm2866_vm1, 1.0, %v9323_v15  ;;  %vm2882_vm3 = vcmp.ge.f32.partialorder %v7932_v43, -1.4  ;;  %vm2898_vm4 = vcmp.ge.f32.partialorder %v7932_v43, -1.0 }
 0x3f1   :  { %6201 = vtanh.f32 %v2834_v42  ;;  %v5917_v9 = vsel %vm2882_vm3, 1.0, %v9323_v15  ;;  %v5921_v48 = vsel %vm2898_vm4, 1.0, %v9323_v15  ;;  %v2878_v45 = vsub.f32 %v5909_v44, %v5913_v11 }
 0x3f2   :  { %v2894_v46 = vsub.f32 %v5913_v11, %v5917_v9  ;;  %vm2914_vm5 = vcmp.ge.f32.partialorder %v7932_v43, -0.6  ;;  %vm2930_vm6 = vcmp.ge.f32.partialorder %v7932_v43, -0.2  ;;  %vm2946_vm7 = vcmp.ge.f32.partialorder %v7932_v43, 0.2 }
 0x3f3   :  { %v5925_v33 = vsel %vm2914_vm5, 1.0, %v9323_v15  ;;  %v5929_v21 = vsel %vm2930_vm6, 1.0, %v9323_v15  ;;  %v5957_v12 = vadd.f32 2.2, %v7932_v43  ;;  %v2910_v10 = vsub.f32 %v5917_v9, %v5921_v48 }
 0x3f4   :  { %v2926_v13 = vsub.f32 %v5921_v48, %v5925_v33  ;;  %v5933_v8 = vsel %vm2946_vm7, 1.0, %v9323_v15  ;;  %v3054_v20 = vsub.f32 -1.4, %v7932_v43  ;;  %v7952_v25 = vsub.f32 %v5925_v33, %v5929_v21 }
 0x3f5   :  { %v3046_v54 = vmul.f32 2.5, %v5957_v12  ;;  %v5961_v39 = vadd.f32 1.8, %v7932_v43  ;;  %v3082_v31 = vsub.f32 -1.0, %v7932_v43  ;;  %v7956_v1 = vsub.f32 %v5929_v21, %v5933_v8 }
 0x3f6   :  { %v2804_v23 = vpop.f32.mrf.mxu3  ;;  %v3058_v5 = vmul.f32 2.5, %v3054_v20  ;;  %v7959_v30 = vadd.f32 1.4, %v7932_v43  ;;  %v3110_v56 = vsub.f32 -0.6, %v7932_v43  ;;  %v7964_v28 = vadd.f32 1.0, %v7932_v43 }
 0x3f7   :  { %v6202_v61 = vpop.eup %6201  ;;  %2824 = vst.msk [vmem:[#allocation2 + $0x10] sm:$0xff] %vm186_vm2, %v2804_v23  ;;  %v3050_v59 = vmul.f32 %v3046_v54, %v2878_v45  ;;  %v3074_v22 = vmul.f32 2.5, %v5961_v39  ;;  %v3086_v51 = vmul.f32 2.5, %v3082_v31  ;;  %v3322_v63 = vmul.f32 1.25, %v5957_v12 }
 0x3f8   :  { %v2842_v32 = vadd.f32 1.0, %v6202_v61  ;;  %v3062_v27 = vmul.f32 %v3058_v5, %v2894_v46  ;;  %v3102_v37 = vmul.f32 2.5, %v7959_v30  ;;  %v3114_v24 = vmul.f32 2.5, %v3110_v56 }
 0x3f9   :  { %v3078_v29 = vmul.f32 %v3074_v22, %v2894_v46  ;;  %v3090_v17 = vmul.f32 %v3086_v51, %v2910_v10  ;;  %v3130_v41 = vmul.f32 2.5, %v7964_v28  ;;  %v3330_v19 = vmul.f32 1.25, %v3082_v31 }
 0x3fa   :  { %v2846_v16 = vmul.f32 0.5, %v2842_v32  ;;  %v3066_v38 = vadd.f32 %v3062_v27, %v3050_v59  ;;  %v3106_v60 = vmul.f32 %v3102_v37, %v2910_v10  ;;  %v3118_v57 = vmul.f32 %v3114_v24, %v2926_v13 }
 0x3fb   :  { %v3094_v50 = vadd.f32 %v3090_v17, %v3078_v29  ;;  %v3134_v58 = vmul.f32 %v3130_v41, %v2926_v13  ;;  %v3342_v47 = vmul.f32 1.25, %v5961_v39  ;;  %v3350_v40 = vmul.f32 1.25, %v3110_v56  ;;  %v8009_v17 = vld [vmem:[#allocation2 + $0x8] sm:$0xff] }
 0x3fc   :  { %v2850_v4 = vmul.f32 %v2846_v16, %v7932_v43  ;;  %v3122_v26 = vadd.f32 %v3118_v57, %v3106_v60  ;;  %v3326_v2 = vmul.f32 %v3322_v63, %v3066_v38  ;;  %v3362_v6 = vmul.f32 1.25, %v7959_v30 }
 0x3fd   :  { %v3334_v36 = vmul.f32 %v3330_v19, %v3094_v50  ;;  %v3346_v35 = vmul.f32 %v3342_v47, %v3094_v50  ;;  %v3502_v14 = vmul.f32 0.8333333, %v5957_v12  ;;  %v3510_v3 = vmul.f32 0.8333333, %v3110_v56 }
 0x3fe   :  { %v2807_v7 = vpop.f32.mrf.mxu3  ;;  %6001 = vmatmul.msk.f32.vlgmr.msra.gmra.mxu1 %vm186_vm2, %v2850_v4  ;;  %v3354_v55 = vmul.f32 %v3350_v40, %v3122_v26  ;;  %v3522_v18 = vmul.f32 0.8333333, %v5961_v39  ;;  %vm2978_vm8 = vcmp.ge.f32.partialorder %v7932_v43, 1.0  ;;  %v3366_v53 = vmul.f32 %v3362_v6, %v3122_v26 }
 0x3ff   :  { %2825 = vst.msk [vmem:[#allocation2 + $0x18] sm:$0xff] %vm186_vm2, %v2807_v7  ;;  %v3338_v62 = vadd.f32 %v3334_v36, %v3326_v2  ;;  %v3138_v52 = vsub.f32 -0.2, %v7932_v43  ;;  %vm2962_vm9 = vcmp.ge.f32.partialorder %v7932_v43, 0.6  ;;  %v5941_v49 = vsel %vm2978_vm8, 1.0, %v9323_v15 }
 0x400   :  { %v3358_v0 = vadd.f32 %v3354_v55, %v3346_v35  ;;  %v5937_v34 = vsel %vm2962_vm9, 1.0, %v9323_v15  ;;  %vm2994_vm10 = vcmp.ge.f32.partialorder %v7932_v43, 1.4  ;;  %v5977_v10 = vadd.f32 0.2, %v7932_v43 }
 0x401   :  { %v3506_v42 = vmul.f32 %v3502_v14, %v3338_v62  ;;  %v3142_v44 = vmul.f32 2.5, %v3138_v52  ;;  %v3370_v11 = vmul.f32 1.25, %v3138_v52  ;;  %v3530_v9 = vmul.f32 0.8333333, %v3138_v52 }
 0x402   :  { %v3514_v48 = vmul.f32 %v3510_v3, %v3358_v0  ;;  %v3526_v45 = vmul.f32 %v3522_v18, %v3358_v0  ;;  %v2974_v46 = vsub.f32 %v5933_v8, %v5937_v34  ;;  %v2990_v33 = vsub.f32 %v5937_v34, %v5941_v49 }
 0x403   :  { %v3146_v21 = vmul.f32 %v3142_v44, %v7952_v25  ;;  %v7980_v12 = vsel %vm2994_vm10, 1.0, %v9323_v15  ;;  %v7984_v13 = vsub.f32 0.6, %v7932_v43  ;;  %v7990_v39 = vadd.f32 -0.2, %v7932_v43 }
 0x404   :  { %9465 = vst [vmem:[#allocation21_spill] sm:$0xff] %v7980_v12  ;;  %v3518_v20 = vadd.f32 %v3514_v48, %v3506_v42  ;;  %v7987_v54 = vsub.f32 %v5941_v49, %v7980_v12  ;;  %v7993_v8 = vsub.f32 1.0, %v7932_v43  ;;  %v3186_v23 = vmul.f32 2.5, %v5977_v10  ;;  %v4942_v12 = vld [vmem:[#allocation4 + $0x130] sm:$0xff] }
 0x405   :  { %9467 = vst [vmem:[#allocation28_spill] sm:$0xff] %v7990_v39  ;;  %v7995_v31 = vadd.f32 %v3146_v21, %v3134_v58  ;;  %v3198_v5 = vmul.f32 2.5, %v7984_v13  ;;  %v7999_v56 = vadd.f32 -0.6, %v7932_v43  ;;  %v3214_v61 = vmul.f32 2.5, %v7990_v39 }
 0x406   :  { %9466 = vst [vmem:[#allocation19_spill] sm:$0xff] %v7987_v54  ;;  %5997 = vmatmul.msk.f32.vlgmr.msra.gmra.mxu0 %vm186_vm2, %v3518_v20  ;;  %v3226_v59 = vmul.f32 2.5, %v7993_v8  ;;  %v3250_v22 = vsub.f32 1.4, %v7932_v43  ;;  %v3422_v51 = vmul.f32 1.25, %v5977_v10  ;;  %v2810_v32 = vpop.f32.mrf.mxu3  ;;  %v3190_v37 = vmul.f32 %v3186_v23, %v7956_v1 }
 0x407   :  { %9468 = vst [vmem:[#allocation16_spill] sm:$0xff] %v7999_v56  ;;  %v3374_v27 = vmul.f32 %v3370_v11, %v7995_v31  ;;  %v3202_v24 = vmul.f32 %v3198_v5, %v2974_v46  ;;  %v3242_v29 = vmul.f32 2.5, %v7999_v56  ;;  %v3218_v41 = vmul.f32 %v3214_v61, %v2974_v46 }
 0x408   :  { %2826 = vst.msk [vmem:[#allocation2 + $0x20] sm:$0xff] %vm186_vm2, %v2810_v32  ;;  %v3230_v63 = vmul.f32 %v3226_v59, %v2990_v33  ;;  %v3254_v16 = vmul.f32 2.5, %v3250_v22  ;;  %v3430_v38 = vmul.f32 1.25, %v7993_v8  ;;  %v3442_v50 = vmul.f32 1.25, %v7990_v39 }
 0x409   :  { %v8012_v60 = vadd.f32 %v3374_v27, %v3366_v53  ;;  %v8014_v43 = vadd.f32 %v3202_v24, %v3190_v37  ;;  %v3246_v57 = vmul.f32 %v3242_v29, %v2990_v33  ;;  %v3450_v47 = vmul.f32 1.25, %v3250_v22 }
 0x40a   :  { %v3234_v58 = vadd.f32 %v3230_v63, %v3218_v41  ;;  %v3258_v19 = vmul.f32 %v3254_v16, %v7987_v54  ;;  %v3602_v4 = vmul.f32 0.8333333, %v5977_v10  ;;  %v3610_v40 = vmul.f32 0.8333333, %v3250_v22 }
 0x40b   :  { %v3534_v26 = vmul.f32 %v3530_v9, %v8012_v60  ;;  %v3426_v2 = vmul.f32 %v3422_v51, %v8014_v43  ;;  %v2835_v36 = vmul.f32 0.5, %v8009_v17  ;;  %vm2855_vm11 = vcmp.ge.f32.partialorder %v8009_v17, -2.2 }
 0x40c   :  { %v8021_v35 = vadd.f32 %v3258_v19, %v3246_v57  ;;  %v3434_v6 = vmul.f32 %v3430_v38, %v3234_v58  ;;  %v3446_v14 = vmul.f32 %v3442_v50, %v3234_v58  ;;  %v5910_v55 = vsel %vm2855_vm11, 1.0, %v9323_v15 }
 0x40d   :  { %v3538_v7 = vadd.f32 %v3534_v26, %v3526_v45  ;;  %6203 = vtanh.f32 %v2835_v36  ;;  %vm2867_vm12 = vcmp.ge.f32.partialorder %v8009_v17, -1.8  ;;  %vm2883_vm13 = vcmp.ge.f32.partialorder %v8009_v17, -1.4 }
 0x40e   :  { %9469 = vst [vmem:[#allocation23_spill] sm:$0xff] %v8021_v35  ;;  %v8026_v3 = vadd.f32 %v3434_v6, %v3426_v2  ;;  %v3454_v18 = vmul.f32 %v3450_v47, %v8021_v35  ;;  %v5914_v62 = vsel %vm2867_vm12, 1.0, %v9323_v15  ;;  %v5918_v52 = vsel %vm2883_vm13, 1.0, %v9323_v15 }
 0x40f   :  { %6005 = vmatmul.msk.f32.vlgmr.msrb.gmra.mxu2 %vm186_vm2, %v3538_v7  ;;  %v2879_v53 = vsub.f32 %v5910_v55, %v5914_v62  ;;  %vm2899_vm14 = vcmp.ge.f32.partialorder %v8009_v17, -1.0  ;;  %vm2915_vm15 = vcmp.ge.f32.partialorder %v8009_v17, -0.6  ;;  %v2895_v49 = vsub.f32 %v5914_v62, %v5918_v52 }
 0x410   :  { %v8035_v0 = vadd.f32 %v3454_v18, %v3446_v14  ;;  %v3606_v34 = vmul.f32 %v3602_v4, %v8026_v3  ;;  %v5922_v42 = vsel %vm2899_vm14, 1.0, %v9323_v15  ;;  %v5926_v11 = vsel %vm2915_vm15, 1.0, %v9323_v15  ;;  %v2813_v14 = vpop.f32.mrf.mxu3 }
 0x411   :  { %v2911_v44 = vsub.f32 %v5918_v52, %v5922_v42  ;;  %vm2931_vm1 = vcmp.ge.f32.partialorder %v8009_v17, -0.2  ;;  %v5958_v9 = vadd.f32 2.2, %v8009_v17  ;;  %v2927_v45 = vsub.f32 %v5922_v42, %v5926_v11  ;;  %2827 = vst.msk [vmem:[#allocation2 + $0x28] sm:$0xff] %vm186_vm2, %v2813_v14 }
 0x412   :  { %9470 = vst [vmem:[#allocation32_spill] sm:$0xff] %v8035_v0  ;;  %v3614_v48 = vmul.f32 %v3610_v40, %v8035_v0  ;;  %v5930_v46 = vsel %vm2931_vm1, 1.0, %v9323_v15  ;;  %v3055_v33 = vsub.f32 -1.4, %v8009_v17  ;;  %v5962_v23 = vadd.f32 1.8, %v8009_v17 }
 0x413   :  { %v6204_v21 = vpop.eup %6203  ;;  %v8045_v10 = vsub.f32 %v5926_v11, %v5930_v46  ;;  %v3047_v20 = vmul.f32 2.5, %v5958_v9  ;;  %v3083_v5 = vsub.f32 -1.0, %v8009_v17  ;;  %v8050_v51 = vadd.f32 1.4, %v8009_v17 }
 0x414   :  { %v3618_v61 = vadd.f32 %v3614_v48, %v3606_v34  ;;  %v2843_v59 = vadd.f32 1.0, %v6204_v21  ;;  %v3059_v22 = vmul.f32 2.5, %v3055_v33  ;;  %v3075_v27 = vmul.f32 2.5, %v5962_v23 }
 0x415   :  { %v3051_v32 = vmul.f32 %v3047_v20, %v2879_v53  ;;  %v3087_v37 = vmul.f32 2.5, %v3083_v5  ;;  %v3111_v24 = vsub.f32 -0.6, %v8009_v17  ;;  %v3103_v63 = vmul.f32 2.5, %v8050_v51 }
 0x416   :  { %6021 = vmatmul.msk.f32.vlgmr.msra.gmra.mxu3 %vm186_vm2, %v3618_v61  ;;  %v2847_v29 = vmul.f32 0.5, %v2843_v59  ;;  %v3063_v41 = vmul.f32 %v3059_v22, %v2895_v49  ;;  %v3323_v16 = vmul.f32 1.25, %v5958_v9  ;;  %v3079_v38 = vmul.f32 %v3075_v27, %v2895_v49 }
 0x417   :  { %v3091_v57 = vmul.f32 %v3087_v37, %v2911_v44  ;;  %v3115_v50 = vmul.f32 2.5, %v3111_v24  ;;  %v3331_v58 = vmul.f32 1.25, %v3083_v5  ;;  %v3107_v4 = vmul.f32 %v3103_v63, %v2911_v44 }
 0x418   :  { %v2851_v19 = vmul.f32 %v2847_v29, %v8009_v17  ;;  %v3067_v47 = vadd.f32 %v3063_v41, %v3051_v32  ;;  %v3343_v26 = vmul.f32 1.25, %v5962_v23  ;;  %v3351_v36 = vmul.f32 1.25, %v3111_v24  ;;  %v2816_v0 = vpop.f32.mrf.mxu3 }
 0x419   :  { %v3095_v2 = vadd.f32 %v3091_v57, %v3079_v38  ;;  %v3119_v40 = vmul.f32 %v3115_v50, %v2927_v45  ;;  %v3503_v6 = vmul.f32 0.8333333, %v5958_v9  ;;  %v3511_v55 = vmul.f32 0.8333333, %v3111_v24  ;;  %2828 = vst.msk [vmem:[#allocation2 + $0x30] sm:$0xff] %vm186_vm2, %v2816_v0 }
 0x41a   :  { %6002 = vmatmul.msk.f32.gmra.mxu1 %vm186_vm2, %v2851_v19  ;;  %v3327_v7 = vmul.f32 %v3323_v16, %v3067_v47  ;;  %v8058_v18 = vadd.f32 1.0, %v8009_v17  ;;  %v3139_v62 = vsub.f32 -0.2, %v8009_v17  ;;  %v3363_v49 = vmul.f32 1.25, %v8050_v51 }
 0x41b   :  { %v3123_v53 = vadd.f32 %v3119_v40, %v3107_v4  ;;  %v3335_v52 = vmul.f32 %v3331_v58, %v3095_v2  ;;  %v3347_v34 = vmul.f32 %v3343_v26, %v3095_v2  ;;  %v3523_v9 = vmul.f32 0.8333333, %v5962_v23 }
 0x41c   :  { %v3131_v42 = vmul.f32 2.5, %v8058_v18  ;;  %v3143_v44 = vmul.f32 2.5, %v3139_v62  ;;  %v3371_v11 = vmul.f32 1.25, %v3139_v62  ;;  %v3531_v20 = vmul.f32 0.8333333, %v3139_v62 }
 0x41d   :  { %v3339_v48 = vadd.f32 %v3335_v52, %v3327_v7  ;;  %v3355_v33 = vmul.f32 %v3351_v36, %v3123_v53  ;;  %v3367_v21 = vmul.f32 %v3363_v49, %v3123_v53  ;;  %vm2947_vm3 = vcmp.ge.f32.partialorder %v8009_v17, 0.2  ;;  %v8106_v52 = vld [vmem:[#allocation2 + $0x10] sm:$0xff] }
 0x41e   :  { %v3135_v5 = vmul.f32 %v3131_v42, %v2927_v45  ;;  %v3147_v61 = vmul.f32 %v3143_v44, %v8045_v10  ;;  %vm2963_vm4 = vcmp.ge.f32.partialorder %v8009_v17, 0.6  ;;  %v5934_v32 = vsel %vm2947_vm3, 1.0, %v9323_v15 }
 0x41f   :  { %v3359_v59 = vadd.f32 %v3355_v33, %v3347_v34  ;;  %v3507_v22 = vmul.f32 %v3503_v6, %v3339_v48  ;;  %v5938_v27 = vsel %vm2963_vm4, 1.0, %v9323_v15  ;;  %v8071_v23 = vsub.f32 %v5930_v46, %v5934_v32 }
 0x420   :  { %v8069_v37 = vadd.f32 %v3147_v61, %v3135_v5  ;;  %v2975_v24 = vsub.f32 %v5934_v32, %v5938_v27  ;;  %vm2979_vm5 = vcmp.ge.f32.partialorder %v8009_v17, 1.0  ;;  %vm2995_vm6 = vcmp.ge.f32.partialorder %v8009_v17, 1.4 }
 0x421   :  { %v3515_v45 = vmul.f32 %v3511_v55, %v3359_v59  ;;  %v3527_v29 = vmul.f32 %v3523_v9, %v3359_v59  ;;  %v5942_v41 = vsel %vm2979_vm5, 1.0, %v9323_v15  ;;  %v8078_v38 = vsel %vm2995_vm6, 1.0, %v9323_v15 }
 0x422   :  { %v3375_v63 = vmul.f32 %v3371_v11, %v8069_v37  ;;  %v2991_v16 = vsub.f32 %v5938_v27, %v5942_v41  ;;  %9471 = vst [vmem:[#allocation30_spill] sm:$0xff] %v8078_v38  ;;  %v5978_v57 = vadd.f32 0.2, %v8009_v17  ;;  %v8082_v46 = vsub.f32 %v5942_v41, %v8078_v38 }
 0x423   :  { %v3519_v50 = vadd.f32 %v3515_v45, %v3507_v22  ;;  %v8085_v58 = vsub.f32 0.6, %v8009_v17  ;;  %v8088_v19 = vadd.f32 -0.2, %v8009_v17  ;;  %v8093_v26 = vsub.f32 1.0, %v8009_v17 }
 0x424   :  { %9472 = vst [vmem:[#allocation31_spill] sm:$0xff] %v8082_v46  ;;  %v8090_v47 = vadd.f32 %v3375_v63, %v3367_v21  ;;  %v3187_v4 = vmul.f32 2.5, %v5978_v57  ;;  %v8096_v2 = vadd.f32 -0.6, %v8009_v17  ;;  %v3251_v6 = vsub.f32 1.4, %v8009_v17 }
 0x425   :  { %9473 = vst [vmem:[#allocation10_spill] sm:$0xff] %v8088_v19  ;;  %5998 = vmatmul.msk.f32.gmra.mxu0 %vm186_vm2, %v3519_v50  ;;  %v3199_v40 = vmul.f32 2.5, %v8085_v58  ;;  %v3215_v36 = vmul.f32 2.5, %v8088_v19  ;;  %v3423_v14 = vmul.f32 1.25, %v5978_v57  ;;  %v3227_v62 = vmul.f32 2.5, %v8093_v26 }
 0x426   :  { %9474 = vst [vmem:[#allocation8_spill] sm:$0xff] %v8096_v2  ;;  %v3535_v7 = vmul.f32 %v3531_v20, %v8090_v47  ;;  %v3191_v55 = vmul.f32 %v3187_v4, %v8071_v23  ;;  %v3243_v53 = vmul.f32 2.5, %v8096_v2  ;;  %v3255_v42 = vmul.f32 2.5, %v3251_v6 }
 0x427   :  { %v3203_v34 = vmul.f32 %v3199_v40, %v2975_v24  ;;  %v3219_v49 = vmul.f32 %v3215_v36, %v2975_v24  ;;  %v3431_v44 = vmul.f32 1.25, %v8093_v26  ;;  %v3231_v9 = vmul.f32 %v3227_v62, %v2991_v16 }
 0x428   :  { %v3539_v11 = vadd.f32 %v3535_v7, %v3527_v29  ;;  %v3247_v48 = vmul.f32 %v3243_v53, %v2991_v16  ;;  %v3443_v33 = vmul.f32 1.25, %v8088_v19  ;;  %v3259_v20 = vmul.f32 %v3255_v42, %v8082_v46 }
 0x429   :  { %v8110_v21 = vadd.f32 %v3203_v34, %v3191_v55  ;;  %v3451_v5 = vmul.f32 1.25, %v3251_v6  ;;  %v3603_v61 = vmul.f32 0.8333333, %v5978_v57  ;;  %v3235_v59 = vadd.f32 %v3231_v9, %v3219_v49 }
 0x42a   :  { %6006 = vmatmul.msk.f32.gmra.mxu2 %vm186_vm2, %v3539_v11  ;;  %v3611_v22 = vmul.f32 0.8333333, %v3251_v6  ;;  %v2836_v32 = vmul.f32 0.5, %v8106_v52  ;;  %vm2856_vm7 = vcmp.ge.f32.partialorder %v8106_v52, -2.2  ;;  %v8116_v27 = vadd.f32 %v3259_v20, %v3247_v48 }
 0x42b   :  { %v3427_v24 = vmul.f32 %v3423_v14, %v8110_v21  ;;  %v5911_v45 = vsel %vm2856_vm7, 1.0, %v9323_v15  ;;  %vm2868_vm8 = vcmp.ge.f32.partialorder %v8106_v52, -1.8  ;;  %v3435_v29 = vmul.f32 %v3431_v44, %v3235_v59 }
 0x42c   :  { %9475 = vst [vmem:[#allocation9_spill] sm:$0xff] %v8116_v27  ;;  %v3447_v41 = vmul.f32 %v3443_v33, %v3235_v59  ;;  %6205 = vtanh.f32 %v2836_v32  ;;  %v5915_v63 = vsel %vm2868_vm8, 1.0, %v9323_v15  ;;  %v3455_v16 = vmul.f32 %v3451_v5, %v8116_v27  ;;  %v8149_v32 = vld [vmem:[#allocation4 + $0x1d8] sm:$0xff] }
 0x42d   :  { %v2880_v57 = vsub.f32 %v5911_v45, %v5915_v63  ;;  %vm2884_vm9 = vcmp.ge.f32.partialorder %v8106_v52, -1.4  ;;  %vm2900_vm10 = vcmp.ge.f32.partialorder %v8106_v52, -1.0  ;;  %v8125_v50 = vadd.f32 %v3435_v29, %v3427_v24  ;;  %v3808_v24 = vld [vmem:[#allocation4 + $0x198] sm:$0xff]  ;;  %3933 = vmatpush.msra.mxu2 %v8149_v32 }
 0x42e   :  { %v5919_v4 = vsel %vm2884_vm9, 1.0, %v9323_v15  ;;  %v5923_v40 = vsel %vm2900_vm10, 1.0, %v9323_v15  ;;  %vm2916_vm11 = vcmp.ge.f32.partialorder %v8106_v52, -0.6  ;;  %v8130_v36 = vadd.f32 %v3455_v16, %v3447_v41  ;;  %v3858_v45 = vld [vmem:[#allocation4 + $0x1b8] sm:$0xff]  ;;  %3833 = vmatpush.msrb.mxu0 %v3808_v24 }
 0x42f   :  { %v2896_v6 = vsub.f32 %v5915_v63, %v5919_v4  ;;  %v2912_v14 = vsub.f32 %v5919_v4, %v5923_v40  ;;  %v5927_v7 = vsel %vm2916_vm11, 1.0, %v9323_v15  ;;  %v3607_v55 = vmul.f32 %v3603_v61, %v8125_v50  ;;  %3883 = vmatpush.msrb.mxu1 %v3858_v45 }
 0x430   :  { %9476 = vst [vmem:[#allocation17_spill] sm:$0xff] %v8130_v36  ;;  %v2928_v62 = vsub.f32 %v5923_v40, %v5927_v7  ;;  %vm2932_vm12 = vcmp.ge.f32.partialorder %v8106_v52, -0.2  ;;  %v5959_v53 = vadd.f32 2.2, %v8106_v52  ;;  %v3615_v34 = vmul.f32 %v3611_v22, %v8130_v36 }
 0x431   :  { %v8138_v49 = vsel %vm2932_vm12, 1.0, %v9323_v15  ;;  %v3056_v42 = vsub.f32 -1.4, %v8106_v52  ;;  %v5963_v44 = vadd.f32 1.8, %v8106_v52  ;;  %v3084_v33 = vsub.f32 -1.0, %v8106_v52 }
 0x432   :  { %v6206_v11 = vpop.eup %6205  ;;  %v8143_v9 = vsub.f32 %v5927_v7, %v8138_v49  ;;  %v3048_v48 = vmul.f32 2.5, %v5959_v53  ;;  %v8147_v20 = vadd.f32 1.4, %v8106_v52  ;;  %v3619_v5 = vadd.f32 %v3615_v34, %v3607_v55 }
 0x433   :  { %v2844_v61 = vadd.f32 1.0, %v6206_v11  ;;  %v3060_v59 = vmul.f32 2.5, %v3056_v42  ;;  %v3076_v22 = vmul.f32 2.5, %v5963_v44  ;;  %v3088_v41 = vmul.f32 2.5, %v3084_v33 }
 0x434   :  { %9477 = vst [vmem:[#allocation25_spill] sm:$0xff] %v8143_v9  ;;  %v3052_v29 = vmul.f32 %v3048_v48, %v2880_v57  ;;  %v3104_v63 = vmul.f32 2.5, %v8147_v20  ;;  %v3112_v16 = vsub.f32 -0.6, %v8106_v52  ;;  %6022 = vmatmul.msk.f32.gmra.mxu3 %vm186_vm2, %v3619_v5  ;;  %v3324_v55 = vmul.f32 1.25, %v5959_v53 }
 0x435   :  { %9478 = vst [vmem:[#allocation34_spill] sm:$0xff] %v8147_v20  ;;  %v2848_v4 = vmul.f32 0.5, %v2844_v61  ;;  %v3064_v40 = vmul.f32 %v3060_v59, %v2896_v6  ;;  %v3080_v7 = vmul.f32 %v3076_v22, %v2896_v6  ;;  %v3092_v34 = vmul.f32 %v3088_v41, %v2912_v14 }
 0x436   :  { %v3108_v42 = vmul.f32 %v3104_v63, %v2912_v14  ;;  %v3116_v11 = vmul.f32 2.5, %v3112_v16  ;;  %v3332_v36 = vmul.f32 1.25, %v3084_v33  ;;  %v3344_v19 = vmul.f32 1.25, %v5963_v44 }
 0x437   :  { %v2852_v57 = vmul.f32 %v2848_v4, %v8106_v52  ;;  %v3068_v48 = vadd.f32 %v3064_v40, %v3052_v29  ;;  %v3352_v46 = vmul.f32 1.25, %v3112_v16  ;;  %v3096_v27 = vadd.f32 %v3092_v34, %v3080_v7 }
 0x438   :  { %v3120_v2 = vmul.f32 %v3116_v11, %v2928_v62  ;;  %v3504_v38 = vmul.f32 0.8333333, %v5959_v53  ;;  %v3512_v24 = vmul.f32 0.8333333, %v3112_v16  ;;  %v8158_v6 = vadd.f32 1.0, %v8106_v52 }
 0x439   :  { %6003 = vmatmul.msk.f32.gmra.mxu1 %vm186_vm2, %v2852_v57  ;;  %v3328_v5 = vmul.f32 %v3324_v55, %v3068_v48  ;;  %v3140_v14 = vsub.f32 -0.2, %v8106_v52  ;;  %v3364_v33 = vmul.f32 1.25, %v8147_v20  ;;  %v3336_v59 = vmul.f32 %v3332_v36, %v3096_v27  ;;  %v4941_v20 = vld [vmem:[#allocation4 + $0x128] sm:$0xff] }
 0x43a   :  { %v3124_v61 = vadd.f32 %v3120_v2, %v3108_v42  ;;  %v3348_v22 = vmul.f32 %v3344_v19, %v3096_v27  ;;  %v3524_v45 = vmul.f32 0.8333333, %v5963_v44  ;;  %v3132_v53 = vmul.f32 2.5, %v8158_v6 }
 0x43b   :  { %v3144_v29 = vmul.f32 2.5, %v3140_v14  ;;  %v3372_v41 = vmul.f32 1.25, %v3140_v14  ;;  %v3532_v63 = vmul.f32 0.8333333, %v3140_v14  ;;  %v3340_v16 = vadd.f32 %v3336_v59, %v3328_v5 }
 0x43c   :  { %v3356_v4 = vmul.f32 %v3352_v46, %v3124_v61  ;;  %v3368_v40 = vmul.f32 %v3364_v33, %v3124_v61  ;;  %vm2948_vm13 = vcmp.ge.f32.partialorder %v8106_v52, 0.2  ;;  %v3136_v7 = vmul.f32 %v3132_v53, %v2928_v62 }
 0x43d   :  { %v3148_v55 = vmul.f32 %v3144_v29, %v8143_v9  ;;  %v5935_v34 = vsel %vm2948_vm13, 1.0, %v9323_v15  ;;  %vm2964_vm14 = vcmp.ge.f32.partialorder %v8106_v52, 0.6  ;;  %v3508_v19 = vmul.f32 %v3504_v38, %v3340_v16 }
 0x43e   :  { %v3360_v0 = vadd.f32 %v3356_v4, %v3348_v22  ;;  %v8169_v2 = vsub.f32 %v8138_v49, %v5935_v34  ;;  %v5939_v27 = vsel %vm2964_vm14, 1.0, %v9323_v15  ;;  %vm2980_vm15 = vcmp.ge.f32.partialorder %v8106_v52, 1.0 }
 0x43f   :  { %v8172_v36 = vadd.f32 %v3148_v55, %v3136_v7  ;;  %v2976_v46 = vsub.f32 %v5935_v34, %v5939_v27  ;;  %vm2996_vm1 = vcmp.ge.f32.partialorder %v8106_v52, 1.4  ;;  %v5943_v42 = vsel %vm2980_vm15, 1.0, %v9323_v15  ;;  %v8207_v34 = vld [vmem:[#allocation2 + $0x18] sm:$0xff] }
 0x440   :  { %9479 = vst [vmem:[#allocation29_spill] sm:$0xff] %v8169_v2  ;;  %v3516_v62 = vmul.f32 %v3512_v24, %v3360_v0  ;;  %v3528_v44 = vmul.f32 %v3524_v45, %v3360_v0  ;;  %v8178_v11 = vsel %vm2996_vm1, 1.0, %v9323_v15  ;;  %v2992_v49 = vsub.f32 %v5939_v27, %v5943_v42 }
 0x441   :  { %9480 = vst [vmem:[#allocation13_spill] sm:$0xff] %v8178_v11  ;;  %v3376_v38 = vmul.f32 %v3372_v41, %v8172_v36  ;;  %v8182_v57 = vsub.f32 %v5943_v42, %v8178_v11  ;;  %v5979_v48 = vadd.f32 0.2, %v8106_v52  ;;  %v8186_v14 = vsub.f32 0.6, %v8106_v52 }
 0x442   :  { %v3520_v5 = vadd.f32 %v3516_v62, %v3508_v19  ;;  %v8189_v24 = vadd.f32 -0.2, %v8106_v52  ;;  %v8192_v33 = vsub.f32 1.0, %v8106_v52  ;;  %v8197_v22 = vadd.f32 -0.6, %v8106_v52 }
 0x443   :  { %9481 = vst [vmem:[#allocation11_spill] sm:$0xff] %v8182_v57  ;;  %v8194_v61 = vadd.f32 %v3376_v38, %v3368_v40  ;;  %v3188_v59 = vmul.f32 2.5, %v5979_v48  ;;  %v3252_v45 = vsub.f32 1.4, %v8106_v52  ;;  %v3200_v53 = vmul.f32 2.5, %v8186_v14 }
 0x444   :  { %9482 = vst [vmem:[#allocation24_spill] sm:$0xff] %v8186_v14  ;;  %5999 = vmatmul.msk.f32.gmra.mxu0 %vm186_vm2, %v3520_v5  ;;  %v3216_v29 = vmul.f32 2.5, %v8189_v24  ;;  %v3228_v41 = vmul.f32 2.5, %v8192_v33  ;;  %v3424_v16 = vmul.f32 1.25, %v5979_v48  ;;  %v3244_v7 = vmul.f32 2.5, %v8197_v22 }
 0x445   :  { %9483 = vst [vmem:[#allocation20_spill] sm:$0xff] %v8189_v24  ;;  %v3536_v4 = vmul.f32 %v3532_v63, %v8194_v61  ;;  %v3192_v40 = vmul.f32 %v3188_v59, %v8169_v2  ;;  %v3256_v55 = vmul.f32 2.5, %v3252_v45  ;;  %v3204_v0 = vmul.f32 %v3200_v53, %v2976_v46 }
 0x446   :  { %9484 = vst [vmem:[#allocation22_spill] sm:$0xff] %v8192_v33  ;;  %v3220_v19 = vmul.f32 %v3216_v29, %v2976_v46  ;;  %v3232_v27 = vmul.f32 %v3228_v41, %v2992_v49  ;;  %v3432_v62 = vmul.f32 1.25, %v8192_v33  ;;  %v3248_v38 = vmul.f32 %v3244_v7, %v2992_v49  ;;  %v3806_v33 = vld [vmem:[#allocation4 + $0x188] sm:$0xff] }
 0x447   :  { %9485 = vst [vmem:[#allocation27_spill] sm:$0xff] %v8194_v61  ;;  %v3540_v42 = vadd.f32 %v3536_v4, %v3528_v44  ;;  %v3260_v5 = vmul.f32 %v3256_v55, %v8182_v57  ;;  %v3444_v11 = vmul.f32 1.25, %v8189_v24  ;;  %v8212_v39 = vadd.f32 %v3204_v0, %v3192_v40  ;;  %v3807_v57 = vld [vmem:[#allocation4 + $0x190] sm:$0xff] }
 0x448   :  { %9486 = vst [vmem:[#allocation35_spill] sm:$0xff] %v8197_v22  ;;  %v3236_v63 = vadd.f32 %v3232_v27, %v3220_v19  ;;  %v3452_v59 = vmul.f32 1.25, %v3252_v45  ;;  %v3604_v35 = vmul.f32 0.8333333, %v5979_v48  ;;  %v3612_v53 = vmul.f32 0.8333333, %v3252_v45  ;;  %3834 = vmatpush.msrb.mxu0 %v3807_v57 }
 0x449   :  { %9487 = vst [vmem:[#allocation36_spill] sm:$0xff] %v8212_v39  ;;  %6007 = vmatmul.msk.f32.gmra.mxu2 %vm186_vm2, %v3540_v42  ;;  %v8215_v22 = vadd.f32 %v3260_v5, %v3248_v38  ;;  %v2837_v46 = vmul.f32 0.5, %v8207_v34  ;;  %vm2857_vm3 = vcmp.ge.f32.partialorder %v8207_v34, -2.2  ;;  %v3428_v44 = vmul.f32 %v3424_v16, %v8212_v39  ;;  %v3906_v39 = vld [vmem:[#allocation4 + $0x1c8] sm:$0xff] }
 0x44a   :  { %v3436_v49 = vmul.f32 %v3432_v62, %v3236_v63  ;;  %v3448_v29 = vmul.f32 %v3444_v11, %v3236_v63  ;;  %v5912_v41 = vsel %vm2857_vm3, 1.0, %v9323_v15  ;;  %vm2869_vm4 = vcmp.ge.f32.partialorder %v8207_v34, -1.8  ;;  %3835 = vmatpush.msrb.mxu0 %v3806_v33 }
 0x44b   :  { %9488 = vst [vmem:[#allocation14_spill] sm:$0xff] %v8215_v22  ;;  %v3456_v4 = vmul.f32 %v3452_v59, %v8215_v22  ;;  %6207 = vtanh.f32 %v2837_v46  ;;  %vm2885_vm5 = vcmp.ge.f32.partialorder %v8207_v34, -1.4  ;;  %v5916_v45 = vsel %vm2869_vm4, 1.0, %v9323_v15  ;;  %v3857_v22 = vld [vmem:[#allocation4 + $0x1b0] sm:$0xff] }
 0x44c   :  { %v8224_v48 = vadd.f32 %v3436_v49, %v3428_v44  ;;  %v5920_v40 = vsel %vm2885_vm5, 1.0, %v9323_v15  ;;  %vm2901_vm6 = vcmp.ge.f32.partialorder %v8207_v34, -1.0  ;;  %v2881_v11 = vsub.f32 %v5912_v41, %v5916_v45  ;;  %3884 = vmatpush.msrb.mxu1 %v3857_v22  ;;  %v3805_v22 = vld [vmem:[#allocation4 + $0x180] sm:$0xff] }
 0x44d   :  { %v8229_v16 = vadd.f32 %v3456_v4, %v3448_v29  ;;  %v2897_v7 = vsub.f32 %v5916_v45, %v5920_v40  ;;  %v5924_v55 = vsel %vm2901_vm6, 1.0, %v9323_v15  ;;  %vm2917_vm7 = vcmp.ge.f32.partialorder %v8207_v34, -0.6  ;;  %3836 = vmatpush.msrb.mxu0 %v3805_v22 }
 0x44e   :  { %9489 = vst [vmem:[#allocation18_spill] sm:$0xff] %v8224_v48  ;;  %v3608_v0 = vmul.f32 %v3604_v35, %v8224_v48  ;;  %v2913_v19 = vsub.f32 %v5920_v40, %v5924_v55  ;;  %vm2933_vm8 = vcmp.ge.f32.partialorder %v8207_v34, -0.2  ;;  %v5928_v62 = vsel %vm2917_vm7, 1.0, %v9323_v15  ;;  %v3856_v48 = vld [vmem:[#allocation4 + $0x1a8] sm:$0xff] }
 0x44f   :  { %9490 = vst [vmem:[#allocation37_spill] sm:$0xff] %v8229_v16  ;;  %v3616_v27 = vmul.f32 %v3612_v53, %v8229_v16  ;;  %v8238_v42 = vsel %vm2933_vm8, 1.0, %v9323_v15  ;;  %v5960_v38 = vadd.f32 2.2, %v8207_v34  ;;  %v8241_v5 = vsub.f32 %v5924_v55, %v5928_v62  ;;  %v8253_v55 = vld [vmem:[#allocation4 + $0x1d0] sm:$0xff]  ;;  %3885 = vmatpush.msrb.mxu1 %v3856_v48  ;;  %v4940_v48 = vld [vmem:[#allocation4 + $0x120] sm:$0xff] }
 0x450   :  { %v8244_v63 = vsub.f32 %v5928_v62, %v8238_v42  ;;  %v3057_v35 = vsub.f32 -1.4, %v8207_v34  ;;  %v5964_v59 = vadd.f32 1.8, %v8207_v34  ;;  %v3085_v53 = vsub.f32 -1.0, %v8207_v34  ;;  %3934 = vmatpush.msra.mxu2 %v8253_v55 }
 0x451   :  { %v6208_v46 = vpop.eup %6207  ;;  %v3620_v44 = vadd.f32 %v3616_v27, %v3608_v0  ;;  %v3049_v49 = vmul.f32 2.5, %v5960_v38  ;;  %v8250_v29 = vadd.f32 1.4, %v8207_v34  ;;  %v3113_v40 = vsub.f32 -0.6, %v8207_v34  ;;  %v4943_v27 = vld [vmem:[#allocation4 + $0x138] sm:$0xff] }
 0x452   :  { %v2845_v41 = vadd.f32 1.0, %v6208_v46  ;;  %v3061_v4 = vmul.f32 2.5, %v3057_v35  ;;  %v3077_v45 = vmul.f32 2.5, %v5964_v59  ;;  %v3089_v16 = vmul.f32 2.5, %v3085_v53  ;;  %5013 = vmatpush.msrb.mxu3 %v4943_v27  ;;  %3935 = vmatpush.msra.mxu2 %v3906_v39 }
 0x453   :  { %6023 = vmatmul.msk.f32.gmra.mxu3 %vm186_vm2, %v3620_v44  ;;  %v3053_v62 = vmul.f32 %v3049_v49, %v2881_v11  ;;  %v3105_v24 = vmul.f32 2.5, %v8250_v29  ;;  %v3325_v0 = vmul.f32 1.25, %v5960_v38  ;;  %v3117_v54 = vmul.f32 2.5, %v3113_v40 }
 0x454   :  { %v2849_v56 = vmul.f32 0.5, %v2845_v41  ;;  %v3065_v46 = vmul.f32 %v3061_v4, %v2897_v7  ;;  %v3081_v35 = vmul.f32 %v3077_v45, %v2897_v7  ;;  %v3093_v44 = vmul.f32 %v3089_v16, %v2913_v19  ;;  %5014 = vmatpush.msrb.mxu3 %v4942_v12  ;;  %v3855_v7 = vld [vmem:[#allocation4 + $0x1a0] sm:$0xff] }
 0x455   :  { %v3109_v11 = vmul.f32 %v3105_v24, %v2913_v19  ;;  %v3333_v49 = vmul.f32 1.25, %v3085_v53  ;;  %v3345_v61 = vmul.f32 1.25, %v5964_v59  ;;  %v3121_v41 = vmul.f32 %v3117_v54, %v8241_v5  ;;  %v3905_v12 = vld [vmem:[#allocation4 + $0x1c0] sm:$0xff]  ;;  %v2819_v19 = vpop.f32.mrf.mxu3  ;;  %3886 = vmatpush.msrb.mxu1 %v3855_v7 }
 0x456   :  { %v2853_v14 = vmul.f32 %v2849_v56, %v8207_v34  ;;  %v3069_v2 = vadd.f32 %v3065_v46, %v3053_v62  ;;  %v3353_v4 = vmul.f32 1.25, %v3113_v40  ;;  %v3097_v45 = vadd.f32 %v3093_v44, %v3081_v35  ;;  %5015 = vmatpush.msrb.mxu3 %v4941_v20  ;;  %2829 = vst.msk [vmem:[#allocation2 + $0x38] sm:$0xff] %vm186_vm2, %v2819_v19 }
 0x457   :  { %v3505_v27 = vmul.f32 0.8333333, %v5960_v38  ;;  %v3513_v9 = vmul.f32 0.8333333, %v3113_v40  ;;  %v8261_v24 = vadd.f32 1.0, %v8207_v34  ;;  %v3125_v57 = vadd.f32 %v3121_v41, %v3109_v11  ;;  %3936 = vmatpush.msra.mxu2 %v3905_v12 }
 0x458   :  { %6004 = vmatmul.msk.f32.gmra.mxu1 %vm186_vm2, %v2853_v14  ;;  %v3329_v56 = vmul.f32 %v3325_v0, %v3069_v2  ;;  %v3141_v16 = vsub.f32 -0.2, %v8207_v34  ;;  %v3365_v54 = vmul.f32 1.25, %v8250_v29  ;;  %v3337_v53 = vmul.f32 %v3333_v49, %v3097_v45  ;;  %5016 = vmatpush.msrb.mxu3 %v4940_v48 }
 0x459   :  { %v3349_v38 = vmul.f32 %v3345_v61, %v3097_v45  ;;  %v3133_v40 = vmul.f32 2.5, %v8261_v24  ;;  %v3525_v62 = vmul.f32 0.8333333, %v5964_v59  ;;  %v3357_v14 = vmul.f32 %v3353_v4, %v3125_v57 }
 0x45a   :  { %v3145_v33 = vmul.f32 2.5, %v3141_v16  ;;  %v3369_v2 = vmul.f32 %v3365_v54, %v3125_v57  ;;  %v3373_v0 = vmul.f32 1.25, %v3141_v16  ;;  %v3341_v46 = vadd.f32 %v3337_v53, %v3329_v56  ;;  %5205 = vmatpush.msra.mxu3 %v8149_v32 }
 0x45b   :  { %v3137_v20 = vmul.f32 %v3133_v40, %v8241_v5  ;;  %v3533_v35 = vmul.f32 0.8333333, %v3141_v16  ;;  %vm2949_vm9 = vcmp.ge.f32.partialorder %v8207_v34, 0.2  ;;  %v3361_v61 = vadd.f32 %v3357_v14, %v3349_v38 }
 0x45c   :  { %v3149_v59 = vmul.f32 %v3145_v33, %v8244_v63  ;;  %v5936_v44 = vsel %vm2949_vm9, 1.0, %v9323_v15  ;;  %vm2965_vm10 = vcmp.ge.f32.partialorder %v8207_v34, 0.6  ;;  %v3509_v11 = vmul.f32 %v3505_v27, %v3341_v46  ;;  %5206 = vmatpush.msra.mxu3 %v8253_v55 }
 0x45d   :  { %v8275_v49 = vsub.f32 %v8238_v42, %v5936_v44  ;;  %v5940_v41 = vsel %vm2965_vm10, 1.0, %v9323_v15  ;;  %vm2981_vm11 = vcmp.ge.f32.partialorder %v8207_v34, 1.0  ;;  %v3517_v5 = vmul.f32 %v3513_v9, %v3361_v61 }
 0x45e   :  { %v8280_v4 = vadd.f32 %v3149_v59, %v3137_v20  ;;  %v3529_v32 = vmul.f32 %v3525_v62, %v3361_v61  ;;  %v2977_v7 = vsub.f32 %v5936_v44, %v5940_v41  ;;  %v5944_v22 = vsel %vm2981_vm11, 1.0, %v9323_v15  ;;  %5207 = vmatpush.msra.mxu3 %v3906_v39 }
 0x45f   :  { %vm2997_vm12 = vcmp.ge.f32.partialorder %v8207_v34, 1.4  ;;  %v5980_v45 = vadd.f32 0.2, %v8207_v34  ;;  %v8286_v42 = vsub.f32 1.0, %v8207_v34  ;;  %v3521_v27 = vadd.f32 %v3517_v5, %v3509_v11 }
 0x460   :  { %v3377_v57 = vmul.f32 %v3373_v0, %v8280_v4  ;;  %v2993_v56 = vsub.f32 %v5940_v41, %v5944_v22  ;;  %v8290_v9 = vsel %vm2997_vm12, 1.0, %v9323_v15  ;;  %v8296_v54 = vsub.f32 0.6, %v8207_v34  ;;  %5208 = vmatpush.msra.mxu3 %v3905_v12 }
 0x461   :  { %v8293_v55 = vsub.f32 %v5944_v22, %v8290_v9  ;;  %v3189_v16 = vmul.f32 2.5, %v5980_v45  ;;  %v8299_v48 = vadd.f32 -0.2, %v8207_v34  ;;  %6000 = vmatmul.msk.f32.gmra.mxu0 %vm186_vm2, %v3521_v27  ;;  %v3229_v19 = vmul.f32 2.5, %v8286_v42 }
 0x462   :  { %v8302_v39 = vadd.f32 %v3377_v57, %v3369_v2  ;;  %v8306_v53 = vadd.f32 -0.6, %v8207_v34  ;;  %v3253_v38 = vsub.f32 1.4, %v8207_v34  ;;  %v3201_v62 = vmul.f32 2.5, %v8296_v54 }
 0x463   :  { %9491 = vst [vmem:[#allocation15_spill] sm:$0xff] %v8299_v48  ;;  %v3193_v40 = vmul.f32 %v3189_v16, %v8275_v49  ;;  %v3217_v14 = vmul.f32 2.5, %v8299_v48  ;;  %v3425_v33 = vmul.f32 1.25, %v5980_v45  ;;  %v3233_v0 = vmul.f32 %v3229_v19, %v2993_v56 }
 0x464   :  { %v3537_v12 = vmul.f32 %v3533_v35, %v8302_v39  ;;  %v3245_v2 = vmul.f32 2.5, %v8306_v53  ;;  %v3257_v46 = vmul.f32 2.5, %v3253_v38  ;;  %v3205_v20 = vmul.f32 %v3201_v62, %v2977_v7  ;;  %v8322_v62 = vld [vmem:[#allocation2] sm:$0xff] }
 0x465   :  { %v3221_v61 = vmul.f32 %v3217_v14, %v2977_v7  ;;  %v3433_v59 = vmul.f32 1.25, %v8286_v42  ;;  %v3445_v44 = vmul.f32 1.25, %v8299_v48  ;;  %v3453_v22 = vmul.f32 1.25, %v3253_v38 }
 0x466   :  { %v3541_v11 = vadd.f32 %v3537_v12, %v3529_v32  ;;  %v3249_v41 = vmul.f32 %v3245_v2, %v2993_v56  ;;  %v3261_v5 = vmul.f32 %v3257_v46, %v8293_v55  ;;  %v8317_v27 = vadd.f32 %v3205_v20, %v3193_v40 }
 0x467   :  { %v3237_v57 = vadd.f32 %v3233_v0, %v3221_v61  ;;  %v3605_v16 = vmul.f32 0.8333333, %v5980_v45  ;;  %v3613_v35 = vmul.f32 0.8333333, %v3253_v38  ;;  %v5973_v7 = vadd.f32 0.6, %v8322_v62 }
 0x468   :  { %6008 = vmatmul.msk.f32.gmra.mxu2 %vm186_vm2, %v3541_v11  ;;  %v8320_v19 = vadd.f32 %v3261_v5, %v3249_v41  ;;  %v3166_v14 = vsub.f32 0.2, %v8322_v62  ;;  %v3382_v32 = vmul.f32 1.25, %v7964_v28  ;;  %v3429_v56 = vmul.f32 %v3425_v33, %v8317_v27  ;;  %v8334_v5 = vld [vmem:[#allocation2 + $0x20] sm:$0xff] }
 0x469   :  { %v3437_v12 = vmul.f32 %v3433_v59, %v3237_v57  ;;  %v3449_v40 = vmul.f32 %v3445_v44, %v3237_v57  ;;  %v3410_v0 = vmul.f32 1.25, %v7984_v13  ;;  %v3158_v38 = vmul.f32 2.5, %v5973_v7 }
 0x46a   :  { %v3457_v45 = vmul.f32 %v3453_v22, %v8320_v19  ;;  %v3170_v2 = vmul.f32 2.5, %v3166_v14  ;;  %v3386_v46 = vmul.f32 %v3382_v32, %v7995_v31  ;;  %v3390_v61 = vmul.f32 1.25, %v3166_v14 }
 0x46b   :  { %v8331_v20 = vadd.f32 %v3437_v12, %v3429_v56  ;;  %v3402_v11 = vmul.f32 1.25, %v5973_v7  ;;  %v3414_v41 = vmul.f32 %v3410_v0, %v8014_v43  ;;  %v3162_v33 = vmul.f32 %v3158_v38, %v7952_v25  ;;  %v4008_v38 = vld [vmem:[#allocation4 + $0x218] sm:$0xff] }
 0x46c   :  { %v8336_v48 = vadd.f32 %v3457_v45, %v3449_v40  ;;  %v3174_v59 = vmul.f32 %v3170_v2, %v7956_v1  ;;  %v3562_v44 = vmul.f32 0.8333333, %v7964_v28  ;;  %v3570_v31 = vmul.f32 0.8333333, %v7984_v13  ;;  %4033 = vmatpush.msra.mxu0 %v4008_v38 }
 0x46d   :  { %v3609_v22 = vmul.f32 %v3605_v16, %v8331_v20  ;;  %v3542_v57 = vmul.f32 0.8333333, %v7959_v30  ;;  %v3550_v32 = vmul.f32 0.8333333, %v3166_v14  ;;  %v3582_v12 = vmul.f32 0.8333333, %v5973_v7 }
 0x46e   :  { %v3617_v56 = vmul.f32 %v3613_v35, %v8336_v48  ;;  %v3178_v43 = vadd.f32 %v3174_v59, %v3162_v33  ;;  %v3590_v40 = vmul.f32 0.8333333, %v7993_v8  ;;  %v4112_v25 = vmul.f32 0.5, %v8334_v5  ;;  %v4947_v14 = vld [vmem:[#allocation4 + $0x158] sm:$0xff] }
 0x46f   :  { %v3546_v0 = vmul.f32 %v3542_v57, %v8012_v60  ;;  %v5974_v1 = vadd.f32 0.6, %v8009_v17  ;;  %v3167_v28 = vsub.f32 0.2, %v8009_v17  ;;  %v4058_v35 = vld [vmem:[#allocation4 + $0x238] sm:$0xff]  ;;  %v3383_v8 = vmul.f32 1.25, %v8058_v18  ;;  %4972 = vmatpush.msrb.mxu2 %v4947_v14 }
 0x470   :  { %v3621_v16 = vadd.f32 %v3617_v56, %v3609_v22  ;;  %v3394_v45 = vmul.f32 %v3390_v61, %v3178_v43  ;;  %v3406_v13 = vmul.f32 %v3402_v11, %v3178_v43  ;;  %v3594_v30 = vmul.f32 %v3590_v40, %v8026_v3  ;;  %4083 = vmatpush.msra.mxu1 %v4058_v35  ;;  %v4057_v35 = vld [vmem:[#allocation4 + $0x230] sm:$0xff] }
 0x471   :  { %6209 = vtanh.f32 %v4112_v25  ;;  %v3159_v7 = vmul.f32 2.5, %v5974_v1  ;;  %v3171_v2 = vmul.f32 2.5, %v3167_v28  ;;  %v3391_v17 = vmul.f32 1.25, %v3167_v28  ;;  %v8357_v25 = vld [vmem:[#allocation2 + $0x28] sm:$0xff] }
 0x472   :  { %6024 = vmatmul.msk.f32.gmra.mxu3 %vm186_vm2, %v3621_v16  ;;  %v3398_v60 = vadd.f32 %v3394_v45, %v3386_v46  ;;  %v3418_v33 = vadd.f32 %v3414_v41, %v3406_v13  ;;  %v3403_v59 = vmul.f32 1.25, %v5974_v1  ;;  %v3387_v11 = vmul.f32 %v3383_v8, %v8069_v37  ;;  %4084 = vmatpush.msra.mxu1 %v4057_v35  ;;  %v4056_v8 = vld [vmem:[#allocation4 + $0x228] sm:$0xff]  ;;  %v9497_v35 = vld [vmem:[#allocation27_spill] sm:$0xff] }
 0x473   :  { %v3163_v61 = vmul.f32 %v3159_v7, %v8045_v10  ;;  %v3175_v3 = vmul.f32 %v3171_v2, %v8071_v23  ;;  %v3411_v22 = vmul.f32 1.25, %v8085_v58  ;;  %v3563_v41 = vmul.f32 0.8333333, %v8058_v18 }
 0x474   :  { %v3566_v57 = vmul.f32 %v3562_v44, %v3398_v60  ;;  %v3574_v56 = vmul.f32 %v3570_v31, %v3418_v33  ;;  %v3554_v43 = vmul.f32 %v3550_v32, %v3398_v60  ;;  %v3586_v40 = vmul.f32 %v3582_v12, %v3418_v33  ;;  %v4006_v60 = vld [vmem:[#allocation4 + $0x208] sm:$0xff]  ;;  %4085 = vmatpush.msra.mxu1 %v4056_v8 }
 0x475   :  { %v3179_v16 = vadd.f32 %v3175_v3, %v3163_v61  ;;  %v3415_v46 = vmul.f32 %v3411_v22, %v8110_v21  ;;  %v3571_v45 = vmul.f32 0.8333333, %v8085_v58  ;;  %v3543_v37 = vmul.f32 0.8333333, %v8050_v51  ;;  %v4945_v3 = vld [vmem:[#allocation4 + $0x148] sm:$0xff] }
 0x476   :  { %v3578_v10 = vadd.f32 %v3574_v56, %v3566_v57  ;;  %v3558_v13 = vadd.f32 %v3554_v43, %v3546_v0  ;;  %v3598_v23 = vadd.f32 %v3594_v30, %v3586_v40  ;;  %v3551_v31 = vmul.f32 0.8333333, %v3167_v28 }
 0x477   :  { %v6210_v14 = vpop.eup %6209  ;;  %v3395_v38 = vmul.f32 %v3391_v17, %v3179_v16  ;;  %v3407_v44 = vmul.f32 %v3403_v59, %v3179_v16  ;;  %v3583_v32 = vmul.f32 0.8333333, %v5974_v1  ;;  %v3547_v21 = vmul.f32 %v3543_v37, %v8090_v47  ;;  %v4946_v1 = vld [vmem:[#allocation4 + $0x150] sm:$0xff]  ;;  %v9494_v37 = vld [vmem:[#allocation24_spill] sm:$0xff] }
 0x478   :  { %6013 = vmatmul.msk.f32.vlgmr.msrb.gmra.mxu1 %vm186_vm2, %v3578_v10  ;;  %6009 = vmatmul.msk.f32.vlgmr.msrb.gmra.mxu0 %vm186_vm2, %v3558_v13  ;;  %v4120_v12 = vadd.f32 1.0, %v6210_v14  ;;  %v3591_v18 = vmul.f32 0.8333333, %v8093_v26  ;;  %v4113_v58 = vmul.f32 0.5, %v8357_v25  ;;  %v5975_v30 = vadd.f32 0.6, %v8106_v52 }
 0x479   :  { %6017 = vmatmul.msk.f32.vlgmr.msra.gmra.mxu2 %vm186_vm2, %v3598_v23  ;;  %v3399_v0 = vadd.f32 %v3395_v38, %v3387_v11  ;;  %v3419_v51 = vadd.f32 %v3415_v46, %v3407_v44  ;;  %v3168_v28 = vsub.f32 0.2, %v8106_v52  ;;  %v3384_v47 = vmul.f32 1.25, %v8158_v6  ;;  %v4007_v26 = vld [vmem:[#allocation4 + $0x210] sm:$0xff]  ;;  %v4055_v52 = vld [vmem:[#allocation4 + $0x220] sm:$0xff] }
 0x47a   :  { %v4124_v7 = vmul.f32 0.5, %v4120_v12  ;;  %v3595_v2 = vmul.f32 %v3591_v18, %v8125_v50  ;;  %6211 = vtanh.f32 %v4113_v58  ;;  %4973 = vmatpush.msrb.mxu2 %v4946_v1  ;;  %4034 = vmatpush.msra.mxu0 %v4007_v26  ;;  %v3160_v22 = vmul.f32 2.5, %v5975_v30  ;;  %v4005_v50 = vld [vmem:[#allocation4 + $0x200] sm:$0xff]  ;;  %v8375_v46 = vld [vmem:[#allocation2 + $0x30] sm:$0xff]  ;;  %v9496_v18 = vld [vmem:[#allocation36_spill] sm:$0xff] }
 0x47b   :  { %v3567_v33 = vmul.f32 %v3563_v41, %v3399_v0  ;;  %v3575_v17 = vmul.f32 %v3571_v45, %v3419_v51  ;;  %v3555_v59 = vmul.f32 %v3551_v31, %v3399_v0  ;;  %v3587_v61 = vmul.f32 %v3583_v32, %v3419_v51  ;;  %v9492_v41 = vld [vmem:[#allocation25_spill] sm:$0xff]  ;;  %4086 = vmatpush.msra.mxu1 %v4055_v52  ;;  %v4944_v26 = vld [vmem:[#allocation4 + $0x140] sm:$0xff] }
 0x47c   :  { %v4128_v11 = vmul.f32 %v4124_v7, %v8334_v5  ;;  %v3172_v57 = vmul.f32 2.5, %v3168_v28  ;;  %4974 = vmatpush.msrb.mxu2 %v4945_v3  ;;  %v3388_v40 = vmul.f32 %v3384_v47, %v8172_v36  ;;  %v3392_v16 = vmul.f32 1.25, %v3168_v28  ;;  %4035 = vmatpush.msra.mxu0 %v4006_v60  ;;  %v9493_v10 = vld [vmem:[#allocation29_spill] sm:$0xff]  ;;  %v9495_v36 = vld [vmem:[#allocation34_spill] sm:$0xff] }
 0x47d   :  { %v3579_v56 = vadd.f32 %v3575_v17, %v3567_v33  ;;  %v3559_v43 = vadd.f32 %v3555_v59, %v3547_v21  ;;  %v3164_v45 = vmul.f32 %v3160_v22, %v9492_v41  ;;  %v3404_v23 = vmul.f32 1.25, %v5975_v30  ;;  %v9498_v7 = vld [vmem:[#allocation22_spill] sm:$0xff] }
 0x47e   :  { %6125 = vmatmul.msk.f32.vlgmr.msrb.gmra.mxu3 %vm186_vm2, %v4128_v11  ;;  %v3176_v13 = vmul.f32 %v3172_v57, %v9493_v10  ;;  %v3412_v14 = vmul.f32 1.25, %v9494_v37  ;;  %v3599_v38 = vadd.f32 %v3595_v2, %v3587_v61  ;;  %v3564_v44 = vmul.f32 0.8333333, %v8158_v6  ;;  %4036 = vmatpush.msra.mxu0 %v4005_v50  ;;  %v8397_v10 = vld [vmem:[#allocation2 + $0x38] sm:$0xff] }
 0x47f   :  { %v3572_v31 = vmul.f32 0.8333333, %v9494_v37  ;;  %v3544_v32 = vmul.f32 0.8333333, %v9495_v36  ;;  %v3552_v0 = vmul.f32 0.8333333, %v3168_v28  ;;  %4975 = vmatpush.msrb.mxu2 %v4944_v26 }
 0x480   :  { %v6212_v12 = vpop.eup %6211  ;;  %6014 = vmatmul.msk.f32.gmra.mxu1 %vm186_vm2, %v3579_v56  ;;  %6010 = vmatmul.msk.f32.gmra.mxu0 %vm186_vm2, %v3559_v43  ;;  %v3180_v21 = vadd.f32 %v3176_v13, %v3164_v45  ;;  %v3416_v58 = vmul.f32 %v3412_v14, %v9496_v18  ;;  %v3584_v51 = vmul.f32 0.8333333, %v5975_v30  ;;  %v3592_v2 = vmul.f32 0.8333333, %v9498_v7  ;;  %v9499_v28 = vld [vmem:[#allocation18_spill] sm:$0xff] }
 0x481   :  { %6018 = vmatmul.msk.f32.gmra.mxu2 %vm186_vm2, %v3599_v38  ;;  %v4121_v1 = vadd.f32 1.0, %v6212_v12  ;;  %v3548_v6 = vmul.f32 %v3544_v32, %v9497_v35  ;;  %v4114_v47 = vmul.f32 0.5, %v8375_v46  ;;  %v5976_v33 = vadd.f32 0.6, %v8207_v34 }
 0x482   :  { %v3396_v8 = vmul.f32 %v3392_v16, %v3180_v21  ;;  %v3408_v60 = vmul.f32 %v3404_v23, %v3180_v21  ;;  %v3169_v17 = vsub.f32 0.2, %v8207_v34  ;;  %v3596_v30 = vmul.f32 %v3592_v2, %v9499_v28 }
 0x483   :  { %v4125_v59 = vmul.f32 0.5, %v4121_v1  ;;  %6213 = vtanh.f32 %v4114_v47  ;;  %v3385_v61 = vmul.f32 1.25, %v8261_v24  ;;  %v3161_v11 = vmul.f32 2.5, %v5976_v33 }
 0x484   :  { %v3400_v3 = vadd.f32 %v3396_v8, %v3388_v40  ;;  %v3420_v52 = vadd.f32 %v3416_v58, %v3408_v60  ;;  %v3173_v22 = vmul.f32 2.5, %v3169_v17  ;;  %v3393_v56 = vmul.f32 1.25, %v3169_v17 }
 0x485   :  { %v4129_v57 = vmul.f32 %v4125_v59, %v8357_v25  ;;  %v3389_v50 = vmul.f32 %v3385_v61, %v8280_v4  ;;  %v3405_v43 = vmul.f32 1.25, %v5976_v33  ;;  %v3165_v13 = vmul.f32 %v3161_v11, %v8244_v63 }
 0x486   :  { %v3568_v16 = vmul.f32 %v3564_v44, %v3400_v3  ;;  %v3576_v41 = vmul.f32 %v3572_v31, %v3420_v52  ;;  %v3556_v34 = vmul.f32 %v3552_v0, %v3400_v3  ;;  %v3588_v45 = vmul.f32 %v3584_v51, %v3420_v52 }
 0x487   :  { %6126 = vmatmul.msk.f32.gmra.mxu3 %vm186_vm2, %v4129_v57  ;;  %v3177_v40 = vmul.f32 %v3173_v22, %v8275_v49  ;;  %v3413_v23 = vmul.f32 1.25, %v8296_v54  ;;  %v3565_v37 = vmul.f32 0.8333333, %v8261_v24  ;;  %v3573_v44 = vmul.f32 0.8333333, %v8296_v54  ;;  %v9501_v22 = vld [vmem:[#allocation19_spill] sm:$0xff] }
 0x488   :  { %v3580_v14 = vadd.f32 %v3576_v41, %v3568_v16  ;;  %v3560_v4 = vadd.f32 %v3556_v34, %v3548_v6  ;;  %v3600_v38 = vadd.f32 %v3596_v30, %v3588_v45  ;;  %v3545_v12 = vmul.f32 0.8333333, %v8250_v29  ;;  %v9500_v6 = vld [vmem:[#allocation21_spill] sm:$0xff] }
 0x489   :  { %v6214_v31 = vpop.eup %6213  ;;  %v3181_v36 = vadd.f32 %v3177_v40, %v3165_v13  ;;  %v3417_v32 = vmul.f32 %v3413_v23, %v8317_v27  ;;  %v3553_v21 = vmul.f32 0.8333333, %v3169_v17  ;;  %v3585_v49 = vmul.f32 0.8333333, %v5976_v33 }
 0x48a   :  { %6015 = vmatmul.msk.f32.gmra.mxu1 %vm186_vm2, %v3580_v14  ;;  %6011 = vmatmul.msk.f32.gmra.mxu0 %vm186_vm2, %v3560_v4  ;;  %v4122_v63 = vadd.f32 1.0, %v6214_v31  ;;  %v3593_v24 = vmul.f32 0.8333333, %v8286_v42  ;;  %v4115_v18 = vmul.f32 0.5, %v8397_v10  ;;  %v3549_v0 = vmul.f32 %v3545_v12, %v8302_v39  ;;  %v9504_v12 = vld [vmem:[#allocation28_spill] sm:$0xff] }
 0x48b   :  { %6019 = vmatmul.msk.f32.gmra.mxu2 %vm186_vm2, %v3600_v38  ;;  %v3397_v54 = vmul.f32 %v3393_v56, %v3181_v36  ;;  %v3409_v58 = vmul.f32 %v3405_v43, %v3181_v36  ;;  %vm3010_vm13 = vcmp.ge.f32.partialorder %v8322_v62, 1.8  ;;  %vm3026_vm14 = vcmp.ge.f32.partialorder %v8322_v62, 2.2  ;;  %v9502_v43 = vld [vmem:[#allocation16_spill] sm:$0xff] }
 0x48c   :  { %v4126_v29 = vmul.f32 0.5, %v4122_v63  ;;  %v3597_v27 = vmul.f32 %v3593_v24, %v8331_v20  ;;  %6215 = vtanh.f32 %v4115_v18  ;;  %v5949_v51 = vsel %vm3010_vm13, 1.0, %v9323_v15 }
 0x48d   :  { %v3401_v1 = vadd.f32 %v3397_v54, %v3389_v50  ;;  %v3421_v35 = vadd.f32 %v3417_v32, %v3409_v58  ;;  %v3022_v42 = vsub.f32 %v9500_v6, %v5949_v51  ;;  %v5953_v2 = vsel %vm3026_vm14, 1.0, %v9323_v15  ;;  %v9505_v54 = vld [vmem:[#allocation32_spill] sm:$0xff] }
 0x48e   :  { %v4130_v7 = vmul.f32 %v4126_v29, %v8375_v46  ;;  %v5989_v39 = vadd.f32 -1.0, %v8322_v62  ;;  %v3278_v47 = vsub.f32 1.8, %v8322_v62  ;;  %v3038_v33 = vsub.f32 %v5949_v51, %v5953_v2 }
 0x48f   :  { %v3569_v26 = vmul.f32 %v3565_v37, %v3401_v1  ;;  %v3577_v8 = vmul.f32 %v3573_v44, %v3421_v35  ;;  %v3557_v20 = vmul.f32 %v3553_v21, %v3401_v1  ;;  %v3589_v60 = vmul.f32 %v3585_v49, %v3421_v35 }
 0x490   :  { %6127 = vmatmul.msk.f32.gmra.mxu3 %vm186_vm2, %v4130_v7  ;;  %v3270_v17 = vmul.f32 2.5, %v5989_v39  ;;  %v3282_v59 = vmul.f32 2.5, %v3278_v47  ;;  %v5993_v28 = vadd.f32 -1.4, %v8322_v62  ;;  %v3306_v52 = vsub.f32 2.2, %v8322_v62 }
 0x491   :  { %v3581_v30 = vadd.f32 %v3577_v8, %v3569_v26  ;;  %v3561_v61 = vadd.f32 %v3557_v20, %v3549_v0  ;;  %v3601_v3 = vadd.f32 %v3597_v27, %v3589_v60  ;;  %v3462_v16 = vmul.f32 1.25, %v9502_v43  ;;  %v9503_v62 = vld [vmem:[#allocation23_spill] sm:$0xff] }
 0x492   :  { %v6216_v11 = vpop.eup %6215  ;;  %v3274_v57 = vmul.f32 %v3270_v17, %v9501_v22  ;;  %v3286_v50 = vmul.f32 %v3282_v59, %v3022_v42  ;;  %v3298_v56 = vmul.f32 2.5, %v5993_v28  ;;  %v3310_v34 = vmul.f32 2.5, %v3306_v52 }
 0x493   :  { %6016 = vmatmul.msk.f32.gmra.mxu1 %vm186_vm2, %v3581_v30  ;;  %6012 = vmatmul.msk.f32.gmra.mxu0 %vm186_vm2, %v3561_v61  ;;  %v4123_v41 = vadd.f32 1.0, %v6216_v11  ;;  %v3470_v45 = vmul.f32 1.25, %v3278_v47  ;;  %v3482_v13 = vmul.f32 1.25, %v5989_v39  ;;  %v3466_v37 = vmul.f32 %v3462_v16, %v9503_v62 }
 0x494   :  { %6020 = vmatmul.msk.f32.gmra.mxu2 %vm186_vm2, %v3601_v3  ;;  %v3290_v40 = vadd.f32 %v3286_v50, %v3274_v57  ;;  %v3302_v23 = vmul.f32 %v3298_v56, %v3022_v42  ;;  %v3490_v14 = vmul.f32 1.25, %v3306_v52  ;;  %v3314_v38 = vmul.f32 %v3310_v34, %v3038_v33 }
 0x495   :  { %v4127_v4 = vmul.f32 0.5, %v4123_v41  ;;  %v3642_v44 = vmul.f32 0.8333333, %v9502_v43  ;;  %v3650_v31 = vmul.f32 0.8333333, %v3306_v52  ;;  %vm4176_vm4 = vcmp.ge.f32.partialorder %v8334_v5, -1.0 }
 0x496   :  { %v3474_v36 = vmul.f32 %v3470_v45, %v3290_v40  ;;  %v3486_v32 = vmul.f32 %v3482_v13, %v3290_v40  ;;  %v3622_v21 = vmul.f32 0.8333333, %v9504_v12  ;;  %v3630_v63 = vmul.f32 0.8333333, %v3278_v47 }
 0x497   :  { %v4131_v49 = vmul.f32 %v4127_v4, %v8397_v10  ;;  %v3318_v24 = vadd.f32 %v3314_v38, %v3302_v23  ;;  %vm4132_vm15 = vcmp.ge.f32.partialorder %v8334_v5, -2.2  ;;  %vm4144_vm1 = vcmp.ge.f32.partialorder %v8334_v5, -1.8 }
 0x498   :  { %v3478_v18 = vadd.f32 %v3474_v36, %v3466_v37  ;;  %v3626_v58 = vmul.f32 %v3622_v21, %v9505_v54  ;;  %v6033_v0 = vsel %vm4132_vm15, 1.0, %v9323_v15  ;;  %v6037_v29 = vsel %vm4144_vm1, 1.0, %v9323_v15 }
 0x499   :  { %6128 = vmatmul.msk.f32.gmra.mxu3 %vm186_vm2, %v4131_v49  ;;  %v3494_v27 = vmul.f32 %v3490_v14, %v3318_v24  ;;  %v4156_v51 = vsub.f32 %v6033_v0, %v6037_v29  ;;  %vm4160_vm3 = vcmp.ge.f32.partialorder %v8334_v5, -1.4  ;;  %v6045_v42 = vsel %vm4176_vm4, 1.0, %v9323_v15 }
 0x49a   :  { %v3646_v1 = vmul.f32 %v3642_v44, %v3478_v18  ;;  %v3634_v35 = vmul.f32 %v3630_v63, %v3478_v18  ;;  %v6041_v6 = vsel %vm4160_vm3, 1.0, %v9323_v15  ;;  %vm4192_vm5 = vcmp.ge.f32.partialorder %v8334_v5, -0.6 }
 0x49b   :  { %v3498_v7 = vadd.f32 %v3494_v27, %v3486_v32  ;;  %v4172_v2 = vsub.f32 %v6037_v29, %v6041_v6  ;;  %v4188_v39 = vsub.f32 %v6041_v6, %v6045_v42  ;;  %v6049_v26 = vsel %vm4192_vm5, 1.0, %v9323_v15 }
 0x49c   :  { %v3638_v47 = vadd.f32 %v3634_v35, %v3626_v58  ;;  %v6081_v8 = vadd.f32 2.2, %v8334_v5  ;;  %v4332_v20 = vsub.f32 -1.4, %v8334_v5  ;;  %v8448_v33 = vsub.f32 %v6045_v42, %v6049_v26 }
 0x49d   :  { %v3654_v60 = vmul.f32 %v3650_v31, %v3498_v7  ;;  %v8451_v17 = vadd.f32 1.8, %v8334_v5  ;;  %v4360_v59 = vsub.f32 -1.0, %v8334_v5  ;;  %v8456_v61 = vadd.f32 1.4, %v8334_v5 }
 0x49e   :  { %6025 = vmatmul.msk.f32.vlgmr.msra.gmra.mxu0 %vm186_vm2, %v3638_v47  ;;  %v4324_v28 = vmul.f32 2.5, %v6081_v8  ;;  %v4336_v30 = vmul.f32 2.5, %v4332_v20  ;;  %v4388_v3 = vsub.f32 -0.6, %v8334_v5  ;;  %v4600_v57 = vmul.f32 1.25, %v6081_v8 }
 0x49f   :  { %v3658_v52 = vadd.f32 %v3654_v60, %v3646_v1  ;;  %v4352_v11 = vmul.f32 2.5, %v8451_v17  ;;  %v4364_v22 = vmul.f32 2.5, %v4360_v59  ;;  %v4380_v43 = vmul.f32 2.5, %v8456_v61 }
 0x4a0   :  { %v4328_v50 = vmul.f32 %v4324_v28, %v4156_v51  ;;  %v4340_v56 = vmul.f32 %v4336_v30, %v4172_v2  ;;  %v4392_v16 = vmul.f32 2.5, %v4388_v3  ;;  %v4608_v45 = vmul.f32 1.25, %v4360_v59 }
 0x4a1   :  { %6029 = vmatmul.msk.f32.vlgmr.msra.gmra.mxu1 %vm186_vm2, %v3658_v52  ;;  %v4356_v41 = vmul.f32 %v4352_v11, %v4172_v2  ;;  %v4368_v34 = vmul.f32 %v4364_v22, %v4188_v39  ;;  %v4620_v13 = vmul.f32 1.25, %v8451_v17  ;;  %v4384_v23 = vmul.f32 %v4380_v43, %v4188_v39 }
 0x4a2   :  { %v4344_v40 = vadd.f32 %v4340_v56, %v4328_v50  ;;  %v4396_v62 = vmul.f32 %v4392_v16, %v8448_v33  ;;  %v4628_v37 = vmul.f32 1.25, %v4388_v3  ;;  %v4780_v4 = vmul.f32 0.8333333, %v6081_v8 }
 0x4a3   :  { %v4372_v14 = vadd.f32 %v4368_v34, %v4356_v41  ;;  %v4788_v38 = vmul.f32 0.8333333, %v4388_v3  ;;  %vm4208_vm6 = vcmp.ge.f32.partialorder %v8334_v5, -0.2  ;;  %vm4224_vm7 = vcmp.ge.f32.partialorder %v8334_v5, 0.2 }
 0x4a4   :  { %v8465_v44 = vadd.f32 %v4396_v62, %v4384_v23  ;;  %v4604_v31 = vmul.f32 %v4600_v57, %v4344_v40  ;;  %v6053_v36 = vsel %vm4208_vm6, 1.0, %v9323_v15  ;;  %v6057_v63 = vsel %vm4224_vm7, 1.0, %v9323_v15 }
 0x4a5   :  { %v4612_v32 = vmul.f32 %v4608_v45, %v4372_v14  ;;  %v4624_v12 = vmul.f32 %v4620_v13, %v4372_v14  ;;  %v8469_v21 = vsub.f32 %v6049_v26, %v6053_v36  ;;  %v4236_v24 = vsub.f32 %v6053_v36, %v6057_v63  ;;  %v6258_v13 = vld [vmem:[#allocation2 + $0x8] sm:$0xff] }
 0x4a6   :  { %v4632_v49 = vmul.f32 %v4628_v37, %v8465_v44  ;;  %vm4240_vm8 = vcmp.ge.f32.partialorder %v8334_v5, 0.6  ;;  %vm4256_vm9 = vcmp.ge.f32.partialorder %v8334_v5, 1.0  ;;  %v6097_v0 = vadd.f32 0.6, %v8334_v5 }
 0x4a7   :  { %v4616_v18 = vadd.f32 %v4612_v32, %v4604_v31  ;;  %v6061_v54 = vsel %vm4240_vm8, 1.0, %v9323_v15  ;;  %v8477_v58 = vsel %vm4256_vm9, 1.0, %v9323_v15  ;;  %v8486_v1 = vsub.f32 0.2, %v8334_v5 }
 0x4a8   :  { %9506 = vst [vmem:[#allocation26_spill] sm:$0xff] %v8477_v58  ;;  %v8480_v29 = vadd.f32 %v4632_v49, %v4624_v12  ;;  %v4252_v27 = vsub.f32 %v6057_v63, %v6061_v54  ;;  %v8483_v51 = vsub.f32 %v6061_v54, %v8477_v58  ;;  %v4436_v6 = vmul.f32 2.5, %v6097_v0  ;;  %v9512_v54 = vld [vmem:[#allocation8_spill] sm:$0xff] }
 0x4a9   :  { %v4784_v35 = vmul.f32 %v4780_v4, %v4616_v18  ;;  %v8489_v42 = vadd.f32 0.2, %v8334_v5  ;;  %v8492_v7 = vsub.f32 0.6, %v8334_v5  ;;  %v4448_v39 = vmul.f32 2.5, %v8486_v1  ;;  %v9511_v4 = vld [vmem:[#allocation30_spill] sm:$0xff] }
 0x4aa   :  { %9507 = vst [vmem:[#allocation33_spill] sm:$0xff] %v8483_v51  ;;  %v4792_v2 = vmul.f32 %v4788_v38, %v8480_v29  ;;  %v8497_v47 = vadd.f32 -0.2, %v8334_v5  ;;  %v4500_v26 = vsub.f32 1.0, %v8334_v5  ;;  %v4440_v8 = vmul.f32 %v4436_v6, %v8469_v21 }
 0x4ab   :  { %9508 = vst [vmem:[#allocation7_spill] sm:$0xff] %v8489_v42  ;;  %v4464_v20 = vmul.f32 2.5, %v8489_v42  ;;  %v4476_v60 = vmul.f32 2.5, %v8492_v7  ;;  %v4680_v59 = vmul.f32 1.25, %v6097_v0  ;;  %v4452_v30 = vmul.f32 %v4448_v39, %v4236_v24 }
 0x4ac   :  { %9509 = vst [vmem:[#allocation12_spill] sm:$0xff] %v8497_v47  ;;  %v4796_v28 = vadd.f32 %v4792_v2, %v4784_v35  ;;  %v4492_v3 = vmul.f32 2.5, %v8497_v47  ;;  %v4504_v52 = vmul.f32 2.5, %v4500_v26  ;;  %v4688_v57 = vmul.f32 1.25, %v8492_v7 }
 0x4ad   :  { %v4468_v11 = vmul.f32 %v4464_v20, %v4236_v24  ;;  %v4480_v22 = vmul.f32 %v4476_v60, %v4252_v27  ;;  %v4700_v50 = vmul.f32 1.25, %v8489_v42  ;;  %v8507_v5 = vadd.f32 %v4452_v30, %v4440_v8  ;;  %v9514_v20 = vld [vmem:[#allocation9_spill] sm:$0xff] }
 0x4ae   :  { %6121 = vmatmul.msk.f32.vlgmr.msrb.gmra.mxu2 %vm186_vm2, %v4796_v28  ;;  %v4496_v56 = vmul.f32 %v4492_v3, %v4252_v27  ;;  %v4508_v43 = vmul.f32 %v4504_v52, %v8483_v51  ;;  %v4708_v16 = vmul.f32 1.25, %v4500_v26  ;;  %v4860_v34 = vmul.f32 0.8333333, %v6097_v0  ;;  %v9515_v28 = vld [vmem:[#allocation31_spill] sm:$0xff] }
 0x4af   :  { %v4484_v41 = vadd.f32 %v4480_v22, %v4468_v11  ;;  %v4868_v45 = vmul.f32 0.8333333, %v4500_v26  ;;  %vm3011_vm10 = vcmp.ge.f32.partialorder %v6258_v13, 1.8  ;;  %v4684_v23 = vmul.f32 %v4680_v59, %v8507_v5 }
 0x4b0   :  { %v8510_v40 = vadd.f32 %v4508_v43, %v4496_v56  ;;  %v5950_v62 = vsel %vm3011_vm10, 1.0, %v9323_v15  ;;  %vm3027_vm11 = vcmp.ge.f32.partialorder %v6258_v13, 2.2  ;;  %v5990_v12 = vadd.f32 -1.0, %v6258_v13 }
 0x4b1   :  { %v4692_v37 = vmul.f32 %v4688_v57, %v4484_v41  ;;  %v4704_v14 = vmul.f32 %v4700_v50, %v4484_v41  ;;  %v3023_v38 = vsub.f32 %v9511_v4, %v5950_v62  ;;  %v5954_v31 = vsel %vm3027_vm11, 1.0, %v9323_v15  ;;  %v9516_v41 = vld [vmem:[#allocation10_spill] sm:$0xff] }
 0x4b2   :  { %9510 = vst [vmem:[#allocation25_spill] sm:$0xff] %v8510_v40  ;;  %v4712_v36 = vmul.f32 %v4708_v16, %v8510_v40  ;;  %v3039_v32 = vsub.f32 %v5950_v62, %v5954_v31  ;;  %v3279_v63 = vsub.f32 1.8, %v6258_v13  ;;  %v5994_v24 = vadd.f32 -1.4, %v6258_v13 }
 0x4b3   :  { %v8517_v49 = vadd.f32 %v4692_v37, %v4684_v23  ;;  %v3307_v18 = vsub.f32 2.2, %v6258_v13  ;;  %v3463_v0 = vmul.f32 1.25, %v9512_v54  ;;  %v3271_v35 = vmul.f32 2.5, %v5990_v12  ;;  %v9517_v37 = vld [vmem:[#allocation17_spill] sm:$0xff] }
 0x4b4   :  { %v8520_v27 = vadd.f32 %v4712_v36, %v4704_v14  ;;  %v3283_v6 = vmul.f32 2.5, %v3279_v63  ;;  %v3471_v2 = vmul.f32 1.25, %v3279_v63  ;;  %v3299_v26 = vmul.f32 2.5, %v5994_v24 }
 0x4b5   :  { %v4864_v39 = vmul.f32 %v4860_v34, %v8517_v49  ;;  %v3311_v8 = vmul.f32 2.5, %v3307_v18  ;;  %v3467_v60 = vmul.f32 %v3463_v0, %v9514_v20  ;;  %v3275_v30 = vmul.f32 %v3271_v35, %v9515_v28 }
 0x4b6   :  { %9513 = vst [vmem:[#allocation29_spill] sm:$0xff] %v8520_v27  ;;  %v4872_v59 = vmul.f32 %v4868_v45, %v8520_v27  ;;  %v3287_v3 = vmul.f32 %v3283_v6, %v3023_v38  ;;  %v3483_v52 = vmul.f32 1.25, %v5990_v12  ;;  %v3303_v11 = vmul.f32 %v3299_v26, %v3023_v38  ;;  %v9529_v27 = vld [vmem:[#allocation37_spill] sm:$0xff] }
 0x4b7   :  { %v3315_v22 = vmul.f32 %v3311_v8, %v3039_v32  ;;  %v3491_v57 = vmul.f32 1.25, %v3307_v18  ;;  %v3643_v50 = vmul.f32 0.8333333, %v9512_v54  ;;  %v3651_v16 = vmul.f32 0.8333333, %v3307_v18 }
 0x4b8   :  { %v4876_v56 = vadd.f32 %v4872_v59, %v4864_v39  ;;  %v3291_v43 = vadd.f32 %v3287_v3, %v3275_v30  ;;  %v3623_v34 = vmul.f32 0.8333333, %v9516_v41  ;;  %v3631_v23 = vmul.f32 0.8333333, %v3279_v63 }
 0x4b9   :  { %v3319_v13 = vadd.f32 %v3315_v22, %v3303_v11  ;;  %vm4133_vm12 = vcmp.ge.f32.partialorder %v8357_v25, -2.2  ;;  %vm4145_vm13 = vcmp.ge.f32.partialorder %v8357_v25, -1.8  ;;  %vm4161_vm14 = vcmp.ge.f32.partialorder %v8357_v25, -1.4 }
 0x4ba   :  { %6141 = vmatmul.msk.f32.vlgmr.msra.gmra.mxu3 %vm186_vm2, %v4876_v56  ;;  %v3475_v45 = vmul.f32 %v3471_v2, %v3291_v43  ;;  %v3487_v62 = vmul.f32 %v3483_v52, %v3291_v43  ;;  %v3627_v14 = vmul.f32 %v3623_v34, %v9517_v37  ;;  %v6034_v4 = vsel %vm4133_vm12, 1.0, %v9323_v15 }
 0x4bb   :  { %v3495_v38 = vmul.f32 %v3491_v57, %v3319_v13  ;;  %v6038_v31 = vsel %vm4145_vm13, 1.0, %v9323_v15  ;;  %vm4177_vm15 = vcmp.ge.f32.partialorder %v8357_v25, -1.0  ;;  %v6042_v12 = vsel %vm4161_vm14, 1.0, %v9323_v15 }
 0x4bc   :  { %v3479_v36 = vadd.f32 %v3475_v45, %v3467_v60  ;;  %v4157_v32 = vsub.f32 %v6034_v4, %v6038_v31  ;;  %v6046_v63 = vsel %vm4177_vm15, 1.0, %v9323_v15  ;;  %v4173_v18 = vsub.f32 %v6038_v31, %v6042_v12 }
 0x4bd   :  { %v3499_v24 = vadd.f32 %v3495_v38, %v3487_v62  ;;  %v4189_v54 = vsub.f32 %v6042_v12, %v6046_v63  ;;  %vm4193_vm1 = vcmp.ge.f32.partialorder %v8357_v25, -0.6  ;;  %v6082_v2 = vadd.f32 2.2, %v8357_v25 }
 0x4be   :  { %v3647_v0 = vmul.f32 %v3643_v50, %v3479_v36  ;;  %v3635_v35 = vmul.f32 %v3631_v23, %v3479_v36  ;;  %v6050_v6 = vsel %vm4193_vm1, 1.0, %v9323_v15  ;;  %v4333_v8 = vsub.f32 -1.4, %v8357_v25 }
 0x4bf   :  { %v3655_v39 = vmul.f32 %v3651_v16, %v3499_v24  ;;  %v8541_v26 = vsub.f32 %v6046_v63, %v6050_v6  ;;  %v8545_v20 = vadd.f32 1.8, %v8357_v25  ;;  %v4325_v59 = vmul.f32 2.5, %v6082_v2 }
 0x4c0   :  { %v3639_v60 = vadd.f32 %v3635_v35, %v3627_v14  ;;  %v4361_v28 = vsub.f32 -1.0, %v8357_v25  ;;  %v8549_v30 = vadd.f32 1.4, %v8357_v25  ;;  %v4337_v52 = vmul.f32 2.5, %v4333_v8 }
 0x4c1   :  { %v3659_v3 = vadd.f32 %v3655_v39, %v3647_v0  ;;  %v4353_v11 = vmul.f32 2.5, %v8545_v20  ;;  %v4389_v22 = vsub.f32 -0.6, %v8357_v25  ;;  %v4329_v57 = vmul.f32 %v4325_v59, %v4157_v32 }
 0x4c2   :  { %6026 = vmatmul.msk.f32.gmra.mxu0 %vm186_vm2, %v3639_v60  ;;  %v4365_v50 = vmul.f32 2.5, %v4361_v28  ;;  %v4381_v56 = vmul.f32 2.5, %v8549_v30  ;;  %v4601_v43 = vmul.f32 1.25, %v6082_v2  ;;  %v4341_v16 = vmul.f32 %v4337_v52, %v4173_v18 }
 0x4c3   :  { %6030 = vmatmul.msk.f32.gmra.mxu1 %vm186_vm2, %v3659_v3  ;;  %v4357_v41 = vmul.f32 %v4353_v11, %v4173_v18  ;;  %v4393_v34 = vmul.f32 2.5, %v4389_v22  ;;  %v4609_v13 = vmul.f32 1.25, %v4361_v28  ;;  %v4621_v62 = vmul.f32 1.25, %v8545_v20 }
 0x4c4   :  { %v4369_v23 = vmul.f32 %v4365_v50, %v4189_v54  ;;  %v4385_v45 = vmul.f32 %v4381_v56, %v4189_v54  ;;  %v4629_v37 = vmul.f32 1.25, %v4389_v22  ;;  %v4345_v14 = vadd.f32 %v4341_v16, %v4329_v57 }
 0x4c5   :  { %v4397_v4 = vmul.f32 %v4393_v34, %v8541_v26  ;;  %v4781_v38 = vmul.f32 0.8333333, %v6082_v2  ;;  %v4789_v31 = vmul.f32 0.8333333, %v4389_v22  ;;  %vm4209_vm3 = vcmp.ge.f32.partialorder %v8357_v25, -0.2 }
 0x4c6   :  { %v4373_v36 = vadd.f32 %v4369_v23, %v4357_v41  ;;  %vm4225_vm4 = vcmp.ge.f32.partialorder %v8357_v25, 0.2  ;;  %vm4241_vm5 = vcmp.ge.f32.partialorder %v8357_v25, 0.6  ;;  %v4605_v12 = vmul.f32 %v4601_v43, %v4345_v14 }
 0x4c7   :  { %v8561_v32 = vadd.f32 %v4397_v4, %v4385_v45  ;;  %v6054_v63 = vsel %vm4209_vm3, 1.0, %v9323_v15  ;;  %v6058_v24 = vsel %vm4225_vm4, 1.0, %v9323_v15  ;;  %v6062_v39 = vsel %vm4241_vm5, 1.0, %v9323_v15 }
 0x4c8   :  { %v4613_v18 = vmul.f32 %v4609_v13, %v4373_v36  ;;  %v4625_v54 = vmul.f32 %v4621_v62, %v4373_v36  ;;  %v8565_v0 = vsub.f32 %v6050_v6, %v6054_v63  ;;  %v4237_v35 = vsub.f32 %v6054_v63, %v6058_v24 }
 0x4c9   :  { %v4633_v2 = vmul.f32 %v4629_v37, %v8561_v32  ;;  %vm4257_vm6 = vcmp.ge.f32.partialorder %v8357_v25, 1.0  ;;  %v6098_v8 = vadd.f32 0.6, %v8357_v25  ;;  %v4253_v59 = vsub.f32 %v6058_v24, %v6062_v39 }
 0x4ca   :  { %v4617_v60 = vadd.f32 %v4613_v18, %v4605_v12  ;;  %v8572_v28 = vsel %vm4257_vm6, 1.0, %v9323_v15  ;;  %v8575_v3 = vsub.f32 0.2, %v8357_v25  ;;  %v8583_v22 = vadd.f32 0.2, %v8357_v25 }
 0x4cb   :  { %9518 = vst [vmem:[#allocation24_spill] sm:$0xff] %v8572_v28  ;;  %v8577_v52 = vadd.f32 %v4633_v2, %v4625_v54  ;;  %v8580_v6 = vsub.f32 %v6062_v39, %v8572_v28  ;;  %v4437_v11 = vmul.f32 2.5, %v6098_v8  ;;  %v8587_v56 = vsub.f32 0.6, %v8357_v25 }
 0x4cc   :  { %9520 = vst [vmem:[#allocation36_spill] sm:$0xff] %v8583_v22  ;;  %v4785_v57 = vmul.f32 %v4781_v38, %v4617_v60  ;;  %v4449_v50 = vmul.f32 2.5, %v8575_v3  ;;  %v8590_v43 = vadd.f32 -0.2, %v8357_v25  ;;  %v4465_v34 = vmul.f32 2.5, %v8583_v22 }
 0x4cd   :  { %9519 = vst [vmem:[#allocation34_spill] sm:$0xff] %v8580_v6  ;;  %v4793_v16 = vmul.f32 %v4789_v31, %v8577_v52  ;;  %v4441_v41 = vmul.f32 %v4437_v11, %v8565_v0  ;;  %v4501_v13 = vsub.f32 1.0, %v8357_v25  ;;  %v4477_v45 = vmul.f32 2.5, %v8587_v56 }
 0x4ce   :  { %9521 = vst [vmem:[#allocation27_spill] sm:$0xff] %v8590_v43  ;;  %v4453_v23 = vmul.f32 %v4449_v50, %v4237_v35  ;;  %v4493_v62 = vmul.f32 2.5, %v8590_v43  ;;  %v4681_v37 = vmul.f32 1.25, %v6098_v8  ;;  %v4469_v4 = vmul.f32 %v4465_v34, %v4237_v35  ;;  %v6259_v35 = vld [vmem:[#allocation2 + $0x10] sm:$0xff] }
 0x4cf   :  { %v4797_v14 = vadd.f32 %v4793_v16, %v4785_v57  ;;  %v4505_v38 = vmul.f32 2.5, %v4501_v13  ;;  %v4689_v36 = vmul.f32 1.25, %v8587_v56  ;;  %v4481_v31 = vmul.f32 %v4477_v45, %v4253_v59  ;;  %v9523_v34 = vld [vmem:[#allocation13_spill] sm:$0xff] }
 0x4d0   :  { %v8599_v12 = vadd.f32 %v4453_v23, %v4441_v41  ;;  %v4497_v63 = vmul.f32 %v4493_v62, %v4253_v59  ;;  %v4701_v24 = vmul.f32 1.25, %v8583_v22  ;;  %v4709_v18 = vmul.f32 1.25, %v4501_v13  ;;  %v9526_v22 = vld [vmem:[#allocation11_spill] sm:$0xff] }
 0x4d1   :  { %6122 = vmatmul.msk.f32.gmra.mxu2 %vm186_vm2, %v4797_v14  ;;  %v4509_v25 = vmul.f32 %v4505_v38, %v8580_v6  ;;  %v4861_v54 = vmul.f32 0.8333333, %v6098_v8  ;;  %v4869_v2 = vmul.f32 0.8333333, %v4501_v13  ;;  %v4485_v39 = vadd.f32 %v4481_v31, %v4469_v4  ;;  %v9524_v38 = vld [vmem:[#allocation35_spill] sm:$0xff] }
 0x4d2   :  { %v4685_v60 = vmul.f32 %v4681_v37, %v8599_v12  ;;  %vm3012_vm7 = vcmp.ge.f32.partialorder %v6259_v35, 1.8  ;;  %vm3028_vm8 = vcmp.ge.f32.partialorder %v6259_v35, 2.2  ;;  %v5991_v50 = vadd.f32 -1.0, %v6259_v35 }
 0x4d3   :  { %v8605_v11 = vadd.f32 %v4509_v25, %v4497_v63  ;;  %v5951_v57 = vsel %vm3012_vm7, 1.0, %v9323_v15  ;;  %v5955_v59 = vsel %vm3028_vm8, 1.0, %v9323_v15  ;;  %v4693_v16 = vmul.f32 %v4689_v36, %v4485_v39 }
 0x4d4   :  { %v4705_v41 = vmul.f32 %v4701_v24, %v4485_v39  ;;  %v3024_v23 = vsub.f32 %v9523_v34, %v5951_v57  ;;  %v3040_v45 = vsub.f32 %v5951_v57, %v5955_v59  ;;  %v3272_v13 = vmul.f32 2.5, %v5991_v50  ;;  %v9527_v59 = vld [vmem:[#allocation14_spill] sm:$0xff] }
 0x4d5   :  { %9522 = vst [vmem:[#allocation22_spill] sm:$0xff] %v8605_v11  ;;  %v4713_v8 = vmul.f32 %v4709_v18, %v8605_v11  ;;  %v3280_v62 = vsub.f32 1.8, %v6259_v35  ;;  %v5995_v37 = vadd.f32 -1.4, %v6259_v35  ;;  %v8611_v14 = vadd.f32 %v4693_v16, %v4685_v60 }
 0x4d6   :  { %v3308_v4 = vsub.f32 2.2, %v6259_v35  ;;  %v3464_v31 = vmul.f32 1.25, %v9524_v38  ;;  %v3484_v63 = vmul.f32 1.25, %v5991_v50  ;;  %v3276_v6 = vmul.f32 %v3272_v13, %v9526_v22 }
 0x4d7   :  { %v8614_v25 = vadd.f32 %v4713_v8, %v4705_v41  ;;  %v3284_v36 = vmul.f32 2.5, %v3280_v62  ;;  %v3300_v24 = vmul.f32 2.5, %v5995_v37  ;;  %v4865_v39 = vmul.f32 %v4861_v54, %v8611_v14  ;;  %v9528_v8 = vld [vmem:[#allocation20_spill] sm:$0xff] }
 0x4d8   :  { %v3312_v57 = vmul.f32 2.5, %v3308_v4  ;;  %v3468_v18 = vmul.f32 %v3464_v31, %v9527_v59  ;;  %v3472_v34 = vmul.f32 1.25, %v3280_v62  ;;  %v3492_v35 = vmul.f32 1.25, %v3308_v4 }
 0x4d9   :  { %9525 = vst [vmem:[#allocation18_spill] sm:$0xff] %v8614_v25  ;;  %v4873_v11 = vmul.f32 %v4869_v2, %v8614_v25  ;;  %v3288_v60 = vmul.f32 %v3284_v36, %v3024_v23  ;;  %v3304_v16 = vmul.f32 %v3300_v24, %v3024_v23  ;;  %v3644_v50 = vmul.f32 0.8333333, %v9524_v38  ;;  %v5033_v38 = vld [vmem:[#allocation4 + $0x178] sm:$0xff] }
 0x4da   :  { %v3316_v43 = vmul.f32 %v3312_v57, %v3040_v45  ;;  %v3652_v41 = vmul.f32 0.8333333, %v3308_v4  ;;  %v3624_v28 = vmul.f32 0.8333333, %v9528_v8  ;;  %v3632_v37 = vmul.f32 0.8333333, %v3280_v62  ;;  %5058 = vmatpush.msrb.mxu0 %v5033_v38 }
 0x4db   :  { %v4877_v22 = vadd.f32 %v4873_v11, %v4865_v39  ;;  %v3292_v13 = vadd.f32 %v3288_v60, %v3276_v6  ;;  %vm4134_vm9 = vcmp.ge.f32.partialorder %v8375_v46, -2.2  ;;  %vm4146_vm10 = vcmp.ge.f32.partialorder %v8375_v46, -1.8  ;;  %v5131_v4 = vld [vmem:[#allocation4 + $0x1b8] sm:$0xff] }
 0x4dc   :  { %v3320_v54 = vadd.f32 %v3316_v43, %v3304_v16  ;;  %v3628_v31 = vmul.f32 %v3624_v28, %v9529_v27  ;;  %v6035_v59 = vsel %vm4134_vm9, 1.0, %v9323_v15  ;;  %v6039_v45 = vsel %vm4146_vm10, 1.0, %v9323_v15  ;;  %v5082_v36 = vld [vmem:[#allocation4 + $0x198] sm:$0xff]  ;;  %5156 = vmatpush.msra.mxu2 %v5131_v4 }
 0x4dd   :  { %6142 = vmatmul.msk.f32.gmra.mxu3 %vm186_vm2, %v4877_v22  ;;  %v3476_v2 = vmul.f32 %v3472_v34, %v3292_v13  ;;  %v3488_v23 = vmul.f32 %v3484_v63, %v3292_v13  ;;  %vm4162_vm11 = vcmp.ge.f32.partialorder %v8375_v46, -1.4  ;;  %v4158_v6 = vsub.f32 %v6035_v59, %v6039_v45  ;;  %5107 = vmatpush.msrb.mxu1 %v5082_v36 }
 0x4de   :  { %v3496_v11 = vmul.f32 %v3492_v35, %v3320_v54  ;;  %v6043_v62 = vsel %vm4162_vm11, 1.0, %v9323_v15  ;;  %vm4178_vm12 = vcmp.ge.f32.partialorder %v8375_v46, -1.0  ;;  %vm4194_vm13 = vcmp.ge.f32.partialorder %v8375_v46, -0.6 }
 0x4df   :  { %v3480_v43 = vadd.f32 %v3476_v2, %v3468_v18  ;;  %v4174_v27 = vsub.f32 %v6039_v45, %v6043_v62  ;;  %v6047_v28 = vsel %vm4178_vm12, 1.0, %v9323_v15  ;;  %v6051_v39 = vsel %vm4194_vm13, 1.0, %v9323_v15 }
 0x4e0   :  { %v3500_v63 = vadd.f32 %v3496_v11, %v3488_v23  ;;  %v4190_v24 = vsub.f32 %v6043_v62, %v6047_v28  ;;  %v6083_v57 = vadd.f32 2.2, %v8375_v46  ;;  %v8635_v16 = vsub.f32 %v6047_v28, %v6051_v39 }
 0x4e1   :  { %v3648_v34 = vmul.f32 %v3644_v50, %v3480_v43  ;;  %v3636_v60 = vmul.f32 %v3632_v37, %v3480_v43  ;;  %v4334_v18 = vsub.f32 -1.4, %v8375_v46  ;;  %v8639_v22 = vadd.f32 1.8, %v8375_v46 }
 0x4e2   :  { %v3656_v35 = vmul.f32 %v3652_v41, %v3500_v63  ;;  %v4326_v8 = vmul.f32 2.5, %v6083_v57  ;;  %v4362_v13 = vsub.f32 -1.0, %v8375_v46  ;;  %v8643_v2 = vadd.f32 1.4, %v8375_v46 }
 0x4e3   :  { %v3640_v54 = vadd.f32 %v3636_v60, %v3628_v31  ;;  %v4338_v59 = vmul.f32 2.5, %v4334_v18  ;;  %v4390_v50 = vsub.f32 -0.6, %v8375_v46  ;;  %v4354_v45 = vmul.f32 2.5, %v8639_v22 }
 0x4e4   :  { %v3660_v37 = vadd.f32 %v3656_v35, %v3648_v34  ;;  %v4330_v23 = vmul.f32 %v4326_v8, %v4158_v6  ;;  %v4366_v11 = vmul.f32 2.5, %v4362_v13  ;;  %v4382_v62 = vmul.f32 2.5, %v8643_v2 }
 0x4e5   :  { %6027 = vmatmul.msk.f32.gmra.mxu0 %vm186_vm2, %v3640_v54  ;;  %v4342_v41 = vmul.f32 %v4338_v59, %v4174_v27  ;;  %v4394_v43 = vmul.f32 2.5, %v4390_v50  ;;  %v4602_v28 = vmul.f32 1.25, %v6083_v57  ;;  %v4358_v31 = vmul.f32 %v4354_v45, %v4174_v27 }
 0x4e6   :  { %6031 = vmatmul.msk.f32.gmra.mxu1 %vm186_vm2, %v3660_v37  ;;  %v4370_v4 = vmul.f32 %v4366_v11, %v4190_v24  ;;  %v4610_v38 = vmul.f32 1.25, %v4362_v13  ;;  %v4622_v36 = vmul.f32 1.25, %v8639_v22  ;;  %v4386_v34 = vmul.f32 %v4382_v62, %v4190_v24 }
 0x4e7   :  { %v4346_v63 = vadd.f32 %v4342_v41, %v4330_v23  ;;  %v4398_v6 = vmul.f32 %v4394_v43, %v8635_v16  ;;  %v4630_v60 = vmul.f32 1.25, %v4390_v50  ;;  %v4782_v35 = vmul.f32 0.8333333, %v6083_v57 }
 0x4e8   :  { %v4374_v18 = vadd.f32 %v4370_v4, %v4358_v31  ;;  %v4790_v8 = vmul.f32 0.8333333, %v4390_v50  ;;  %vm4210_vm14 = vcmp.ge.f32.partialorder %v8375_v46, -0.2  ;;  %vm4226_vm15 = vcmp.ge.f32.partialorder %v8375_v46, 0.2 }
 0x4e9   :  { %v8653_v54 = vadd.f32 %v4398_v6, %v4386_v34  ;;  %v4606_v59 = vmul.f32 %v4602_v28, %v4346_v63  ;;  %v6055_v37 = vsel %vm4210_vm14, 1.0, %v9323_v15  ;;  %v6059_v24 = vsel %vm4226_vm15, 1.0, %v9323_v15 }
 0x4ea   :  { %v4614_v27 = vmul.f32 %v4610_v38, %v4374_v18  ;;  %v4626_v13 = vmul.f32 %v4622_v36, %v4374_v18  ;;  %v8657_v45 = vsub.f32 %v6051_v39, %v6055_v37  ;;  %v4238_v11 = vsub.f32 %v6055_v37, %v6059_v24 }
 0x4eb   :  { %v4634_v23 = vmul.f32 %v4630_v60, %v8653_v54  ;;  %vm4242_vm1 = vcmp.ge.f32.partialorder %v8375_v46, 0.6  ;;  %vm4258_vm3 = vcmp.ge.f32.partialorder %v8375_v46, 1.0  ;;  %v6099_v62 = vadd.f32 0.6, %v8375_v46 }
 0x4ec   :  { %v4618_v57 = vadd.f32 %v4614_v27, %v4606_v59  ;;  %v6063_v50 = vsel %vm4242_vm1, 1.0, %v9323_v15  ;;  %v8665_v41 = vsel %vm4258_vm3, 1.0, %v9323_v15  ;;  %v8674_v31 = vsub.f32 0.2, %v8375_v46 }
 0x4ed   :  { %9530 = vst [vmem:[#allocation21_spill] sm:$0xff] %v8665_v41  ;;  %v8668_v43 = vadd.f32 %v4634_v23, %v4626_v13  ;;  %v4254_v39 = vsub.f32 %v6059_v24, %v6063_v50  ;;  %v8671_v28 = vsub.f32 %v6063_v50, %v8665_v41  ;;  %v4438_v38 = vmul.f32 2.5, %v6099_v62 }
 0x4ee   :  { %v4786_v4 = vmul.f32 %v4782_v35, %v4618_v57  ;;  %v8677_v36 = vadd.f32 0.2, %v8375_v46  ;;  %v8680_v63 = vsub.f32 0.6, %v8375_v46  ;;  %v4450_v6 = vmul.f32 2.5, %v8674_v31 }
 0x4ef   :  { %9531 = vst [vmem:[#allocation19_spill] sm:$0xff] %v8668_v43  ;;  %v4794_v34 = vmul.f32 %v4790_v8, %v8668_v43  ;;  %v8685_v60 = vadd.f32 -0.2, %v8375_v46  ;;  %v4502_v18 = vsub.f32 1.0, %v8375_v46  ;;  %v4442_v59 = vmul.f32 %v4438_v38, %v8657_v45  ;;  %v9538_v43 = vld [vmem:[#allocation15_spill] sm:$0xff] }
 0x4f0   :  { %9532 = vst [vmem:[#allocation16_spill] sm:$0xff] %v8671_v28  ;;  %v4466_v35 = vmul.f32 2.5, %v8677_v36  ;;  %v4478_v37 = vmul.f32 2.5, %v8680_v63  ;;  %v4682_v27 = vmul.f32 1.25, %v6099_v62  ;;  %v4454_v24 = vmul.f32 %v4450_v6, %v4238_v11  ;;  %v6260_v6 = vld [vmem:[#allocation2 + $0x18] sm:$0xff] }
 0x4f1   :  { %9533 = vst [vmem:[#allocation23_spill] sm:$0xff] %v8677_v36  ;;  %v4798_v13 = vadd.f32 %v4794_v34, %v4786_v4  ;;  %v4494_v23 = vmul.f32 2.5, %v8685_v60  ;;  %v4506_v57 = vmul.f32 2.5, %v4502_v18  ;;  %v4690_v41 = vmul.f32 1.25, %v8680_v63 }
 0x4f2   :  { %9534 = vst [vmem:[#allocation28_spill] sm:$0xff] %v8685_v60  ;;  %v4470_v8 = vmul.f32 %v4466_v35, %v4238_v11  ;;  %v4482_v50 = vmul.f32 %v4478_v37, %v4254_v39  ;;  %v4702_v25 = vmul.f32 1.25, %v8677_v36  ;;  %v8695_v46 = vadd.f32 %v4454_v24, %v4442_v59 }
 0x4f3   :  { %6123 = vmatmul.msk.f32.gmra.mxu2 %vm186_vm2, %v4798_v13  ;;  %v4498_v38 = vmul.f32 %v4494_v23, %v4254_v39  ;;  %v4510_v42 = vmul.f32 %v4506_v57, %v8671_v28  ;;  %v4710_v40 = vmul.f32 1.25, %v4502_v18  ;;  %v4862_v4 = vmul.f32 0.8333333, %v6099_v62 }
 0x4f4   :  { %v4486_v47 = vadd.f32 %v4482_v50, %v4470_v8  ;;  %v4870_v34 = vmul.f32 0.8333333, %v4502_v18  ;;  %vm3013_vm4 = vcmp.ge.f32.partialorder %v6260_v6, 1.8  ;;  %v4686_v11 = vmul.f32 %v4682_v27, %v8695_v46 }
 0x4f5   :  { %v8698_v60 = vadd.f32 %v4510_v42, %v4498_v38  ;;  %v5952_v35 = vsel %vm3013_vm4, 1.0, %v9323_v15  ;;  %vm3029_vm5 = vcmp.ge.f32.partialorder %v6260_v6, 2.2  ;;  %v5992_v62 = vadd.f32 -1.0, %v6260_v6 }
 0x4f6   :  { %v4694_v37 = vmul.f32 %v4690_v41, %v4486_v47  ;;  %v4706_v13 = vmul.f32 %v4702_v25, %v4486_v47  ;;  %v3025_v59 = vsub.f32 %v8290_v9, %v5952_v35  ;;  %v5956_v39 = vsel %vm3029_vm5, 1.0, %v9323_v15 }
 0x4f7   :  { %9535 = vst [vmem:[#allocation32_spill] sm:$0xff] %v8698_v60  ;;  %v4714_v24 = vmul.f32 %v4710_v40, %v8698_v60  ;;  %v3041_v23 = vsub.f32 %v5952_v35, %v5956_v39  ;;  %v3281_v18 = vsub.f32 1.8, %v6260_v6  ;;  %v5996_v42 = vadd.f32 -1.4, %v6260_v6 }
 0x4f8   :  { %v8705_v57 = vadd.f32 %v4694_v37, %v4686_v11  ;;  %v3309_v8 = vsub.f32 2.2, %v6260_v6  ;;  %v3465_v27 = vmul.f32 1.25, %v8306_v53  ;;  %v3273_v38 = vmul.f32 2.5, %v5992_v62 }
 0x4f9   :  { %v8708_v50 = vadd.f32 %v4714_v24, %v4706_v13  ;;  %v3285_v41 = vmul.f32 2.5, %v3281_v18  ;;  %v3473_v47 = vmul.f32 1.25, %v3281_v18  ;;  %v3301_v25 = vmul.f32 2.5, %v5996_v42 }
 0x4fa   :  { %9536 = vst [vmem:[#allocation30_spill] sm:$0xff] %v8705_v57  ;;  %v4866_v9 = vmul.f32 %v4862_v4, %v8705_v57  ;;  %v3313_v36 = vmul.f32 2.5, %v3309_v8  ;;  %v3469_v40 = vmul.f32 %v3465_v27, %v8320_v19  ;;  %v3277_v11 = vmul.f32 %v3273_v38, %v8293_v55  ;;  %v5032_v27 = vld [vmem:[#allocation4 + $0x170] sm:$0xff] }
 0x4fb   :  { %9537 = vst [vmem:[#allocation8_spill] sm:$0xff] %v8708_v50  ;;  %v4874_v35 = vmul.f32 %v4870_v34, %v8708_v50  ;;  %v3289_v37 = vmul.f32 %v3285_v41, %v3025_v59  ;;  %v3485_v39 = vmul.f32 1.25, %v5992_v62  ;;  %v3305_v6 = vmul.f32 %v3301_v25, %v3025_v59  ;;  %v5080_v25 = vld [vmem:[#allocation4 + $0x188] sm:$0xff]  ;;  %5059 = vmatpush.msrb.mxu0 %v5032_v27 }
 0x4fc   :  { %v3317_v60 = vmul.f32 %v3313_v36, %v3041_v23  ;;  %v3493_v28 = vmul.f32 1.25, %v3309_v8  ;;  %v3645_v13 = vmul.f32 0.8333333, %v8306_v53  ;;  %v3653_v58 = vmul.f32 0.8333333, %v3309_v8  ;;  %v8722_v23 = vld [vmem:[#allocation2 + $0x38] sm:$0xff] }
 0x4fd   :  { %v4878_v24 = vadd.f32 %v4874_v35, %v4866_v9  ;;  %v3293_v51 = vadd.f32 %v3289_v37, %v3277_v11  ;;  %v3625_v4 = vmul.f32 0.8333333, %v9538_v43  ;;  %v3633_v57 = vmul.f32 0.8333333, %v3281_v18  ;;  %v5081_v8 = vld [vmem:[#allocation4 + $0x190] sm:$0xff]  ;;  %v5129_v35 = vld [vmem:[#allocation4 + $0x1a8] sm:$0xff] }
 0x4fe   :  { %v3321_v42 = vadd.f32 %v3317_v60, %v3305_v6  ;;  %vm4135_vm6 = vcmp.ge.f32.partialorder %v8397_v10, -2.2  ;;  %vm4147_vm7 = vcmp.ge.f32.partialorder %v8397_v10, -1.8  ;;  %vm4163_vm8 = vcmp.ge.f32.partialorder %v8722_v23, -1.4  ;;  %5108 = vmatpush.msrb.mxu1 %v5081_v8 }
 0x4ff   :  { %6143 = vmatmul.msk.f32.gmra.mxu3 %vm186_vm2, %v4878_v24  ;;  %v3477_v55 = vmul.f32 %v3473_v47, %v3293_v51  ;;  %v3489_v19 = vmul.f32 %v3485_v39, %v3293_v51  ;;  %v3629_v36 = vmul.f32 %v3625_v4, %v8336_v48  ;;  %v6036_v34 = vsel %vm4135_vm6, 1.0, %v9323_v15 }
 0x500   :  { %v3497_v53 = vmul.f32 %v3493_v28, %v3321_v42  ;;  %v6040_v59 = vsel %vm4147_vm7, 1.0, %v9323_v15  ;;  %vm4179_vm9 = vcmp.ge.f32.partialorder %v8722_v23, -1.0  ;;  %v6044_v10 = vsel %vm4163_vm8, 1.0, %v9323_v15  ;;  %v5130_v28 = vld [vmem:[#allocation4 + $0x1b0] sm:$0xff]  ;;  %5109 = vmatpush.msrb.mxu1 %v5080_v25 }
 0x501   :  { %v3481_v43 = vadd.f32 %v3477_v55, %v3469_v40  ;;  %v4159_v60 = vsub.f32 %v6036_v34, %v6040_v59  ;;  %v6048_v62 = vsel %vm4179_vm9, 1.0, %v9323_v15  ;;  %v4175_v18 = vsub.f32 %v6040_v59, %v6044_v10  ;;  %5157 = vmatpush.msra.mxu2 %v5130_v28  ;;  %v5031_v40 = vld [vmem:[#allocation4 + $0x168] sm:$0xff]  ;;  %v5030_v55 = vld [vmem:[#allocation4 + $0x160] sm:$0xff] }
 0x502   :  { %v3501_v51 = vadd.f32 %v3497_v53, %v3489_v19  ;;  %v4191_v48 = vsub.f32 %v6044_v10, %v6048_v62  ;;  %vm4195_vm10 = vcmp.ge.f32.partialorder %v8722_v23, -0.6  ;;  %v6084_v9 = vadd.f32 2.2, %v8722_v23  ;;  %5060 = vmatpush.msrb.mxu0 %v5031_v40 }
 0x503   :  { %v3649_v38 = vmul.f32 %v3645_v13, %v3481_v43  ;;  %v3637_v41 = vmul.f32 %v3633_v57, %v3481_v43  ;;  %v6052_v47 = vsel %vm4195_vm10, 1.0, %v9323_v15  ;;  %v4335_v39 = vsub.f32 -1.4, %v8722_v23  ;;  %v5079_v13 = vld [vmem:[#allocation4 + $0x180] sm:$0xff]  ;;  %5158 = vmatpush.msra.mxu2 %v5129_v35 }
 0x504   :  { %v3657_v11 = vmul.f32 %v3653_v58, %v3501_v51  ;;  %v8731_v37 = vsub.f32 %v6048_v62, %v6052_v47  ;;  %v8735_v6 = vadd.f32 1.8, %v8722_v23  ;;  %v4327_v24 = vmul.f32 2.5, %v6084_v9  ;;  %5110 = vmatpush.msrb.mxu1 %v5079_v13  ;;  %v5128_v62 = vld [vmem:[#allocation4 + $0x1a0] sm:$0xff]  ;;  %5061 = vmatpush.msrb.mxu0 %v5030_v55 }
 0x505   :  { %v3641_v57 = vadd.f32 %v3637_v41, %v3629_v36  ;;  %v4363_v4 = vsub.f32 -1.0, %v8722_v23  ;;  %v8739_v42 = vadd.f32 1.4, %v8722_v23  ;;  %v4339_v19 = vmul.f32 2.5, %v4335_v39  ;;  %5159 = vmatpush.msra.mxu2 %v5128_v62 }
 0x506   :  { %v3661_v58 = vadd.f32 %v3657_v11, %v3649_v38  ;;  %v4355_v34 = vmul.f32 2.5, %v8735_v6  ;;  %v4391_v53 = vsub.f32 -0.6, %v8722_v23  ;;  %v4331_v59 = vmul.f32 %v4327_v24, %v4159_v60 }
 0x507   :  { %6028 = vmatmul.msk.f32.gmra.mxu0 %vm186_vm2, %v3641_v57  ;;  %v4367_v36 = vmul.f32 2.5, %v4363_v4  ;;  %v4383_v43 = vmul.f32 2.5, %v8739_v42  ;;  %v4603_v10 = vmul.f32 1.25, %v6084_v9  ;;  %v4343_v51 = vmul.f32 %v4339_v19, %v4175_v18 }
 0x508   :  { %6032 = vmatmul.msk.f32.gmra.mxu1 %vm186_vm2, %v3661_v58  ;;  %v4359_v28 = vmul.f32 %v4355_v34, %v4175_v18  ;;  %v4395_v8 = vmul.f32 2.5, %v4391_v53  ;;  %v4611_v27 = vmul.f32 1.25, %v4363_v4  ;;  %v4623_v25 = vmul.f32 1.25, %v8735_v6 }
 0x509   :  { %v4371_v38 = vmul.f32 %v4367_v36, %v4191_v48  ;;  %v4387_v41 = vmul.f32 %v4383_v43, %v4191_v48  ;;  %v4631_v40 = vmul.f32 1.25, %v4391_v53  ;;  %v4347_v60 = vadd.f32 %v4343_v51, %v4331_v59 }
 0x50a   :  { %v4399_v35 = vmul.f32 %v4395_v8, %v8731_v37  ;;  %v4783_v11 = vmul.f32 0.8333333, %v6084_v9  ;;  %v4791_v39 = vmul.f32 0.8333333, %v4391_v53  ;;  %vm4211_vm11 = vcmp.ge.f32.partialorder %v8722_v23, -0.2 }
 0x50b   :  { %v4375_v13 = vadd.f32 %v4371_v38, %v4359_v28  ;;  %vm4227_vm12 = vcmp.ge.f32.partialorder %v8722_v23, 0.2  ;;  %vm4243_vm13 = vcmp.ge.f32.partialorder %v8722_v23, 0.6  ;;  %v4607_v57 = vmul.f32 %v4603_v10, %v4347_v60 }
 0x50c   :  { %v8751_v18 = vadd.f32 %v4399_v35, %v4387_v41  ;;  %v6056_v48 = vsel %vm4211_vm11, 1.0, %v9323_v15  ;;  %v6060_v24 = vsel %vm4227_vm12, 1.0, %v9323_v15  ;;  %v6064_v34 = vsel %vm4243_vm13, 1.0, %v9323_v15 }
 0x50d   :  { %v4615_v4 = vmul.f32 %v4611_v27, %v4375_v13  ;;  %v4627_v55 = vmul.f32 %v4623_v25, %v4375_v13  ;;  %v8755_v58 = vsub.f32 %v6052_v47, %v6056_v48  ;;  %v4239_v9 = vsub.f32 %v6056_v48, %v6060_v24 }
 0x50e   :  { %v4635_v19 = vmul.f32 %v4631_v40, %v8751_v18  ;;  %vm4259_vm14 = vcmp.ge.f32.partialorder %v8722_v23, 1.0  ;;  %v6100_v53 = vadd.f32 0.6, %v8722_v23  ;;  %v4255_v36 = vsub.f32 %v6060_v24, %v6064_v34 }
 0x50f   :  { %v4619_v59 = vadd.f32 %v4615_v4, %v4607_v57  ;;  %v8762_v43 = vsel %vm4259_vm14, 1.0, %v9323_v15  ;;  %v8765_v10 = vsub.f32 0.2, %v8722_v23  ;;  %v8773_v28 = vadd.f32 0.2, %v8722_v23 }
 0x510   :  { %9539 = vst [vmem:[#allocation9_spill] sm:$0xff] %v8762_v43  ;;  %v8767_v62 = vadd.f32 %v4635_v19, %v4627_v55  ;;  %v8770_v47 = vsub.f32 %v6064_v34, %v8762_v43  ;;  %v4439_v51 = vmul.f32 2.5, %v6100_v53  ;;  %v8777_v38 = vsub.f32 0.6, %v8722_v23 }
 0x511   :  { %9541 = vst [vmem:[#allocation10_spill] sm:$0xff] %v8773_v28  ;;  %v4787_v8 = vmul.f32 %v4783_v11, %v4619_v59  ;;  %v4451_v27 = vmul.f32 2.5, %v8765_v10  ;;  %v8780_v41 = vadd.f32 -0.2, %v8722_v23  ;;  %v4467_v60 = vmul.f32 2.5, %v8773_v28 }
 0x512   :  { %9540 = vst [vmem:[#allocation31_spill] sm:$0xff] %v8770_v47  ;;  %v4795_v25 = vmul.f32 %v4791_v39, %v8767_v62  ;;  %v4443_v40 = vmul.f32 %v4439_v51, %v8755_v58  ;;  %v4503_v35 = vsub.f32 1.0, %v8722_v23  ;;  %v4479_v57 = vmul.f32 2.5, %v8777_v38 }
 0x513   :  { %9542 = vst [vmem:[#allocation17_spill] sm:$0xff] %v8780_v41  ;;  %v4455_v13 = vmul.f32 %v4451_v27, %v4239_v9  ;;  %v4495_v11 = vmul.f32 2.5, %v8780_v41  ;;  %v4683_v48 = vmul.f32 1.25, %v6100_v53  ;;  %v4471_v4 = vmul.f32 %v4467_v60, %v4239_v9 }
 0x514   :  { %v4799_v24 = vadd.f32 %v4795_v25, %v4787_v8  ;;  %v4507_v55 = vmul.f32 2.5, %v4503_v35  ;;  %v4691_v19 = vmul.f32 1.25, %v8777_v38  ;;  %v4483_v39 = vmul.f32 %v4479_v57, %v4255_v36  ;;  %v8795_v8 = vld [vmem:[#allocation2 + $0x20] sm:$0xff]  ;;  %v5327_v57 = vld [vmem:[#allocation4 + $0x238] sm:$0xff] }
 0x515   :  { %v8789_v34 = vadd.f32 %v4455_v13, %v4443_v40  ;;  %v4499_v59 = vmul.f32 %v4495_v11, %v4255_v36  ;;  %v4703_v51 = vmul.f32 1.25, %v8773_v28  ;;  %v4711_v43 = vmul.f32 1.25, %v4503_v35  ;;  %v5229_v11 = vld [vmem:[#allocation4 + $0x1f8] sm:$0xff]  ;;  %5352 = vmatpush.msrb.mxu2 %v5327_v57 }
 0x516   :  { %6124 = vmatmul.msk.f32.gmra.mxu2 %vm186_vm2, %v4799_v24  ;;  %v4511_v27 = vmul.f32 %v4507_v55, %v8770_v47  ;;  %v4863_v50 = vmul.f32 0.8333333, %v6100_v53  ;;  %v4487_v15 = vadd.f32 %v4483_v39, %v4471_v4  ;;  %v6093_v9 = vadd.f32 1.0, %v8795_v8  ;;  %5254 = vmatpush.msra.mxu0 %v5229_v11 }
 0x517   :  { %v4687_v41 = vmul.f32 %v4683_v48, %v8789_v34  ;;  %v4416_v25 = vsub.f32 -0.2, %v8795_v8  ;;  %v4871_v36 = vmul.f32 0.8333333, %v4503_v35  ;;  %v4640_v60 = vmul.f32 1.25, %v8456_v61  ;;  %v5278_v48 = vld [vmem:[#allocation4 + $0x218] sm:$0xff] }
 0x518   :  { %v8799_v40 = vadd.f32 %v4511_v27, %v4499_v59  ;;  %v4668_v13 = vmul.f32 1.25, %v8486_v1  ;;  %v4695_v24 = vmul.f32 %v4691_v19, %v4487_v15  ;;  %v4707_v53 = vmul.f32 %v4703_v51, %v4487_v15  ;;  %5303 = vmatpush.msra.mxu1 %v5278_v48 }
 0x519   :  { %v4408_v4 = vmul.f32 2.5, %v6093_v9  ;;  %v4420_v55 = vmul.f32 2.5, %v4416_v25  ;;  %v4644_v28 = vmul.f32 %v4640_v60, %v8465_v44  ;;  %v4648_v59 = vmul.f32 1.25, %v4416_v25 }
 0x51a   :  { %v4715_v39 = vmul.f32 %v4711_v43, %v8799_v40  ;;  %v4820_v35 = vmul.f32 0.8333333, %v8456_v61  ;;  %v8806_v27 = vadd.f32 %v4695_v24, %v4687_v41  ;;  %v4660_v15 = vmul.f32 1.25, %v6093_v9 }
 0x51b   :  { %v4412_v47 = vmul.f32 %v4408_v4, %v8448_v33  ;;  %v4424_v19 = vmul.f32 %v4420_v55, %v8469_v21  ;;  %v4672_v57 = vmul.f32 %v4668_v13, %v8507_v5  ;;  %v4828_v11 = vmul.f32 0.8333333, %v8486_v1  ;;  %v8818_v4 = vld [vmem:[#allocation2 + $0x28] sm:$0xff] }
 0x51c   :  { %v8810_v51 = vadd.f32 %v4715_v39, %v4707_v53  ;;  %v4800_v43 = vmul.f32 0.8333333, %v8451_v17  ;;  %v4867_v44 = vmul.f32 %v4863_v50, %v8806_v27  ;;  %v4808_v61 = vmul.f32 0.8333333, %v4416_v25  ;;  %v5326_v39 = vld [vmem:[#allocation4 + $0x230] sm:$0xff] }
 0x51d   :  { %v4428_v60 = vadd.f32 %v4424_v19, %v4412_v47  ;;  %v4848_v41 = vmul.f32 0.8333333, %v8492_v7  ;;  %v4840_v33 = vmul.f32 0.8333333, %v6093_v9  ;;  %v6094_v21 = vadd.f32 1.0, %v8818_v4  ;;  %v5277_v19 = vld [vmem:[#allocation4 + $0x210] sm:$0xff]  ;;  %5353 = vmatpush.msrb.mxu2 %v5326_v39 }
 0x51e   :  { %9543 = vst [vmem:[#allocation13_spill] sm:$0xff] %v8810_v51  ;;  %v4875_v24 = vmul.f32 %v4871_v36, %v8810_v51  ;;  %v4417_v53 = vsub.f32 -0.2, %v8818_v4  ;;  %v4804_v1 = vmul.f32 %v4800_v43, %v8480_v29  ;;  %v4641_v17 = vmul.f32 1.25, %v8549_v30  ;;  %v5228_v51 = vld [vmem:[#allocation4 + $0x1f0] sm:$0xff]  ;;  %5304 = vmatpush.msra.mxu1 %v5277_v19 }
 0x51f   :  { %v4652_v5 = vmul.f32 %v4648_v59, %v4428_v60  ;;  %v4664_v13 = vmul.f32 %v4660_v15, %v4428_v60  ;;  %v4852_v47 = vmul.f32 %v4848_v41, %v8517_v49  ;;  %v4409_v25 = vmul.f32 2.5, %v6094_v21  ;;  %v5276_v49 = vld [vmem:[#allocation4 + $0x208] sm:$0xff]  ;;  %5255 = vmatpush.msra.mxu0 %v5228_v51 }
 0x520   :  { %v4879_v50 = vadd.f32 %v4875_v24, %v4867_v44  ;;  %v4421_v7 = vmul.f32 2.5, %v4417_v53  ;;  %v4645_v9 = vmul.f32 %v4641_v17, %v8561_v32  ;;  %v4649_v48 = vmul.f32 1.25, %v4417_v53  ;;  %v5325_v44 = vld [vmem:[#allocation4 + $0x228] sm:$0xff]  ;;  %5305 = vmatpush.msra.mxu1 %v5276_v49 }
 0x521   :  { %v4656_v55 = vadd.f32 %v4652_v5, %v4644_v28  ;;  %v4676_v36 = vadd.f32 %v4672_v57, %v4664_v13  ;;  %v4413_v59 = vmul.f32 %v4409_v25, %v8541_v26  ;;  %v4661_v15 = vmul.f32 1.25, %v6094_v21  ;;  %v5227_v41 = vld [vmem:[#allocation4 + $0x1e8] sm:$0xff]  ;;  %5354 = vmatpush.msrb.mxu2 %v5325_v44  ;;  %v5324_v44 = vld [vmem:[#allocation4 + $0x220] sm:$0xff] }
 0x522   :  { %6144 = vmatmul.msk.f32.gmra.mxu3 %vm186_vm2, %v4879_v50  ;;  %v4425_v29 = vmul.f32 %v4421_v7, %v8565_v0  ;;  %v4669_v43 = vmul.f32 1.25, %v8575_v3  ;;  %v4821_v13 = vmul.f32 0.8333333, %v8549_v30  ;;  %v4801_v26 = vmul.f32 0.8333333, %v8545_v20  ;;  %5256 = vmatpush.msra.mxu0 %v5227_v41 }
 0x523   :  { %v4824_v28 = vmul.f32 %v4820_v35, %v4656_v55  ;;  %v4832_v57 = vmul.f32 %v4828_v11, %v4676_v36  ;;  %v4812_v60 = vmul.f32 %v4808_v61, %v4656_v55  ;;  %v4844_v32 = vmul.f32 %v4840_v33, %v4676_v36  ;;  %v5275_v35 = vld [vmem:[#allocation4 + $0x200] sm:$0xff]  ;;  %5355 = vmatpush.msrb.mxu2 %v5324_v44 }
 0x524   :  { %v4429_v24 = vadd.f32 %v4425_v29, %v4413_v59  ;;  %v4673_v5 = vmul.f32 %v4669_v43, %v8599_v12  ;;  %v4829_v25 = vmul.f32 0.8333333, %v8575_v3  ;;  %v4809_v33 = vmul.f32 0.8333333, %v4417_v53  ;;  %v5226_v55 = vld [vmem:[#allocation4 + $0x1e0] sm:$0xff]  ;;  %v8838_v12 = vld [vmem:[#allocation2 + $0x30] sm:$0xff]  ;;  %5306 = vmatpush.msra.mxu1 %v5275_v35 }
 0x525   :  { %v4836_v0 = vadd.f32 %v4832_v57, %v4824_v28  ;;  %v4816_v17 = vadd.f32 %v4812_v60, %v4804_v1  ;;  %v4856_v50 = vadd.f32 %v4852_v47, %v4844_v32  ;;  %v4841_v7 = vmul.f32 0.8333333, %v6094_v21  ;;  %5257 = vmatpush.msra.mxu0 %v5226_v55 }
 0x526   :  { %v4653_v11 = vmul.f32 %v4649_v48, %v4429_v24  ;;  %v4665_v61 = vmul.f32 %v4661_v15, %v4429_v24  ;;  %v4805_v20 = vmul.f32 %v4801_v26, %v8577_v52  ;;  %v4849_v30 = vmul.f32 0.8333333, %v8587_v56 }
 0x527   :  { %6133 = vmatmul.msk.f32.vlgmr.msrb.gmra.mxu1 %vm186_vm2, %v4836_v0  ;;  %6129 = vmatmul.msk.f32.vlgmr.msrb.gmra.mxu0 %vm186_vm2, %v4816_v17  ;;  %v6095_v3 = vadd.f32 1.0, %v8838_v12  ;;  %v4418_v51 = vsub.f32 -0.2, %v8838_v12  ;;  %v4642_v1 = vmul.f32 1.25, %v8643_v2  ;;  %v4670_v47 = vmul.f32 1.25, %v8674_v31  ;;  %v9545_v17 = vld [vmem:[#allocation30_spill] sm:$0xff] }
 0x528   :  { %6137 = vmatmul.msk.f32.vlgmr.msra.gmra.mxu2 %vm186_vm2, %v4856_v50  ;;  %v4657_v53 = vadd.f32 %v4653_v11, %v4645_v9  ;;  %v4677_v21 = vadd.f32 %v4673_v5, %v4665_v61  ;;  %v4853_v36 = vmul.f32 %v4849_v30, %v8611_v14  ;;  %v4822_v56 = vmul.f32 0.8333333, %v8643_v2 }
 0x529   :  { %v4410_v52 = vmul.f32 2.5, %v6095_v3  ;;  %v4422_v48 = vmul.f32 2.5, %v4418_v51  ;;  %v4650_v43 = vmul.f32 1.25, %v4418_v51  ;;  %v4662_v49 = vmul.f32 1.25, %v6095_v3 }
 0x52a   :  { %v4825_v39 = vmul.f32 %v4821_v13, %v4657_v53  ;;  %v4833_v19 = vmul.f32 %v4829_v25, %v4677_v21  ;;  %v4813_v59 = vmul.f32 %v4809_v33, %v4657_v53  ;;  %v4845_v29 = vmul.f32 %v4841_v7, %v4677_v21 }
 0x52b   :  { %v4414_v15 = vmul.f32 %v4410_v52, %v8635_v16  ;;  %v4426_v9 = vmul.f32 %v4422_v48, %v8657_v45  ;;  %v4646_v14 = vmul.f32 %v4642_v1, %v8653_v54  ;;  %v4674_v2 = vmul.f32 %v4670_v47, %v8695_v46 }
 0x52c   :  { %v4837_v28 = vadd.f32 %v4833_v19, %v4825_v39  ;;  %v4817_v57 = vadd.f32 %v4813_v59, %v4805_v20  ;;  %v4857_v60 = vadd.f32 %v4853_v36, %v4845_v29  ;;  %v4830_v41 = vmul.f32 0.8333333, %v8674_v31  ;;  %v9544_v31 = vld [vmem:[#allocation19_spill] sm:$0xff] }
 0x52d   :  { %v4430_v32 = vadd.f32 %v4426_v9, %v4414_v15  ;;  %v4802_v24 = vmul.f32 0.8333333, %v8639_v22  ;;  %v4810_v5 = vmul.f32 0.8333333, %v4418_v51  ;;  %v4850_v16 = vmul.f32 0.8333333, %v8680_v63 }
 0x52e   :  { %v6096_v45 = vadd.f32 1.0, %v8722_v23  ;;  %v4643_v13 = vmul.f32 1.25, %v8739_v42  ;;  %v4842_v0 = vmul.f32 0.8333333, %v6095_v3  ;;  %v4419_v46 = vsub.f32 -0.2, %v8722_v23 }
 0x52f   :  { %6134 = vmatmul.msk.f32.gmra.mxu1 %vm186_vm2, %v4837_v28  ;;  %6130 = vmatmul.msk.f32.gmra.mxu0 %vm186_vm2, %v4817_v57  ;;  %v4654_v54 = vmul.f32 %v4650_v43, %v4430_v32  ;;  %v4666_v26 = vmul.f32 %v4662_v49, %v4430_v32  ;;  %v4806_v22 = vmul.f32 %v4802_v24, %v9544_v31  ;;  %v4671_v20 = vmul.f32 1.25, %v8765_v10  ;;  %v9547_v15 = vld [vmem:[#allocation26_spill] sm:$0xff]  ;;  %v8888_v57 = vpop.f32.mrf.mxu1  ;;  %v9548_v32 = vld [vmem:[#allocation33_spill] sm:$0xff] }
 0x530   :  { %6138 = vmatmul.msk.f32.gmra.mxu2 %vm186_vm2, %v4857_v60  ;;  %v4854_v50 = vmul.f32 %v4850_v16, %v9545_v17  ;;  %v4411_v63 = vmul.f32 2.5, %v6096_v45  ;;  %v4423_v11 = vmul.f32 2.5, %v4419_v46  ;;  %v4647_v61 = vmul.f32 %v4643_v13, %v8751_v18  ;;  %v8890_v60 = vpop.f32.mrf.mxu0 }
 0x531   :  { %v4658_v25 = vadd.f32 %v4654_v54, %v4646_v14  ;;  %v4678_v35 = vadd.f32 %v4674_v2, %v4666_v26  ;;  %v4651_v7 = vmul.f32 1.25, %v4419_v46  ;;  %v4663_v55 = vmul.f32 1.25, %v6096_v45 }
 0x532   :  { %v4415_v33 = vmul.f32 %v4411_v63, %v8731_v37  ;;  %v4427_v21 = vmul.f32 %v4423_v11, %v8755_v58  ;;  %v4823_v1 = vmul.f32 0.8333333, %v8739_v42  ;;  %v4831_v47 = vmul.f32 0.8333333, %v8765_v10 }
 0x533   :  { %v4826_v30 = vmul.f32 %v4822_v56, %v4658_v25  ;;  %v4834_v3 = vmul.f32 %v4830_v41, %v4678_v35  ;;  %v4814_v51 = vmul.f32 %v4810_v5, %v4658_v25  ;;  %v4846_v53 = vmul.f32 %v4842_v0, %v4678_v35  ;;  %v9549_v5 = vld [vmem:[#allocation12_spill] sm:$0xff] }
 0x534   :  { %v4803_v36 = vmul.f32 0.8333333, %v8735_v6  ;;  %v4675_v37 = vmul.f32 %v4671_v20, %v8789_v34  ;;  %v4811_v48 = vmul.f32 0.8333333, %v4419_v46  ;;  %v4431_v19 = vadd.f32 %v4427_v21, %v4415_v33 }
 0x535   :  { %v4838_v52 = vadd.f32 %v4834_v3, %v4826_v30  ;;  %v4818_v18 = vadd.f32 %v4814_v51, %v4806_v22  ;;  %v4858_v39 = vadd.f32 %v4854_v50, %v4846_v53  ;;  %v4843_v59 = vmul.f32 0.8333333, %v6096_v45  ;;  %v9550_v22 = vld [vmem:[#allocation25_spill] sm:$0xff] }
 0x536   :  { %v4851_v56 = vmul.f32 0.8333333, %v8777_v38  ;;  %v4807_v42 = vmul.f32 %v4803_v36, %v8767_v62  ;;  %vm4272_vm15 = vcmp.ge.f32.partialorder %v8795_v8, 1.4  ;;  %vm4288_vm1 = vcmp.ge.f32.partialorder %v8795_v8, 1.8 }
 0x537   :  { %6135 = vmatmul.msk.f32.gmra.mxu1 %vm186_vm2, %v4838_v52  ;;  %6131 = vmatmul.msk.f32.gmra.mxu0 %vm186_vm2, %v4818_v18  ;;  %v8877_v6 = vadd.f32 -0.6, %v8795_v8  ;;  %v4655_v58 = vmul.f32 %v4651_v7, %v4431_v19  ;;  %v4667_v10 = vmul.f32 %v4663_v55, %v4431_v19  ;;  %v9546_v38 = vmov 0.0  }
 0x538   :  { %6139 = vmatmul.msk.f32.gmra.mxu2 %vm186_vm2, %v4858_v39  ;;  %v4855_v34 = vmul.f32 %v4851_v56, %v8806_v27  ;;  %v6069_v29 = vsel %vm4272_vm15, 1.0, %v9546_v38  ;;  %v8884_v43 = vsel %vm4288_vm1, 1.0, %v9546_v38  ;;  %v4528_v49 = vsub.f32 1.4, %v8795_v8 }
 0x539   :  { %v4284_v9 = vsub.f32 %v9547_v15, %v6069_v29  ;;  %v4520_v62 = vmul.f32 2.5, %v8877_v6  ;;  %v4659_v44 = vadd.f32 %v4655_v58, %v4647_v61  ;;  %v4679_v28 = vadd.f32 %v4675_v37, %v4667_v10 }
 0x53a   :  { %v4300_v14 = vsub.f32 %v6069_v29, %v8884_v43  ;;  %v6113_v27 = vadd.f32 -1.0, %v8795_v8  ;;  %v4532_v41 = vmul.f32 2.5, %v4528_v49  ;;  %v4556_v24 = vsub.f32 1.8, %v8795_v8  ;;  %v8914_v29 = vpop.f32.mrf.mxu0 }
 0x53b   :  { %v4524_v2 = vmul.f32 %v4520_v62, %v9548_v32  ;;  %v4720_v16 = vmul.f32 1.25, %v9549_v5  ;;  %v4827_v45 = vmul.f32 %v4823_v1, %v4659_v44  ;;  %v4835_v13 = vmul.f32 %v4831_v47, %v4679_v28  ;;  %v9551_v1 = vld [vmem:[#allocation7_spill] sm:$0xff] }
 0x53c   :  { %v4815_v54 = vmul.f32 %v4811_v48, %v4659_v44  ;;  %v4847_v26 = vmul.f32 %v4843_v59, %v4679_v28  ;;  %v4536_v0 = vmul.f32 %v4532_v41, %v4284_v9  ;;  %v4548_v46 = vmul.f32 2.5, %v6113_v27  ;;  %v9552_v48 = vld [vmem:[#allocation29_spill] sm:$0xff]  ;;  %v8908_v59 = vpop.f32.mrf.mxu2 }
 0x53d   :  { %v4560_v31 = vmul.f32 2.5, %v4556_v24  ;;  %v4724_v17 = vmul.f32 %v4720_v16, %v9550_v22  ;;  %v4839_v50 = vadd.f32 %v4835_v13, %v4827_v45  ;;  %v4728_v35 = vmul.f32 1.25, %v4528_v49 }
 0x53e   :  { %v4819_v63 = vadd.f32 %v4815_v54, %v4807_v42  ;;  %v4859_v25 = vadd.f32 %v4855_v34, %v4847_v26  ;;  %v4540_v11 = vadd.f32 %v4536_v0, %v4524_v2  ;;  %v4552_v61 = vmul.f32 %v4548_v46, %v4284_v9  ;;  %v8912_v34 = vpop.f32.mrf.mxu1 }
 0x53f   :  { %v4564_v33 = vmul.f32 %v4560_v31, %v4300_v14  ;;  %v4740_v7 = vmul.f32 1.25, %v8877_v6  ;;  %6136 = vmatmul.msk.f32.gmra.mxu1 %vm186_vm2, %v4839_v50  ;;  %v4748_v55 = vmul.f32 1.25, %v4556_v24  ;;  %v4900_v20 = vmul.f32 0.8333333, %v9549_v5 }
 0x540   :  { %6132 = vmatmul.msk.f32.gmra.mxu0 %vm186_vm2, %v4819_v63  ;;  %v4908_v30 = vmul.f32 0.8333333, %v4556_v24  ;;  %v4760_v3 = vmul.f32 1.25, %v6113_v27  ;;  %6140 = vmatmul.msk.f32.gmra.mxu2 %vm186_vm2, %v4859_v25  ;;  %v4732_v53 = vmul.f32 %v4728_v35, %v4540_v11  ;;  %v4880_v47 = vmul.f32 0.8333333, %v9551_v1  ;;  %v9555_v35 = vld [vmem:[#allocation34_spill] sm:$0xff] }
 0x541   :  { %v4568_v51 = vadd.f32 %v4564_v33, %v4552_v61  ;;  %v4744_v21 = vmul.f32 %v4740_v7, %v4540_v11  ;;  %v4888_v36 = vmul.f32 0.8333333, %v4528_v49  ;;  %vm4304_vm3 = vcmp.ge.f32.partialorder %v8795_v8, 2.2 }
 0x542   :  { %v6117_v52 = vadd.f32 -1.4, %v8795_v8  ;;  %v4736_v18 = vadd.f32 %v4732_v53, %v4724_v17  ;;  %v4884_v39 = vmul.f32 %v4880_v47, %v9552_v48  ;;  %v6077_v19 = vsel %vm4304_vm3, 1.0, %v9546_v38  ;;  %v9554_v17 = vld [vmem:[#allocation27_spill] sm:$0xff]  ;;  %v9557_v48 = vld [vmem:[#allocation36_spill] sm:$0xff] }
 0x543   :  { %v4752_v37 = vmul.f32 %v4748_v55, %v4568_v51  ;;  %v4316_v56 = vsub.f32 %v8884_v43, %v6077_v19  ;;  %v4584_v58 = vsub.f32 2.2, %v8795_v8  ;;  %v4764_v10 = vmul.f32 %v4760_v3, %v4568_v51 }
 0x544   :  { %v4576_v42 = vmul.f32 2.5, %v6117_v52  ;;  %v4904_v9 = vmul.f32 %v4900_v20, %v4736_v18  ;;  %v4892_v62 = vmul.f32 %v4888_v36, %v4736_v18  ;;  %v4920_v49 = vmul.f32 0.8333333, %v8877_v6  ;;  %v9553_v6 = vld [vmem:[#allocation24_spill] sm:$0xff]  ;;  %v9556_v20 = vld [vmem:[#allocation22_spill] sm:$0xff]  ;;  %v8931_v51 = vpop.f32.mrf.mxu2  ;;  %v8936_v52 = vpop.f32.mrf.mxu0 }
 0x545   :  { %v4756_v15 = vadd.f32 %v4752_v37, %v4744_v21  ;;  %v4588_v28 = vmul.f32 2.5, %v4584_v58  ;;  %v4768_v27 = vmul.f32 1.25, %v4584_v58  ;;  %v4928_v32 = vmul.f32 0.8333333, %v4584_v58 }
 0x546   :  { %v4580_v44 = vmul.f32 %v4576_v42, %v4300_v14  ;;  %v4896_v41 = vadd.f32 %v4892_v62, %v4884_v39  ;;  %vm4273_vm4 = vcmp.ge.f32.partialorder %v8818_v4, 1.4  ;;  %vm4289_vm5 = vcmp.ge.f32.partialorder %v8818_v4, 1.8  ;;  %v8934_v36 = vpop.f32.mrf.mxu1  ;;  %v9558_v62 = vld [vmem:[#allocation18_spill] sm:$0xff] }
 0x547   :  { %v4912_v2 = vmul.f32 %v4908_v30, %v4756_v15  ;;  %v4924_v43 = vmul.f32 %v4920_v49, %v4756_v15  ;;  %v4592_v8 = vmul.f32 %v4588_v28, %v4316_v56  ;;  %v6070_v24 = vsel %vm4273_vm4, 1.0, %v9546_v38 }
 0x548   :  { %v6110_v5 = vadd.f32 -0.6, %v8818_v4  ;;  %6145 = vmatmul.msk.f32.vlgmr.msra.gmra.mxu0 %vm186_vm2, %v4896_v41  ;;  %v4285_v14 = vsub.f32 %v9553_v6, %v6070_v24  ;;  %v6074_v45 = vsel %vm4289_vm5, 1.0, %v9546_v38  ;;  %v4529_v13 = vsub.f32 1.4, %v8818_v4 }
 0x549   :  { %v4916_v16 = vadd.f32 %v4912_v2, %v4904_v9  ;;  %v4596_v54 = vadd.f32 %v4592_v8, %v4580_v44  ;;  %v4301_v26 = vsub.f32 %v6070_v24, %v6074_v45  ;;  %v6114_v46 = vadd.f32 -1.0, %v8818_v4 }
 0x54a   :  { %v4521_v0 = vmul.f32 2.5, %v6110_v5  ;;  %v4533_v31 = vmul.f32 2.5, %v4529_v13  ;;  %v4557_v22 = vsub.f32 1.8, %v8818_v4  ;;  %v4721_v50 = vmul.f32 1.25, %v9554_v17 }
 0x54b   :  { %6149 = vmatmul.msk.f32.vlgmr.msra.gmra.mxu1 %vm186_vm2, %v4916_v16  ;;  %v4729_v63 = vmul.f32 1.25, %v4529_v13  ;;  %v4772_v25 = vmul.f32 %v4768_v27, %v4596_v54  ;;  %v4549_v61 = vmul.f32 2.5, %v6114_v46  ;;  %v4741_v33 = vmul.f32 1.25, %v6110_v5 }
 0x54c   :  { %v4525_v11 = vmul.f32 %v4521_v0, %v9555_v35  ;;  %v4537_v7 = vmul.f32 %v4533_v31, %v4285_v14  ;;  %v4561_v55 = vmul.f32 2.5, %v4557_v22  ;;  %v4725_v30 = vmul.f32 %v4721_v50, %v9556_v20 }
 0x54d   :  { %v4749_v3 = vmul.f32 1.25, %v4557_v22  ;;  %v4776_v53 = vadd.f32 %v4772_v25, %v4764_v10  ;;  %v4553_v21 = vmul.f32 %v4549_v61, %v4285_v14  ;;  %v4901_v1 = vmul.f32 0.8333333, %v9554_v17  ;;  %v9559_v61 = vld [vmem:[#allocation21_spill] sm:$0xff] }
 0x54e   :  { %v4909_v47 = vmul.f32 0.8333333, %v4557_v22  ;;  %v4541_v18 = vadd.f32 %v4537_v7, %v4525_v11  ;;  %v4565_v37 = vmul.f32 %v4561_v55, %v4301_v26  ;;  %v4881_v39 = vmul.f32 0.8333333, %v9557_v48  ;;  %v8952_v25 = vpop.f32.mrf.mxu1 }
 0x54f   :  { %v4889_v19 = vmul.f32 0.8333333, %v4529_v13  ;;  %v4932_v56 = vmul.f32 %v4928_v32, %v4776_v53  ;;  %vm4305_vm6 = vcmp.ge.f32.partialorder %v8818_v4, 2.2  ;;  %v6118_v42 = vadd.f32 -1.4, %v8818_v4 }
 0x550   :  { %v4585_v58 = vsub.f32 2.2, %v8818_v4  ;;  %v4569_v10 = vadd.f32 %v4565_v37, %v4553_v21  ;;  %v4733_v15 = vmul.f32 %v4729_v63, %v4541_v18  ;;  %v4745_v9 = vmul.f32 %v4741_v33, %v4541_v18  ;;  %v8946_v63 = vpop.f32.mrf.mxu2  ;;  %v9561_v37 = vld [vmem:[#allocation16_spill] sm:$0xff] }
 0x551   :  { %v4885_v49 = vmul.f32 %v4881_v39, %v9558_v62  ;;  %v4936_v44 = vadd.f32 %v4932_v56, %v4924_v43  ;;  %v6078_v28 = vsel %vm4305_vm6, 1.0, %v9546_v38  ;;  %v4577_v27 = vmul.f32 2.5, %v6118_v42 }
 0x552   :  { %v4589_v2 = vmul.f32 2.5, %v4585_v58  ;;  %v4737_v41 = vadd.f32 %v4733_v15, %v4725_v30  ;;  %v4753_v8 = vmul.f32 %v4749_v3, %v4569_v10  ;;  %v4317_v24 = vsub.f32 %v6074_v45, %v6078_v28  ;;  %v9562_v15 = vld [vmem:[#allocation32_spill] sm:$0xff] }
 0x553   :  { %v4761_v32 = vmul.f32 1.25, %v6114_v46  ;;  %6153 = vmatmul.msk.f32.vlgmr.msrb.gmra.mxu2 %vm186_vm2, %v4936_v44  ;;  %v4581_v16 = vmul.f32 %v4577_v27, %v4301_v26  ;;  %v4769_v6 = vmul.f32 1.25, %v4585_v58  ;;  %v4921_v0 = vmul.f32 0.8333333, %v6110_v5  ;;  %v8954_v5 = vpop.f32.mrf.mxu0  ;;  %v9563_v27 = vld [vmem:[#allocation23_spill] sm:$0xff] }
 0x554   :  { %v4757_v14 = vadd.f32 %v4753_v8, %v4745_v9  ;;  %v4905_v4 = vmul.f32 %v4901_v1, %v4737_v41  ;;  %v4893_v13 = vmul.f32 %v4889_v19, %v4737_v41  ;;  %v4593_v54 = vmul.f32 %v4589_v2, %v4317_v24 }
 0x555   :  { %v4929_v31 = vmul.f32 0.8333333, %v4585_v58  ;;  %vm4274_vm7 = vcmp.ge.f32.partialorder %v8838_v12, 1.4  ;;  %v4765_v50 = vmul.f32 %v4761_v32, %v4569_v10  ;;  %vm4290_vm8 = vcmp.ge.f32.partialorder %v8838_v12, 1.8 }
 0x556   :  { %v4913_v43 = vmul.f32 %v4909_v47, %v4757_v14  ;;  %v4897_v22 = vadd.f32 %v4893_v13, %v4885_v49  ;;  %v4597_v17 = vadd.f32 %v4593_v54, %v4581_v16  ;;  %v6071_v45 = vsel %vm4274_vm7, 1.0, %v9546_v38  ;;  %v9560_v47 = vld [vmem:[#allocation28_spill] sm:$0xff] }
 0x557   :  { %v6111_v26 = vadd.f32 -0.6, %v8838_v12  ;;  %v6115_v46 = vadd.f32 -1.0, %v8838_v12  ;;  %v4286_v33 = vsub.f32 %v9559_v61, %v6071_v45  ;;  %v6075_v7 = vsel %vm4290_vm8, 1.0, %v9546_v38 }
 0x558   :  { %v4917_v35 = vadd.f32 %v4913_v43, %v4905_v4  ;;  %6146 = vmatmul.msk.f32.gmra.mxu0 %vm186_vm2, %v4897_v22  ;;  %v4773_v11 = vmul.f32 %v4769_v6, %v4597_v17  ;;  %v4925_v55 = vmul.f32 %v4921_v0, %v4757_v14  ;;  %v4530_v30 = vsub.f32 1.4, %v8838_v12  ;;  %v8972_v13 = vpop.f32.mrf.mxu2  ;;  %v8974_v22 = vpop.f32.mrf.mxu1 }
 0x559   :  { %v4522_v20 = vmul.f32 2.5, %v6111_v26  ;;  %v4550_v3 = vmul.f32 2.5, %v6115_v46  ;;  %v4302_v21 = vsub.f32 %v6071_v45, %v6075_v7  ;;  %v4558_v1 = vsub.f32 1.8, %v8838_v12 }
 0x55a   :  { %6150 = vmatmul.msk.f32.gmra.mxu1 %vm186_vm2, %v4917_v35  ;;  %v4777_v53 = vadd.f32 %v4773_v11, %v4765_v50  ;;  %v4722_v18 = vmul.f32 1.25, %v9560_v47  ;;  %v4534_v39 = vmul.f32 2.5, %v4530_v30  ;;  %v4742_v58 = vmul.f32 1.25, %v6111_v26  ;;  %v9564_v35 = vld [vmem:[#allocation8_spill] sm:$0xff] }
 0x55b   :  { %v4526_v48 = vmul.f32 %v4522_v20, %v9561_v37  ;;  %v4554_v56 = vmul.f32 %v4550_v3, %v4286_v33  ;;  %v4562_v42 = vmul.f32 2.5, %v4558_v1  ;;  %v4730_v62 = vmul.f32 1.25, %v4530_v30  ;;  %v8976_v17 = vpop.f32.mrf.mxu0 }
 0x55c   :  { %v4933_v19 = vmul.f32 %v4929_v31, %v4777_v53  ;;  %v4538_v10 = vmul.f32 %v4534_v39, %v4286_v33  ;;  %v4726_v9 = vmul.f32 %v4722_v18, %v9562_v15  ;;  %v4750_v49 = vmul.f32 1.25, %v4558_v1 }
 0x55d   :  { %v4566_v28 = vmul.f32 %v4562_v42, %v4302_v21  ;;  %v4882_v2 = vmul.f32 0.8333333, %v9563_v27  ;;  %vm4306_vm9 = vcmp.ge.f32.partialorder %v8838_v12, 2.2  ;;  %v4902_v8 = vmul.f32 0.8333333, %v9560_v47 }
 0x55e   :  { %v4937_v44 = vadd.f32 %v4933_v19, %v4925_v55  ;;  %v4542_v41 = vadd.f32 %v4538_v10, %v4526_v48  ;;  %v6079_v24 = vsel %vm4306_vm9, 1.0, %v9546_v38  ;;  %v6119_v32 = vadd.f32 -1.4, %v8838_v12  ;;  %v9565_v48 = vld [vmem:[#allocation9_spill] sm:$0xff] }
 0x55f   :  { %v4570_v16 = vadd.f32 %v4566_v28, %v4554_v56  ;;  %v4318_v6 = vsub.f32 %v6075_v7, %v6079_v24  ;;  %v4586_v14 = vsub.f32 2.2, %v8838_v12  ;;  %v4762_v4 = vmul.f32 1.25, %v6115_v46  ;;  %v9566_v28 = vld [vmem:[#allocation17_spill] sm:$0xff] }
 0x560   :  { %6154 = vmatmul.msk.f32.gmra.mxu2 %vm186_vm2, %v4937_v44  ;;  %v4734_v54 = vmul.f32 %v4730_v62, %v4542_v41  ;;  %v4746_v0 = vmul.f32 %v4742_v58, %v4542_v41  ;;  %v4890_v31 = vmul.f32 0.8333333, %v4530_v30  ;;  %v4578_v43 = vmul.f32 2.5, %v6119_v32 }
 0x561   :  { %v4754_v50 = vmul.f32 %v4750_v49, %v4570_v16  ;;  %v4910_v45 = vmul.f32 0.8333333, %v4558_v1  ;;  %v4886_v11 = vmul.f32 %v4882_v2, %v9564_v35  ;;  %v4590_v61 = vmul.f32 2.5, %v4586_v14  ;;  %v8998_v2 = vpop.f32.mrf.mxu1 }
 0x562   :  { %v4738_v33 = vadd.f32 %v4734_v54, %v4726_v9  ;;  %v4582_v7 = vmul.f32 %v4578_v43, %v4302_v21  ;;  %v4766_v55 = vmul.f32 %v4762_v4, %v4570_v16  ;;  %v4922_v12 = vmul.f32 0.8333333, %v6111_v26  ;;  %v8992_v9 = vpop.f32.mrf.mxu2 }
 0x563   :  { %v4758_v46 = vadd.f32 %v4754_v50, %v4746_v0  ;;  %v4594_v20 = vmul.f32 %v4590_v61, %v4318_v6  ;;  %v4770_v3 = vmul.f32 1.25, %v4586_v14  ;;  %vm4275_vm10 = vcmp.ge.f32.partialorder %v8722_v23, 1.4  ;;  %v9000_v41 = vpop.f32.mrf.mxu0  ;;  %v9568_v61 = vld [vmem:[#allocation10_spill] sm:$0xff] }
 0x564   :  { %v4906_v30 = vmul.f32 %v4902_v8, %v4738_v33  ;;  %v4894_v53 = vmul.f32 %v4890_v31, %v4738_v33  ;;  %v6072_v47 = vsel %vm4275_vm10, 1.0, %v9546_v38  ;;  %vm4291_vm11 = vcmp.ge.f32.partialorder %v8722_v23, 1.8  ;;  %v5388_v8 = vld [vmem:[%s9161_s4 + $0x18] sm:$0xff] }
 0x565   :  { %v4914_v18 = vmul.f32 %v4910_v45, %v4758_v46  ;;  %v4598_v1 = vadd.f32 %v4594_v20, %v4582_v7  ;;  %v4930_v37 = vmul.f32 0.8333333, %v4586_v14  ;;  %v4287_v39 = vsub.f32 %v9565_v48, %v6072_v47  ;;  %5425 = vmatpush.msrb.mxu3 %v5388_v8  ;;  %v9567_v14 = vld [vmem:[#allocation31_spill] sm:$0xff] }
 0x566   :  { %v4898_v19 = vadd.f32 %v4894_v53, %v4886_v11  ;;  %v8984_v21 = vsel %vm4291_vm11, 1.0, %v9546_v38  ;;  %v8987_v26 = vadd.f32 -0.6, %v8722_v23  ;;  %v4531_v56 = vsub.f32 1.4, %v8722_v23 }
 0x567   :  { %v4918_v42 = vadd.f32 %v4914_v18, %v4906_v30  ;;  %v4774_v58 = vmul.f32 %v4770_v3, %v4598_v1  ;;  %v4303_v10 = vsub.f32 %v6072_v47, %v8984_v21  ;;  %v6116_v15 = vadd.f32 -1.0, %v8722_v23  ;;  %v5387_v47 = vld [vmem:[%s9161_s4 + $0x10] sm:$0xff] }
 0x568   :  { %6147 = vmatmul.msk.f32.gmra.mxu0 %vm186_vm2, %v4898_v19  ;;  %v4523_v62 = vmul.f32 2.5, %v8987_v26  ;;  %v4535_v49 = vmul.f32 2.5, %v4531_v56  ;;  %v4559_v44 = vsub.f32 1.8, %v8722_v23  ;;  %v4723_v27 = vmul.f32 1.25, %v9566_v28  ;;  %5426 = vmatpush.msrb.mxu3 %v5387_v47 }
 0x569   :  { %6151 = vmatmul.msk.f32.gmra.mxu1 %vm186_vm2, %v4918_v42  ;;  %v4778_v24 = vadd.f32 %v4774_v58, %v4766_v55  ;;  %v4926_v32 = vmul.f32 %v4922_v12, %v4758_v46  ;;  %v4551_v16 = vmul.f32 2.5, %v6116_v15  ;;  %v4731_v6 = vmul.f32 1.25, %v4531_v56  ;;  %v6265_v12 = vld [vmem:[#allocation2 + $0x38] sm:$0xff] }
 0x56a   :  { %v4527_v4 = vmul.f32 %v4523_v62, %v9567_v14  ;;  %v4539_v23 = vmul.f32 %v4535_v49, %v4287_v39  ;;  %v4563_v54 = vmul.f32 2.5, %v4559_v44  ;;  %v4743_v0 = vmul.f32 1.25, %v8987_v26  ;;  %v3894_v49 = vpop.f32.mrf.mxu1 }
 0x56b   :  { %v4934_v31 = vmul.f32 %v4930_v37, %v4778_v24  ;;  %v4555_v43 = vmul.f32 %v4551_v16, %v4287_v39  ;;  %v4727_v50 = vmul.f32 %v4723_v27, %v8799_v40  ;;  %v4751_v11 = vmul.f32 1.25, %v4559_v44  ;;  %v5386_v40 = vld [vmem:[%s9161_s4 + $0x8] sm:$0xff]  ;;  %v3941_v39 = vpop.f32.mrf.mxu2  ;;  %v5385_v27 = vld [vmem:[%s9161_s4] sm:$0xff] }
 0x56c   :  { %v4543_v45 = vadd.f32 %v4539_v23, %v4527_v4  ;;  %v4567_v35 = vmul.f32 %v4563_v54, %v4303_v10  ;;  %v4883_v33 = vmul.f32 0.8333333, %v9568_v61  ;;  %v4903_v55 = vmul.f32 0.8333333, %v9566_v28  ;;  %v3844_v28 = vpop.f32.mrf.mxu0  ;;  %5427 = vmatpush.msrb.mxu3 %v5386_v40 }
 0x56d   :  { %v4938_v7 = vadd.f32 %v4934_v31, %v4926_v32  ;;  %vm4307_vm12 = vcmp.ge.f32.partialorder %v6265_v12, 2.2  ;;  %v6120_v46 = vadd.f32 -1.4, %v6265_v12  ;;  %v4891_v53 = vmul.f32 0.8333333, %v4531_v56 }
 0x56e   :  { %v4571_v20 = vadd.f32 %v4567_v35, %v4555_v43  ;;  %v4735_v3 = vmul.f32 %v4731_v6, %v4543_v45  ;;  %v4747_v30 = vmul.f32 %v4743_v0, %v4543_v45  ;;  %v4911_v18 = vmul.f32 0.8333333, %v4559_v44  ;;  %v9569_v56 = vld [vmem:[#allocation13_spill] sm:$0xff]  ;;  %5428 = vmatpush.msrb.mxu3 %v5385_v27 }
 0x56f   :  { %6155 = vmatmul.msk.f32.gmra.mxu2 %vm186_vm2, %v4938_v7  ;;  %v6080_v1 = vsel %vm4307_vm12, 1.0, %v9546_v38  ;;  %v4579_v37 = vmul.f32 2.5, %v6120_v46  ;;  %v4587_v48 = vsub.f32 2.2, %v6265_v12  ;;  %v4887_v58 = vmul.f32 %v4883_v33, %v9569_v56 }
 0x570   :  { %v4739_v19 = vadd.f32 %v4735_v3, %v4727_v50  ;;  %v4755_v42 = vmul.f32 %v4751_v11, %v4571_v20  ;;  %v4319_v62 = vsub.f32 %v8984_v21, %v6080_v1  ;;  %v3743_v44 = vadd.f32 %v8888_v57, %v8890_v60 }
 0x571   :  { %v4583_v38 = vmul.f32 %v4579_v37, %v4303_v10  ;;  %v4591_v8 = vmul.f32 2.5, %v4587_v48  ;;  %v4763_v24 = vmul.f32 1.25, %v6116_v15  ;;  %v4771_v21 = vmul.f32 1.25, %v4587_v48  ;;  %v3988_v10 = vpop.f32.mrf.mxu3 }
 0x572   :  { %v4759_v32 = vadd.f32 %v4755_v42, %v4747_v30  ;;  %v4907_v16 = vmul.f32 %v4903_v55, %v4739_v19  ;;  %v4895_v6 = vmul.f32 %v4891_v53, %v4739_v19  ;;  %v3800_v14 = vadd.f32 %v8908_v59, %v3743_v44  ;;  %v3897_v59 = vpop.f32.mrf.mxu1 }
 0x573   :  { %v4595_v4 = vmul.f32 %v4591_v8, %v4319_v62  ;;  %v4767_v31 = vmul.f32 %v4763_v24, %v4571_v20  ;;  %v4923_v43 = vmul.f32 0.8333333, %v8987_v26  ;;  %v4931_v50 = vmul.f32 0.8333333, %v4587_v48  ;;  %v3944_v45 = vpop.f32.mrf.mxu2 }
 0x574   :  { %v4915_v23 = vmul.f32 %v4911_v18, %v4759_v32  ;;  %v4899_v54 = vadd.f32 %v4895_v6, %v4887_v58  ;;  %v3850_v57 = vadd.f32 %v8976_v17, %v3800_v14  ;;  %v3847_v35 = vpop.f32.mrf.mxu0  ;;  %v3746_v11 = vadd.f32 %v8912_v34, %v8914_v29 }
 0x575   :  { %v4599_v0 = vadd.f32 %v4595_v4, %v4583_v38  ;;  %v4927_v33 = vmul.f32 %v4923_v43, %v4759_v32  ;;  %v3749_v34 = vadd.f32 %v8934_v36, %v8936_v52  ;;  %v3752_v19 = vadd.f32 %v8952_v25, %v8954_v5 }
 0x576   :  { %v4919_v60 = vadd.f32 %v4915_v23, %v4907_v16  ;;  %6148 = vmatmul.msk.f32.gmra.mxu0 %vm186_vm2, %v4899_v54  ;;  %v3900_v26 = vadd.f32 %v8974_v22, %v3850_v57  ;;  %v3801_v17 = vadd.f32 %v8931_v51, %v3746_v11 }
 0x577   :  { %v4775_v15 = vmul.f32 %v4771_v21, %v4599_v0  ;;  %v3802_v51 = vadd.f32 %v8946_v63, %v3749_v34  ;;  %v3803_v52 = vadd.f32 %v8972_v13, %v3752_v19 }
 0x578   :  { %6152 = vmatmul.msk.f32.gmra.mxu1 %vm186_vm2, %v4919_v60  ;;  %v3950_v55 = vadd.f32 %v8992_v9, %v3900_v26  ;;  %v3851_v46 = vadd.f32 %v9000_v41, %v3801_v17 }
 0x579   :  { %v4779_v61 = vadd.f32 %v4775_v15, %v4767_v31  ;;  %v3991_v47 = vpop.f32.mrf.mxu3  ;;  %v3852_v18 = vadd.f32 %v3844_v28, %v3802_v51 }
 0x57a   :  { %v4000_v3 = vadd.f32 %v3988_v10, %v3950_v55  ;;  %v4088_v30 = vpop.f32.mrf.mxu1  ;;  %v3901_v29 = vadd.f32 %v8998_v2, %v3851_v46 }
 0x57b   :  { %v4935_v7 = vmul.f32 %v4931_v50, %v4779_v61  ;;  %v3947_v20 = vpop.f32.mrf.mxu2  ;;  %v3902_v42 = vadd.f32 %v3894_v49, %v3852_v18 }
 0x57c   :  { %v4038_v53 = vpop.f32.mrf.mxu0  ;;  %v3951_v40 = vadd.f32 %v3941_v39, %v3901_v29  ;;  %v3853_v39 = vadd.f32 %v3847_v35, %v3803_v52 }
 0x57d   :  { %v4939_v12 = vadd.f32 %v4935_v7, %v4927_v33  ;;  %v4050_v22 = vadd.f32 %v4038_v53, %v4000_v3  ;;  %v3952_v2 = vadd.f32 %v3944_v45, %v3902_v42 }
 0x57e   :  { %v4001_v1 = vadd.f32 %v3991_v47, %v3951_v40  ;;  %v3903_v38 = vadd.f32 %v3897_v59, %v3853_v39 }
 0x57f   :  { %6156 = vmatmul.msk.f32.gmra.mxu2 %vm186_vm2, %v4939_v12  ;;  %v4100_v9 = vadd.f32 %v4088_v30, %v4050_v22 }
 0x580   :  { %v3953_v25 = vadd.f32 %v3947_v20, %v3903_v38 }
 0x581   :  { %4104 = vst.msk [vmem:[#allocation3] sm:$0xff] %vm186_vm2, %v4100_v9  ;;  %v3994_v58 = vpop.f32.mrf.mxu3 }
 0x582   :  { %v4091_v37 = vpop.f32.mrf.mxu1  ;;  %v4002_v28 = vadd.f32 %v3994_v58, %v3952_v2 }
 0x583   :  { %v4977_v41 = vpop.f32.mrf.mxu2 }
 0x584   :  { %v4041_v48 = vpop.f32.mrf.mxu0 }
 0x585   :  { %v4051_v36 = vadd.f32 %v4041_v48, %v4001_v1 }
 0x587   :  { %v4101_v56 = vadd.f32 %v4091_v37, %v4051_v36 }
 0x588   :  { %v5377_v63 = vld [vmem:[#allocation3] sm:$0xff] }
 0x589   :  { %4105 = vst.msk [vmem:[#allocation3 + $0x8] sm:$0xff] %vm186_vm2, %v4101_v56  ;;  %6157 = vmatmul.msk.f32.vlgmr.msrb.gmra.mxu3 %vm186_vm2, %v5377_v63  ;;  %v3997_v13 = vpop.f32.mrf.mxu3 }
 0x58a   :  { %v4094_v27 = vpop.f32.mrf.mxu1  ;;  %v4003_v24 = vadd.f32 %v3997_v13, %v3953_v25 }
 0x58b   :  { %v4980_v62 = vpop.f32.mrf.mxu2 }
 0x58c   :  { %v4044_v44 = vpop.f32.mrf.mxu0 }
 0x58d   :  { %v4052_v8 = vadd.f32 %v4044_v44, %v4002_v28 }
 0x58f   :  { %v4102_v5 = vadd.f32 %v4094_v27, %v4052_v8 }
 0x590   :  { %v5378_v49 = vld [vmem:[#allocation3 + $0x8] sm:$0xff] }
 0x591   :  { %4106 = vst.msk [vmem:[#allocation3 + $0x10] sm:$0xff] %vm186_vm2, %v4102_v5  ;;  %6158 = vmatmul.msk.f32.gmra.mxu3 %vm186_vm2, %v5378_v49  ;;  %v5018_v0 = vpop.f32.mrf.mxu3 }
 0x592   :  { %v4097_v14 = vpop.f32.mrf.mxu1  ;;  %v5019_v61 = vadd.f32 %v5018_v0, %v4977_v41 }
 0x593   :  { %v4983_v16 = vpop.f32.mrf.mxu2 }
 0x594   :  { %v4047_v32 = vpop.f32.mrf.mxu0 }
 0x595   :  { %v4053_v6 = vadd.f32 %v4047_v32, %v4003_v24 }
 0x597   :  { %v4103_v4 = vadd.f32 %v4097_v14, %v4053_v6 }
 0x598   :  { %v5379_v21 = vld [vmem:[#allocation3 + $0x10] sm:$0xff] }
 0x599   :  { %4107 = vst.msk [vmem:[#allocation3 + $0x18] sm:$0xff] %vm186_vm2, %v4103_v4  ;;  %6159 = vmatmul.msk.f32.gmra.mxu3 %vm186_vm2, %v5379_v21  ;;  %v5021_v60 = vpop.f32.mrf.mxu3 }
 0x59a   :  { %v5022_v53 = vadd.f32 %v5021_v60, %v4980_v62 }
 0x59b   :  { %v4986_v23 = vpop.f32.mrf.mxu2 }
 0x5a0   :  { %v5380_v54 = vld [vmem:[#allocation3 + $0x18] sm:$0xff] }
 0x5a1   :  { %6160 = vmatmul.msk.f32.gmra.mxu3 %vm186_vm2, %v5380_v54  ;;  %v5024_v45 = vpop.f32.mrf.mxu3 }
 0x5a2   :  { %v5025_v19 = vadd.f32 %v5024_v45, %v4983_v16 }
 0x5a4   :  { %v5063_v31 = vpop.f32.mrf.mxu0  ;;  %v5112_v43 = vpop.f32.mrf.mxu1 }
 0x5a5   :  { %v5075_v17 = vadd.f32 %v5063_v31, %v5019_v61  ;;  %v5454_v61 = vld [vmem:[%s9158_s1] sm:$0xff] }
 0x5a7   :  { %v5124_v7 = vadd.f32 %v5112_v43, %v5075_v17  ;;  %v5457_v17 = vld [vmem:[%s9158_s1 + $0x18] sm:$0xff] }
 0x5a9   :  { %v5027_v33 = vpop.f32.mrf.mxu3 }
 0x5aa   :  { %v5028_v8 = vadd.f32 %v5027_v33, %v4986_v23  ;;  %v5455_v33 = vld [vmem:[%s9158_s1 + $0x8] sm:$0xff] }
 0x5ab   :  { %v5161_v57 = vpop.f32.mrf.mxu2 }
 0x5ac   :  { %v5066_v10 = vpop.f32.mrf.mxu0  ;;  %v5115_v15 = vpop.f32.mrf.mxu1  ;;  %v5173_v12 = vadd.f32 %v5161_v57, %v5124_v7  ;;  %v5458_v7 = vld [vmem:[%s9158_s1 + $0x20] sm:$0xff] }
 0x5ad   :  { %v5076_v29 = vadd.f32 %v5066_v10, %v5022_v53 }
 0x5af   :  { %v5125_v51 = vadd.f32 %v5115_v15, %v5076_v29 }
 0x5b1   :  { %v5210_v20 = vpop.f32.mrf.mxu3 }
 0x5b2   :  { %v5222_v30 = vadd.f32 %v5210_v20, %v5173_v12  ;;  %v5460_v12 = vld [vmem:[%s9158_s1 + $0x30] sm:$0xff] }
 0x5b3   :  { %v5164_v50 = vpop.f32.mrf.mxu2 }
 0x5b4   :  { %v5069_v59 = vpop.f32.mrf.mxu0  ;;  %v5118_v35 = vpop.f32.mrf.mxu1  ;;  %v5174_v18 = vadd.f32 %v5164_v50, %v5125_v51 }
 0x5b5   :  { %v5077_v52 = vadd.f32 %v5069_v59, %v5025_v19 }
 0x5b7   :  { %v5126_v63 = vadd.f32 %v5118_v35, %v5077_v52 }
 0x5b9   :  { %v5213_v41 = vpop.f32.mrf.mxu3 }
 0x5ba   :  { %v5223_v37 = vadd.f32 %v5213_v41, %v5174_v18 }
 0x5bb   :  { %v5167_v11 = vpop.f32.mrf.mxu2 }
 0x5bc   :  { %v5121_v55 = vpop.f32.mrf.mxu1  ;;  %v5175_v39 = vadd.f32 %v5167_v11, %v5126_v63 }
 0x5bd   :  { %v5072_v26 = vpop.f32.mrf.mxu0 }
 0x5be   :  { %v5078_v5 = vadd.f32 %v5072_v26, %v5028_v8  ;;  %v5456_v26 = vld [vmem:[%s9158_s1 + $0x10] sm:$0xff] }
 0x5c0   :  { %v5127_v32 = vadd.f32 %v5121_v55, %v5078_v5  ;;  %v5459_v55 = vld [vmem:[%s9158_s1 + $0x28] sm:$0xff] }
 0x5c1   :  { %v5216_v62 = vpop.f32.mrf.mxu3 }
 0x5c2   :  { %v5224_v27 = vadd.f32 %v5216_v62, %v5175_v39 }
 0x5c3   :  { %v5170_v46 = vpop.f32.mrf.mxu2 }
 0x5c4   :  { %v5176_v16 = vadd.f32 %v5170_v46, %v5127_v32  ;;  %v5461_v46 = vld [vmem:[%s9158_s1 + $0x38] sm:$0xff] }
 0x5c5   :  { %v5259_v3 = vpop.f32.mrf.mxu0 }
 0x5c6   :  { %v5271_v34 = vadd.f32 %v5259_v3, %v5222_v30 }
 0x5c8   :  { %v5308_v22 = vpop.f32.mrf.mxu1 }
 0x5c9   :  { %v5320_v47 = vadd.f32 %v5308_v22, %v5271_v34  ;;  %v5219_v6 = vpop.f32.mrf.mxu3 }
 0x5ca   :  { %v5225_v4 = vadd.f32 %v5219_v6, %v5176_v16 }
 0x5d5   :  { %v5262_v1 = vpop.f32.mrf.mxu0 }
 0x5d6   :  { %v5357_v40 = vpop.f32.mrf.mxu2  ;;  %v5272_v48 = vadd.f32 %v5262_v1, %v5223_v37 }
 0x5d7   :  { %v5369_v9 = vadd.f32 %v5357_v40, %v5320_v47  ;;  %v5311_v36 = vpop.f32.mrf.mxu1 }
 0x5d8   :  { %v5321_v2 = vadd.f32 %v5311_v36, %v5272_v48 }
 0x5d9   :  { %5373 = vst.msk [vmem:[#allocation3 + $0x20] sm:$0xff] %vm186_vm2, %v5369_v9 }
 0x5e0   :  { %v5381_v42 = vld [vmem:[#allocation3 + $0x20] sm:$0xff] }
 0x5e1   :  { %6161 = vmatmul.msk.f32.gmra.mxu3 %vm186_vm2, %v5381_v42 }
 0x5e3   :  { %v5360_v56 = vpop.f32.mrf.mxu2 }
 0x5e4   :  { %v5370_v58 = vadd.f32 %v5360_v56, %v5321_v2 }
 0x5e5   :  { %v5265_v28 = vpop.f32.mrf.mxu0 }
 0x5e6   :  { %5374 = vst.msk [vmem:[#allocation3 + $0x28] sm:$0xff] %vm186_vm2, %v5370_v58  ;;  %v5273_v38 = vadd.f32 %v5265_v28, %v5224_v27  ;;  %v5314_v25 = vpop.f32.mrf.mxu1 }
 0x5e8   :  { %v5322_v49 = vadd.f32 %v5314_v25, %v5273_v38 }
 0x5ed   :  { %v5382_v44 = vld [vmem:[#allocation3 + $0x28] sm:$0xff] }
 0x5ee   :  { %6162 = vmatmul.msk.f32.gmra.mxu3 %vm186_vm2, %v5382_v44 }
 0x5f2   :  { %v5363_v13 = vpop.f32.mrf.mxu2 }
 0x5f3   :  { %v5371_v24 = vadd.f32 %v5363_v13, %v5322_v49  ;;  %v5268_v14 = vpop.f32.mrf.mxu0 }
 0x5f4   :  { %v5274_v54 = vadd.f32 %v5268_v14, %v5225_v4 }
 0x5f5   :  { %5375 = vst.msk [vmem:[#allocation3 + $0x30] sm:$0xff] %vm186_vm2, %v5371_v24  ;;  %v5317_v0 = vpop.f32.mrf.mxu1 }
 0x5f6   :  { %v5323_v31 = vadd.f32 %v5317_v0, %v5274_v54 }
 0x5fc   :  { %v5383_v21 = vld [vmem:[#allocation3 + $0x30] sm:$0xff] }
 0x5fd   :  { %6163 = vmatmul.msk.f32.gmra.mxu3 %vm186_vm2, %v5383_v21 }
 0x602   :  { %v5366_v43 = vpop.f32.mrf.mxu2 }
 0x603   :  { %v5372_v23 = vadd.f32 %v5366_v43, %v5323_v31 }
 0x605   :  { %5376 = vst.msk [vmem:[#allocation3 + $0x38] sm:$0xff] %vm186_vm2, %v5372_v23 }
 0x60c   :  { %v5384_v57 = vld [vmem:[#allocation3 + $0x38] sm:$0xff]  ;;  %v5430_v60 = vpop.f32.mrf.mxu3 }
 0x60d   :  { %6164 = vmatmul.msk.f32.gmra.mxu3 %vm186_vm2, %v5384_v57  ;;  %vm5527_vm2 = vcmask 31744  }
 0x614   :  { %v5433_v10 = vpop.f32.mrf.mxu3 }
 0x61c   :  { %v5436_v15 = vpop.f32.mrf.mxu3 }
 0x624   :  { %v5439_v50 = vpop.f32.mrf.mxu3 }
 0x664   :  { %v5442_v45 = vpop.f32.mrf.mxu3 }
 0x671   :  { %v5445_v59 = vpop.f32.mrf.mxu3 }
 0x680   :  { %v5448_v35 = vpop.f32.mrf.mxu3 }
 0x690   :  { %v5451_v11 = vpop.f32.mrf.mxu3 }
 0x691   :  { %5494 = vmatpush.msrb.mxu0 %v5451_v11 }
 0x693   :  { %5495 = vmatpush.msrb.mxu0 %v5448_v35 }
 0x695   :  { %5496 = vmatpush.msrb.mxu0 %v5445_v59 }
 0x697   :  { %5497 = vmatpush.msrb.mxu0 %v5442_v45 }
 0x699   :  { %5498 = vmatpush.msrb.mxu0 %v5439_v50 }
 0x69b   :  { %5499 = vmatpush.msrb.mxu0 %v5436_v15 }
 0x69d   :  { %5500 = vmatpush.msrb.mxu0 %v5433_v10 }
 0x69f   :  { %5501 = vmatpush.msrb.mxu0 %v5430_v60 }
 0x6a0   :  { %6165 = vmatmul.msk.f32.vlgmr.msrb.gmra.mxu0 %vm52_vm0, %v5454_v61 }
 0x6a8   :  { %6166 = vmatmul.msk.f32.gmra.mxu0 %vm52_vm0, %v5455_v33 }
 0x6b0   :  { %6167 = vmatmul.msk.f32.gmra.mxu0 %vm52_vm0, %v5456_v26 }
 0x6b8   :  { %6168 = vmatmul.msk.f32.gmra.mxu0 %vm52_vm0, %v5457_v17 }
 0x6c0   :  { %6169 = vmatmul.msk.f32.gmra.mxu0 %vm52_vm0, %v5458_v7 }
 0x6c8   :  { %6170 = vmatmul.msk.f32.gmra.mxu0 %vm52_vm0, %v5459_v55 }
 0x6d0   :  { %6171 = vmatmul.msk.f32.gmra.mxu0 %vm52_vm0, %v5460_v12 }
 0x6d8   :  { %6172 = vmatmul.msk.f32.gmra.mxu0 %vm52_vm0, %v5461_v46 }
 0x71d   :  { %v5503_v20 = vpop.f32.mrf.mxu0 }
 0x71e   :  { %v5528_v3 = vsel %vm5527_vm2, %v5503_v20, -inf }
 0x71f   :  { %5529 = vmax.xlane.f32.xlu0 %v5528_v3 }
 0x725   :  { %v5506_v30 = vpop.f32.mrf.mxu0 }
 0x726   :  { %v5531_v53 = vsel %vm5527_vm2, %v5506_v30, -inf }
 0x727   :  { %5532 = vmax.xlane.f32.xlu0 %v5531_v53 }
 0x72d   :  { %v5509_v34 = vpop.f32.mrf.mxu0 }
 0x72e   :  { %v5534_v29 = vsel %vm5527_vm2, %v5509_v34, -inf }
 0x72f   :  { %5535 = vmax.xlane.f32.xlu1 %v5534_v29 }
 0x735   :  { %v5512_v22 = vpop.f32.mrf.mxu0 }
 0x736   :  { %v5537_v47 = vsel %vm5527_vm2, %v5512_v22, -inf }
 0x737   :  { %5538 = vmax.xlane.f32.xlu1 %v5537_v47 }
 0x73d   :  { %v5515_v51 = vpop.f32.mrf.mxu0 }
 0x73e   :  { %v5540_v40 = vsel %vm5527_vm2, %v5515_v51, -inf }
 0x73f   :  { %5541 = vmax.xlane.f32.xlu2 %v5540_v40 }
 0x745   :  { %v5518_v9 = vpop.f32.mrf.mxu0 }
 0x746   :  { %v5543_v18 = vsel %vm5527_vm2, %v5518_v9, -inf }
 0x747   :  { %5544 = vmax.xlane.f32.xlu2 %v5543_v18 }
 0x74d   :  { %v5521_v41 = vpop.f32.mrf.mxu0 }
 0x74e   :  { %v5546_v1 = vsel %vm5527_vm2, %v5521_v41, -inf }
 0x74f   :  { %5547 = vmax.xlane.f32.xlu0 %v5546_v1 }
 0x755   :  { %v5524_v37 = vpop.f32.mrf.mxu0 }
 0x756   :  { %v5549_v48 = vsel %vm5527_vm2, %v5524_v37, -inf }
 0x757   :  { %5550 = vmax.xlane.f32.xlu1 %v5549_v48 }
 0x792   :  { %v5530_v19 = vpop.xlane.xlu0 %5529 }
 0x793   :  { %v9101_v42 = vsub.f32 %v5503_v20, %v5530_v19 }
 0x795   :  { %v5560_v36 = vmul.f32 1.442695, %v9101_v42 }
 0x797   :  { %6217 = vpow2.f32 %v5560_v36 }
 0x79a   :  { %v5533_v52 = vpop.xlane.xlu0 %5532 }
 0x79b   :  { %v9104_v2 = vsub.f32 %v5506_v30, %v5533_v52 }
 0x79d   :  { %v6218_v56 = vpop.eup %6217  ;;  %v5562_v58 = vmul.f32 1.442695, %v9104_v2 }
 0x79e   :  { %v5576_v63 = vsel %vm5527_vm2, %v6218_v56, 0.0 }
 0x79f   :  { %6219 = vpow2.f32 %v5562_v58  ;;  %5577 = vadd.xlane.f32.xlu2 %v5576_v63 }
 0x7a2   :  { %v5536_v39 = vpop.xlane.xlu1 %5535 }
 0x7a3   :  { %v9108_v62 = vsub.f32 %v5509_v34, %v5536_v39 }
 0x7a5   :  { %v6220_v28 = vpop.eup %6219  ;;  %v5564_v27 = vmul.f32 1.442695, %v9108_v62 }
 0x7a6   :  { %v5579_v44 = vsel %vm5527_vm2, %v6220_v28, 0.0 }
 0x7a7   :  { %6221 = vpow2.f32 %v5564_v27  ;;  %5580 = vadd.xlane.f32.xlu0 %v5579_v44 }
 0x7aa   :  { %v5539_v38 = vpop.xlane.xlu1 %5538 }
 0x7ab   :  { %v9112_v8 = vsub.f32 %v5512_v22, %v5539_v38 }
 0x7ad   :  { %v6222_v25 = vpop.eup %6221  ;;  %v5566_v5 = vmul.f32 1.442695, %v9112_v8 }
 0x7ae   :  { %v5582_v49 = vsel %vm5527_vm2, %v6222_v25, 0.0 }
 0x7af   :  { %6223 = vpow2.f32 %v5566_v5  ;;  %5583 = vadd.xlane.f32.xlu1 %v5582_v49 }
 0x7b2   :  { %v5542_v13 = vpop.xlane.xlu2 %5541 }
 0x7b3   :  { %v5556_v24 = vsub.f32 %v5515_v51, %v5542_v13 }
 0x7b5   :  { %v6224_v32 = vpop.eup %6223  ;;  %v5568_v16 = vmul.f32 1.442695, %v5556_v24 }
 0x7b6   :  { %v5585_v6 = vsel %vm5527_vm2, %v6224_v32, 0.0 }
 0x7b7   :  { %6225 = vpow2.f32 %v5568_v16  ;;  %5586 = vadd.xlane.f32.xlu2 %v5585_v6 }
 0x7ba   :  { %v5545_v14 = vpop.xlane.xlu2 %5544 }
 0x7bb   :  { %v5557_v4 = vsub.f32 %v5518_v9, %v5545_v14 }
 0x7bd   :  { %v6226_v21 = vpop.eup %6225  ;;  %v5570_v54 = vmul.f32 1.442695, %v5557_v4 }
 0x7be   :  { %v5588_v0 = vsel %vm5527_vm2, %v6226_v21, 0.0 }
 0x7bf   :  { %6227 = vpow2.f32 %v5570_v54  ;;  %5589 = vadd.xlane.f32.xlu0 %v5588_v0 }
 0x7c2   :  { %v5548_v31 = vpop.xlane.xlu0 %5547 }
 0x7c3   :  { %v5558_v43 = vsub.f32 %v5521_v41, %v5548_v31 }
 0x7c5   :  { %v6228_v23 = vpop.eup %6227  ;;  %v5572_v57 = vmul.f32 1.442695, %v5558_v43 }
 0x7c6   :  { %v5591_v60 = vsel %vm5527_vm2, %v6228_v23, 0.0 }
 0x7c7   :  { %6229 = vpow2.f32 %v5572_v57  ;;  %5592 = vadd.xlane.f32.xlu1 %v5591_v60 }
 0x7ca   :  { %v5551_v10 = vpop.xlane.xlu1 %5550 }
 0x7cb   :  { %v5559_v15 = vsub.f32 %v5524_v37, %v5551_v10 }
 0x7cd   :  { %v6230_v50 = vpop.eup %6229  ;;  %v5574_v45 = vmul.f32 1.442695, %v5559_v15 }
 0x7ce   :  { %v5594_v59 = vsel %vm5527_vm2, %v6230_v50, 0.0 }
 0x7cf   :  { %6231 = vpow2.f32 %v5574_v45  ;;  %5595 = vadd.xlane.f32.xlu2 %v5594_v59 }
 0x7d5   :  { %v6232_v35 = vpop.eup %6231 }
 0x7d6   :  { %v5597_v11 = vsel %vm5527_vm2, %v6232_v35, 0.0 }
 0x7d7   :  { %5598 = vadd.xlane.f32.xlu0 %v5597_v11 }
 0x812   :  { %v5578_v61 = vpop.xlane.xlu2 %5577 }
 0x813   :  { %6233 = vlog2.f32 %v5578_v61 }
 0x819   :  { %v6234_v33 = vpop.eup %6233 }
 0x81a   :  { %v5601_v26 = vmul.f32 0.6931472, %v6234_v33  ;;  %v5581_v17 = vpop.xlane.xlu0 %5580 }
 0x81b   :  { %6235 = vlog2.f32 %v5581_v17 }
 0x81c   :  { %v5616_v7 = vsub.f32 %v9101_v42, %v5601_v26 }
 0x81e   :  { %5624 = vst.msk [vmem:[%s9162_s5] sm:$0xff] %vm5527_vm2, %v5616_v7 }
 0x821   :  { %v6236_v55 = vpop.eup %6235 }
 0x822   :  { %v5603_v12 = vmul.f32 0.6931472, %v6236_v55  ;;  %v5584_v46 = vpop.xlane.xlu1 %5583 }
 0x823   :  { %6237 = vlog2.f32 %v5584_v46 }
 0x824   :  { %v5617_v20 = vsub.f32 %v9104_v2, %v5603_v12 }
 0x826   :  { %5625 = vst.msk [vmem:[%s9162_s5 + $0x8] sm:$0xff] %vm5527_vm2, %v5617_v20 }
 0x829   :  { %v6238_v3 = vpop.eup %6237 }
 0x82a   :  { %v5605_v30 = vmul.f32 0.6931472, %v6238_v3  ;;  %v5587_v53 = vpop.xlane.xlu2 %5586 }
 0x82b   :  { %6239 = vlog2.f32 %v5587_v53 }
 0x82c   :  { %v5618_v34 = vsub.f32 %v9108_v62, %v5605_v30 }
 0x82e   :  { %5626 = vst.msk [vmem:[%s9162_s5 + $0x10] sm:$0xff] %vm5527_vm2, %v5618_v34 }
 0x831   :  { %v6240_v29 = vpop.eup %6239 }
 0x832   :  { %v5607_v22 = vmul.f32 0.6931472, %v6240_v29  ;;  %v5590_v47 = vpop.xlane.xlu0 %5589 }
 0x833   :  { %6241 = vlog2.f32 %v5590_v47 }
 0x834   :  { %v5619_v51 = vsub.f32 %v9112_v8, %v5607_v22 }
 0x836   :  { %5627 = vst.msk [vmem:[%s9162_s5 + $0x18] sm:$0xff] %vm5527_vm2, %v5619_v51 }
 0x839   :  { %v6242_v40 = vpop.eup %6241 }
 0x83a   :  { %v5609_v9 = vmul.f32 0.6931472, %v6242_v40  ;;  %v5593_v18 = vpop.xlane.xlu1 %5592 }
 0x83b   :  { %6243 = vlog2.f32 %v5593_v18 }
 0x83c   :  { %v5620_v41 = vsub.f32 %v5556_v24, %v5609_v9 }
 0x83e   :  { %5628 = vst.msk [vmem:[%s9162_s5 + $0x20] sm:$0xff] %vm5527_vm2, %v5620_v41 }
 0x841   :  { %v6244_v1 = vpop.eup %6243 }
 0x842   :  { %v5611_v37 = vmul.f32 0.6931472, %v6244_v1  ;;  %v5596_v48 = vpop.xlane.xlu2 %5595 }
 0x843   :  { %6245 = vlog2.f32 %v5596_v48 }
 0x844   :  { %v5621_v19 = vsub.f32 %v5557_v4, %v5611_v37 }
 0x846   :  { %5629 = vst.msk [vmem:[%s9162_s5 + $0x28] sm:$0xff] %vm5527_vm2, %v5621_v19 }
 0x849   :  { %v6246_v42 = vpop.eup %6245 }
 0x84a   :  { %v5613_v36 = vmul.f32 0.6931472, %v6246_v42  ;;  %v5599_v52 = vpop.xlane.xlu0 %5598 }
 0x84b   :  { %6247 = vlog2.f32 %v5599_v52 }
 0x84c   :  { %v5622_v2 = vsub.f32 %v5558_v43, %v5613_v36 }
 0x84e   :  { %5630 = vst.msk [vmem:[%s9162_s5 + $0x30] sm:$0xff] %vm5527_vm2, %v5622_v2 }
 0x851   :  { %v6248_v56 = vpop.eup %6247 }
 0x852   :  { %v5615_v58 = vmul.f32 0.6931472, %v6248_v56 }
 0x854   :  { %v5623_v63 = vsub.f32 %v5559_v15, %v5615_v58 }
 0x856   :  { %5631 = vst.msk [vmem:[%s9162_s5 + $0x38] sm:$0xff] %vm5527_vm2, %v5623_v63 }
 0x857   :  { %5636 = vsyncpa [#allocation5], 1 }

</bundles_post_ra>
